<compile_context>
chip_gen: v5e
topology: v5e:2x2
jax: 0.10.0
libtpu: 0.0.40
codegen_flags: <defaults>
</compile_context>

<pallas_src>
import jax
import jax.numpy as jnp
from jax.experimental import pallas as pl
from jax.experimental.pallas import tpu as pltpu

# ---- module hyper-parameters (from ffnn_train_model.py) ----
P = 3
S = 3
INPUT_SIZE = (P + 1 + S) * 300          # 2100
INPUT_PAD = 2176                        # 17 * 128 : lane-aligned K for fc1
H1, H2, H3, H4 = 512, 1024, 512, 256
NUM_CLASSES = 13                        # len(tag_map)
NC_PAD = 128                            # pad classes to a lane-dense width

MAX_BATCH_TILE = 512                    # amortizes per-grid-step overhead on v5e/v6e

_MATMUL_MACS = (INPUT_PAD * H1 + H1 * H2 + H2 * H3 + H3 * H4 + H4 * NC_PAD)
_WEIGHT_BYTES = 2 * _MATMUL_MACS + 4 * (H1 + H2 + H3 + H4 + NC_PAD)


def _round_up(v, m):
    return ((v + m - 1) // m) * m


def _choose_tile(batch):
    """Balanced batch tile: minimize pad rows, and split >=2 ways when B >= 32
    so the 'parallel' grid axis spans both v7x TensorCores."""
    n_tiles = max(1, pl.cdiv(batch, MAX_BATCH_TILE))
    if batch >= 32:
        n_tiles = max(n_tiles, 2)
    return _round_up(pl.cdiv(batch, n_tiles), 16)


def mlp_kernel(x_ref,
               w1_ref, b1_ref,
               w2_ref, b2_ref,
               w3_ref, b3_ref,
               w4_ref, b4_ref,
               w5_ref, b5_ref,
               o_ref):
    """5-layer MLP for one batch tile; bf16 operands, f32 accumulation."""
    h = x_ref[...].astype(jnp.bfloat16)                         # f32 tile -> bf16 on-chip
    for w_ref, b_ref in ((w1_ref, b1_ref), (w2_ref, b2_ref),
                         (w3_ref, b3_ref), (w4_ref, b4_ref)):
        z = jnp.dot(h, w_ref[...], preferred_element_type=jnp.float32) + b_ref[...]
        h = jnp.maximum(z, 0.0).astype(jnp.bfloat16)
    out = jnp.dot(h, w5_ref[...], preferred_element_type=jnp.float32) + b5_ref[...]
    o_ref[...] = out.astype(o_ref.dtype)                        # f32 (tile, 128)


@jax.jit
def neural_net_forward(x, kernel_params):
    """x: (B, INPUT_SIZE) float32.  Returns logits (B, NUM_CLASSES) float32."""
    (w1, b1, w2, b2, w3, b3, w4, b4, w5, b5) = kernel_params
    B, F = x.shape

    tile = _choose_tile(B)
    Bp = _round_up(B, tile)
    n_tiles = Bp // tile

    # f32 zero-pad only (no bf16 round trip); allow_input_fusion lets XLA fuse
    # this pad into the pallas_call operand stream.
    xp = jnp.pad(x, ((0, Bp - B), (0, INPUT_PAD - F)))

    def resident(arr):
        # whole-array block, same block every grid step (weights stay in VMEM;
        # the constant index map means the DMA runs once).
        return pl.BlockSpec(arr.shape, lambda i: (0,) * arr.ndim)

    grid_spec = pltpu.PrefetchScalarGridSpec(
        num_scalar_prefetch=0,
        grid=(n_tiles,),
        in_specs=[
            pl.BlockSpec((tile, INPUT_PAD), lambda i: (i, 0)),
            resident(w1), resident(b1),
            resident(w2), resident(b2),
            resident(w3), resident(b3),
            resident(w4), resident(b4),
            resident(w5), resident(b5),
        ],
        out_specs=pl.BlockSpec((tile, NC_PAD), lambda i: (i, 0)),
    )

    cost = pl.CostEstimate(
        flops=2 * Bp * _MATMUL_MACS,
        transcendentals=0,
        bytes_accessed=Bp * INPUT_PAD * 4 + _WEIGHT_BYTES + Bp * NC_PAD * 4,
    )

    out_padded = pl.pallas_call(
        mlp_kernel,
        out_shape=jax.ShapeDtypeStruct((Bp, NC_PAD), jnp.float32),
        grid_spec=grid_spec,
        compiler_params=pltpu.CompilerParams(
            dimension_semantics=("parallel",),
            vmem_limit_bytes=32 * 1024 * 1024,
            allow_input_fusion=[True] + [False] * 10,   # fuse the pad of xp
        ),
        cost_estimate=cost,
    )(xp, w1, b1, w2, b2, w3, b3, w4, b4, w5, b5)

    return out_padded[:B, :NUM_CLASSES]


# ------------------------- parameter construction -------------------------

def init_params(key):
    """Deterministic PyTorch-Linear-style init (uniform(-1/sqrt(fan_in), +)).
    Weights are stored as (in_features, out_features), float32, true shapes."""
    dims = [(INPUT_SIZE, H1), (H1, H2), (H2, H3), (H3, H4), (H4, NUM_CLASSES)]
    params = []
    for fan_in, fan_out in dims:
        key, kw, kb = jax.random.split(key, 3)
        bound = 1.0 / jnp.sqrt(fan_in)
        w = jax.random.uniform(kw, (fan_in, fan_out), jnp.float32, -bound, bound)
        b = jax.random.uniform(kb, (1, fan_out), jnp.float32, -bound, bound)
        params.extend([w, b])
    return tuple(params)


def prepare_params(params):
    """Pad (K: 2100->2176 for w1, classes: 13->128 for fc5) and cast weights
    to bf16 (biases stay f32, added after the f32 accumulation)."""
    (w1, b1, w2, b2, w3, b3, w4, b4, w5, b5) = params
    w1p = jnp.zeros((INPUT_PAD, H1), jnp.float32).at[:INPUT_SIZE, :].set(w1)
    w5p = jnp.zeros((H4, NC_PAD), jnp.float32).at[:, :NUM_CLASSES].set(w5)
    b5p = jnp.zeros((1, NC_PAD), jnp.float32).at[:, :NUM_CLASSES].set(b5)
    prepared = []
    for w, b in ((w1p, b1), (w2, b2), (w3, b3), (w4, b4), (w5p, b5p)):
        prepared.extend([w.astype(jnp.bfloat16), b.astype(jnp.float32)])
    return tuple(prepared)


# ------------------------------ references --------------------------------

def reference_forward_f32(x, params):
    """Pure f32 reference with the original (unpadded) parameters."""
    (w1, b1, w2, b2, w3, b3, w4, b4, w5, b5) = params
    h = jnp.maximum(x @ w1 + b1, 0.0)
    h = jnp.maximum(h @ w2 + b2, 0.0)
    h = jnp.maximum(h @ w3 + b3, 0.0)
    h = jnp.maximum(h @ w4 + b4, 0.0)
    return h @ w5 + b5


def reference_forward_bf16(x, kernel_params):
    """Pure-JAX mirror of the kernel math (bf16 operands, f32 accumulation)."""
    (w1, b1, w2, b2, w3, b3, w4, b4, w5, b5) = kernel_params
    xp = jnp.pad(x, ((0, 0), (0, INPUT_PAD - x.shape[1]))).astype(jnp.bfloat16)
    h = xp
    for w, b in ((w1, b1), (w2, b2), (w3, b3), (w4, b4)):
        z = jnp.dot(h, w, preferred_element_type=jnp.float32) + b
        h = jnp.maximum(z, 0.0).astype(jnp.bfloat16)
    out = jnp.dot(h, w5, preferred_element_type=jnp.float32) + b5
    return out[:, :NUM_CLASSES]


# --------------------------------- main ------------------------------------

if __name__ == "__main__":
    key = jax.random.PRNGKey(0)
    key, kx = jax.random.split(key)

    params = init_params(key)            # f32, true shapes (reference)
    kparams = prepare_params(params)     # padded + bf16 (kernel)

    # batch=8 exercises the single-tile path; batch=300 exercises the balanced
    # multi-tile path (tile=160, grid=2, 20 pad rows) incl. ragged padding.
    for batch in (8, 300):
        kxb = jax.random.fold_in(kx, batch)
        x = jax.random.normal(kxb, (batch, INPUT_SIZE), jnp.float32)

        out = jax.block_until_ready(neural_net_forward(x, kparams))
        assert out.shape == (batch, NUM_CLASSES), out.shape

        ref_bf16 = reference_forward_bf16(x, kparams)
        err_bf16 = float(jnp.max(jnp.abs(out - ref_bf16)))
        assert jnp.allclose(out, ref_bf16, rtol=5e-3, atol=5e-3), err_bf16

        ref_f32 = reference_forward_f32(x, params)
        err_f32 = float(jnp.max(jnp.abs(out - ref_f32)))
        assert jnp.allclose(out, ref_f32, rtol=1e-1, atol=1e-1), err_f32

    print("KERNEL_OK")
</pallas_src>

<mosaic_0001>
module attributes {stable_mosaic.version = 11 : i64} {
  func.func @mlp_kernel(%arg0: i32, %arg1: memref<16x2176xf32, #tpu.memory_space<vmem>>, %arg2: memref<2176x512xbf16, #tpu.memory_space<vmem>>, %arg3: memref<1x512xf32, #tpu.memory_space<vmem>>, %arg4: memref<512x1024xbf16, #tpu.memory_space<vmem>>, %arg5: memref<1x1024xf32, #tpu.memory_space<vmem>>, %arg6: memref<1024x512xbf16, #tpu.memory_space<vmem>>, %arg7: memref<1x512xf32, #tpu.memory_space<vmem>>, %arg8: memref<512x256xbf16, #tpu.memory_space<vmem>>, %arg9: memref<1x256xf32, #tpu.memory_space<vmem>>, %arg10: memref<256x128xbf16, #tpu.memory_space<vmem>>, %arg11: memref<1x128xf32, #tpu.memory_space<vmem>>, %arg12: memref<16x128xf32, #tpu.memory_space<vmem>>) attributes {dimension_semantics = [#tpu.dimension_semantics<parallel>], iteration_bounds = array<i64: 1>, scalar_prefetch = 0 : i64, scratch_operands = 0 : i64, tpu.core_type = #tpu.core_type<tc>, window_params = [{transform_indices = @transform_0, window_bounds = array<i64: 16, 2176>}, {pipeline_mode = #tpu.pipeline_mode<synchronous>, transform_indices = @transform_1, window_bounds = array<i64: 2176, 512>}, {pipeline_mode = #tpu.pipeline_mode<synchronous>, transform_indices = @transform_2, window_bounds = array<i64: 1, 512>}, {pipeline_mode = #tpu.pipeline_mode<synchronous>, transform_indices = @transform_3, window_bounds = array<i64: 512, 1024>}, {pipeline_mode = #tpu.pipeline_mode<synchronous>, transform_indices = @transform_4, window_bounds = array<i64: 1, 1024>}, {pipeline_mode = #tpu.pipeline_mode<synchronous>, transform_indices = @transform_5, window_bounds = array<i64: 1024, 512>}, {pipeline_mode = #tpu.pipeline_mode<synchronous>, transform_indices = @transform_6, window_bounds = array<i64: 1, 512>}, {pipeline_mode = #tpu.pipeline_mode<synchronous>, transform_indices = @transform_7, window_bounds = array<i64: 512, 256>}, {pipeline_mode = #tpu.pipeline_mode<synchronous>, transform_indices = @transform_8, window_bounds = array<i64: 1, 256>}, {pipeline_mode = #tpu.pipeline_mode<synchronous>, transform_indices = @transform_9, window_bounds = array<i64: 256, 128>}, {pipeline_mode = #tpu.pipeline_mode<synchronous>, transform_indices = @transform_10, window_bounds = array<i64: 1, 128>}, {transform_indices = @transform_11, window_bounds = array<i64: 16, 128>}]} {
    %c0 = arith.constant 0 : index
    %c0_0 = arith.constant 0 : index
    %0 = vector.load %arg1[%c0, %c0_0] : memref<16x2176xf32, #tpu.memory_space<vmem>>, vector<16x2176xf32>
    %1 = arith.truncf %0 : vector<16x2176xf32> to vector<16x2176xbf16>
    %c0_1 = arith.constant 0 : index
    %c0_2 = arith.constant 0 : index
    %2 = vector.load %arg2[%c0_1, %c0_2] : memref<2176x512xbf16, #tpu.memory_space<vmem>>, vector<2176x512xbf16>
    %cst = arith.constant dense<0.000000e+00> : vector<16x512xf32>
    %3 = tpu.matmul %1, %2, %cst {dimension_numbers = #tpu.dot_dimension_numbers<[1], [0], [0], [1], [0, 0, 1, 1], [], []>} : vector<16x2176xbf16>, vector<2176x512xbf16>, vector<16x512xf32> -> vector<16x512xf32>
    %c0_3 = arith.constant 0 : index
    %c0_4 = arith.constant 0 : index
    %4 = vector.load %arg3[%c0_3, %c0_4] : memref<1x512xf32, #tpu.memory_space<vmem>>, vector<1x512xf32>
    %5 = vector.broadcast %4 : vector<1x512xf32> to vector<16x512xf32>
    %6 = arith.addf %3, %5 : vector<16x512xf32>
    %cst_5 = arith.constant 0.000000e+00 : f32
    %7 = vector.broadcast %cst_5 : f32 to vector<16x512xf32>
    %8 = arith.maximumf %6, %7 : vector<16x512xf32>
    %9 = arith.truncf %8 : vector<16x512xf32> to vector<16x512xbf16>
    %c0_6 = arith.constant 0 : index
    %c0_7 = arith.constant 0 : index
    %10 = vector.load %arg4[%c0_6, %c0_7] : memref<512x1024xbf16, #tpu.memory_space<vmem>>, vector<512x1024xbf16>
    %cst_8 = arith.constant dense<0.000000e+00> : vector<16x1024xf32>
    %11 = tpu.matmul %9, %10, %cst_8 {dimension_numbers = #tpu.dot_dimension_numbers<[1], [0], [0], [1], [0, 0, 1, 1], [], []>} : vector<16x512xbf16>, vector<512x1024xbf16>, vector<16x1024xf32> -> vector<16x1024xf32>
    %c0_9 = arith.constant 0 : index
    %c0_10 = arith.constant 0 : index
    %12 = vector.load %arg5[%c0_9, %c0_10] : memref<1x1024xf32, #tpu.memory_space<vmem>>, vector<1x1024xf32>
    %13 = vector.broadcast %12 : vector<1x1024xf32> to vector<16x1024xf32>
    %14 = arith.addf %11, %13 : vector<16x1024xf32>
    %cst_11 = arith.constant 0.000000e+00 : f32
    %15 = vector.broadcast %cst_11 : f32 to vector<16x1024xf32>
    %16 = arith.maximumf %14, %15 : vector<16x1024xf32>
    %17 = arith.truncf %16 : vector<16x1024xf32> to vector<16x1024xbf16>
    %c0_12 = arith.constant 0 : index
    %c0_13 = arith.constant 0 : index
    %18 = vector.load %arg6[%c0_12, %c0_13] : memref<1024x512xbf16, #tpu.memory_space<vmem>>, vector<1024x512xbf16>
    %cst_14 = arith.constant dense<0.000000e+00> : vector<16x512xf32>
    %19 = tpu.matmul %17, %18, %cst_14 {dimension_numbers = #tpu.dot_dimension_numbers<[1], [0], [0], [1], [0, 0, 1, 1], [], []>} : vector<16x1024xbf16>, vector<1024x512xbf16>, vector<16x512xf32> -> vector<16x512xf32>
    %c0_15 = arith.constant 0 : index
    %c0_16 = arith.constant 0 : index
    %20 = vector.load %arg7[%c0_15, %c0_16] : memref<1x512xf32, #tpu.memory_space<vmem>>, vector<1x512xf32>
    %21 = vector.broadcast %20 : vector<1x512xf32> to vector<16x512xf32>
    %22 = arith.addf %19, %21 : vector<16x512xf32>
    %cst_17 = arith.constant 0.000000e+00 : f32
    %23 = vector.broadcast %cst_17 : f32 to vector<16x512xf32>
    %24 = arith.maximumf %22, %23 : vector<16x512xf32>
    %25 = arith.truncf %24 : vector<16x512xf32> to vector<16x512xbf16>
    %c0_18 = arith.constant 0 : index
    %c0_19 = arith.constant 0 : index
    %26 = vector.load %arg8[%c0_18, %c0_19] : memref<512x256xbf16, #tpu.memory_space<vmem>>, vector<512x256xbf16>
    %cst_20 = arith.constant dense<0.000000e+00> : vector<16x256xf32>
    %27 = tpu.matmul %25, %26, %cst_20 {dimension_numbers = #tpu.dot_dimension_numbers<[1], [0], [0], [1], [0, 0, 1, 1], [], []>} : vector<16x512xbf16>, vector<512x256xbf16>, vector<16x256xf32> -> vector<16x256xf32>
    %c0_21 = arith.constant 0 : index
    %c0_22 = arith.constant 0 : index
    %28 = vector.load %arg9[%c0_21, %c0_22] : memref<1x256xf32, #tpu.memory_space<vmem>>, vector<1x256xf32>
    %29 = vector.broadcast %28 : vector<1x256xf32> to vector<16x256xf32>
    %30 = arith.addf %27, %29 : vector<16x256xf32>
    %cst_23 = arith.constant 0.000000e+00 : f32
    %31 = vector.broadcast %cst_23 : f32 to vector<16x256xf32>
    %32 = arith.maximumf %30, %31 : vector<16x256xf32>
    %33 = arith.truncf %32 : vector<16x256xf32> to vector<16x256xbf16>
    %c0_24 = arith.constant 0 : index
    %c0_25 = arith.constant 0 : index
    %34 = vector.load %arg10[%c0_24, %c0_25] : memref<256x128xbf16, #tpu.memory_space<vmem>>, vector<256x128xbf16>
    %cst_26 = arith.constant dense<0.000000e+00> : vector<16x128xf32>
    %35 = tpu.matmul %33, %34, %cst_26 {dimension_numbers = #tpu.dot_dimension_numbers<[1], [0], [0], [1], [0, 0, 1, 1], [], []>} : vector<16x256xbf16>, vector<256x128xbf16>, vector<16x128xf32> -> vector<16x128xf32>
    %c0_27 = arith.constant 0 : index
    %c0_28 = arith.constant 0 : index
    %36 = vector.load %arg11[%c0_27, %c0_28] : memref<1x128xf32, #tpu.memory_space<vmem>>, vector<1x128xf32>
    %37 = vector.broadcast %36 : vector<1x128xf32> to vector<16x128xf32>
    %38 = arith.addf %35, %37 : vector<16x128xf32>
    %c0_29 = arith.constant 0 : index
    %c0_30 = arith.constant 0 : index
    %39 = vector.load %arg12[%c0_29, %c0_30] : memref<16x128xf32, #tpu.memory_space<vmem>>, vector<16x128xf32>
    tpu.vector_store %arg12[%c0_29, %c0_30], %38 {strides = array<i32>} : memref<16x128xf32, #tpu.memory_space<vmem>>, vector<16x128xf32>,
    return
  }
  func.func @transform_0(%arg0: i32) -> (i32, i32) {
    %c0_i32 = arith.constant 0 : i32
    %c0_i32_0 = arith.constant 0 : i32
    return %arg0, %c0_i32 : i32, i32
  }
  func.func @transform_1(%arg0: i32) -> (i32, i32) {
    %c0_i32 = arith.constant 0 : i32
    %c0_i32_0 = arith.constant 0 : i32
    %c0_i32_1 = arith.constant 0 : i32
    return %c0_i32, %c0_i32_0 : i32, i32
  }
  func.func @transform_2(%arg0: i32) -> (i32, i32) {
    %c0_i32 = arith.constant 0 : i32
    %c0_i32_0 = arith.constant 0 : i32
    %c0_i32_1 = arith.constant 0 : i32
    return %c0_i32, %c0_i32_0 : i32, i32
  }
  func.func @transform_3(%arg0: i32) -> (i32, i32) {
    %c0_i32 = arith.constant 0 : i32
    %c0_i32_0 = arith.constant 0 : i32
    %c0_i32_1 = arith.constant 0 : i32
    return %c0_i32, %c0_i32_0 : i32, i32
  }
  func.func @transform_4(%arg0: i32) -> (i32, i32) {
    %c0_i32 = arith.constant 0 : i32
    %c0_i32_0 = arith.constant 0 : i32
    %c0_i32_1 = arith.constant 0 : i32
    return %c0_i32, %c0_i32_0 : i32, i32
  }
  func.func @transform_5(%arg0: i32) -> (i32, i32) {
    %c0_i32 = arith.constant 0 : i32
    %c0_i32_0 = arith.constant 0 : i32
    %c0_i32_1 = arith.constant 0 : i32
    return %c0_i32, %c0_i32_0 : i32, i32
  }
  func.func @transform_6(%arg0: i32) -> (i32, i32) {
    %c0_i32 = arith.constant 0 : i32
    %c0_i32_0 = arith.constant 0 : i32
    %c0_i32_1 = arith.constant 0 : i32
    return %c0_i32, %c0_i32_0 : i32, i32
  }
  func.func @transform_7(%arg0: i32) -> (i32, i32) {
    %c0_i32 = arith.constant 0 : i32
    %c0_i32_0 = arith.constant 0 : i32
    %c0_i32_1 = arith.constant 0 : i32
    return %c0_i32, %c0_i32_0 : i32, i32
  }
  func.func @transform_8(%arg0: i32) -> (i32, i32) {
    %c0_i32 = arith.constant 0 : i32
    %c0_i32_0 = arith.constant 0 : i32
    %c0_i32_1 = arith.constant 0 : i32
    return %c0_i32, %c0_i32_0 : i32, i32
  }
  func.func @transform_9(%arg0: i32) -> (i32, i32) {
    %c0_i32 = arith.constant 0 : i32
    %c0_i32_0 = arith.constant 0 : i32
    %c0_i32_1 = arith.constant 0 : i32
    return %c0_i32, %c0_i32_0 : i32, i32
  }
  func.func @transform_10(%arg0: i32) -> (i32, i32) {
    %c0_i32 = arith.constant 0 : i32
    %c0_i32_0 = arith.constant 0 : i32
    %c0_i32_1 = arith.constant 0 : i32
    return %c0_i32, %c0_i32_0 : i32, i32
  }
  func.func @transform_11(%arg0: i32) -> (i32, i32) {
    %c0_i32 = arith.constant 0 : i32
    %c0_i32_0 = arith.constant 0 : i32
    return %arg0, %c0_i32 : i32, i32
  }
}

</mosaic_0001>

<bundles_post_ra>
// kernel: neural_net_forward.1
= control target key start
LH: loop header
LB: loop body
LE: loop exit
PB: predicated region body
PF: predicated region fallthrough
CT: control target
= control target key end

     0   :  { %16 = vsyncpa [#allocation3], 0  ;;  %s15870_s0 = inlined_call_operand.vmem [shape: f32[16,2176], index: 0, kind: input, shape index: {}]   ;;  %s15871_s1 = inlined_call_operand.hbm [shape: bf16[2176,512], index: 1, kind: input, shape index: {}]   ;;  %s15872_s2 = inlined_call_operand.hbm [shape: f32[1,512], index: 2, kind: input, shape index: {}]   ;;  %s15873_s3 = inlined_call_operand.hbm [shape: bf16[512,1024], index: 3, kind: input, shape index: {}]   ;;  %s15874_s4 = inlined_call_operand.hbm [shape: f32[1,1024], index: 4, kind: input, shape index: {}]   ;;  %s15875_s5 = inlined_call_operand.hbm [shape: bf16[1024,512], index: 5, kind: input, shape index: {}]   ;;  %s15876_s6 = inlined_call_operand.hbm [shape: f32[1,512], index: 6, kind: input, shape index: {}]   ;;  %s15877_s7 = inlined_call_operand.hbm [shape: bf16[512,256], index: 7, kind: input, shape index: {}]   ;;  %s15878_s8 = inlined_call_operand.hbm [shape: f32[1,256], index: 8, kind: input, shape index: {}]   ;;  %s15879_s9 = inlined_call_operand.hbm [shape: bf16[256,128], index: 9, kind: input, shape index: {}]   ;;  %s15880_s10 = inlined_call_operand.hbm [shape: f32[1,128], index: 10, kind: input, shape index: {}]   ;;  %s15881_s11 = inlined_call_operand.vmem [shape: f32[16,128], index: 11, kind: output, shape index: {}]  }
   0x1   :  { %17 = vsyncpa [#allocation5], 0 }
   0x2   :  { %18 = vsyncpa [#allocation8], 0 }
   0x3   :  { %19 = vsyncpa [#allocation11], 0 }
   0x4   :  { %20 = vsyncpa [#allocation14], 0  ;;  %s42_s19 = sshll.u32 %s15872_s2, 4  ;;  %s43_s19 = int_to_ptr.hbm [resolvable:$true] %s42_s19 }
   0x5   :  { %21 = vsyncpa [#allocation17], 0  ;;  %s15140_s20 = smov [#allocation4]   ;;  %s66_s24 = sshll.u32 %s15874_s4, 4  ;;  %s67_s24 = int_to_ptr.hbm [resolvable:$true] %s66_s24 }
   0x6   :  { %s44_s21 = sshll.u32 %s15140_s20, 4  ;;  %s15141_s25 = smov [#allocation7]   ;;  %s45_s21 = int_to_ptr.vmem [resolvable:$true] %s44_s21 }
   0x7   :  { %47 = dma.hbm_to_vmem [thread:$0]  %s43_s19, 64, %s45_s21, [#allocation5]  }
   0x8   :  { %s68_s26 = sshll.u32 %s15141_s25, 4  ;;  %s90_s29 = sshll.u32 %s15876_s6, 4  ;;  %s69_s26 = int_to_ptr.vmem [resolvable:$true] %s68_s26  ;;  %s91_s29 = int_to_ptr.hbm [resolvable:$true] %s90_s29 }
   0x9   :  { %71 = dma.hbm_to_vmem [thread:$0]  %s67_s24, 128, %s69_s26, [#allocation8]  }
   0xa   :  { %s114_s12 = sshll.u32 %s15878_s8, 4  ;;  %s15142_s13 = smov [#allocation10]   ;;  %s115_s12 = int_to_ptr.hbm [resolvable:$true] %s114_s12 }
   0xb   :  { %s92_s14 = sshll.u32 %s15142_s13, 4  ;;  %s15143_s4 = smov [#allocation13]   ;;  %s93_s14 = int_to_ptr.vmem [resolvable:$true] %s92_s14 }
   0xc   :  { %95 = dma.hbm_to_vmem [thread:$0]  %s91_s29, 64, %s93_s14, [#allocation11]  }
   0xd   :  { %s116_s15 = sshll.u32 %s15143_s4, 4  ;;  %s28_s18 = sshll.u32 %s15871_s1, 4  ;;  %s117_s15 = int_to_ptr.vmem [resolvable:$true] %s116_s15  ;;  %s29_s18 = int_to_ptr.hbm [resolvable:$true] %s28_s18 }
   0xe   :  { %119 = dma.hbm_to_vmem [thread:$0]  %s115_s12, 32, %s117_s15, [#allocation14]  }
   0xf   :  { %s15144_s6 = smov [#allocation2]   ;;  %s52_s8 = sshll.u32 %s15873_s3, 4  ;;  %s53_s8 = int_to_ptr.hbm [resolvable:$true] %s52_s8 }
  0x10   :  { %s30_s19 = sshll.u32 %s15144_s6, 4  ;;  %s15145_s22 = smov 256   ;;  %s31_s19 = int_to_ptr.vmem [resolvable:$true] %s30_s19 }
  0x11   :  { %s15146_s23 = smov 16   ;;  %s15147_s24 = smov [#allocation6]  }
  0x12   :  { %36 = dma.hbm_to_vmem [thread:$0]  %s29_s18, 69632, %s31_s19, [#allocation3], %s15145_s22, %s15145_s22, %s15146_s23  }
  0x13   :  { %s54_s25 = sshll.u32 %s15147_s24, 4  ;;  %s15148_s26 = smov 512   ;;  %s55_s25 = int_to_ptr.vmem [resolvable:$true] %s54_s25 }
  0x14   :  { %s15149_s27 = smov 32   ;;  %s76_s29 = sshll.u32 %s15875_s5, 4  ;;  %s77_s29 = int_to_ptr.hbm [resolvable:$true] %s76_s29 }
  0x15   :  { %60 = dma.hbm_to_vmem [thread:$0]  %s53_s8, 32768, %s55_s25, [#allocation5], %s15148_s26, %s15148_s26, %s15149_s27  }
  0x16   :  { %s15150_s2 = smov [#allocation9]   ;;  %s100_s13 = sshll.u32 %s15877_s7, 4  ;;  %s101_s13 = int_to_ptr.hbm [resolvable:$true] %s100_s13 }
  0x17   :  { %s78_s30 = sshll.u32 %s15150_s2, 4  ;;  %s15151_s14 = smov [#allocation12]   ;;  %s79_s30 = int_to_ptr.vmem [resolvable:$true] %s78_s30 }
  0x18   :  { %84 = dma.hbm_to_vmem [thread:$0]  %s77_s29, 32768, %s79_s30, [#allocation8], %s15145_s22, %s15145_s22, %s15146_s23  }
  0x19   :  { %s102_s4 = sshll.u32 %s15151_s14, 4  ;;  %s15152_s15 = smov 128   ;;  %s103_s4 = int_to_ptr.vmem [resolvable:$true] %s102_s4 }
  0x1a   :  { %s15153_s16 = smov 8   ;;  %s124_s5 = sshll.u32 %s15879_s9, 4  ;;  %s125_s5 = int_to_ptr.hbm [resolvable:$true] %s124_s5 }
  0x1b   :  { %108 = dma.hbm_to_vmem [thread:$0]  %s101_s13, 8192, %s103_s4, [#allocation11], %s15152_s15, %s15152_s15, %s15153_s16  }
  0x1c   :  { %s15154_s6 = smov [#allocation15]   ;;  %s138_s7 = sshll.u32 %s15880_s10, 4  ;;  %s139_s7 = int_to_ptr.hbm [resolvable:$true] %s138_s7 }
  0x1d   :  { %s126_s19 = sshll.u32 %s15154_s6, 4  ;;  %s15155_s8 = smov 64   ;;  %s127_s19 = int_to_ptr.vmem [resolvable:$true] %s126_s19 }
  0x1e   :  { %s15156_s22 = smov 4   ;;  %s15157_s23 = smov [#allocation16]  }
  0x1f   :  { %132 = dma.hbm_to_vmem [thread:$0]  %s125_s5, 2048, %s127_s19, [#allocation14], %s15155_s8, %s15155_s8, %s15156_s22  }
  0x20   :  { %s140_s24 = sshll.u32 %s15157_s23, 4  ;;  %s141_s24 = int_to_ptr.vmem [resolvable:$true] %s140_s24 }
  0x21   :  { %143 = dma.hbm_to_vmem [thread:$0]  %s139_s7, 16, %s141_s24, [#allocation17]  }
  0x22   :  { %15128 = dma.done.wait [#allocation3], 69632  }
  0x23   :  { %15129 = vsyncadd [#allocation3], 4294897664 }
  0x24   :  { %15130 = dma.done.wait [#allocation5], 32832  }
  0x25   :  { %15131 = vsyncadd [#allocation5], 4294934464 }
  0x26   :  { %15132 = dma.done.wait [#allocation8], 32896  }
  0x27   :  { %15133 = vsyncadd [#allocation8], 4294934400 }
  0x28   :  { %15134 = dma.done.wait [#allocation11], 8256  }
  0x29   :  { %15135 = vsyncadd [#allocation11], 4294959040 }
  0x2a   :  { %15136 = dma.done.wait [#allocation14], 2080  }
  0x2b   :  { %15137 = vsyncadd [#allocation14], 4294965216 }
  0x2c   :  { %15138 = dma.done.wait [#allocation17], 16  }
  0x2d   :  { %15139 = vsyncadd [#allocation17], 4294967280  ;;  %v9299_v0 = vld [vmem:[#allocation2 + $0xe0] sm:$0xf]  ;;  %v13759_v1 = vld [vmem:[#allocation2 + $0xec] sm:$0xf0] }
  0x2e   :  { %v9427_v2 = vld [vmem:[#allocation2 + $0x1e0] sm:$0xf]  ;;  %v9300_v3 = vor.u32 %v13759_v1, %v9299_v0  ;;  %v13791_v4 = vld [vmem:[#allocation2 + $0x1ec] sm:$0xf0] }
  0x2f   :  { %v9555_v5 = vld [vmem:[#allocation2 + $0x2e0] sm:$0xf]  ;;  %v13823_v6 = vld [vmem:[#allocation2 + $0x2ec] sm:$0xf0]  ;;  %v9428_v7 = vor.u32 %v13791_v4, %v9427_v2 }
  0x30   :  { %v9556_v8 = vor.u32 %v13823_v6, %v9555_v5  ;;  %v9683_v9 = vld [vmem:[#allocation2 + $0x3e0] sm:$0xf]  ;;  %v13855_v10 = vld [vmem:[#allocation2 + $0x3ec] sm:$0xf0]  ;;  %3509 = vmatpush.bf16.msra.mxu0 %v9300_v3 }
  0x31   :  { %v9283_v11 = vld [vmem:[#allocation2 + $0xc0] sm:$0xf]  ;;  %v9684_v12 = vor.u32 %v13855_v10, %v9683_v9  ;;  %v13755_v13 = vld [vmem:[#allocation2 + $0xcc] sm:$0xf0]  ;;  %3523 = vmatpush.bf16.msra.mxu1 %v9428_v7 }
  0x32   :  { %v9411_v14 = vld [vmem:[#allocation2 + $0x1c0] sm:$0xf]  ;;  %v13787_v15 = vld [vmem:[#allocation2 + $0x1cc] sm:$0xf0]  ;;  %3537 = vmatpush.bf16.msra.mxu2 %v9556_v8  ;;  %v9284_v16 = vor.u32 %v13755_v13, %v9283_v11 }
  0x33   :  { %v9412_v17 = vor.u32 %v13787_v15, %v9411_v14  ;;  %v9539_v18 = vld [vmem:[#allocation2 + $0x2c0] sm:$0xf]  ;;  %v13819_v19 = vld [vmem:[#allocation2 + $0x2cc] sm:$0xf0]  ;;  %3551 = vmatpush.bf16.msra.mxu3 %v9684_v12 }
  0x34   :  { %v9667_v20 = vld [vmem:[#allocation2 + $0x3c0] sm:$0xf]  ;;  %v9540_v21 = vor.u32 %v13819_v19, %v9539_v18  ;;  %v13851_v22 = vld [vmem:[#allocation2 + $0x3cc] sm:$0xf0]  ;;  %3510 = vmatpush.bf16.msra.mxu0 %v9284_v16 }
  0x35   :  { %v9267_v23 = vld [vmem:[#allocation2 + $0xa0] sm:$0xf]  ;;  %v13751_v24 = vld [vmem:[#allocation2 + $0xac] sm:$0xf0]  ;;  %v9668_v25 = vor.u32 %v13851_v22, %v9667_v20  ;;  %3524 = vmatpush.bf16.msra.mxu1 %v9412_v17 }
  0x36   :  { %v9395_v26 = vld [vmem:[#allocation2 + $0x1a0] sm:$0xf]  ;;  %v13783_v27 = vld [vmem:[#allocation2 + $0x1ac] sm:$0xf0]  ;;  %v9268_v29 = vor.u32 %v13751_v24, %v9267_v23  ;;  %3538 = vmatpush.bf16.msra.mxu2 %v9540_v21 }
  0x37   :  { %v9523_v28 = vld [vmem:[#allocation2 + $0x2a0] sm:$0xf]  ;;  %v13815_v30 = vld [vmem:[#allocation2 + $0x2ac] sm:$0xf0]  ;;  %v9396_v33 = vor.u32 %v13783_v27, %v9395_v26  ;;  %3552 = vmatpush.bf16.msra.mxu3 %v9668_v25 }
  0x38   :  { %v9651_v31 = vld [vmem:[#allocation2 + $0x3a0] sm:$0xf]  ;;  %v13847_v32 = vld [vmem:[#allocation2 + $0x3ac] sm:$0xf0]  ;;  %v9524_v34 = vor.u32 %v13815_v30, %v9523_v28  ;;  %3511 = vmatpush.bf16.msra.mxu0 %v9268_v29 }
  0x39   :  { %v9251_v35 = vld [vmem:[#allocation2 + $0x80] sm:$0xf]  ;;  %v13747_v36 = vld [vmem:[#allocation2 + $0x8c] sm:$0xf0]  ;;  %v9652_v38 = vor.u32 %v13847_v32, %v9651_v31  ;;  %3525 = vmatpush.bf16.msra.mxu1 %v9396_v33 }
  0x3a   :  { %v9379_v37 = vld [vmem:[#allocation2 + $0x180] sm:$0xf]  ;;  %v13779_v39 = vld [vmem:[#allocation2 + $0x18c] sm:$0xf0]  ;;  %v9252_v44 = vor.u32 %v13747_v36, %v9251_v35  ;;  %3539 = vmatpush.bf16.msra.mxu2 %v9524_v34 }
  0x3b   :  { %v9507_v40 = vld [vmem:[#allocation2 + $0x280] sm:$0xf]  ;;  %v13811_v41 = vld [vmem:[#allocation2 + $0x28c] sm:$0xf0]  ;;  %v9380_v45 = vor.u32 %v13779_v39, %v9379_v37  ;;  %3553 = vmatpush.bf16.msra.mxu3 %v9652_v38 }
  0x3c   :  { %v9635_v42 = vld [vmem:[#allocation2 + $0x380] sm:$0xf]  ;;  %v13843_v43 = vld [vmem:[#allocation2 + $0x38c] sm:$0xf0]  ;;  %v9508_v46 = vor.u32 %v13811_v41, %v9507_v40  ;;  %3512 = vmatpush.bf16.msra.mxu0 %v9252_v44 }
  0x3d   :  { %v9235_v47 = vld [vmem:[#allocation2 + $0x60] sm:$0xf]  ;;  %v13743_v48 = vld [vmem:[#allocation2 + $0x6c] sm:$0xf0]  ;;  %v9636_v50 = vor.u32 %v13843_v43, %v9635_v42  ;;  %3526 = vmatpush.bf16.msra.mxu1 %v9380_v45 }
  0x3e   :  { %v9363_v49 = vld [vmem:[#allocation2 + $0x160] sm:$0xf]  ;;  %v13775_v51 = vld [vmem:[#allocation2 + $0x16c] sm:$0xf0]  ;;  %v9236_v56 = vor.u32 %v13743_v48, %v9235_v47  ;;  %3540 = vmatpush.bf16.msra.mxu2 %v9508_v46 }
  0x3f   :  { %v9491_v52 = vld [vmem:[#allocation2 + $0x260] sm:$0xf]  ;;  %v13807_v53 = vld [vmem:[#allocation2 + $0x26c] sm:$0xf0]  ;;  %v9364_v57 = vor.u32 %v13775_v51, %v9363_v49  ;;  %3554 = vmatpush.bf16.msra.mxu3 %v9636_v50 }
  0x40   :  { %v9619_v54 = vld [vmem:[#allocation2 + $0x360] sm:$0xf]  ;;  %v13839_v55 = vld [vmem:[#allocation2 + $0x36c] sm:$0xf0]  ;;  %v9492_v58 = vor.u32 %v13807_v53, %v9491_v52  ;;  %3513 = vmatpush.bf16.msra.mxu0 %v9236_v56  ;;  %v201_v53 = vld [vmem:[%s15870_s0 + $0x88] sm:$0xff] }
  0x41   :  { %v9219_v59 = vld [vmem:[#allocation2 + $0x40] sm:$0xf]  ;;  %v13739_v60 = vld [vmem:[#allocation2 + $0x4c] sm:$0xf0]  ;;  %v9620_v62 = vor.u32 %v13839_v55, %v9619_v54  ;;  %3527 = vmatpush.bf16.msra.mxu1 %v9364_v57 }
  0x42   :  { %v9347_v61 = vld [vmem:[#allocation2 + $0x140] sm:$0xf]  ;;  %v13771_v63 = vld [vmem:[#allocation2 + $0x14c] sm:$0xf0]  ;;  %v9220_v4 = vor.u32 %v13739_v60, %v9219_v59  ;;  %3541 = vmatpush.bf16.msra.mxu2 %v9492_v58  ;;  %v203_v59 = vld [vmem:[%s15870_s0 + $0x98] sm:$0xff] }
  0x43   :  { %v9475_v0 = vld [vmem:[#allocation2 + $0x240] sm:$0xf]  ;;  %v13803_v1 = vld [vmem:[#allocation2 + $0x24c] sm:$0xf0]  ;;  %v9348_v5 = vor.u32 %v13771_v63, %v9347_v61  ;;  %3555 = vmatpush.bf16.msra.mxu3 %v9620_v62 }
  0x44   :  { %v9603_v2 = vld [vmem:[#allocation2 + $0x340] sm:$0xf]  ;;  %v13835_v3 = vld [vmem:[#allocation2 + $0x34c] sm:$0xf0]  ;;  %v9476_v6 = vor.u32 %v13803_v1, %v9475_v0  ;;  %3514 = vmatpush.bf16.msra.mxu0 %v9220_v4 }
  0x45   :  { %v9203_v7 = vld [vmem:[#allocation2 + $0x20] sm:$0xf]  ;;  %v13735_v8 = vld [vmem:[#allocation2 + $0x2c] sm:$0xf0]  ;;  %v9604_v10 = vor.u32 %v13835_v3, %v9603_v2  ;;  %3528 = vmatpush.bf16.msra.mxu1 %v9348_v5 }
  0x46   :  { %v9331_v9 = vld [vmem:[#allocation2 + $0x120] sm:$0xf]  ;;  %v13767_v11 = vld [vmem:[#allocation2 + $0x12c] sm:$0xf0]  ;;  %v9204_v16 = vor.u32 %v13735_v8, %v9203_v7  ;;  %3542 = vmatpush.bf16.msra.mxu2 %v9476_v6  ;;  %v185_v6 = vld [vmem:[%s15870_s0 + $0x8] sm:$0xff] }
  0x47   :  { %v9459_v12 = vld [vmem:[#allocation2 + $0x220] sm:$0xf]  ;;  %v13799_v13 = vld [vmem:[#allocation2 + $0x22c] sm:$0xf0]  ;;  %v9332_v19 = vor.u32 %v13767_v11, %v9331_v9  ;;  %3556 = vmatpush.bf16.msra.mxu3 %v9604_v10  ;;  %v187_v8 = vld [vmem:[%s15870_s0 + $0x18] sm:$0xff] }
  0x48   :  { %v9587_v14 = vld [vmem:[#allocation2 + $0x320] sm:$0xf]  ;;  %v13831_v15 = vld [vmem:[#allocation2 + $0x32c] sm:$0xf0]  ;;  %v9460_v20 = vor.u32 %v13799_v13, %v9459_v12  ;;  %3515 = vmatpush.bf16.msra.mxu0 %v9204_v16 }
  0x49   :  { %v9187_v17 = vld [vmem:[#allocation2] sm:$0xf]  ;;  %v13731_v18 = vld [vmem:[#allocation2 + $0xc] sm:$0xf0]  ;;  %v9588_v24 = vor.u32 %v13831_v15, %v9587_v14  ;;  %3529 = vmatpush.bf16.msra.mxu1 %v9332_v19 }
  0x4a   :  { %v9315_v21 = vld [vmem:[#allocation2 + $0x100] sm:$0xf]  ;;  %v13763_v22 = vld [vmem:[#allocation2 + $0x10c] sm:$0xf0]  ;;  %v9188_v31 = vor.u32 %v13731_v18, %v9187_v17  ;;  %3543 = vmatpush.bf16.msra.mxu2 %v9460_v20 }
  0x4b   :  { %v9443_v23 = vld [vmem:[#allocation2 + $0x200] sm:$0xf]  ;;  %v13795_v25 = vld [vmem:[#allocation2 + $0x20c] sm:$0xf0]  ;;  %v9316_v35 = vor.u32 %v13763_v22, %v9315_v21  ;;  %3557 = vmatpush.bf16.msra.mxu3 %v9588_v24 }
  0x4c   :  { %v9571_v26 = vld [vmem:[#allocation2 + $0x300] sm:$0xf]  ;;  %v13827_v27 = vld [vmem:[#allocation2 + $0x30c] sm:$0xf0]  ;;  %v9444_v36 = vor.u32 %v13795_v25, %v9443_v23  ;;  %3516 = vmatpush.bf16.msra.mxu0 %v9188_v31 }
  0x4d   :  { %v9811_v28 = vld [vmem:[#allocation2 + $0x4e0] sm:$0xf]  ;;  %v13887_v29 = vld [vmem:[#allocation2 + $0x4ec] sm:$0xf0]  ;;  %v9572_v39 = vor.u32 %v13827_v27, %v9571_v26  ;;  %3530 = vmatpush.bf16.msra.mxu1 %v9316_v35 }
  0x4e   :  { %v9939_v30 = vld [vmem:[#allocation2 + $0x5e0] sm:$0xf]  ;;  %v13919_v32 = vld [vmem:[#allocation2 + $0x5ec] sm:$0xf0]  ;;  %v9812_v40 = vor.u32 %v13887_v29, %v9811_v28  ;;  %3544 = vmatpush.bf16.msra.mxu2 %v9444_v36 }
  0x4f   :  { %v10067_v33 = vld [vmem:[#allocation2 + $0x6e0] sm:$0xf]  ;;  %v13951_v34 = vld [vmem:[#allocation2 + $0x6ec] sm:$0xf0]  ;;  %v9940_v43 = vor.u32 %v13919_v32, %v9939_v30  ;;  %3558 = vmatpush.bf16.msra.mxu3 %v9572_v39 }
  0x50   :  { %v10195_v37 = vld [vmem:[#allocation2 + $0x7e0] sm:$0xf]  ;;  %v13983_v38 = vld [vmem:[#allocation2 + $0x7ec] sm:$0xf0]  ;;  %v10068_v44 = vor.u32 %v13951_v34, %v10067_v33  ;;  %3565 = vmatpush.bf16.msrb.mxu0 %v9812_v40 }
  0x51   :  { %v9795_v41 = vld [vmem:[#allocation2 + $0x4c0] sm:$0xf]  ;;  %v13883_v42 = vld [vmem:[#allocation2 + $0x4cc] sm:$0xf0]  ;;  %v10196_v48 = vor.u32 %v13983_v38, %v10195_v37  ;;  %3579 = vmatpush.bf16.msrb.mxu1 %v9940_v43 }
  0x52   :  { %v9923_v45 = vld [vmem:[#allocation2 + $0x5c0] sm:$0xf]  ;;  %v13915_v46 = vld [vmem:[#allocation2 + $0x5cc] sm:$0xf0]  ;;  %v9796_v55 = vor.u32 %v13883_v42, %v9795_v41  ;;  %3593 = vmatpush.bf16.msrb.mxu2 %v10068_v44 }
  0x53   :  { %v10051_v47 = vld [vmem:[#allocation2 + $0x6c0] sm:$0xf]  ;;  %v13947_v49 = vld [vmem:[#allocation2 + $0x6cc] sm:$0xf0]  ;;  %v9924_v60 = vor.u32 %v13915_v46, %v9923_v45  ;;  %3607 = vmatpush.bf16.msrb.mxu3 %v10196_v48 }
  0x54   :  { %v10179_v50 = vld [vmem:[#allocation2 + $0x7c0] sm:$0xf]  ;;  %v13979_v51 = vld [vmem:[#allocation2 + $0x7cc] sm:$0xf0]  ;;  %v10052_v61 = vor.u32 %v13947_v49, %v10051_v47  ;;  %3566 = vmatpush.bf16.msrb.mxu0 %v9796_v55 }
  0x55   :  { %v184_v52 = vld [vmem:[%s15870_s0] sm:$0xff]  ;;  %v186_v54 = vld [vmem:[%s15870_s0 + $0x10] sm:$0xff]  ;;  %v10180_v2 = vor.u32 %v13979_v51, %v10179_v50  ;;  %3580 = vmatpush.bf16.msrb.mxu1 %v9924_v60 }
  0x56   :  { %v9779_v56 = vld [vmem:[#allocation2 + $0x4a0] sm:$0xf]  ;;  %v13879_v57 = vld [vmem:[#allocation2 + $0x4ac] sm:$0xf0]  ;;  %v15257_v58 = vpack.c.bf16 %v201_v53, %v184_v52  ;;  %v15262_v1 = vpack.c.bf16 %v203_v59, %v186_v54  ;;  %3594 = vmatpush.bf16.msrb.mxu2 %v10052_v61 }
  0x57   :  { %v9907_v62 = vld [vmem:[#allocation2 + $0x5a0] sm:$0xf]  ;;  %v13911_v63 = vld [vmem:[#allocation2 + $0x5ac] sm:$0xf0]  ;;  %v9780_v9 = vor.u32 %v13879_v57, %v9779_v56  ;;  %3608 = vmatpush.bf16.msrb.mxu3 %v10180_v2 }
  0x58   :  { %v10035_v0 = vld [vmem:[#allocation2 + $0x6a0] sm:$0xf]  ;;  %v13943_v3 = vld [vmem:[#allocation2 + $0x6ac] sm:$0xf0]  ;;  %3517 = vmatmul.bf16.vlgmr.msra.gmra.mxu0 %v15257_v58  ;;  %3545 = vmatmul.bf16.vlgmr.msra.gmra.mxu2 %v15262_v1  ;;  %v9908_v12 = vor.u32 %v13911_v63, %v9907_v62 }
  0x59   :  { %v10163_v4 = vld [vmem:[#allocation2 + $0x7a0] sm:$0xf]  ;;  %v13975_v5 = vld [vmem:[#allocation2 + $0x7ac] sm:$0xf0]  ;;  %v10036_v13 = vor.u32 %v13943_v3, %v10035_v0  ;;  %3567 = vmatpush.bf16.msrb.mxu0 %v9780_v9 }
  0x5a   :  { %v202_v7 = vld [vmem:[%s15870_s0 + $0x90] sm:$0xff]  ;;  %v204_v11 = vld [vmem:[%s15870_s0 + $0xa0] sm:$0xff]  ;;  %v10164_v18 = vor.u32 %v13975_v5, %v10163_v4  ;;  %3581 = vmatpush.bf16.msrb.mxu1 %v9908_v12 }
  0x5b   :  { %v15275_v10 = vpack.c.bf16 %v202_v7, %v185_v6  ;;  %v9763_v14 = vld [vmem:[#allocation2 + $0x480] sm:$0xf]  ;;  %v13875_v15 = vld [vmem:[#allocation2 + $0x48c] sm:$0xf0]  ;;  %v15280_v17 = vpack.c.bf16 %v204_v11, %v187_v8  ;;  %3595 = vmatpush.bf16.msrb.mxu2 %v10036_v13 }
  0x5c   :  { %v9891_v16 = vld [vmem:[#allocation2 + $0x580] sm:$0xf]  ;;  %v13907_v19 = vld [vmem:[#allocation2 + $0x58c] sm:$0xf0]  ;;  %v9764_v24 = vor.u32 %v13875_v15, %v9763_v14  ;;  %3609 = vmatpush.bf16.msrb.mxu3 %v10164_v18 }
  0x5d   :  { %v10019_v20 = vld [vmem:[#allocation2 + $0x680] sm:$0xf]  ;;  %v13939_v21 = vld [vmem:[#allocation2 + $0x68c] sm:$0xf0]  ;;  %3531 = vmatmul.bf16.vlgmr.msra.gmra.mxu1 %v15275_v10  ;;  %3559 = vmatmul.bf16.vlgmr.msra.gmra.mxu3 %v15280_v17  ;;  %v9892_v25 = vor.u32 %v13907_v19, %v9891_v16 }
  0x5e   :  { %v10147_v22 = vld [vmem:[#allocation2 + $0x780] sm:$0xf]  ;;  %v13971_v23 = vld [vmem:[#allocation2 + $0x78c] sm:$0xf0]  ;;  %v10020_v26 = vor.u32 %v13939_v21, %v10019_v20  ;;  %3568 = vmatpush.bf16.msrb.mxu0 %v9764_v24 }
  0x5f   :  { %v9747_v27 = vld [vmem:[#allocation2 + $0x460] sm:$0xf]  ;;  %v13871_v28 = vld [vmem:[#allocation2 + $0x46c] sm:$0xf0]  ;;  %v10148_v30 = vor.u32 %v13971_v23, %v10147_v22  ;;  %3582 = vmatpush.bf16.msrb.mxu1 %v9892_v25  ;;  %v205_v22 = vld [vmem:[%s15870_s0 + $0xa8] sm:$0xff] }
  0x60   :  { %v9875_v29 = vld [vmem:[#allocation2 + $0x560] sm:$0xf]  ;;  %v13903_v31 = vld [vmem:[#allocation2 + $0x56c] sm:$0xf0]  ;;  %v9748_v36 = vor.u32 %v13871_v28, %v9747_v27  ;;  %3596 = vmatpush.bf16.msrb.mxu2 %v10020_v26  ;;  %v207_v26 = vld [vmem:[%s15870_s0 + $0xb8] sm:$0xff] }
  0x61   :  { %v10003_v32 = vld [vmem:[#allocation2 + $0x660] sm:$0xf]  ;;  %v13935_v33 = vld [vmem:[#allocation2 + $0x66c] sm:$0xf0]  ;;  %v9876_v37 = vor.u32 %v13903_v31, %v9875_v29  ;;  %3610 = vmatpush.bf16.msrb.mxu3 %v10148_v30  ;;  %v189_v27 = vld [vmem:[%s15870_s0 + $0x28] sm:$0xff] }
  0x62   :  { %v10131_v34 = vld [vmem:[#allocation2 + $0x760] sm:$0xf]  ;;  %v13967_v35 = vld [vmem:[#allocation2 + $0x76c] sm:$0xf0]  ;;  %v10004_v38 = vor.u32 %v13935_v33, %v10003_v32  ;;  %3569 = vmatpush.bf16.msrb.mxu0 %v9748_v36  ;;  %v191_v31 = vld [vmem:[%s15870_s0 + $0x38] sm:$0xff] }
  0x63   :  { %v9731_v39 = vld [vmem:[#allocation2 + $0x440] sm:$0xf]  ;;  %v13867_v40 = vld [vmem:[#allocation2 + $0x44c] sm:$0xf0]  ;;  %v10132_v42 = vor.u32 %v13967_v35, %v10131_v34  ;;  %3583 = vmatpush.bf16.msrb.mxu1 %v9876_v37 }
  0x64   :  { %v9859_v41 = vld [vmem:[#allocation2 + $0x540] sm:$0xf]  ;;  %v13899_v43 = vld [vmem:[#allocation2 + $0x54c] sm:$0xf0]  ;;  %v9732_v48 = vor.u32 %v13867_v40, %v9731_v39  ;;  %3597 = vmatpush.bf16.msrb.mxu2 %v10004_v38 }
  0x65   :  { %v9987_v44 = vld [vmem:[#allocation2 + $0x640] sm:$0xf]  ;;  %v13931_v45 = vld [vmem:[#allocation2 + $0x64c] sm:$0xf0]  ;;  %v9860_v50 = vor.u32 %v13899_v43, %v9859_v41  ;;  %3611 = vmatpush.bf16.msrb.mxu3 %v10132_v42 }
  0x66   :  { %v10115_v46 = vld [vmem:[#allocation2 + $0x740] sm:$0xf]  ;;  %v13963_v47 = vld [vmem:[#allocation2 + $0x74c] sm:$0xf0]  ;;  %v9988_v51 = vor.u32 %v13931_v45, %v9987_v44  ;;  %3570 = vmatpush.bf16.msrb.mxu0 %v9732_v48 }
  0x67   :  { %v9715_v49 = vld [vmem:[#allocation2 + $0x420] sm:$0xf]  ;;  %v13863_v52 = vld [vmem:[#allocation2 + $0x42c] sm:$0xf0]  ;;  %v10116_v55 = vor.u32 %v13963_v47, %v10115_v46  ;;  %3584 = vmatpush.bf16.msrb.mxu1 %v9860_v50 }
  0x68   :  { %v9843_v53 = vld [vmem:[#allocation2 + $0x520] sm:$0xf]  ;;  %v13895_v54 = vld [vmem:[#allocation2 + $0x52c] sm:$0xf0]  ;;  %v9716_v63 = vor.u32 %v13863_v52, %v9715_v49  ;;  %3598 = vmatpush.bf16.msrb.mxu2 %v9988_v51 }
  0x69   :  { %v9971_v56 = vld [vmem:[#allocation2 + $0x620] sm:$0xf]  ;;  %v13927_v57 = vld [vmem:[#allocation2 + $0x62c] sm:$0xf0]  ;;  %v9844_v5 = vor.u32 %v13895_v54, %v9843_v53  ;;  %3612 = vmatpush.bf16.msrb.mxu3 %v10116_v55 }
  0x6a   :  { %v10099_v59 = vld [vmem:[#allocation2 + $0x720] sm:$0xf]  ;;  %v13959_v60 = vld [vmem:[#allocation2 + $0x72c] sm:$0xf0]  ;;  %v9972_v6 = vor.u32 %v13927_v57, %v9971_v56  ;;  %3571 = vmatpush.bf16.msrb.mxu0 %v9716_v63 }
  0x6b   :  { %v9699_v61 = vld [vmem:[#allocation2 + $0x400] sm:$0xf]  ;;  %v13859_v62 = vld [vmem:[#allocation2 + $0x40c] sm:$0xf0]  ;;  %v10100_v11 = vor.u32 %v13959_v60, %v10099_v59  ;;  %3585 = vmatpush.bf16.msrb.mxu1 %v9844_v5 }
  0x6c   :  { %v9827_v0 = vld [vmem:[#allocation2 + $0x500] sm:$0xf]  ;;  %v13891_v2 = vld [vmem:[#allocation2 + $0x50c] sm:$0xf0]  ;;  %v9700_v19 = vor.u32 %v13859_v62, %v9699_v61  ;;  %3599 = vmatpush.bf16.msrb.mxu2 %v9972_v6 }
  0x6d   :  { %v9955_v3 = vld [vmem:[#allocation2 + $0x600] sm:$0xf]  ;;  %v13923_v4 = vld [vmem:[#allocation2 + $0x60c] sm:$0xf0]  ;;  %v9828_v23 = vor.u32 %v13891_v2, %v9827_v0  ;;  %3613 = vmatpush.bf16.msrb.mxu3 %v10100_v11 }
  0x6e   :  { %v10083_v7 = vld [vmem:[#allocation2 + $0x700] sm:$0xf]  ;;  %v13955_v8 = vld [vmem:[#allocation2 + $0x70c] sm:$0xf0]  ;;  %v9956_v24 = vor.u32 %v13923_v4, %v9955_v3  ;;  %3572 = vmatpush.bf16.msrb.mxu0 %v9700_v19 }
  0x6f   :  { %v10323_v9 = vld [vmem:[#allocation2 + $0x8e0] sm:$0xf]  ;;  %v14015_v12 = vld [vmem:[#allocation2 + $0x8ec] sm:$0xf0]  ;;  %v10084_v28 = vor.u32 %v13955_v8, %v10083_v7  ;;  %3586 = vmatpush.bf16.msrb.mxu1 %v9828_v23 }
  0x70   :  { %v10451_v13 = vld [vmem:[#allocation2 + $0x9e0] sm:$0xf]  ;;  %v14047_v14 = vld [vmem:[#allocation2 + $0x9ec] sm:$0xf0]  ;;  %v10324_v29 = vor.u32 %v14015_v12, %v10323_v9  ;;  %3600 = vmatpush.bf16.msrb.mxu2 %v9956_v24 }
  0x71   :  { %v10579_v15 = vld [vmem:[#allocation2 + $0xae0] sm:$0xf]  ;;  %v14079_v16 = vld [vmem:[#allocation2 + $0xaec] sm:$0xf0]  ;;  %v10452_v33 = vor.u32 %v14047_v14, %v10451_v13  ;;  %3614 = vmatpush.bf16.msrb.mxu3 %v10084_v28 }
  0x72   :  { %v10707_v18 = vld [vmem:[#allocation2 + $0xbe0] sm:$0xf]  ;;  %v14111_v20 = vld [vmem:[#allocation2 + $0xbec] sm:$0xf0]  ;;  %v10580_v34 = vor.u32 %v14079_v16, %v10579_v15  ;;  %3621 = vmatpush.bf16.msra.mxu0 %v10324_v29 }
  0x73   :  { %v188_v21 = vld [vmem:[%s15870_s0 + $0x20] sm:$0xff]  ;;  %v190_v25 = vld [vmem:[%s15870_s0 + $0x30] sm:$0xff]  ;;  %v10708_v38 = vor.u32 %v14111_v20, %v10707_v18  ;;  %3635 = vmatpush.bf16.msra.mxu1 %v10452_v33 }
  0x74   :  { %v206_v30 = vld [vmem:[%s15870_s0 + $0xb0] sm:$0xff]  ;;  %v208_v32 = vld [vmem:[%s15870_s0 + $0xc0] sm:$0xff]  ;;  %v15308_v39 = vpack.c.bf16 %v205_v22, %v188_v21  ;;  %v15310_v43 = vpack.c.bf16 %v207_v26, %v190_v25  ;;  %3649 = vmatpush.bf16.msra.mxu2 %v10580_v34 }
  0x75   :  { %v10307_v35 = vld [vmem:[#allocation2 + $0x8c0] sm:$0xf]  ;;  %v14011_v36 = vld [vmem:[#allocation2 + $0x8cc] sm:$0xf0]  ;;  %v15312_v44 = vpack.c.bf16 %v206_v30, %v189_v27  ;;  %v15314_v47 = vpack.c.bf16 %v208_v32, %v191_v31  ;;  %3663 = vmatpush.bf16.msra.mxu3 %v10708_v38 }
  0x76   :  { %v10435_v37 = vld [vmem:[#allocation2 + $0x9c0] sm:$0xf]  ;;  %v14043_v40 = vld [vmem:[#allocation2 + $0x9cc] sm:$0xf0]  ;;  %v10308_v48 = vor.u32 %v14011_v36, %v10307_v35  ;;  %3573 = vmatmul.bf16.vlgmr.msrb.gmra.mxu0 %v15308_v39  ;;  %3601 = vmatmul.bf16.vlgmr.msrb.gmra.mxu2 %v15310_v43 }
  0x77   :  { %v10563_v41 = vld [vmem:[#allocation2 + $0xac0] sm:$0xf]  ;;  %v14075_v42 = vld [vmem:[#allocation2 + $0xacc] sm:$0xf0]  ;;  %v10436_v49 = vor.u32 %v14043_v40, %v10435_v37  ;;  %3587 = vmatmul.bf16.vlgmr.msrb.gmra.mxu1 %v15312_v44  ;;  %3615 = vmatmul.bf16.vlgmr.msrb.gmra.mxu3 %v15314_v47 }
  0x78   :  { %v10691_v45 = vld [vmem:[#allocation2 + $0xbc0] sm:$0xf]  ;;  %v14107_v46 = vld [vmem:[#allocation2 + $0xbcc] sm:$0xf0]  ;;  %v10564_v50 = vor.u32 %v14075_v42, %v10563_v41  ;;  %3622 = vmatpush.bf16.msra.mxu0 %v10308_v48 }
  0x79   :  { %v10291_v51 = vld [vmem:[#allocation2 + $0x8a0] sm:$0xf]  ;;  %v14007_v52 = vld [vmem:[#allocation2 + $0x8ac] sm:$0xf0]  ;;  %v10692_v54 = vor.u32 %v14107_v46, %v10691_v45  ;;  %3636 = vmatpush.bf16.msra.mxu1 %v10436_v49 }
  0x7a   :  { %v10419_v53 = vld [vmem:[#allocation2 + $0x9a0] sm:$0xf]  ;;  %v14039_v55 = vld [vmem:[#allocation2 + $0x9ac] sm:$0xf0]  ;;  %v10292_v61 = vor.u32 %v14007_v52, %v10291_v51  ;;  %3650 = vmatpush.bf16.msra.mxu2 %v10564_v50 }
  0x7b   :  { %v10547_v56 = vld [vmem:[#allocation2 + $0xaa0] sm:$0xf]  ;;  %v14071_v57 = vld [vmem:[#allocation2 + $0xaac] sm:$0xf0]  ;;  %v10420_v62 = vor.u32 %v14039_v55, %v10419_v53  ;;  %3664 = vmatpush.bf16.msra.mxu3 %v10692_v54 }
  0x7c   :  { %v10675_v59 = vld [vmem:[#allocation2 + $0xba0] sm:$0xf]  ;;  %v14103_v60 = vld [vmem:[#allocation2 + $0xbac] sm:$0xf0]  ;;  %v10548_v63 = vor.u32 %v14071_v57, %v10547_v56  ;;  %3623 = vmatpush.bf16.msra.mxu0 %v10292_v61 }
  0x7d   :  { %v10275_v0 = vld [vmem:[#allocation2 + $0x880] sm:$0xf]  ;;  %v14003_v2 = vld [vmem:[#allocation2 + $0x88c] sm:$0xf0]  ;;  %v10676_v4 = vor.u32 %v14103_v60, %v10675_v59  ;;  %3637 = vmatpush.bf16.msra.mxu1 %v10420_v62 }
  0x7e   :  { %v10403_v3 = vld [vmem:[#allocation2 + $0x980] sm:$0xf]  ;;  %v14035_v5 = vld [vmem:[#allocation2 + $0x98c] sm:$0xf0]  ;;  %v10276_v11 = vor.u32 %v14003_v2, %v10275_v0  ;;  %3651 = vmatpush.bf16.msra.mxu2 %v10548_v63 }
  0x7f   :  { %v10531_v6 = vld [vmem:[#allocation2 + $0xa80] sm:$0xf]  ;;  %v14067_v7 = vld [vmem:[#allocation2 + $0xa8c] sm:$0xf0]  ;;  %v10404_v12 = vor.u32 %v14035_v5, %v10403_v3  ;;  %3665 = vmatpush.bf16.msra.mxu3 %v10676_v4 }
  0x80   :  { %v10659_v8 = vld [vmem:[#allocation2 + $0xb80] sm:$0xf]  ;;  %v14099_v9 = vld [vmem:[#allocation2 + $0xb8c] sm:$0xf0]  ;;  %v10532_v13 = vor.u32 %v14067_v7, %v10531_v6  ;;  %3624 = vmatpush.bf16.msra.mxu0 %v10276_v11 }
  0x81   :  { %v10259_v14 = vld [vmem:[#allocation2 + $0x860] sm:$0xf]  ;;  %v13999_v15 = vld [vmem:[#allocation2 + $0x86c] sm:$0xf0]  ;;  %v10660_v18 = vor.u32 %v14099_v9, %v10659_v8  ;;  %3638 = vmatpush.bf16.msra.mxu1 %v10404_v12 }
  0x82   :  { %v10387_v16 = vld [vmem:[#allocation2 + $0x960] sm:$0xf]  ;;  %v14031_v19 = vld [vmem:[#allocation2 + $0x96c] sm:$0xf0]  ;;  %v10260_v24 = vor.u32 %v13999_v15, %v10259_v14  ;;  %3652 = vmatpush.bf16.msra.mxu2 %v10532_v13  ;;  %v209_v13 = vld [vmem:[%s15870_s0 + $0xc8] sm:$0xff] }
  0x83   :  { %v10515_v20 = vld [vmem:[#allocation2 + $0xa60] sm:$0xf]  ;;  %v14063_v21 = vld [vmem:[#allocation2 + $0xa6c] sm:$0xf0]  ;;  %v10388_v25 = vor.u32 %v14031_v19, %v10387_v16  ;;  %3666 = vmatpush.bf16.msra.mxu3 %v10660_v18  ;;  %v211_v18 = vld [vmem:[%s15870_s0 + $0xd8] sm:$0xff] }
  0x84   :  { %v10643_v22 = vld [vmem:[#allocation2 + $0xb60] sm:$0xf]  ;;  %v14095_v23 = vld [vmem:[#allocation2 + $0xb6c] sm:$0xf0]  ;;  %v10516_v26 = vor.u32 %v14063_v21, %v10515_v20  ;;  %3625 = vmatpush.bf16.msra.mxu0 %v10260_v24  ;;  %v193_v19 = vld [vmem:[%s15870_s0 + $0x48] sm:$0xff] }
  0x85   :  { %v10243_v27 = vld [vmem:[#allocation2 + $0x840] sm:$0xf]  ;;  %v13995_v28 = vld [vmem:[#allocation2 + $0x84c] sm:$0xf0]  ;;  %v10644_v30 = vor.u32 %v14095_v23, %v10643_v22  ;;  %3639 = vmatpush.bf16.msra.mxu1 %v10388_v25  ;;  %v195_v23 = vld [vmem:[%s15870_s0 + $0x58] sm:$0xff] }
  0x86   :  { %v10371_v29 = vld [vmem:[#allocation2 + $0x940] sm:$0xf]  ;;  %v14027_v31 = vld [vmem:[#allocation2 + $0x94c] sm:$0xf0]  ;;  %v10244_v36 = vor.u32 %v13995_v28, %v10243_v27  ;;  %3653 = vmatpush.bf16.msra.mxu2 %v10516_v26 }
  0x87   :  { %v10499_v32 = vld [vmem:[#allocation2 + $0xa40] sm:$0xf]  ;;  %v14059_v33 = vld [vmem:[#allocation2 + $0xa4c] sm:$0xf0]  ;;  %v10372_v38 = vor.u32 %v14027_v31, %v10371_v29  ;;  %3667 = vmatpush.bf16.msra.mxu3 %v10644_v30 }
  0x88   :  { %v10627_v34 = vld [vmem:[#allocation2 + $0xb40] sm:$0xf]  ;;  %v14091_v35 = vld [vmem:[#allocation2 + $0xb4c] sm:$0xf0]  ;;  %v10500_v40 = vor.u32 %v14059_v33, %v10499_v32  ;;  %3626 = vmatpush.bf16.msra.mxu0 %v10244_v36 }
  0x89   :  { %v10227_v37 = vld [vmem:[#allocation2 + $0x820] sm:$0xf]  ;;  %v13991_v41 = vld [vmem:[#allocation2 + $0x82c] sm:$0xf0]  ;;  %v10628_v46 = vor.u32 %v14091_v35, %v10627_v34  ;;  %3640 = vmatpush.bf16.msra.mxu1 %v10372_v38 }
  0x8a   :  { %v10355_v42 = vld [vmem:[#allocation2 + $0x920] sm:$0xf]  ;;  %v14023_v45 = vld [vmem:[#allocation2 + $0x92c] sm:$0xf0]  ;;  %v10228_v54 = vor.u32 %v13991_v41, %v10227_v37  ;;  %3654 = vmatpush.bf16.msra.mxu2 %v10500_v40 }
  0x8b   :  { %v10483_v48 = vld [vmem:[#allocation2 + $0xa20] sm:$0xf]  ;;  %v14055_v49 = vld [vmem:[#allocation2 + $0xa2c] sm:$0xf0]  ;;  %v10356_v60 = vor.u32 %v14023_v45, %v10355_v42  ;;  %3668 = vmatpush.bf16.msra.mxu3 %v10628_v46 }
  0x8c   :  { %v10611_v50 = vld [vmem:[#allocation2 + $0xb20] sm:$0xf]  ;;  %v14087_v51 = vld [vmem:[#allocation2 + $0xb2c] sm:$0xf0]  ;;  %v10484_v61 = vor.u32 %v14055_v49, %v10483_v48  ;;  %3627 = vmatpush.bf16.msra.mxu0 %v10228_v54 }
  0x8d   :  { %v10211_v52 = vld [vmem:[#allocation2 + $0x800] sm:$0xf]  ;;  %v13987_v53 = vld [vmem:[#allocation2 + $0x80c] sm:$0xf0]  ;;  %v10612_v2 = vor.u32 %v14087_v51, %v10611_v50  ;;  %3641 = vmatpush.bf16.msra.mxu1 %v10356_v60 }
  0x8e   :  { %v10339_v55 = vld [vmem:[#allocation2 + $0x900] sm:$0xf]  ;;  %v14019_v56 = vld [vmem:[#allocation2 + $0x90c] sm:$0xf0]  ;;  %v10212_v9 = vor.u32 %v13987_v53, %v10211_v52  ;;  %3655 = vmatpush.bf16.msra.mxu2 %v10484_v61 }
  0x8f   :  { %v10467_v57 = vld [vmem:[#allocation2 + $0xa00] sm:$0xf]  ;;  %v14051_v59 = vld [vmem:[#allocation2 + $0xa0c] sm:$0xf0]  ;;  %v10340_v14 = vor.u32 %v14019_v56, %v10339_v55  ;;  %3669 = vmatpush.bf16.msra.mxu3 %v10612_v2 }
  0x90   :  { %v10595_v62 = vld [vmem:[#allocation2 + $0xb00] sm:$0xf]  ;;  %v14083_v63 = vld [vmem:[#allocation2 + $0xb0c] sm:$0xf0]  ;;  %v10468_v15 = vor.u32 %v14051_v59, %v10467_v57  ;;  %3628 = vmatpush.bf16.msra.mxu0 %v10212_v9 }
  0x91   :  { %v10835_v0 = vld [vmem:[#allocation2 + $0xce0] sm:$0xf]  ;;  %v14143_v3 = vld [vmem:[#allocation2 + $0xcec] sm:$0xf0]  ;;  %v10596_v20 = vor.u32 %v14083_v63, %v10595_v62  ;;  %3642 = vmatpush.bf16.msra.mxu1 %v10340_v14 }
  0x92   :  { %v10963_v4 = vld [vmem:[#allocation2 + $0xde0] sm:$0xf]  ;;  %v14175_v5 = vld [vmem:[#allocation2 + $0xdec] sm:$0xf0]  ;;  %v10836_v21 = vor.u32 %v14143_v3, %v10835_v0  ;;  %3656 = vmatpush.bf16.msra.mxu2 %v10468_v15 }
  0x93   :  { %v11091_v6 = vld [vmem:[#allocation2 + $0xee0] sm:$0xf]  ;;  %v14207_v7 = vld [vmem:[#allocation2 + $0xeec] sm:$0xf0]  ;;  %v10964_v25 = vor.u32 %v14175_v5, %v10963_v4  ;;  %3670 = vmatpush.bf16.msra.mxu3 %v10596_v20 }
  0x94   :  { %v11219_v8 = vld [vmem:[#allocation2 + $0xfe0] sm:$0xf]  ;;  %v14239_v11 = vld [vmem:[#allocation2 + $0xfec] sm:$0xf0]  ;;  %v11092_v26 = vor.u32 %v14207_v7, %v11091_v6  ;;  %3677 = vmatpush.bf16.msrb.mxu0 %v10836_v21 }
  0x95   :  { %v192_v12 = vld [vmem:[%s15870_s0 + $0x40] sm:$0xff]  ;;  %v194_v16 = vld [vmem:[%s15870_s0 + $0x50] sm:$0xff]  ;;  %v11220_v30 = vor.u32 %v14239_v11, %v11219_v8  ;;  %3691 = vmatpush.bf16.msrb.mxu1 %v10964_v25 }
  0x96   :  { %v210_v22 = vld [vmem:[%s15870_s0 + $0xd0] sm:$0xff]  ;;  %v212_v24 = vld [vmem:[%s15870_s0 + $0xe0] sm:$0xff]  ;;  %v15344_v31 = vpack.c.bf16 %v209_v13, %v192_v12  ;;  %v15346_v35 = vpack.c.bf16 %v211_v18, %v194_v16  ;;  %3705 = vmatpush.bf16.msrb.mxu2 %v11092_v26 }
  0x97   :  { %v10819_v27 = vld [vmem:[#allocation2 + $0xcc0] sm:$0xf]  ;;  %v14139_v28 = vld [vmem:[#allocation2 + $0xccc] sm:$0xf0]  ;;  %v15348_v36 = vpack.c.bf16 %v210_v22, %v193_v19  ;;  %v15350_v40 = vpack.c.bf16 %v212_v24, %v195_v23  ;;  %3719 = vmatpush.bf16.msrb.mxu3 %v11220_v30 }
  0x98   :  { %v10947_v29 = vld [vmem:[#allocation2 + $0xdc0] sm:$0xf]  ;;  %v14171_v32 = vld [vmem:[#allocation2 + $0xdcc] sm:$0xf0]  ;;  %v10820_v41 = vor.u32 %v14139_v28, %v10819_v27  ;;  %3629 = vmatmul.bf16.vlgmr.msra.gmra.mxu0 %v15344_v31  ;;  %3657 = vmatmul.bf16.vlgmr.msra.gmra.mxu2 %v15346_v35 }
  0x99   :  { %v11075_v33 = vld [vmem:[#allocation2 + $0xec0] sm:$0xf]  ;;  %v14203_v34 = vld [vmem:[#allocation2 + $0xecc] sm:$0xf0]  ;;  %v10948_v42 = vor.u32 %v14171_v32, %v10947_v29  ;;  %3643 = vmatmul.bf16.vlgmr.msra.gmra.mxu1 %v15348_v36  ;;  %3671 = vmatmul.bf16.vlgmr.msra.gmra.mxu3 %v15350_v40 }
  0x9a   :  { %v11203_v37 = vld [vmem:[#allocation2 + $0xfc0] sm:$0xf]  ;;  %v14235_v38 = vld [vmem:[#allocation2 + $0xfcc] sm:$0xf0]  ;;  %v11076_v45 = vor.u32 %v14203_v34, %v11075_v33  ;;  %3678 = vmatpush.bf16.msrb.mxu0 %v10820_v41 }
  0x9b   :  { %v10803_v46 = vld [vmem:[#allocation2 + $0xca0] sm:$0xf]  ;;  %v14135_v48 = vld [vmem:[#allocation2 + $0xcac] sm:$0xf0]  ;;  %v11204_v50 = vor.u32 %v14235_v38, %v11203_v37  ;;  %3692 = vmatpush.bf16.msrb.mxu1 %v10948_v42 }
  0x9c   :  { %v10931_v49 = vld [vmem:[#allocation2 + $0xda0] sm:$0xf]  ;;  %v14167_v51 = vld [vmem:[#allocation2 + $0xdac] sm:$0xf0]  ;;  %v10804_v56 = vor.u32 %v14135_v48, %v10803_v46  ;;  %3706 = vmatpush.bf16.msrb.mxu2 %v11076_v45 }
  0x9d   :  { %v11059_v52 = vld [vmem:[#allocation2 + $0xea0] sm:$0xf]  ;;  %v14199_v53 = vld [vmem:[#allocation2 + $0xeac] sm:$0xf0]  ;;  %v10932_v57 = vor.u32 %v14167_v51, %v10931_v49  ;;  %3720 = vmatpush.bf16.msrb.mxu3 %v11204_v50 }
  0x9e   :  { %v11187_v54 = vld [vmem:[#allocation2 + $0xfa0] sm:$0xf]  ;;  %v14231_v55 = vld [vmem:[#allocation2 + $0xfac] sm:$0xf0]  ;;  %v11060_v59 = vor.u32 %v14199_v53, %v11059_v52  ;;  %3679 = vmatpush.bf16.msrb.mxu0 %v10804_v56 }
  0x9f   :  { %v10787_v60 = vld [vmem:[#allocation2 + $0xc80] sm:$0xf]  ;;  %v14131_v61 = vld [vmem:[#allocation2 + $0xc8c] sm:$0xf0]  ;;  %v11188_v63 = vor.u32 %v14231_v55, %v11187_v54  ;;  %3693 = vmatpush.bf16.msrb.mxu1 %v10932_v57 }
  0xa0   :  { %v10915_v62 = vld [vmem:[#allocation2 + $0xd80] sm:$0xf]  ;;  %v14163_v0 = vld [vmem:[#allocation2 + $0xd8c] sm:$0xf0]  ;;  %v10788_v6 = vor.u32 %v14131_v61, %v10787_v60  ;;  %3707 = vmatpush.bf16.msrb.mxu2 %v11060_v59 }
  0xa1   :  { %v11043_v2 = vld [vmem:[#allocation2 + $0xe80] sm:$0xf]  ;;  %v14195_v3 = vld [vmem:[#allocation2 + $0xe8c] sm:$0xf0]  ;;  %v10916_v7 = vor.u32 %v14163_v0, %v10915_v62  ;;  %3721 = vmatpush.bf16.msrb.mxu3 %v11188_v63 }
  0xa2   :  { %v11171_v4 = vld [vmem:[#allocation2 + $0xf80] sm:$0xf]  ;;  %v14227_v5 = vld [vmem:[#allocation2 + $0xf8c] sm:$0xf0]  ;;  %v11044_v8 = vor.u32 %v14195_v3, %v11043_v2  ;;  %3680 = vmatpush.bf16.msrb.mxu0 %v10788_v6  ;;  %v13789_v6 = vld [vmem:[#allocation2 + $0x1e4] sm:$0xf] }
  0xa3   :  { %v10771_v9 = vld [vmem:[#allocation2 + $0xc60] sm:$0xf]  ;;  %v14127_v11 = vld [vmem:[#allocation2 + $0xc6c] sm:$0xf0]  ;;  %v11172_v13 = vor.u32 %v14227_v5, %v11171_v4  ;;  %3694 = vmatpush.bf16.msrb.mxu1 %v10916_v7  ;;  %v13757_v4 = vld [vmem:[#allocation2 + $0xe4] sm:$0xf] }
  0xa4   :  { %v10899_v12 = vld [vmem:[#allocation2 + $0xd60] sm:$0xf]  ;;  %v14159_v14 = vld [vmem:[#allocation2 + $0xd6c] sm:$0xf0]  ;;  %v10772_v20 = vor.u32 %v14127_v11, %v10771_v9  ;;  %3708 = vmatpush.bf16.msrb.mxu2 %v11044_v8  ;;  %v9301_v5 = vld [vmem:[#allocation2 + $0xf0] sm:$0xf0] }
  0xa5   :  { %v11027_v15 = vld [vmem:[#allocation2 + $0xe60] sm:$0xf]  ;;  %v14191_v16 = vld [vmem:[#allocation2 + $0xe6c] sm:$0xf0]  ;;  %v10900_v21 = vor.u32 %v14159_v14, %v10899_v12  ;;  %3722 = vmatpush.bf16.msrb.mxu3 %v11172_v13  ;;  %v9429_v7 = vld [vmem:[#allocation2 + $0x1f0] sm:$0xf0] }
  0xa6   :  { %v11155_v18 = vld [vmem:[#allocation2 + $0xf60] sm:$0xf]  ;;  %v14223_v19 = vld [vmem:[#allocation2 + $0xf6c] sm:$0xf0]  ;;  %v11028_v22 = vor.u32 %v14191_v16, %v11027_v15  ;;  %3681 = vmatpush.bf16.msrb.mxu0 %v10772_v20  ;;  %v13821_v8 = vld [vmem:[#allocation2 + $0x2e4] sm:$0xf] }
  0xa7   :  { %v10755_v23 = vld [vmem:[#allocation2 + $0xc40] sm:$0xf]  ;;  %v14123_v24 = vld [vmem:[#allocation2 + $0xc4c] sm:$0xf0]  ;;  %v11156_v26 = vor.u32 %v14223_v19, %v11155_v18  ;;  %3695 = vmatpush.bf16.msrb.mxu1 %v10900_v21  ;;  %v9557_v11 = vld [vmem:[#allocation2 + $0x2f0] sm:$0xf0] }
  0xa8   :  { %v10883_v25 = vld [vmem:[#allocation2 + $0xd40] sm:$0xf]  ;;  %v14155_v27 = vld [vmem:[#allocation2 + $0xd4c] sm:$0xf0]  ;;  %v10756_v33 = vor.u32 %v14123_v24, %v10755_v23  ;;  %3709 = vmatpush.bf16.msrb.mxu2 %v11028_v22  ;;  %v213_v13 = vld [vmem:[%s15870_s0 + $0xe8] sm:$0xff] }
  0xa9   :  { %v11011_v28 = vld [vmem:[#allocation2 + $0xe40] sm:$0xf]  ;;  %v14187_v29 = vld [vmem:[#allocation2 + $0xe4c] sm:$0xf0]  ;;  %v10884_v38 = vor.u32 %v14155_v27, %v10883_v25  ;;  %3723 = vmatpush.bf16.msrb.mxu3 %v11156_v26  ;;  %v215_v18 = vld [vmem:[%s15870_s0 + $0xf8] sm:$0xff]  ;;  %v9304_v25 = vor.u32 %v13757_v4, %v9301_v5  ;;  %v9432_v26 = vor.u32 %v13789_v6, %v9429_v7 }
  0xaa   :  { %v11139_v30 = vld [vmem:[#allocation2 + $0xf40] sm:$0xf]  ;;  %v14219_v32 = vld [vmem:[#allocation2 + $0xf4c] sm:$0xf0]  ;;  %v11012_v41 = vor.u32 %v14187_v29, %v11011_v28  ;;  %3682 = vmatpush.bf16.msrb.mxu0 %v10756_v33  ;;  %v197_v19 = vld [vmem:[%s15870_s0 + $0x68] sm:$0xff] }
  0xab   :  { %v10739_v34 = vld [vmem:[#allocation2 + $0xc20] sm:$0xf]  ;;  %v14119_v37 = vld [vmem:[#allocation2 + $0xc2c] sm:$0xf0]  ;;  %v11140_v48 = vor.u32 %v14219_v32, %v11139_v30  ;;  %3696 = vmatpush.bf16.msrb.mxu1 %v10884_v38  ;;  %v199_v23 = vld [vmem:[%s15870_s0 + $0x78] sm:$0xff]  ;;  %v9560_v30 = vor.u32 %v13821_v8, %v9557_v11 }
  0xac   :  { %v10867_v42 = vld [vmem:[#allocation2 + $0xd20] sm:$0xf]  ;;  %v14151_v45 = vld [vmem:[#allocation2 + $0xd2c] sm:$0xf0]  ;;  %v10740_v54 = vor.u32 %v14119_v37, %v10739_v34  ;;  %3710 = vmatpush.bf16.msrb.mxu2 %v11012_v41  ;;  %v13753_v29 = vld [vmem:[#allocation2 + $0xc4] sm:$0xf] }
  0xad   :  { %v10995_v46 = vld [vmem:[#allocation2 + $0xe20] sm:$0xf]  ;;  %v14183_v49 = vld [vmem:[#allocation2 + $0xe2c] sm:$0xf0]  ;;  %v10868_v60 = vor.u32 %v14151_v45, %v10867_v42  ;;  %3724 = vmatpush.bf16.msrb.mxu3 %v11140_v48  ;;  %v9285_v33 = vld [vmem:[#allocation2 + $0xd0] sm:$0xf0] }
  0xae   :  { %v11123_v50 = vld [vmem:[#allocation2 + $0xf20] sm:$0xf]  ;;  %v14215_v51 = vld [vmem:[#allocation2 + $0xf2c] sm:$0xf0]  ;;  %v10996_v61 = vor.u32 %v14183_v49, %v10995_v46  ;;  %3683 = vmatpush.bf16.msrb.mxu0 %v10740_v54  ;;  %v13785_v34 = vld [vmem:[#allocation2 + $0x1c4] sm:$0xf]  ;;  %v9288_v49 = vor.u32 %v13753_v29, %v9285_v33 }
  0xaf   :  { %v10723_v52 = vld [vmem:[#allocation2 + $0xc00] sm:$0xf]  ;;  %v14115_v53 = vld [vmem:[#allocation2 + $0xc0c] sm:$0xf0]  ;;  %v11124_v2 = vor.u32 %v14215_v51, %v11123_v50  ;;  %3697 = vmatpush.bf16.msrb.mxu1 %v10868_v60  ;;  %v9413_v37 = vld [vmem:[#allocation2 + $0x1d0] sm:$0xf0] }
  0xb0   :  { %v10851_v55 = vld [vmem:[#allocation2 + $0xd00] sm:$0xf]  ;;  %v14147_v56 = vld [vmem:[#allocation2 + $0xd0c] sm:$0xf0]  ;;  %v10724_v9 = vor.u32 %v14115_v53, %v10723_v52  ;;  %3711 = vmatpush.bf16.msrb.mxu2 %v10996_v61  ;;  %v13817_v42 = vld [vmem:[#allocation2 + $0x2c4] sm:$0xf]  ;;  %v9416_v50 = vor.u32 %v13785_v34, %v9413_v37 }
  0xb1   :  { %v10979_v57 = vld [vmem:[#allocation2 + $0xe00] sm:$0xf]  ;;  %v14179_v59 = vld [vmem:[#allocation2 + $0xe0c] sm:$0xf0]  ;;  %v10852_v14 = vor.u32 %v14147_v56, %v10851_v55  ;;  %3725 = vmatpush.bf16.msrb.mxu3 %v11124_v2  ;;  %v9541_v45 = vld [vmem:[#allocation2 + $0x2d0] sm:$0xf0] }
  0xb2   :  { %v11107_v62 = vld [vmem:[#allocation2 + $0xf00] sm:$0xf]  ;;  %v14211_v63 = vld [vmem:[#allocation2 + $0xf0c] sm:$0xf0]  ;;  %v10980_v15 = vor.u32 %v14179_v59, %v10979_v57  ;;  %3684 = vmatpush.bf16.msrb.mxu0 %v10724_v9  ;;  %v13749_v53 = vld [vmem:[#allocation2 + $0xa4] sm:$0xf]  ;;  %v9544_v54 = vor.u32 %v13817_v42, %v9541_v45 }
  0xb3   :  { %v11347_v0 = vld [vmem:[#allocation2 + $0x10e0] sm:$0xf]  ;;  %v14271_v3 = vld [vmem:[#allocation2 + $0x10ec] sm:$0xf0]  ;;  %v11108_v20 = vor.u32 %v14211_v63, %v11107_v62  ;;  %3698 = vmatpush.bf16.msrb.mxu1 %v10852_v14  ;;  %v9269_v55 = vld [vmem:[#allocation2 + $0xb0] sm:$0xf0] }
  0xb4   :  { %v196_v12 = vld [vmem:[%s15870_s0 + $0x60] sm:$0xff]  ;;  %v198_v16 = vld [vmem:[%s15870_s0 + $0x70] sm:$0xff]  ;;  %v11348_v21 = vor.u32 %v14271_v3, %v11347_v0  ;;  %3712 = vmatpush.bf16.msrb.mxu2 %v10980_v15  ;;  %v9272_v62 = vor.u32 %v13749_v53, %v9269_v55 }
  0xb5   :  { %v214_v22 = vld [vmem:[%s15870_s0 + $0xf0] sm:$0xff]  ;;  %v216_v24 = vld [vmem:[%s15870_s0 + $0x100] sm:$0xff]  ;;  %v15380_v32 = vpack.c.bf16 %v213_v13, %v196_v12  ;;  %v15382_v38 = vpack.c.bf16 %v215_v18, %v198_v16  ;;  %3726 = vmatpush.bf16.msrb.mxu3 %v11108_v20 }
  0xb6   :  { %v11331_v27 = vld [vmem:[#allocation2 + $0x10c0] sm:$0xf]  ;;  %v14267_v28 = vld [vmem:[#allocation2 + $0x10cc] sm:$0xf0]  ;;  %v15384_v41 = vpack.c.bf16 %v214_v22, %v197_v19  ;;  %3733 = vmatpush.bf16.msra.mxu0 %v11348_v21  ;;  %v15386_v46 = vpack.c.bf16 %v216_v24, %v199_v23  ;;  %v13781_v56 = vld [vmem:[#allocation2 + $0x1a4] sm:$0xf] }
  0xb7   :  { %v11332_v48 = vor.u32 %v14267_v28, %v11331_v27  ;;  %3747 = vmatpush.bf16.msra.mxu1 %v9304_v25  ;;  %v11315_v51 = vld [vmem:[#allocation2 + $0x10a0] sm:$0xf]  ;;  %v14263_v52 = vld [vmem:[#allocation2 + $0x10ac] sm:$0xf0]  ;;  %3685 = vmatmul.bf16.vlgmr.msrb.gmra.mxu0 %v15380_v32  ;;  %v9397_v57 = vld [vmem:[#allocation2 + $0x1b0] sm:$0xf0] }
  0xb8   :  { %15885 = vst [vmem:[#allocation24_spill] sm:$0xff] %v15384_v41  ;;  %3761 = vmatpush.bf16.msra.mxu2 %v9432_v26  ;;  %3699 = vmatmul.bf16.vlgmr.msrb.gmra.mxu1 %v15384_v41  ;;  %v13813_v59 = vld [vmem:[#allocation2 + $0x2a4] sm:$0xf]  ;;  %v9525_v60 = vld [vmem:[#allocation2 + $0x2b0] sm:$0xf0]  ;;  %v11316_v61 = vor.u32 %v14263_v52, %v11315_v51  ;;  %v9400_v63 = vor.u32 %v13781_v56, %v9397_v57 }
  0xb9   :  { %3775 = vmatpush.bf16.msra.mxu3 %v9560_v30  ;;  %3713 = vmatmul.bf16.vlgmr.msrb.gmra.mxu2 %v15382_v38  ;;  %v11299_v0 = vld [vmem:[#allocation2 + $0x1080] sm:$0xf]  ;;  %v14259_v2 = vld [vmem:[#allocation2 + $0x108c] sm:$0xf0]  ;;  %v13745_v3 = vld [vmem:[#allocation2 + $0x84] sm:$0xf]  ;;  %v9528_v4 = vor.u32 %v13813_v59, %v9525_v60 }
  0xba   :  { %3727 = vmatmul.bf16.vlgmr.msrb.gmra.mxu3 %v15386_v46  ;;  %3734 = vmatpush.bf16.msra.mxu0 %v11332_v48  ;;  %v9253_v5 = vld [vmem:[#allocation2 + $0x90] sm:$0xf0]  ;;  %v13777_v6 = vld [vmem:[#allocation2 + $0x184] sm:$0xf]  ;;  %v11300_v11 = vor.u32 %v14259_v2, %v11299_v0  ;;  %v11283_v14 = vld [vmem:[#allocation2 + $0x1060] sm:$0xf] }
  0xbb   :  { %3748 = vmatpush.bf16.msra.mxu1 %v9288_v49  ;;  %v9381_v7 = vld [vmem:[#allocation2 + $0x190] sm:$0xf0]  ;;  %v13809_v8 = vld [vmem:[#allocation2 + $0x284] sm:$0xf]  ;;  %v9256_v12 = vor.u32 %v13745_v3, %v9253_v5  ;;  %v14255_v15 = vld [vmem:[#allocation2 + $0x106c] sm:$0xf0] }
  0xbc   :  { %3762 = vmatpush.bf16.msra.mxu2 %v9416_v50  ;;  %v9509_v9 = vld [vmem:[#allocation2 + $0x290] sm:$0xf0]  ;;  %v9384_v13 = vor.u32 %v13777_v6, %v9381_v7  ;;  %v13741_v16 = vld [vmem:[#allocation2 + $0x64] sm:$0xf]  ;;  %v11284_v24 = vor.u32 %v14255_v15, %v11283_v14  ;;  %v11267_v27 = vld [vmem:[#allocation2 + $0x1040] sm:$0xf] }
  0xbd   :  { %3776 = vmatpush.bf16.msra.mxu3 %v9544_v54  ;;  %v9512_v18 = vor.u32 %v13809_v8, %v9509_v9  ;;  %v9237_v19 = vld [vmem:[#allocation2 + $0x70] sm:$0xf0]  ;;  %v13773_v20 = vld [vmem:[#allocation2 + $0x164] sm:$0xf]  ;;  %v14251_v28 = vld [vmem:[#allocation2 + $0x104c] sm:$0xf0] }
  0xbe   :  { %3735 = vmatpush.bf16.msra.mxu0 %v11316_v61  ;;  %v9365_v21 = vld [vmem:[#allocation2 + $0x170] sm:$0xf0]  ;;  %v13805_v22 = vld [vmem:[#allocation2 + $0x264] sm:$0xf]  ;;  %v9240_v25 = vor.u32 %v13741_v16, %v9237_v19  ;;  %v11268_v48 = vor.u32 %v14251_v28, %v11267_v27  ;;  %v11251_v51 = vld [vmem:[#allocation2 + $0x1020] sm:$0xf] }
  0xbf   :  { %3749 = vmatpush.bf16.msra.mxu1 %v9272_v62  ;;  %v9493_v23 = vld [vmem:[#allocation2 + $0x270] sm:$0xf0]  ;;  %v9368_v26 = vor.u32 %v13773_v20, %v9365_v21  ;;  %v13737_v29 = vld [vmem:[#allocation2 + $0x44] sm:$0xf]  ;;  %v14247_v52 = vld [vmem:[#allocation2 + $0x102c] sm:$0xf0] }
  0xc0   :  { %3763 = vmatpush.bf16.msra.mxu2 %v9400_v63  ;;  %v9496_v30 = vor.u32 %v13805_v22, %v9493_v23  ;;  %v9221_v33 = vld [vmem:[#allocation2 + $0x50] sm:$0xf0]  ;;  %v13769_v34 = vld [vmem:[#allocation2 + $0x144] sm:$0xf]  ;;  %v11252_v61 = vor.u32 %v14247_v52, %v11251_v51  ;;  %v11235_v62 = vld [vmem:[#allocation2 + $0x1000] sm:$0xf] }
  0xc1   :  { %3777 = vmatpush.bf16.msra.mxu3 %v9528_v4  ;;  %v9349_v37 = vld [vmem:[#allocation2 + $0x150] sm:$0xf0]  ;;  %v13801_v42 = vld [vmem:[#allocation2 + $0x244] sm:$0xf]  ;;  %v9224_v49 = vor.u32 %v13737_v29, %v9221_v33  ;;  %v14243_v63 = vld [vmem:[#allocation2 + $0x100c] sm:$0xf0] }
  0xc2   :  { %3736 = vmatpush.bf16.msra.mxu0 %v11300_v11  ;;  %v9477_v45 = vld [vmem:[#allocation2 + $0x250] sm:$0xf0]  ;;  %v9352_v50 = vor.u32 %v13769_v34, %v9349_v37  ;;  %v13733_v53 = vld [vmem:[#allocation2 + $0x24] sm:$0xf]  ;;  %v11236_v15 = vor.u32 %v14243_v63, %v11235_v62 }
  0xc3   :  { %3750 = vmatpush.bf16.msra.mxu1 %v9256_v12  ;;  %v9480_v54 = vor.u32 %v13801_v42, %v9477_v45  ;;  %v9205_v55 = vld [vmem:[#allocation2 + $0x30] sm:$0xf0]  ;;  %v13765_v56 = vld [vmem:[#allocation2 + $0x124] sm:$0xf] }
  0xc4   :  { %3764 = vmatpush.bf16.msra.mxu2 %v9384_v13  ;;  %v9333_v57 = vld [vmem:[#allocation2 + $0x130] sm:$0xf0]  ;;  %v13797_v59 = vld [vmem:[#allocation2 + $0x224] sm:$0xf]  ;;  %v9208_v2 = vor.u32 %v13733_v53, %v9205_v55 }
  0xc5   :  { %3778 = vmatpush.bf16.msra.mxu3 %v9512_v18  ;;  %v9461_v60 = vld [vmem:[#allocation2 + $0x230] sm:$0xf0]  ;;  %v13729_v0 = vld [vmem:[#allocation2 + $0x4] sm:$0xf]  ;;  %v9336_v3 = vor.u32 %v13765_v56, %v9333_v57  ;;  %v15400_v57 = vld [vmem:[#allocation4] sm:$0xf] }
  0xc6   :  { %3737 = vmatpush.bf16.msra.mxu0 %v11284_v24  ;;  %v9189_v4 = vld [vmem:[#allocation2 + $0x10] sm:$0xf0]  ;;  %v13761_v5 = vld [vmem:[#allocation2 + $0x104] sm:$0xf]  ;;  %v9464_v7 = vor.u32 %v13797_v59, %v9461_v60  ;;  %v217_v24 = vld [vmem:[%s15870_s0 + $0x108] sm:$0xff] }
  0xc7   :  { %3751 = vmatpush.bf16.msra.mxu1 %v9240_v25  ;;  %v9317_v6 = vld [vmem:[#allocation2 + $0x110] sm:$0xf0]  ;;  %v13793_v8 = vld [vmem:[#allocation2 + $0x204] sm:$0xf]  ;;  %v9192_v20 = vor.u32 %v13729_v0, %v9189_v4 }
  0xc8   :  { %3765 = vmatpush.bf16.msra.mxu2 %v9368_v26  ;;  %v9445_v9 = vld [vmem:[#allocation2 + $0x210] sm:$0xf0]  ;;  %v13853_v11 = vld [vmem:[#allocation2 + $0x3e4] sm:$0xf]  ;;  %v9320_v21 = vor.u32 %v13761_v5, %v9317_v6 }
  0xc9   :  { %3779 = vmatpush.bf16.msra.mxu3 %v9496_v30  ;;  %v9685_v12 = vld [vmem:[#allocation2 + $0x3f0] sm:$0xf0]  ;;  %v13885_v13 = vld [vmem:[#allocation2 + $0x4e4] sm:$0xf]  ;;  %v9448_v25 = vor.u32 %v13793_v8, %v9445_v9 }
  0xca   :  { %3738 = vmatpush.bf16.msra.mxu0 %v11268_v48  ;;  %v9813_v14 = vld [vmem:[#allocation2 + $0x4f0] sm:$0xf0]  ;;  %v13917_v16 = vld [vmem:[#allocation2 + $0x5e4] sm:$0xf]  ;;  %v9688_v26 = vor.u32 %v13853_v11, %v9685_v12 }
  0xcb   :  { %3752 = vmatpush.bf16.msra.mxu1 %v9224_v49  ;;  %v9941_v18 = vld [vmem:[#allocation2 + $0x5f0] sm:$0xf0]  ;;  %v13949_v19 = vld [vmem:[#allocation2 + $0x6e4] sm:$0xf]  ;;  %v9816_v27 = vor.u32 %v13885_v13, %v9813_v14 }
  0xcc   :  { %3766 = vmatpush.bf16.msra.mxu2 %v9352_v50  ;;  %v10069_v22 = vld [vmem:[#allocation2 + $0x6f0] sm:$0xf0]  ;;  %v200_v23 = vld [vmem:[%s15870_s0 + $0x80] sm:$0xff]  ;;  %v9944_v28 = vor.u32 %v13917_v16, %v9941_v18 }
  0xcd   :  { %3780 = vmatpush.bf16.msra.mxu3 %v9480_v54  ;;  %v13849_v29 = vld [vmem:[#allocation2 + $0x3c4] sm:$0xf]  ;;  %v9669_v30 = vld [vmem:[#allocation2 + $0x3d0] sm:$0xf0]  ;;  %v10072_v34 = vor.u32 %v13949_v19, %v10069_v22  ;;  %v15398_v37 = vpack.c.bf16 %v217_v24, %v200_v23 }
  0xce   :  { %3739 = vmatpush.bf16.msra.mxu0 %v11252_v61  ;;  %v13881_v33 = vld [vmem:[#allocation2 + $0x4c4] sm:$0xf]  ;;  %v9797_v42 = vld [vmem:[#allocation2 + $0x4d0] sm:$0xf0]  ;;  %v9672_v51 = vor.u32 %v13849_v29, %v9669_v30 }
  0xcf   :  { %3753 = vmatpush.bf16.msra.mxu1 %v9208_v2  ;;  %v13913_v45 = vld [vmem:[#allocation2 + $0x5c4] sm:$0xf]  ;;  %v9925_v48 = vld [vmem:[#allocation2 + $0x5d0] sm:$0xf0]  ;;  %v9800_v53 = vor.u32 %v13881_v33, %v9797_v42 }
  0xd0   :  { %3767 = vmatpush.bf16.msra.mxu2 %v9336_v3  ;;  %v13945_v49 = vld [vmem:[#allocation2 + $0x6c4] sm:$0xf]  ;;  %v10053_v50 = vld [vmem:[#allocation2 + $0x6d0] sm:$0xf0]  ;;  %v9928_v54 = vor.u32 %v13913_v45, %v9925_v48  ;;  %v15882_v3 = vperm.slane %v15400_v57, 0 }
  0xd1   :  { %3781 = vmatpush.bf16.msra.mxu3 %v9464_v7  ;;  %v13845_v52 = vld [vmem:[#allocation2 + $0x3a4] sm:$0xf]  ;;  %v9653_v55 = vld [vmem:[#allocation2 + $0x3b0] sm:$0xf0]  ;;  %v10056_v59 = vor.u32 %v13945_v49, %v10053_v50 }
  0xd2   :  { %3740 = vmatpush.bf16.msra.mxu0 %v11236_v15  ;;  %v13877_v56 = vld [vmem:[#allocation2 + $0x4a4] sm:$0xf]  ;;  %v9781_v60 = vld [vmem:[#allocation2 + $0x4b0] sm:$0xf0]  ;;  %v9656_v2 = vor.u32 %v13845_v52, %v9653_v55 }
  0xd3   :  { %3754 = vmatpush.bf16.msra.mxu1 %v9192_v20  ;;  %v13909_v61 = vld [vmem:[#allocation2 + $0x5a4] sm:$0xf]  ;;  %v9909_v62 = vld [vmem:[#allocation2 + $0x5b0] sm:$0xf0]  ;;  %v9784_v4 = vor.u32 %v13877_v56, %v9781_v60 }
  0xd4   :  { %3768 = vmatpush.bf16.msra.mxu2 %v9320_v21  ;;  %v13941_v63 = vld [vmem:[#allocation2 + $0x6a4] sm:$0xf]  ;;  %v10037_v0 = vld [vmem:[#allocation2 + $0x6b0] sm:$0xf0]  ;;  %v9912_v5 = vor.u32 %v13909_v61, %v9909_v62 }
  0xd5   :  { %3782 = vmatpush.bf16.msra.mxu3 %v9448_v25  ;;  %3741 = vmatmul.bf16.vlgmr.msra.gmra.mxu0 %v15398_v37  ;;  %v13841_v6 = vld [vmem:[#allocation2 + $0x384] sm:$0xf]  ;;  %v9637_v7 = vld [vmem:[#allocation2 + $0x390] sm:$0xf0]  ;;  %v10040_v9 = vor.u32 %v13941_v63, %v10037_v0  ;;  %v3518_v16 = vpop.f32.mrf.mxu0 }
  0xd6   :  { %3789 = vmatpush.bf16.msrb.mxu0 %v9688_v26  ;;  %3755 = vmatmul.bf16.vlgmr.msra.gmra.mxu1 %v15257_v58  ;;  %v13873_v8 = vld [vmem:[#allocation2 + $0x484] sm:$0xf]  ;;  %v9765_v11 = vld [vmem:[#allocation2 + $0x490] sm:$0xf0]  ;;  %v9640_v18 = vor.u32 %v13841_v6, %v9637_v7  ;;  %v3519_v19 = vadd.f32 %v3518_v16, %v15882_v3  ;;  %v13904_v3 = vld [vmem:[#allocation2 + $0x574] sm:$0xf0] }
  0xd7   :  { %3803 = vmatpush.bf16.msrb.mxu1 %v9816_v27  ;;  %3769 = vmatmul.bf16.vlgmr.msra.gmra.mxu2 %v15275_v10  ;;  %v13905_v12 = vld [vmem:[#allocation2 + $0x584] sm:$0xf]  ;;  %v9893_v13 = vld [vmem:[#allocation2 + $0x590] sm:$0xf0]  ;;  %v9768_v20 = vor.u32 %v13873_v8, %v9765_v11 }
  0xd8   :  { %3817 = vmatpush.bf16.msrb.mxu2 %v9944_v28  ;;  %3783 = vmatmul.bf16.vlgmr.msra.gmra.mxu3 %v15262_v1  ;;  %v13937_v14 = vld [vmem:[#allocation2 + $0x684] sm:$0xf]  ;;  %v10021_v15 = vld [vmem:[#allocation2 + $0x690] sm:$0xf0]  ;;  %v9896_v21 = vor.u32 %v13905_v12, %v9893_v13 }
  0xd9   :  { %3831 = vmatpush.bf16.msrb.mxu3 %v10072_v34  ;;  %v13837_v22 = vld [vmem:[#allocation2 + $0x364] sm:$0xf]  ;;  %v9621_v23 = vld [vmem:[#allocation2 + $0x370] sm:$0xf0]  ;;  %v10024_v25 = vor.u32 %v13937_v14, %v10021_v15 }
  0xda   :  { %3790 = vmatpush.bf16.msrb.mxu0 %v9672_v51  ;;  %v13869_v24 = vld [vmem:[#allocation2 + $0x464] sm:$0xf]  ;;  %v9749_v26 = vld [vmem:[#allocation2 + $0x470] sm:$0xf0]  ;;  %v3532_v33 = vpop.f32.mrf.mxu1  ;;  %v9624_v34 = vor.u32 %v13837_v22, %v9621_v23 }
  0xdb   :  { %3804 = vmatpush.bf16.msrb.mxu1 %v9800_v53  ;;  %v13901_v27 = vld [vmem:[#allocation2 + $0x564] sm:$0xf]  ;;  %v9877_v28 = vld [vmem:[#allocation2 + $0x570] sm:$0xf0]  ;;  %v3533_v42 = vadd.f32 %v3532_v33, %v3519_v19  ;;  %v9752_v45 = vor.u32 %v13869_v24, %v9749_v26  ;;  %v3546_v56 = vpop.f32.mrf.mxu2 }
  0xdc   :  { %3818 = vmatpush.bf16.msrb.mxu2 %v9928_v54  ;;  %v13933_v29 = vld [vmem:[#allocation2 + $0x664] sm:$0xf]  ;;  %v10005_v30 = vld [vmem:[#allocation2 + $0x670] sm:$0xf0]  ;;  %v9880_v48 = vor.u32 %v13901_v27, %v9877_v28 }
  0xdd   :  { %3832 = vmatpush.bf16.msrb.mxu3 %v10056_v59  ;;  %v13833_v49 = vld [vmem:[#allocation2 + $0x344] sm:$0xf]  ;;  %v9605_v50 = vld [vmem:[#allocation2 + $0x350] sm:$0xf0]  ;;  %v10008_v52 = vor.u32 %v13933_v29, %v10005_v30  ;;  %v3547_v61 = vadd.f32 %v3546_v56, %v3533_v42  ;;  %v15411_v56 = vpop.f32.mrf.mxu0 }
  0xde   :  { %3791 = vmatpush.bf16.msrb.mxu0 %v9656_v2  ;;  %v13865_v51 = vld [vmem:[#allocation2 + $0x444] sm:$0xf]  ;;  %v9733_v53 = vld [vmem:[#allocation2 + $0x450] sm:$0xf0]  ;;  %v9608_v62 = vor.u32 %v13833_v49, %v9605_v50 }
  0xdf   :  { %3805 = vmatpush.bf16.msrb.mxu1 %v9784_v4  ;;  %v13897_v54 = vld [vmem:[#allocation2 + $0x544] sm:$0xf]  ;;  %v9861_v55 = vld [vmem:[#allocation2 + $0x550] sm:$0xf0]  ;;  %v9736_v63 = vor.u32 %v13865_v51, %v9733_v53 }
  0xe0   :  { %3819 = vmatpush.bf16.msrb.mxu2 %v9912_v5  ;;  %v13929_v59 = vld [vmem:[#allocation2 + $0x644] sm:$0xf]  ;;  %v9989_v60 = vld [vmem:[#allocation2 + $0x650] sm:$0xf0]  ;;  %v9864_v0 = vor.u32 %v13897_v54, %v9861_v55  ;;  %v3560_v11 = vpop.f32.mrf.mxu3 }
  0xe1   :  { %3833 = vmatpush.bf16.msrb.mxu3 %v10040_v9  ;;  %v13829_v2 = vld [vmem:[#allocation2 + $0x324] sm:$0xf]  ;;  %v9589_v4 = vld [vmem:[#allocation2 + $0x330] sm:$0xf0]  ;;  %v9992_v6 = vor.u32 %v13929_v59, %v9989_v60  ;;  %v15409_v14 = vadd.f32 %v3560_v11, %v3547_v61 }
  0xe2   :  { %3792 = vmatpush.bf16.msrb.mxu0 %v9640_v18  ;;  %v13861_v5 = vld [vmem:[#allocation2 + $0x424] sm:$0xf]  ;;  %v9717_v7 = vld [vmem:[#allocation2 + $0x430] sm:$0xf0]  ;;  %v9592_v15 = vor.u32 %v13829_v2, %v9589_v4 }
  0xe3   :  { %3806 = vmatpush.bf16.msrb.mxu1 %v9768_v20  ;;  %v13893_v8 = vld [vmem:[#allocation2 + $0x524] sm:$0xf]  ;;  %v9845_v9 = vld [vmem:[#allocation2 + $0x530] sm:$0xf0]  ;;  %v9720_v19 = vor.u32 %v13861_v5, %v9717_v7 }
  0xe4   :  { %3820 = vmatpush.bf16.msrb.mxu2 %v9896_v21  ;;  %v13925_v12 = vld [vmem:[#allocation2 + $0x624] sm:$0xf]  ;;  %v9973_v13 = vld [vmem:[#allocation2 + $0x630] sm:$0xf0]  ;;  %v9848_v20 = vor.u32 %v13893_v8, %v9845_v9 }
  0xe5   :  { %3834 = vmatpush.bf16.msrb.mxu3 %v10024_v25  ;;  %v13825_v16 = vld [vmem:[#allocation2 + $0x304] sm:$0xf]  ;;  %v9573_v18 = vld [vmem:[#allocation2 + $0x310] sm:$0xf0]  ;;  %v9976_v24 = vor.u32 %v13925_v12, %v9973_v13 }
  0xe6   :  { %3793 = vmatpush.bf16.msrb.mxu0 %v9624_v34  ;;  %v13857_v21 = vld [vmem:[#allocation2 + $0x404] sm:$0xf]  ;;  %v9701_v22 = vld [vmem:[#allocation2 + $0x410] sm:$0xf0]  ;;  %v9576_v33 = vor.u32 %v13825_v16, %v9573_v18 }
  0xe7   :  { %3807 = vmatpush.bf16.msrb.mxu1 %v9752_v45  ;;  %v13889_v23 = vld [vmem:[#allocation2 + $0x504] sm:$0xf]  ;;  %v9829_v25 = vld [vmem:[#allocation2 + $0x510] sm:$0xf0] }
  0xe8   :  { %3821 = vmatpush.bf16.msrb.mxu2 %v9880_v48  ;;  %v13921_v26 = vld [vmem:[#allocation2 + $0x604] sm:$0xf]  ;;  %v9957_v27 = vld [vmem:[#allocation2 + $0x610] sm:$0xf0]  ;;  %v9704_v48 = vor.u32 %v13857_v21, %v9701_v22  ;;  %v9832_v49 = vor.u32 %v13889_v23, %v9829_v25  ;;  %v15419_v23 = vpop.f32.mrf.mxu2 }
  0xe9   :  { %3835 = vmatpush.bf16.msrb.mxu3 %v10008_v52  ;;  %v13981_v28 = vld [vmem:[#allocation2 + $0x7e4] sm:$0xf]  ;;  %v10197_v29 = vld [vmem:[#allocation2 + $0x7f0] sm:$0xf0]  ;;  %v9960_v52 = vor.u32 %v13921_v26, %v9957_v27 }
  0xea   :  { %3794 = vmatpush.bf16.msrb.mxu0 %v9608_v62  ;;  %v14013_v30 = vld [vmem:[#allocation2 + $0x8e4] sm:$0xf]  ;;  %v10325_v34 = vld [vmem:[#allocation2 + $0x8f0] sm:$0xf0]  ;;  %v10200_v53 = vor.u32 %v13981_v28, %v10197_v29 }
  0xeb   :  { %3808 = vmatpush.bf16.msrb.mxu1 %v9736_v63  ;;  %v14045_v42 = vld [vmem:[#allocation2 + $0x9e4] sm:$0xf]  ;;  %v10453_v45 = vld [vmem:[#allocation2 + $0x9f0] sm:$0xf0]  ;;  %v10328_v54 = vor.u32 %v14013_v30, %v10325_v34  ;;  %v15421_v30 = vpop.f32.mrf.mxu3 }
  0xec   :  { %3822 = vmatpush.bf16.msrb.mxu2 %v9864_v0  ;;  %v14077_v50 = vld [vmem:[#allocation2 + $0xae4] sm:$0xf]  ;;  %v10581_v51 = vld [vmem:[#allocation2 + $0xaf0] sm:$0xf0]  ;;  %v10456_v55 = vor.u32 %v14045_v42, %v10453_v45 }
  0xed   :  { %3836 = vmatpush.bf16.msrb.mxu3 %v9992_v6  ;;  %v13977_v59 = vld [vmem:[#allocation2 + $0x7c4] sm:$0xf]  ;;  %v10181_v60 = vld [vmem:[#allocation2 + $0x7d0] sm:$0xf0]  ;;  %v10584_v62 = vor.u32 %v14077_v50, %v10581_v51  ;;  %v15413_v6 = vpop.f32.mrf.mxu1 }
  0xee   :  { %3795 = vmatpush.bf16.msrb.mxu0 %v9592_v15  ;;  %v14009_v61 = vld [vmem:[#allocation2 + $0x8c4] sm:$0xf]  ;;  %v10309_v63 = vld [vmem:[#allocation2 + $0x8d0] sm:$0xf0]  ;;  %v10184_v7 = vor.u32 %v13977_v59, %v10181_v60 }
  0xef   :  { %3809 = vmatpush.bf16.msrb.mxu1 %v9720_v19  ;;  %v14041_v0 = vld [vmem:[#allocation2 + $0x9c4] sm:$0xf]  ;;  %v10437_v2 = vld [vmem:[#allocation2 + $0x9d0] sm:$0xf0]  ;;  %v10312_v8 = vor.u32 %v14009_v61, %v10309_v63 }
  0xf0   :  { %3823 = vmatpush.bf16.msrb.mxu2 %v9848_v20  ;;  %v14073_v4 = vld [vmem:[#allocation2 + $0xac4] sm:$0xf]  ;;  %v10565_v5 = vld [vmem:[#allocation2 + $0xad0] sm:$0xf0]  ;;  %v10440_v9 = vor.u32 %v14041_v0, %v10437_v2 }
  0xf1   :  { %3837 = vmatpush.bf16.msrb.mxu3 %v9976_v24  ;;  %v13973_v11 = vld [vmem:[#allocation2 + $0x7a4] sm:$0xf]  ;;  %v10165_v12 = vld [vmem:[#allocation2 + $0x7b0] sm:$0xf0]  ;;  %v10568_v15 = vor.u32 %v14073_v4, %v10565_v5 }
  0xf2   :  { %3796 = vmatpush.bf16.msrb.mxu0 %v9576_v33  ;;  %v14005_v13 = vld [vmem:[#allocation2 + $0x8a4] sm:$0xf]  ;;  %v10293_v16 = vld [vmem:[#allocation2 + $0x8b0] sm:$0xf0]  ;;  %v10168_v22 = vor.u32 %v13973_v11, %v10165_v12 }
  0xf3   :  { %3810 = vmatpush.bf16.msrb.mxu1 %v9704_v48  ;;  %v14037_v18 = vld [vmem:[#allocation2 + $0x9a4] sm:$0xf]  ;;  %v10421_v19 = vld [vmem:[#allocation2 + $0x9b0] sm:$0xf0]  ;;  %v10296_v24 = vor.u32 %v14005_v13, %v10293_v16  ;;  %v3574_v45 = vpop.f32.mrf.mxu0 }
  0xf4   :  { %3824 = vmatpush.bf16.msrb.mxu2 %v9832_v49  ;;  %v14069_v20 = vld [vmem:[#allocation2 + $0xaa4] sm:$0xf]  ;;  %v10549_v21 = vld [vmem:[#allocation2 + $0xab0] sm:$0xf0]  ;;  %v10424_v25 = vor.u32 %v14037_v18, %v10421_v19  ;;  %v3575_v50 = vadd.f32 %v3574_v45, %v15409_v14 }
  0xf5   :  { %3838 = vmatpush.bf16.msrb.mxu3 %v9960_v52  ;;  %3797 = vmatmul.bf16.vlgmr.msrb.gmra.mxu0 %v15280_v17  ;;  %v13969_v26 = vld [vmem:[#allocation2 + $0x784] sm:$0xf]  ;;  %v10149_v27 = vld [vmem:[#allocation2 + $0x790] sm:$0xf0]  ;;  %v10552_v29 = vor.u32 %v14069_v20, %v10549_v21 }
  0xf6   :  { %3845 = vmatpush.bf16.msra.mxu0 %v10200_v53  ;;  %3811 = vmatmul.bf16.vlgmr.msrb.gmra.mxu1 %v15308_v39  ;;  %v14001_v28 = vld [vmem:[#allocation2 + $0x884] sm:$0xf]  ;;  %v10277_v33 = vld [vmem:[#allocation2 + $0x890] sm:$0xf0]  ;;  %v10152_v51 = vor.u32 %v13969_v26, %v10149_v27 }
  0xf7   :  { %3859 = vmatpush.bf16.msra.mxu1 %v10328_v54  ;;  %3825 = vmatmul.bf16.vlgmr.msrb.gmra.mxu2 %v15312_v44  ;;  %v14033_v34 = vld [vmem:[#allocation2 + $0x984] sm:$0xf]  ;;  %v10405_v42 = vld [vmem:[#allocation2 + $0x990] sm:$0xf0]  ;;  %v10280_v52 = vor.u32 %v14001_v28, %v10277_v33  ;;  %v3588_v54 = vpop.f32.mrf.mxu1 }
  0xf8   :  { %3873 = vmatpush.bf16.msra.mxu2 %v10456_v55  ;;  %3839 = vmatmul.bf16.vlgmr.msrb.gmra.mxu3 %v15310_v43  ;;  %v14065_v48 = vld [vmem:[#allocation2 + $0xa84] sm:$0xf]  ;;  %v10533_v49 = vld [vmem:[#allocation2 + $0xa90] sm:$0xf0]  ;;  %v10408_v53 = vor.u32 %v14033_v34, %v10405_v42 }
  0xf9   :  { %3887 = vmatpush.bf16.msra.mxu3 %v10584_v62  ;;  %v13965_v55 = vld [vmem:[#allocation2 + $0x764] sm:$0xf]  ;;  %v10133_v59 = vld [vmem:[#allocation2 + $0x770] sm:$0xf0]  ;;  %v10536_v61 = vor.u32 %v14065_v48, %v10533_v49  ;;  %v3589_v62 = vadd.f32 %v3588_v54, %v3575_v50 }
  0xfa   :  { %3846 = vmatpush.bf16.msra.mxu0 %v10184_v7  ;;  %v13997_v60 = vld [vmem:[#allocation2 + $0x864] sm:$0xf]  ;;  %v10261_v63 = vld [vmem:[#allocation2 + $0x870] sm:$0xf0]  ;;  %v10136_v7 = vor.u32 %v13965_v55, %v10133_v59 }
  0xfb   :  { %3860 = vmatpush.bf16.msra.mxu1 %v10312_v8  ;;  %v14029_v0 = vld [vmem:[#allocation2 + $0x964] sm:$0xf]  ;;  %v10389_v2 = vld [vmem:[#allocation2 + $0x970] sm:$0xf0]  ;;  %v10264_v14 = vor.u32 %v13997_v60, %v10261_v63 }
  0xfc   :  { %3874 = vmatpush.bf16.msra.mxu2 %v10440_v9  ;;  %v14061_v4 = vld [vmem:[#allocation2 + $0xa64] sm:$0xf]  ;;  %v10517_v5 = vld [vmem:[#allocation2 + $0xa70] sm:$0xf0]  ;;  %v10392_v8 = vor.u32 %v14029_v0, %v10389_v2 }
  0xfd   :  { %3888 = vmatpush.bf16.msra.mxu3 %v10568_v15  ;;  %v13961_v9 = vld [vmem:[#allocation2 + $0x744] sm:$0xf]  ;;  %v10117_v11 = vld [vmem:[#allocation2 + $0x750] sm:$0xf0]  ;;  %v10520_v13 = vor.u32 %v14061_v4, %v10517_v5  ;;  %v3602_v15 = vpop.f32.mrf.mxu2 }
  0xfe   :  { %3847 = vmatpush.bf16.msra.mxu0 %v10168_v22  ;;  %v13993_v12 = vld [vmem:[#allocation2 + $0x844] sm:$0xf]  ;;  %v10245_v16 = vld [vmem:[#allocation2 + $0x850] sm:$0xf0]  ;;  %v3603_v20 = vadd.f32 %v3602_v15, %v3589_v62 }
  0xff   :  { %3861 = vmatpush.bf16.msra.mxu1 %v10296_v24  ;;  %v14025_v18 = vld [vmem:[#allocation2 + $0x944] sm:$0xf]  ;;  %v10373_v19 = vld [vmem:[#allocation2 + $0x950] sm:$0xf0]  ;;  %v3616_v24 = vpop.f32.mrf.mxu3  ;;  %v10248_v27 = vor.u32 %v13993_v12, %v10245_v16 }
 0x100   :  { %3875 = vmatpush.bf16.msra.mxu2 %v10424_v25  ;;  %v14057_v21 = vld [vmem:[#allocation2 + $0xa44] sm:$0xf]  ;;  %v10501_v22 = vld [vmem:[#allocation2 + $0xa50] sm:$0xf0]  ;;  %v10120_v25 = vor.u32 %v13961_v9, %v10117_v11  ;;  %v15424_v26 = vadd.f32 %v3616_v24, %v3603_v20  ;;  %v10376_v28 = vor.u32 %v14025_v18, %v10373_v19 }
 0x101   :  { %3889 = vmatpush.bf16.msra.mxu3 %v10552_v29  ;;  %v13957_v29 = vld [vmem:[#allocation2 + $0x724] sm:$0xf]  ;;  %v10101_v33 = vld [vmem:[#allocation2 + $0x730] sm:$0xf0]  ;;  %v10504_v42 = vor.u32 %v14057_v21, %v10501_v22 }
 0x102   :  { %3848 = vmatpush.bf16.msra.mxu0 %v10152_v51  ;;  %v13989_v34 = vld [vmem:[#allocation2 + $0x824] sm:$0xf]  ;;  %v10229_v45 = vld [vmem:[#allocation2 + $0x830] sm:$0xf0] }
 0x103   :  { %3862 = vmatpush.bf16.msra.mxu1 %v10280_v52  ;;  %v14021_v48 = vld [vmem:[#allocation2 + $0x924] sm:$0xf]  ;;  %v10357_v49 = vld [vmem:[#allocation2 + $0x930] sm:$0xf0]  ;;  %v10104_v52 = vor.u32 %v13957_v29, %v10101_v33  ;;  %v10232_v55 = vor.u32 %v13989_v34, %v10229_v45 }
 0x104   :  { %3876 = vmatpush.bf16.msra.mxu2 %v10408_v53  ;;  %v14053_v50 = vld [vmem:[#allocation2 + $0xa24] sm:$0xf]  ;;  %v10485_v51 = vld [vmem:[#allocation2 + $0xa30] sm:$0xf0]  ;;  %v10360_v59 = vor.u32 %v14021_v48, %v10357_v49  ;;  %v15428_v49 = vpop.f32.mrf.mxu1 }
 0x105   :  { %3890 = vmatpush.bf16.msra.mxu3 %v10536_v61  ;;  %v13953_v53 = vld [vmem:[#allocation2 + $0x704] sm:$0xf]  ;;  %v10085_v54 = vld [vmem:[#allocation2 + $0x710] sm:$0xf0]  ;;  %v10488_v63 = vor.u32 %v14053_v50, %v10485_v51 }
 0x106   :  { %3849 = vmatpush.bf16.msra.mxu0 %v10136_v7  ;;  %v13985_v60 = vld [vmem:[#allocation2 + $0x804] sm:$0xf]  ;;  %v10213_v61 = vld [vmem:[#allocation2 + $0x810] sm:$0xf0] }
 0x107   :  { %3863 = vmatpush.bf16.msra.mxu1 %v10264_v14  ;;  %v14017_v62 = vld [vmem:[#allocation2 + $0x904] sm:$0xf]  ;;  %v10341_v0 = vld [vmem:[#allocation2 + $0x910] sm:$0xf0] }
 0x108   :  { %3877 = vmatpush.bf16.msra.mxu2 %v10392_v8  ;;  %v14049_v2 = vld [vmem:[#allocation2 + $0xa04] sm:$0xf]  ;;  %v10469_v4 = vld [vmem:[#allocation2 + $0xa10] sm:$0xf0]  ;;  %v10088_v8 = vor.u32 %v13953_v53, %v10085_v54  ;;  %v10344_v15 = vor.u32 %v14017_v62, %v10341_v0 }
 0x109   :  { %3891 = vmatpush.bf16.msra.mxu3 %v10520_v13  ;;  %v14109_v5 = vld [vmem:[#allocation2 + $0xbe4] sm:$0xf]  ;;  %v10709_v7 = vld [vmem:[#allocation2 + $0xbf0] sm:$0xf0]  ;;  %v10216_v13 = vor.u32 %v13985_v60, %v10213_v61  ;;  %v10472_v19 = vor.u32 %v14049_v2, %v10469_v4 }
 0x10a   :  { %3850 = vmatpush.bf16.msra.mxu0 %v10120_v25  ;;  %v14141_v14 = vld [vmem:[#allocation2 + $0xce4] sm:$0xf]  ;;  %v10837_v9 = vld [vmem:[#allocation2 + $0xcf0] sm:$0xf0]  ;;  %v10712_v20 = vor.u32 %v14109_v5, %v10709_v7 }
 0x10b   :  { %3864 = vmatpush.bf16.msra.mxu1 %v10248_v27  ;;  %v14173_v11 = vld [vmem:[#allocation2 + $0xde4] sm:$0xf]  ;;  %v10965_v12 = vld [vmem:[#allocation2 + $0xdf0] sm:$0xf0]  ;;  %v10840_v21 = vor.u32 %v14141_v14, %v10837_v9  ;;  %v15434_v9 = vpop.f32.mrf.mxu2 }
 0x10c   :  { %3878 = vmatpush.bf16.msra.mxu2 %v10376_v28  ;;  %v14205_v16 = vld [vmem:[#allocation2 + $0xee4] sm:$0xf]  ;;  %v11093_v18 = vld [vmem:[#allocation2 + $0xef0] sm:$0xf0]  ;;  %v10968_v22 = vor.u32 %v14173_v11, %v10965_v12  ;;  %15886 = vst [vmem:[#allocation25_spill] sm:$0xff] %v15434_v9 }
 0x10d   :  { %3892 = vmatpush.bf16.msra.mxu3 %v10504_v42  ;;  %v14105_v24 = vld [vmem:[#allocation2 + $0xbc4] sm:$0xf]  ;;  %v10693_v25 = vld [vmem:[#allocation2 + $0xbd0] sm:$0xf0]  ;;  %v11096_v28 = vor.u32 %v14205_v16, %v11093_v18  ;;  %v15426_v42 = vpop.f32.mrf.mxu0  ;;  %v15436_v16 = vpop.f32.mrf.mxu3 }
 0x10e   :  { %3851 = vmatpush.bf16.msra.mxu0 %v10104_v52  ;;  %v14137_v27 = vld [vmem:[#allocation2 + $0xcc4] sm:$0xf]  ;;  %v10821_v29 = vld [vmem:[#allocation2 + $0xcd0] sm:$0xf0]  ;;  %v10696_v50 = vor.u32 %v14105_v24, %v10693_v25  ;;  %15887 = vst [vmem:[#allocation26_spill] sm:$0xff] %v15436_v16 }
 0x10f   :  { %3865 = vmatpush.bf16.msra.mxu1 %v10232_v55  ;;  %v14169_v33 = vld [vmem:[#allocation2 + $0xdc4] sm:$0xf]  ;;  %v10949_v34 = vld [vmem:[#allocation2 + $0xdd0] sm:$0xf0]  ;;  %v10824_v51 = vor.u32 %v14137_v27, %v10821_v29  ;;  %v11211_v16 = vld [vmem:[#allocation2 + $0xfc8] sm:$0xf] }
 0x110   :  { %3879 = vmatpush.bf16.msra.mxu2 %v10360_v59  ;;  %v14201_v45 = vld [vmem:[#allocation2 + $0xec4] sm:$0xf]  ;;  %v11077_v48 = vld [vmem:[#allocation2 + $0xed0] sm:$0xf0]  ;;  %v10952_v52 = vor.u32 %v14169_v33, %v10949_v34 }
 0x111   :  { %3893 = vmatpush.bf16.msra.mxu3 %v10488_v63  ;;  %v14101_v53 = vld [vmem:[#allocation2 + $0xba4] sm:$0xf]  ;;  %v10677_v54 = vld [vmem:[#allocation2 + $0xbb0] sm:$0xf0]  ;;  %v11080_v59 = vor.u32 %v14201_v45, %v11077_v48 }
 0x112   :  { %3852 = vmatpush.bf16.msra.mxu0 %v10088_v8  ;;  %v14133_v55 = vld [vmem:[#allocation2 + $0xca4] sm:$0xf]  ;;  %v10805_v60 = vld [vmem:[#allocation2 + $0xcb0] sm:$0xf0]  ;;  %v10680_v2 = vor.u32 %v14101_v53, %v10677_v54 }
 0x113   :  { %3866 = vmatpush.bf16.msra.mxu1 %v10216_v13  ;;  %v14165_v61 = vld [vmem:[#allocation2 + $0xda4] sm:$0xf]  ;;  %v10933_v62 = vld [vmem:[#allocation2 + $0xdb0] sm:$0xf0]  ;;  %v10808_v4 = vor.u32 %v14133_v55, %v10805_v60 }
 0x114   :  { %3880 = vmatpush.bf16.msra.mxu2 %v10344_v15  ;;  %v14197_v63 = vld [vmem:[#allocation2 + $0xea4] sm:$0xf]  ;;  %v11061_v0 = vld [vmem:[#allocation2 + $0xeb0] sm:$0xf0]  ;;  %v10936_v5 = vor.u32 %v14165_v61, %v10933_v62 }
 0x115   :  { %3894 = vmatpush.bf16.msra.mxu3 %v10472_v19  ;;  %3853 = vmatmul.bf16.vlgmr.msra.gmra.mxu0 %v15314_v47  ;;  %v14097_v7 = vld [vmem:[#allocation2 + $0xb84] sm:$0xf]  ;;  %v10661_v14 = vld [vmem:[#allocation2 + $0xb90] sm:$0xf0]  ;;  %v11064_v11 = vor.u32 %v14197_v63, %v11061_v0  ;;  %v3630_v18 = vpop.f32.mrf.mxu0 }
 0x116   :  { %3901 = vmatpush.bf16.msrb.mxu0 %v10712_v20  ;;  %3867 = vmatmul.bf16.vlgmr.msra.gmra.mxu1 %v15344_v31  ;;  %v14129_v8 = vld [vmem:[#allocation2 + $0xc84] sm:$0xf]  ;;  %v10789_v12 = vld [vmem:[#allocation2 + $0xc90] sm:$0xf0]  ;;  %v3644_v24 = vpop.f32.mrf.mxu1 }
 0x117   :  { %3915 = vmatpush.bf16.msrb.mxu1 %v10840_v21  ;;  %3881 = vmatmul.bf16.vlgmr.msra.gmra.mxu2 %v15348_v36  ;;  %v14161_v13 = vld [vmem:[#allocation2 + $0xd84] sm:$0xf]  ;;  %v10917_v15 = vld [vmem:[#allocation2 + $0xd90] sm:$0xf0]  ;;  %v3631_v21 = vadd.f32 %v3630_v18, %v15424_v26  ;;  %v10792_v25 = vor.u32 %v14129_v8, %v10789_v12 }
 0x118   :  { %3929 = vmatpush.bf16.msrb.mxu2 %v10968_v22  ;;  %3895 = vmatmul.bf16.vlgmr.msra.gmra.mxu3 %v15346_v35  ;;  %v14193_v19 = vld [vmem:[#allocation2 + $0xe84] sm:$0xf]  ;;  %v11045_v20 = vld [vmem:[#allocation2 + $0xe90] sm:$0xf0]  ;;  %v10664_v22 = vor.u32 %v14097_v7, %v10661_v14  ;;  %v10920_v27 = vor.u32 %v14161_v13, %v10917_v15 }
 0x119   :  { %3943 = vmatpush.bf16.msrb.mxu3 %v11096_v28  ;;  %v14093_v28 = vld [vmem:[#allocation2 + $0xb64] sm:$0xf]  ;;  %v10645_v29 = vld [vmem:[#allocation2 + $0xb70] sm:$0xf0]  ;;  %v11048_v34 = vor.u32 %v14193_v19, %v11045_v20  ;;  %v3645_v45 = vadd.f32 %v3644_v24, %v3631_v21 }
 0x11a   :  { %3902 = vmatpush.bf16.msrb.mxu0 %v10696_v50  ;;  %v14125_v33 = vld [vmem:[#allocation2 + $0xc64] sm:$0xf]  ;;  %v10773_v48 = vld [vmem:[#allocation2 + $0xc70] sm:$0xf0]  ;;  %v10648_v54 = vor.u32 %v14093_v28, %v10645_v29 }
 0x11b   :  { %3916 = vmatpush.bf16.msrb.mxu1 %v10824_v51  ;;  %v14157_v50 = vld [vmem:[#allocation2 + $0xd64] sm:$0xf]  ;;  %v10901_v51 = vld [vmem:[#allocation2 + $0xd70] sm:$0xf0]  ;;  %v10776_v26 = vor.u32 %v14125_v33, %v10773_v48  ;;  %v3658_v63 = vpop.f32.mrf.mxu2 }
 0x11c   :  { %3930 = vmatpush.bf16.msrb.mxu2 %v10952_v52  ;;  %v14189_v52 = vld [vmem:[#allocation2 + $0xe64] sm:$0xf]  ;;  %v11029_v53 = vld [vmem:[#allocation2 + $0xe70] sm:$0xf0]  ;;  %v10904_v55 = vor.u32 %v14157_v50, %v10901_v51  ;;  %v3672_v7 = vpop.f32.mrf.mxu3 }
 0x11d   :  { %3944 = vmatpush.bf16.msrb.mxu3 %v11080_v59  ;;  %v14089_v59 = vld [vmem:[#allocation2 + $0xb44] sm:$0xf]  ;;  %v10629_v60 = vld [vmem:[#allocation2 + $0xb50] sm:$0xf0]  ;;  %v11032_v62 = vor.u32 %v14189_v52, %v11029_v53 }
 0x11e   :  { %3903 = vmatpush.bf16.msrb.mxu0 %v10680_v2  ;;  %v14121_v61 = vld [vmem:[#allocation2 + $0xc44] sm:$0xf]  ;;  %v10757_v0 = vld [vmem:[#allocation2 + $0xc50] sm:$0xf0] }
 0x11f   :  { %3917 = vmatpush.bf16.msrb.mxu1 %v10808_v4  ;;  %v14153_v2 = vld [vmem:[#allocation2 + $0xd44] sm:$0xf]  ;;  %v10885_v4 = vld [vmem:[#allocation2 + $0xd50] sm:$0xf0]  ;;  %v10760_v13 = vor.u32 %v14121_v61, %v10757_v0  ;;  %v9307_v0 = vld [vmem:[#allocation2 + $0xe8] sm:$0xf] }
 0x120   :  { %3931 = vmatpush.bf16.msrb.mxu2 %v10936_v5  ;;  %v3659_v5 = vadd.f32 %v3658_v63, %v3645_v45  ;;  %v14185_v14 = vld [vmem:[#allocation2 + $0xe44] sm:$0xf]  ;;  %v11013_v8 = vld [vmem:[#allocation2 + $0xe50] sm:$0xf0]  ;;  %v10888_v15 = vor.u32 %v14153_v2, %v10885_v4  ;;  %v13760_v2 = vld [vmem:[#allocation2 + $0xf4] sm:$0xf0] }
 0x121   :  { %3945 = vmatpush.bf16.msrb.mxu3 %v11064_v11  ;;  %v10632_v11 = vor.u32 %v14089_v59, %v10629_v60  ;;  %v14085_v18 = vld [vmem:[#allocation2 + $0xb24] sm:$0xf]  ;;  %v10613_v19 = vld [vmem:[#allocation2 + $0xb30] sm:$0xf0]  ;;  %v11016_v21 = vor.u32 %v14185_v14, %v11013_v8  ;;  %v13792_v14 = vld [vmem:[#allocation2 + $0x1f4] sm:$0xf0] }
 0x122   :  { %3904 = vmatpush.bf16.msrb.mxu0 %v10664_v22  ;;  %v15439_v12 = vadd.f32 %v3672_v7, %v3659_v5  ;;  %v14117_v20 = vld [vmem:[#allocation2 + $0xc24] sm:$0xf]  ;;  %v10741_v22 = vld [vmem:[#allocation2 + $0xc30] sm:$0xf0]  ;;  %v10616_v29 = vor.u32 %v14085_v18, %v10613_v19  ;;  %v9435_v7 = vld [vmem:[#allocation2 + $0x1e8] sm:$0xf] }
 0x123   :  { %3918 = vmatpush.bf16.msrb.mxu1 %v10792_v25  ;;  %v14149_v24 = vld [vmem:[#allocation2 + $0xd24] sm:$0xf]  ;;  %v10869_v25 = vld [vmem:[#allocation2 + $0xd30] sm:$0xf0]  ;;  %v10744_v45 = vor.u32 %v14117_v20, %v10741_v22 }
 0x124   :  { %3932 = vmatpush.bf16.msrb.mxu2 %v10920_v27  ;;  %v14181_v27 = vld [vmem:[#allocation2 + $0xe24] sm:$0xf]  ;;  %v10997_v28 = vld [vmem:[#allocation2 + $0xe30] sm:$0xf0]  ;;  %v10872_v48 = vor.u32 %v14149_v24, %v10869_v25  ;;  %v9291_v24 = vld [vmem:[#allocation2 + $0xc8] sm:$0xf] }
 0x125   :  { %3946 = vmatpush.bf16.msrb.mxu3 %v11048_v34  ;;  %v14081_v33 = vld [vmem:[#allocation2 + $0xb04] sm:$0xf]  ;;  %v10597_v34 = vld [vmem:[#allocation2 + $0xb10] sm:$0xf0]  ;;  %v11000_v53 = vor.u32 %v14181_v27, %v10997_v28  ;;  %v13756_v25 = vld [vmem:[#allocation2 + $0xd4] sm:$0xf0]  ;;  %v15441_v27 = vpop.f32.mrf.mxu0 }
 0x126   :  { %3905 = vmatpush.bf16.msrb.mxu0 %v10648_v54  ;;  %v14113_v50 = vld [vmem:[#allocation2 + $0xc04] sm:$0xf]  ;;  %v10725_v51 = vld [vmem:[#allocation2 + $0xc10] sm:$0xf0]  ;;  %15888 = vst [vmem:[#allocation27_spill] sm:$0xff] %v15441_v27 }
 0x127   :  { %3919 = vmatpush.bf16.msrb.mxu1 %v10776_v26  ;;  %v14145_v52 = vld [vmem:[#allocation2 + $0xd04] sm:$0xf]  ;;  %v10853_v54 = vld [vmem:[#allocation2 + $0xd10] sm:$0xf0]  ;;  %v10728_v4 = vor.u32 %v14113_v50, %v10725_v51  ;;  %v9419_v28 = vld [vmem:[#allocation2 + $0x1c8] sm:$0xf] }
 0x128   :  { %3933 = vmatpush.bf16.msrb.mxu2 %v10904_v55  ;;  %v14177_v26 = vld [vmem:[#allocation2 + $0xe04] sm:$0xf]  ;;  %v10981_v55 = vld [vmem:[#allocation2 + $0xe10] sm:$0xf0]  ;;  %v10856_v5 = vor.u32 %v14145_v52, %v10853_v54  ;;  %v14204_v27 = vld [vmem:[#allocation2 + $0xed4] sm:$0xf0] }
 0x129   :  { %3947 = vmatpush.bf16.msrb.mxu3 %v11032_v62  ;;  %v14237_v59 = vld [vmem:[#allocation2 + $0xfe4] sm:$0xf]  ;;  %v11221_v60 = vld [vmem:[#allocation2 + $0xff0] sm:$0xf0]  ;;  %v10600_v62 = vor.u32 %v14081_v33, %v10597_v34  ;;  %v10984_v8 = vor.u32 %v14177_v26, %v10981_v55  ;;  %v15443_v33 = vpop.f32.mrf.mxu1  ;;  %v9275_v26 = vld [vmem:[#allocation2 + $0xa8] sm:$0xf] }
 0x12a   :  { %3906 = vmatpush.bf16.msrb.mxu0 %v10632_v11  ;;  %v14269_v61 = vld [vmem:[#allocation2 + $0x10e4] sm:$0xf]  ;;  %v11349_v63 = vld [vmem:[#allocation2 + $0x10f0] sm:$0xf0]  ;;  %v11224_v11 = vor.u32 %v14237_v59, %v11221_v60  ;;  %15889 = vst [vmem:[#allocation28_spill] sm:$0xff] %v15443_v33 }
 0x12b   :  { %3920 = vmatpush.bf16.msrb.mxu1 %v10760_v13  ;;  %v11352_v13 = vor.u32 %v14269_v61, %v11349_v63  ;;  %v14233_v18 = vld [vmem:[#allocation2 + $0xfc4] sm:$0xf]  ;;  %v11205_v19 = vld [vmem:[#allocation2 + $0xfd0] sm:$0xf0]  ;;  %v13752_v55 = vld [vmem:[#allocation2 + $0xb4] sm:$0xf0] }
 0x12c   :  { %3934 = vmatpush.bf16.msrb.mxu2 %v10888_v15  ;;  %v9308_v15 = vor.u32 %v13760_v2, %v9307_v0  ;;  %v14265_v20 = vld [vmem:[#allocation2 + $0x10c4] sm:$0xf]  ;;  %v11333_v22 = vld [vmem:[#allocation2 + $0x10d0] sm:$0xf0]  ;;  %v11208_v34 = vor.u32 %v14233_v18, %v11205_v19  ;;  %v9403_v59 = vld [vmem:[#allocation2 + $0x1a8] sm:$0xf]  ;;  %v9276_v63 = vor.u32 %v13752_v55, %v9275_v26 }
 0x12d   :  { %3948 = vmatpush.bf16.msrb.mxu3 %v11016_v21  ;;  %v9436_v21 = vor.u32 %v13792_v14, %v9435_v7  ;;  %v14229_v50 = vld [vmem:[#allocation2 + $0xfa4] sm:$0xf]  ;;  %v11189_v51 = vld [vmem:[#allocation2 + $0xfb0] sm:$0xf0]  ;;  %v13784_v60 = vld [vmem:[#allocation2 + $0x1b4] sm:$0xf0] }
 0x12e   :  { %3907 = vmatpush.bf16.msrb.mxu0 %v10616_v29  ;;  %v13788_v29 = vld [vmem:[#allocation2 + $0x1d4] sm:$0xf0]  ;;  %v14261_v52 = vld [vmem:[#allocation2 + $0x10a4] sm:$0xf]  ;;  %v11317_v54 = vld [vmem:[#allocation2 + $0x10b0] sm:$0xf0]  ;;  %v11192_v61 = vor.u32 %v14229_v50, %v11189_v51  ;;  %v9404_v7 = vor.u32 %v13784_v60, %v9403_v59 }
 0x12f   :  { %3921 = vmatpush.bf16.msrb.mxu1 %v10744_v45  ;;  %v11336_v45 = vor.u32 %v14265_v20, %v11333_v22  ;;  %v14225_v0 = vld [vmem:[#allocation2 + $0xf84] sm:$0xf]  ;;  %v11173_v2 = vld [vmem:[#allocation2 + $0xf90] sm:$0xf0]  ;;  %v9387_v18 = vld [vmem:[#allocation2 + $0x188] sm:$0xf] }
 0x130   :  { %3935 = vmatpush.bf16.msrb.mxu2 %v10872_v48  ;;  %v9292_v48 = vor.u32 %v13756_v25, %v9291_v24  ;;  %v11301_v14 = vld [vmem:[#allocation2 + $0x1090] sm:$0xf0]  ;;  %v13780_v19 = vld [vmem:[#allocation2 + $0x194] sm:$0xf0]  ;;  %v9243_v51 = vld [vmem:[#allocation2 + $0x68] sm:$0xf] }
 0x131   :  { %3949 = vmatpush.bf16.msrb.mxu3 %v11000_v53  ;;  %v9420_v53 = vor.u32 %v13788_v29, %v9419_v28  ;;  %v14221_v28 = vld [vmem:[#allocation2 + $0xf64] sm:$0xf]  ;;  %v11157_v29 = vld [vmem:[#allocation2 + $0xf70] sm:$0xf0] }
 0x132   :  { %3908 = vmatpush.bf16.msrb.mxu0 %v10600_v62  ;;  %v11320_v62 = vor.u32 %v14261_v52, %v11317_v54  ;;  %v11285_v50 = vld [vmem:[#allocation2 + $0x1070] sm:$0xf0]  ;;  %v13744_v52 = vld [vmem:[#allocation2 + $0x74] sm:$0xf0]  ;;  %v11160_v26 = vor.u32 %v14221_v28, %v11157_v29  ;;  %v14217_v59 = vld [vmem:[#allocation2 + $0xf44] sm:$0xf] }
 0x133   :  { %3922 = vmatpush.bf16.msrb.mxu1 %v10728_v4  ;;  %v14257_v4 = vld [vmem:[#allocation2 + $0x1084] sm:$0xf]  ;;  %v13776_v54 = vld [vmem:[#allocation2 + $0x174] sm:$0xf0]  ;;  %v9244_v55 = vor.u32 %v13744_v52, %v9243_v51  ;;  %v11141_v60 = vld [vmem:[#allocation2 + $0xf50] sm:$0xf0] }
 0x134   :  { %3936 = vmatpush.bf16.msrb.mxu2 %v10856_v5  ;;  %v15449_v5 = vpop.f32.mrf.mxu2  ;;  %v11304_v24 = vor.u32 %v14257_v4, %v11301_v14  ;;  %v13740_v4 = vld [vmem:[#allocation2 + $0x54] sm:$0xf0]  ;;  %v11253_v28 = vld [vmem:[#allocation2 + $0x1030] sm:$0xf0]  ;;  %v9211_v29 = vld [vmem:[#allocation2 + $0x28] sm:$0xf] }
 0x135   :  { %3950 = vmatpush.bf16.msrb.mxu3 %v10984_v8  ;;  %3909 = vmatmul.bf16.vlgmr.msrb.gmra.mxu0 %v15350_v40  ;;  %15890 = vst [vmem:[#allocation29_spill] sm:$0xff] %v15449_v5  ;;  %v9259_v8 = vld [vmem:[#allocation2 + $0x88] sm:$0xf]  ;;  %v3700_v22 = vpop.f32.mrf.mxu1  ;;  %v14209_v51 = vld [vmem:[#allocation2 + $0xf04] sm:$0xf] }
 0x136   :  { %3957 = vmatpush.bf16.msra.mxu0 %v11224_v11  ;;  %3923 = vmatmul.bf16.vlgmr.msrb.gmra.mxu1 %v15380_v32  ;;  %v13748_v11 = vld [vmem:[#allocation2 + $0x94] sm:$0xf0]  ;;  %v11109_v52 = vld [vmem:[#allocation2 + $0xf10] sm:$0xf0] }
 0x137   :  { %3971 = vmatpush.bf16.msra.mxu1 %v11352_v13  ;;  %3937 = vmatmul.bf16.vlgmr.msrb.gmra.mxu2 %v15384_v41  ;;  %v15451_v13 = vpop.f32.mrf.mxu3  ;;  %v9260_v25 = vor.u32 %v13748_v11, %v9259_v8  ;;  %v9355_v8 = vld [vmem:[#allocation2 + $0x148] sm:$0xf]  ;;  %v13772_v11 = vld [vmem:[#allocation2 + $0x154] sm:$0xf0] }
 0x138   :  { %3985 = vmatpush.bf16.msra.mxu2 %v9308_v15  ;;  %3951 = vmatmul.bf16.vlgmr.msrb.gmra.mxu3 %v15382_v38  ;;  %15891 = vst [vmem:[#allocation30_spill] sm:$0xff] %v15451_v13  ;;  %v3686_v15 = vpop.f32.mrf.mxu0  ;;  %v10699_v13 = vld [vmem:[#allocation2 + $0xbc8] sm:$0xf]  ;;  %v14140_v5 = vld [vmem:[#allocation2 + $0xcd4] sm:$0xf0] }
 0x139   :  { %3999 = vmatpush.bf16.msra.mxu3 %v9436_v21  ;;  %v3687_v20 = vadd.f32 %v3686_v15, %v15439_v12  ;;  %v11176_v21 = vor.u32 %v14225_v0, %v11173_v2  ;;  %v11269_v0 = vld [vmem:[#allocation2 + $0x1050] sm:$0xf0]  ;;  %v9227_v2 = vld [vmem:[#allocation2 + $0x48] sm:$0xf]  ;;  %v11144_v15 = vor.u32 %v14217_v59, %v11141_v60  ;;  %v13732_v60 = vld [vmem:[#allocation2 + $0x14] sm:$0xf0] }
 0x13a   :  { %3958 = vmatpush.bf16.msra.mxu0 %v11208_v34  ;;  %v14253_v34 = vld [vmem:[#allocation2 + $0x1064] sm:$0xf] }
 0x13b   :  { %3972 = vmatpush.bf16.msra.mxu1 %v11336_v45  ;;  %v9388_v45 = vor.u32 %v13780_v19, %v9387_v18  ;;  %v11288_v12 = vor.u32 %v14253_v34, %v11285_v50  ;;  %v13736_v34 = vld [vmem:[#allocation2 + $0x34] sm:$0xf0] }
 0x13c   :  { %3986 = vmatpush.bf16.msra.mxu2 %v9292_v48  ;;  %v3701_v48 = vadd.f32 %v3700_v22, %v3687_v20  ;;  %v9228_v20 = vor.u32 %v13740_v4, %v9227_v2  ;;  %v11125_v22 = vld [vmem:[#allocation2 + $0xf30] sm:$0xf0]  ;;  %v9691_v2 = vld [vmem:[#allocation2 + $0x3e8] sm:$0xf]  ;;  %v11112_v4 = vor.u32 %v14209_v51, %v11109_v52  ;;  %v13884_v51 = vld [vmem:[#allocation2 + $0x4d4] sm:$0xf0] }
 0x13d   :  { %4000 = vmatpush.bf16.msra.mxu3 %v9420_v53  ;;  %v9371_v53 = vld [vmem:[#allocation2 + $0x168] sm:$0xf] }
 0x13e   :  { %3959 = vmatpush.bf16.msra.mxu0 %v11192_v61  ;;  %v14249_v61 = vld [vmem:[#allocation2 + $0x1044] sm:$0xf] }
 0x13f   :  { %3973 = vmatpush.bf16.msra.mxu1 %v11320_v62  ;;  %v9372_v62 = vor.u32 %v13776_v54, %v9371_v53  ;;  %v3728_v14 = vpop.f32.mrf.mxu3  ;;  %v11272_v19 = vor.u32 %v14249_v61, %v11269_v0  ;;  %v9212_v54 = vor.u32 %v13736_v34, %v9211_v29  ;;  %v9323_v61 = vld [vmem:[#allocation2 + $0x108] sm:$0xf]  ;;  %v13824_v0 = vld [vmem:[#allocation2 + $0x2f4] sm:$0xf0] }
 0x140   :  { %3987 = vmatpush.bf16.msra.mxu2 %v9276_v63  ;;  %v3714_v63 = vpop.f32.mrf.mxu2  ;;  %v13820_v29 = vld [vmem:[#allocation2 + $0x2d4] sm:$0xf0]  ;;  %v9675_v34 = vld [vmem:[#allocation2 + $0x3c8] sm:$0xf]  ;;  %v15456_v52 = vpop.f32.mrf.mxu0 }
 0x141   :  { %4001 = vmatpush.bf16.msra.mxu3 %v9404_v7  ;;  %v3715_v7 = vadd.f32 %v3714_v63, %v3701_v48  ;;  %v13768_v48 = vld [vmem:[#allocation2 + $0x134] sm:$0xf0]  ;;  %v9563_v63 = vld [vmem:[#allocation2 + $0x2e8] sm:$0xf]  ;;  %15892 = vst [vmem:[#allocation31_spill] sm:$0xff] %v15456_v52 }
 0x142   :  { %3960 = vmatpush.bf16.msra.mxu0 %v11176_v21  ;;  %v14213_v21 = vld [vmem:[#allocation2 + $0xf24] sm:$0xf] }
 0x143   :  { %3974 = vmatpush.bf16.msra.mxu1 %v11304_v24  ;;  %v15454_v18 = vadd.f32 %v3728_v14, %v3715_v7  ;;  %v14245_v24 = vld [vmem:[#allocation2 + $0x1024] sm:$0xf]  ;;  %v11128_v50 = vor.u32 %v14213_v21, %v11125_v22  ;;  %v13856_v7 = vld [vmem:[#allocation2 + $0x3f4] sm:$0xf0]  ;;  %v9819_v14 = vld [vmem:[#allocation2 + $0x4e8] sm:$0xf]  ;;  %v9564_v22 = vor.u32 %v13824_v0, %v9563_v63 }
 0x144   :  { %3988 = vmatpush.bf16.msra.mxu2 %v9260_v25  ;;  %v9356_v25 = vor.u32 %v13772_v11, %v9355_v8  ;;  %v11256_v53 = vor.u32 %v14245_v24, %v11253_v28  ;;  %v13888_v8 = vld [vmem:[#allocation2 + $0x4f4] sm:$0xf0]  ;;  %v9692_v24 = vor.u32 %v13856_v7, %v9691_v2  ;;  %v9547_v28 = vld [vmem:[#allocation2 + $0x2c8] sm:$0xf] }
 0x145   :  { %4002 = vmatpush.bf16.msra.mxu3 %v9388_v45  ;;  %v9339_v45 = vld [vmem:[#allocation2 + $0x128] sm:$0xf]  ;;  %v13848_v0 = vld [vmem:[#allocation2 + $0x3b4] sm:$0xf0] }
 0x146   :  { %3961 = vmatpush.bf16.msra.mxu0 %v11160_v26  ;;  %v14241_v26 = vld [vmem:[#allocation2 + $0x1004] sm:$0xf]  ;;  %v9340_v59 = vor.u32 %v13768_v48, %v9339_v45  ;;  %v13852_v48 = vld [vmem:[#allocation2 + $0x3d4] sm:$0xf0]  ;;  %v9787_v2 = vld [vmem:[#allocation2 + $0x4a8] sm:$0xf] }
 0x147   :  { %3975 = vmatpush.bf16.msra.mxu1 %v11288_v12  ;;  %v11237_v12 = vld [vmem:[#allocation2 + $0x1010] sm:$0xf0]  ;;  %v9915_v7 = vld [vmem:[#allocation2 + $0x5a8] sm:$0xf] }
 0x148   :  { %3989 = vmatpush.bf16.msra.mxu2 %v9244_v55  ;;  %v9195_v55 = vld [vmem:[#allocation2 + $0x8] sm:$0xf]  ;;  %v11240_v11 = vor.u32 %v14241_v26, %v11237_v12  ;;  %v9548_v26 = vor.u32 %v13820_v29, %v9547_v28  ;;  %v9676_v12 = vor.u32 %v13852_v48, %v9675_v34  ;;  %v13876_v29 = vld [vmem:[#allocation2 + $0x494] sm:$0xf0] }
 0x149   :  { %4003 = vmatpush.bf16.msra.mxu3 %v9372_v62  ;;  %v13764_v62 = vld [vmem:[#allocation2 + $0x114] sm:$0xf0]  ;;  %v9771_v28 = vld [vmem:[#allocation2 + $0x488] sm:$0xf] }
 0x14a   :  { %3962 = vmatpush.bf16.msra.mxu0 %v11144_v15  ;;  %v9196_v15 = vor.u32 %v13732_v60, %v9195_v55  ;;  %v9324_v21 = vor.u32 %v13764_v62, %v9323_v61  ;;  %v13816_v60 = vld [vmem:[#allocation2 + $0x2b4] sm:$0xf0]  ;;  %v9659_v61 = vld [vmem:[#allocation2 + $0x3a8] sm:$0xf]  ;;  %v15458_v62 = vpop.f32.mrf.mxu1 }
 0x14b   :  { %3976 = vmatpush.bf16.msra.mxu1 %v11272_v19  ;;  %v9947_v19 = vld [vmem:[#allocation2 + $0x5e8] sm:$0xf]  ;;  %15893 = vst [vmem:[#allocation32_spill] sm:$0xff] %v15458_v62  ;;  %v13908_v48 = vld [vmem:[#allocation2 + $0x594] sm:$0xf0] }
 0x14c   :  { %3990 = vmatpush.bf16.msra.mxu2 %v9228_v20  ;;  %v13920_v20 = vld [vmem:[#allocation2 + $0x5f4] sm:$0xf0] }
 0x14d   :  { %4004 = vmatpush.bf16.msra.mxu3 %v9356_v25  ;;  %v9820_v25 = vor.u32 %v13888_v8, %v9819_v14  ;;  %v9948_v45 = vor.u32 %v13920_v20, %v9947_v19  ;;  %v13912_v14 = vld [vmem:[#allocation2 + $0x5b4] sm:$0xf0]  ;;  %v9515_v19 = vld [vmem:[#allocation2 + $0x288] sm:$0xf] }
 0x14e   :  { %3963 = vmatpush.bf16.msra.mxu0 %v11128_v50  ;;  %v9803_v50 = vld [vmem:[#allocation2 + $0x4c8] sm:$0xf]  ;;  %v13812_v20 = vld [vmem:[#allocation2 + $0x294] sm:$0xf0] }
 0x14f   :  { %3977 = vmatpush.bf16.msra.mxu1 %v11256_v53  ;;  %v9931_v53 = vld [vmem:[#allocation2 + $0x5c8] sm:$0xf]  ;;  %v9804_v55 = vor.u32 %v13884_v51, %v9803_v50  ;;  %v15466_v50 = vld [vmem:[#allocation4] sm:$0xf]  ;;  %v14012_v62 = vld [vmem:[#allocation2 + $0x8d4] sm:$0xf0] }
 0x150   :  { %3991 = vmatpush.bf16.msra.mxu2 %v9212_v54  ;;  %v13916_v54 = vld [vmem:[#allocation2 + $0x5d4] sm:$0xf0]  ;;  %v15883_v51 = vperm.slane %v15466_v50, 1 }
 0x151   :  { %4005 = vmatpush.bf16.msra.mxu3 %v9340_v59  ;;  %v9531_v59 = vld [vmem:[#allocation2 + $0x2a8] sm:$0xf]  ;;  %v9932_v63 = vor.u32 %v13916_v54, %v9931_v53  ;;  %v15469_v53 = vpop.f32.mrf.mxu3 }
 0x152   :  { %3964 = vmatpush.bf16.msra.mxu0 %v11112_v4  ;;  %v13880_v4 = vld [vmem:[#allocation2 + $0x4b4] sm:$0xf0]  ;;  %v9532_v8 = vor.u32 %v13816_v60, %v9531_v59  ;;  %v3742_v34 = vpop.f32.mrf.mxu0  ;;  %15895 = vst [vmem:[#allocation34_spill] sm:$0xff] %v15469_v53  ;;  %v9499_v59 = vld [vmem:[#allocation2 + $0x268] sm:$0xf] }
 0x153   :  { %3978 = vmatpush.bf16.msra.mxu1 %v11240_v11  ;;  %v9660_v11 = vor.u32 %v13848_v0, %v9659_v61  ;;  %v15472_v54 = vadd.f32 %v3742_v34, %v15454_v18  ;;  %v13808_v60 = vld [vmem:[#allocation2 + $0x274] sm:$0xf0]  ;;  %v9627_v61 = vld [vmem:[#allocation2 + $0x368] sm:$0xf] }
 0x154   :  { %3992 = vmatpush.bf16.msra.mxu2 %v9196_v15  ;;  %v9788_v15 = vor.u32 %v13880_v4, %v9787_v2  ;;  %v13840_v0 = vld [vmem:[#allocation2 + $0x374] sm:$0xf0]  ;;  %v9755_v2 = vld [vmem:[#allocation2 + $0x468] sm:$0xf] }
 0x155   :  { %4006 = vmatpush.bf16.msra.mxu3 %v9324_v21  ;;  %3965 = vmatmul.bf16.vlgmr.msra.gmra.mxu0 %v15386_v46  ;;  %v9643_v21 = vld [vmem:[#allocation2 + $0x388] sm:$0xf]  ;;  %15896 = vst [vmem:[#allocation35_spill] sm:$0xff] %v15472_v54  ;;  %v13872_v4 = vld [vmem:[#allocation2 + $0x474] sm:$0xf0] }
 0x156   :  { %4013 = vmatpush.bf16.msrb.mxu0 %v9564_v22  ;;  %3979 = vmatmul.bf16.vlgmr.msra.gmra.mxu1 %v15398_v37  ;;  %v15464_v22 = vpop.f32.mrf.mxu2  ;;  %v13948_v53 = vld [vmem:[#allocation2 + $0x6d4] sm:$0xf0] }
 0x157   :  { %4027 = vmatpush.bf16.msrb.mxu1 %v9692_v24  ;;  %3993 = vmatmul.bf16.vlgmr.msra.gmra.mxu2 %v15257_v58  ;;  %15894 = vst [vmem:[#allocation33_spill] sm:$0xff] %v15464_v22  ;;  %v9916_v24 = vor.u32 %v13912_v14, %v9915_v7  ;;  %v3756_v7 = vpop.f32.mrf.mxu1  ;;  %v9883_v14 = vld [vmem:[#allocation2 + $0x568] sm:$0xf] }
 0x158   :  { %4041 = vmatpush.bf16.msrb.mxu2 %v9820_v25  ;;  %4007 = vmatmul.bf16.vlgmr.msra.gmra.mxu3 %v15275_v10  ;;  %v13844_v25 = vld [vmem:[#allocation2 + $0x394] sm:$0xf0]  ;;  %v3757_v18 = vadd.f32 %v3756_v7, %v15883_v51  ;;  %v10187_v22 = vld [vmem:[#allocation2 + $0x7c8] sm:$0xf] }
 0x159   :  { %4055 = vmatpush.bf16.msrb.mxu3 %v9948_v45  ;;  %v9899_v45 = vld [vmem:[#allocation2 + $0x588] sm:$0xf]  ;;  %v13896_v51 = vld [vmem:[#allocation2 + $0x534] sm:$0xf0] }
 0x15a   :  { %4014 = vmatpush.bf16.msrb.mxu0 %v9548_v26  ;;  %v9516_v26 = vor.u32 %v13812_v20, %v9515_v19  ;;  %v9483_v19 = vld [vmem:[#allocation2 + $0x248] sm:$0xf]  ;;  %v13804_v20 = vld [vmem:[#allocation2 + $0x254] sm:$0xf0]  ;;  %v15478_v52 = vpop.f32.mrf.mxu0 }
 0x15b   :  { %4028 = vmatpush.bf16.msrb.mxu1 %v9676_v12  ;;  %v9644_v12 = vor.u32 %v13844_v25, %v9643_v21  ;;  %v9611_v21 = vld [vmem:[#allocation2 + $0x348] sm:$0xf]  ;;  %v13836_v25 = vld [vmem:[#allocation2 + $0x354] sm:$0xf0]  ;;  %v9484_v7 = vor.u32 %v13804_v20, %v9483_v19  ;;  %15897 = vst [vmem:[#allocation36_spill] sm:$0xff] %v15478_v52 }
 0x15c   :  { %4042 = vmatpush.bf16.msrb.mxu2 %v9804_v55  ;;  %v9772_v55 = vor.u32 %v13876_v29, %v9771_v28  ;;  %v9739_v28 = vld [vmem:[#allocation2 + $0x448] sm:$0xf]  ;;  %v13868_v29 = vld [vmem:[#allocation2 + $0x454] sm:$0xf0] }
 0x15d   :  { %4056 = vmatpush.bf16.msrb.mxu3 %v9932_v63  ;;  %v9900_v63 = vor.u32 %v13908_v48, %v9899_v45  ;;  %v9867_v45 = vld [vmem:[#allocation2 + $0x548] sm:$0xf]  ;;  %v13900_v48 = vld [vmem:[#allocation2 + $0x554] sm:$0xf0] }
 0x15e   :  { %4015 = vmatpush.bf16.msrb.mxu0 %v9532_v8  ;;  %v9500_v8 = vor.u32 %v13808_v60, %v9499_v59  ;;  %v3770_v34 = vpop.f32.mrf.mxu2  ;;  %v9467_v59 = vld [vmem:[#allocation2 + $0x228] sm:$0xf]  ;;  %v13800_v60 = vld [vmem:[#allocation2 + $0x234] sm:$0xf0] }
 0x15f   :  { %4029 = vmatpush.bf16.msrb.mxu1 %v9660_v11  ;;  %v9628_v11 = vor.u32 %v13840_v0, %v9627_v61  ;;  %v3771_v54 = vadd.f32 %v3770_v34, %v3757_v18  ;;  %v9595_v61 = vld [vmem:[#allocation2 + $0x328] sm:$0xf]  ;;  %v9468_v18 = vor.u32 %v13800_v60, %v9467_v59  ;;  %v13796_v19 = vld [vmem:[#allocation2 + $0x214] sm:$0xf0] }
 0x160   :  { %4043 = vmatpush.bf16.msrb.mxu2 %v9788_v15  ;;  %v9756_v15 = vor.u32 %v13872_v4, %v9755_v2  ;;  %v9723_v2 = vld [vmem:[#allocation2 + $0x428] sm:$0xf]  ;;  %v13864_v4 = vld [vmem:[#allocation2 + $0x434] sm:$0xf0] }
 0x161   :  { %4057 = vmatpush.bf16.msrb.mxu3 %v9916_v24  ;;  %v9884_v24 = vor.u32 %v13904_v3, %v9883_v14  ;;  %v9868_v3 = vor.u32 %v13900_v48, %v9867_v45  ;;  %v9851_v14 = vld [vmem:[#allocation2 + $0x528] sm:$0xf]  ;;  %v13952_v45 = vld [vmem:[#allocation2 + $0x6f4] sm:$0xf0] }
 0x162   :  { %4016 = vmatpush.bf16.msrb.mxu0 %v9516_v26  ;;  %v3784_v26 = vpop.f32.mrf.mxu3  ;;  %v9579_v20 = vld [vmem:[#allocation2 + $0x308] sm:$0xf]  ;;  %v14016_v60 = vld [vmem:[#allocation2 + $0x8f4] sm:$0xf0] }
 0x163   :  { %4030 = vmatpush.bf16.msrb.mxu1 %v9644_v12  ;;  %v9612_v12 = vor.u32 %v13836_v25, %v9611_v21  ;;  %v15476_v0 = vadd.f32 %v3784_v26, %v3771_v54  ;;  %v13828_v21 = vld [vmem:[#allocation2 + $0x314] sm:$0xf0]  ;;  %v9707_v25 = vld [vmem:[#allocation2 + $0x408] sm:$0xf]  ;;  %v9852_v54 = vor.u32 %v13896_v51, %v9851_v14 }
 0x164   :  { %4044 = vmatpush.bf16.msrb.mxu2 %v9772_v55  ;;  %v9740_v55 = vor.u32 %v13868_v29, %v9739_v28  ;;  %v9835_v28 = vld [vmem:[#allocation2 + $0x508] sm:$0xf]  ;;  %v13892_v29 = vld [vmem:[#allocation2 + $0x514] sm:$0xf0] }
 0x165   :  { %4058 = vmatpush.bf16.msrb.mxu3 %v9900_v63  ;;  %v13832_v63 = vld [vmem:[#allocation2 + $0x334] sm:$0xf0]  ;;  %v10075_v34 = vld [vmem:[#allocation2 + $0x6e8] sm:$0xf] }
 0x166   :  { %4017 = vmatpush.bf16.msrb.mxu0 %v9500_v8  ;;  %v9451_v8 = vld [vmem:[#allocation2 + $0x208] sm:$0xf]  ;;  %v13984_v26 = vld [vmem:[#allocation2 + $0x7f4] sm:$0xf0]  ;;  %v10076_v51 = vor.u32 %v13952_v45, %v10075_v34 }
 0x167   :  { %4031 = vmatpush.bf16.msrb.mxu1 %v9628_v11  ;;  %v9596_v11 = vor.u32 %v13832_v63, %v9595_v61  ;;  %v10203_v48 = vld [vmem:[#allocation2 + $0x7e8] sm:$0xf]  ;;  %v14048_v63 = vld [vmem:[#allocation2 + $0x9f4] sm:$0xf0] }
 0x168   :  { %4045 = vmatpush.bf16.msrb.mxu2 %v9756_v15  ;;  %v9724_v15 = vor.u32 %v13864_v4, %v9723_v2  ;;  %v10331_v59 = vld [vmem:[#allocation2 + $0x8e8] sm:$0xf]  ;;  %v10204_v2 = vor.u32 %v13984_v26, %v10203_v48  ;;  %v13976_v45 = vld [vmem:[#allocation2 + $0x7b4] sm:$0xf0] }
 0x169   :  { %4059 = vmatpush.bf16.msrb.mxu3 %v9884_v24  ;;  %v13860_v24 = vld [vmem:[#allocation2 + $0x414] sm:$0xf0]  ;;  %v10459_v61 = vld [vmem:[#allocation2 + $0x9e8] sm:$0xf]  ;;  %v10332_v4 = vor.u32 %v14016_v60, %v10331_v59 }
 0x16a   :  { %4018 = vmatpush.bf16.msrb.mxu0 %v9484_v7  ;;  %v9452_v7 = vor.u32 %v13796_v19, %v9451_v8  ;;  %v10059_v14 = vld [vmem:[#allocation2 + $0x6c8] sm:$0xf]  ;;  %v13980_v8 = vld [vmem:[#allocation2 + $0x7d4] sm:$0xf0] }
 0x16b   :  { %4032 = vmatpush.bf16.msrb.mxu1 %v9612_v12  ;;  %v9580_v12 = vor.u32 %v13828_v21, %v9579_v20  ;;  %v10315_v19 = vld [vmem:[#allocation2 + $0x8c8] sm:$0xf]  ;;  %v15480_v20 = vpop.f32.mrf.mxu1  ;;  %v10060_v21 = vor.u32 %v13948_v53, %v10059_v14  ;;  %v14040_v53 = vld [vmem:[#allocation2 + $0x9b4] sm:$0xf0] }
 0x16c   :  { %4046 = vmatpush.bf16.msrb.mxu2 %v9740_v55  ;;  %v9708_v55 = vor.u32 %v13860_v24, %v9707_v25  ;;  %v10188_v25 = vor.u32 %v13980_v8, %v10187_v22  ;;  %v10043_v24 = vld [vmem:[#allocation2 + $0x6a8] sm:$0xf]  ;;  %v15486_v22 = vpop.f32.mrf.mxu2  ;;  %v14036_v8 = vld [vmem:[#allocation2 + $0x994] sm:$0xf0] }
 0x16d   :  { %4060 = vmatpush.bf16.msrb.mxu3 %v9868_v3  ;;  %v9836_v3 = vor.u32 %v13892_v29, %v9835_v28  ;;  %v13944_v28 = vld [vmem:[#allocation2 + $0x6b4] sm:$0xf0]  ;;  %v10171_v29 = vld [vmem:[#allocation2 + $0x7a8] sm:$0xf] }
 0x16e   :  { %4019 = vmatpush.bf16.msrb.mxu0 %v9468_v18  ;;  %v10460_v18 = vor.u32 %v14048_v63, %v10459_v61  ;;  %v10299_v48 = vld [vmem:[#allocation2 + $0x8a8] sm:$0xf]  ;;  %v10172_v59 = vor.u32 %v13976_v45, %v10171_v29  ;;  %v13968_v45 = vld [vmem:[#allocation2 + $0x774] sm:$0xf0] }
 0x16f   :  { %4033 = vmatpush.bf16.msrb.mxu1 %v9596_v11  ;;  %v10443_v11 = vld [vmem:[#allocation2 + $0x9c8] sm:$0xf]  ;;  %v14076_v52 = vld [vmem:[#allocation2 + $0xad4] sm:$0xf0] }
 0x170   :  { %4047 = vmatpush.bf16.msrb.mxu2 %v9724_v15  ;;  %v14044_v15 = vld [vmem:[#allocation2 + $0x9d4] sm:$0xf0]  ;;  %v10427_v26 = vld [vmem:[#allocation2 + $0x9a8] sm:$0xf] }
 0x171   :  { %4061 = vmatpush.bf16.msrb.mxu3 %v9852_v54  ;;  %v10316_v54 = vor.u32 %v14012_v62, %v10315_v19  ;;  %v10444_v34 = vor.u32 %v14044_v15, %v10443_v11  ;;  %v10044_v62 = vor.u32 %v13944_v28, %v10043_v24  ;;  %v10155_v61 = vld [vmem:[#allocation2 + $0x788] sm:$0xf]  ;;  %v10428_v63 = vor.u32 %v14040_v53, %v10427_v26  ;;  %v13936_v24 = vld [vmem:[#allocation2 + $0x674] sm:$0xf0] }
 0x172   :  { %4020 = vmatpush.bf16.msrb.mxu0 %v9452_v7  ;;  %v14008_v7 = vld [vmem:[#allocation2 + $0x8b4] sm:$0xf0]  ;;  %v3798_v14 = vpop.f32.mrf.mxu0  ;;  %v10139_v28 = vld [vmem:[#allocation2 + $0x768] sm:$0xf] }
 0x173   :  { %4034 = vmatpush.bf16.msrb.mxu1 %v9580_v12  ;;  %v10300_v60 = vor.u32 %v14008_v7, %v10299_v48  ;;  %v10027_v12 = vld [vmem:[#allocation2 + $0x688] sm:$0xf]  ;;  %v3799_v19 = vadd.f32 %v3798_v14, %v15476_v0  ;;  %v14000_v7 = vld [vmem:[#allocation2 + $0x874] sm:$0xf0]  ;;  %v10140_v0 = vor.u32 %v13968_v45, %v10139_v28 }
 0x174   :  { %4048 = vmatpush.bf16.msrb.mxu2 %v9708_v55  ;;  %v13940_v55 = vld [vmem:[#allocation2 + $0x694] sm:$0xf0]  ;;  %v10267_v48 = vld [vmem:[#allocation2 + $0x868] sm:$0xf] }
 0x175   :  { %4062 = vmatpush.bf16.msrb.mxu3 %v9836_v3  ;;  %4021 = vmatmul.bf16.vlgmr.msrb.gmra.mxu0 %v15262_v1  ;;  %v15488_v3 = vpop.f32.mrf.mxu3  ;;  %v10028_v11 = vor.u32 %v13940_v55, %v10027_v12  ;;  %v10395_v26 = vld [vmem:[#allocation2 + $0x968] sm:$0xf]  ;;  %v14032_v53 = vld [vmem:[#allocation2 + $0x974] sm:$0xf0] }
 0x176   :  { %4069 = vmatpush.bf16.msra.mxu0 %v10076_v51  ;;  %4035 = vmatmul.bf16.vlgmr.msrb.gmra.mxu1 %v15280_v17  ;;  %v13972_v51 = vld [vmem:[#allocation2 + $0x794] sm:$0xf0]  ;;  %v10123_v55 = vld [vmem:[#allocation2 + $0x748] sm:$0xf] }
 0x177   :  { %4083 = vmatpush.bf16.msra.mxu1 %v10204_v2  ;;  %4049 = vmatmul.bf16.vlgmr.msrb.gmra.mxu2 %v15308_v39  ;;  %v10283_v2 = vld [vmem:[#allocation2 + $0x888] sm:$0xf]  ;;  %v10156_v15 = vor.u32 %v13972_v51, %v10155_v61  ;;  %v13932_v12 = vld [vmem:[#allocation2 + $0x654] sm:$0xf0]  ;;  %v10396_v61 = vor.u32 %v14032_v53, %v10395_v26 }
 0x178   :  { %4097 = vmatpush.bf16.msra.mxu2 %v10332_v4  ;;  %4063 = vmatmul.bf16.vlgmr.msrb.gmra.mxu3 %v15312_v44  ;;  %v14004_v4 = vld [vmem:[#allocation2 + $0x894] sm:$0xf0]  ;;  %v10107_v28 = vld [vmem:[#allocation2 + $0x728] sm:$0xf] }
 0x179   :  { %4111 = vmatpush.bf16.msra.mxu3 %v10460_v18  ;;  %v10411_v18 = vld [vmem:[#allocation2 + $0x988] sm:$0xf]  ;;  %v13960_v45 = vld [vmem:[#allocation2 + $0x734] sm:$0xf0] }
 0x17a   :  { %4070 = vmatpush.bf16.msra.mxu0 %v10060_v21  ;;  %v10284_v21 = vor.u32 %v14004_v4, %v10283_v2  ;;  %v10412_v29 = vor.u32 %v14036_v8, %v10411_v18  ;;  %v3826_v51 = vpop.f32.mrf.mxu2  ;;  %v10251_v2 = vld [vmem:[#allocation2 + $0x848] sm:$0xf]  ;;  %v13996_v4 = vld [vmem:[#allocation2 + $0x854] sm:$0xf0]  ;;  %v15493_v33 = vpop.f32.mrf.mxu0 }
 0x17b   :  { %4084 = vmatpush.bf16.msra.mxu1 %v10188_v25  ;;  %v3812_v25 = vpop.f32.mrf.mxu1  ;;  %v10379_v18 = vld [vmem:[#allocation2 + $0x948] sm:$0xf]  ;;  %v14028_v8 = vld [vmem:[#allocation2 + $0x954] sm:$0xf0] }
 0x17c   :  { %4098 = vmatpush.bf16.msra.mxu2 %v10316_v54  ;;  %v10011_v54 = vld [vmem:[#allocation2 + $0x668] sm:$0xf]  ;;  %v14024_v26 = vld [vmem:[#allocation2 + $0x934] sm:$0xf0] }
 0x17d   :  { %4112 = vmatpush.bf16.msra.mxu3 %v10444_v34  ;;  %v3813_v34 = vadd.f32 %v3812_v25, %v3799_v19  ;;  %v3840_v19 = vpop.f32.mrf.mxu3  ;;  %v10252_v25 = vor.u32 %v13996_v4, %v10251_v2  ;;  %v10347_v2 = vld [vmem:[#allocation2 + $0x908] sm:$0xf]  ;;  %v14020_v4 = vld [vmem:[#allocation2 + $0x914] sm:$0xf0] }
 0x17e   :  { %4071 = vmatpush.bf16.msra.mxu0 %v10044_v62  ;;  %v10012_v62 = vor.u32 %v13936_v24, %v10011_v54  ;;  %v9979_v54 = vld [vmem:[#allocation2 + $0x628] sm:$0xf]  ;;  %v13928_v24 = vld [vmem:[#allocation2 + $0x634] sm:$0xf0] }
 0x17f   :  { %4085 = vmatpush.bf16.msra.mxu1 %v10172_v59  ;;  %v10268_v59 = vor.u32 %v14000_v7, %v10267_v48  ;;  %v3827_v14 = vadd.f32 %v3826_v51, %v3813_v34  ;;  %v10235_v48 = vld [vmem:[#allocation2 + $0x828] sm:$0xf]  ;;  %v13992_v7 = vld [vmem:[#allocation2 + $0x834] sm:$0xf0]  ;;  %v9980_v53 = vor.u32 %v13928_v24, %v9979_v54 }
 0x180   :  { %4099 = vmatpush.bf16.msra.mxu2 %v10300_v60  ;;  %v9995_v60 = vld [vmem:[#allocation2 + $0x648] sm:$0xf]  ;;  %v14144_v24 = vld [vmem:[#allocation2 + $0xcf4] sm:$0xf0] }
 0x181   :  { %4113 = vmatpush.bf16.msra.mxu3 %v10428_v63  ;;  %v13964_v63 = vld [vmem:[#allocation2 + $0x754] sm:$0xf0]  ;;  %v10363_v34 = vld [vmem:[#allocation2 + $0x928] sm:$0xf] }
 0x182   :  { %4072 = vmatpush.bf16.msra.mxu0 %v10028_v11  ;;  %v9996_v11 = vor.u32 %v13932_v12, %v9995_v60  ;;  %v13924_v60 = vld [vmem:[#allocation2 + $0x614] sm:$0xf0]  ;;  %v10091_v12 = vld [vmem:[#allocation2 + $0x708] sm:$0xf] }
 0x183   :  { %4086 = vmatpush.bf16.msra.mxu1 %v10156_v15  ;;  %v15491_v15 = vadd.f32 %v3840_v19, %v3827_v14  ;;  %v10219_v51 = vld [vmem:[#allocation2 + $0x808] sm:$0xf] }
 0x184   :  { %4100 = vmatpush.bf16.msra.mxu2 %v10284_v21  ;;  %v10124_v21 = vor.u32 %v13964_v63, %v10123_v55  ;;  %v13956_v55 = vld [vmem:[#allocation2 + $0x714] sm:$0xf0]  ;;  %v10364_v63 = vor.u32 %v14024_v26, %v10363_v34  ;;  %v10587_v14 = vld [vmem:[#allocation2 + $0xae8] sm:$0xf] }
 0x185   :  { %4114 = vmatpush.bf16.msra.mxu3 %v10412_v29  ;;  %v10380_v29 = vor.u32 %v14028_v8, %v10379_v18  ;;  %v14080_v18 = vld [vmem:[#allocation2 + $0xaf4] sm:$0xf0]  ;;  %v10715_v8 = vld [vmem:[#allocation2 + $0xbe8] sm:$0xf] }
 0x186   :  { %4073 = vmatpush.bf16.msra.mxu0 %v10012_v62  ;;  %v9963_v62 = vld [vmem:[#allocation2 + $0x608] sm:$0xf] }
 0x187   :  { %4087 = vmatpush.bf16.msra.mxu1 %v10140_v0  ;;  %v10108_v0 = vor.u32 %v13960_v45, %v10107_v28  ;;  %v9964_v19 = vor.u32 %v13924_v60, %v9963_v62  ;;  %v10843_v54 = vld [vmem:[#allocation2 + $0xce8] sm:$0xf]  ;;  %v14176_v45 = vld [vmem:[#allocation2 + $0xdf4] sm:$0xf0] }
 0x188   :  { %4101 = vmatpush.bf16.msra.mxu2 %v10268_v59  ;;  %v10236_v59 = vor.u32 %v13992_v7, %v10235_v48  ;;  %v10971_v28 = vld [vmem:[#allocation2 + $0xde8] sm:$0xf]  ;;  %v10588_v48 = vor.u32 %v14080_v18, %v10587_v14  ;;  %v10844_v34 = vor.u32 %v14144_v24, %v10843_v54  ;;  %v14108_v62 = vld [vmem:[#allocation2 + $0xbd4] sm:$0xf0] }
 0x189   :  { %4115 = vmatpush.bf16.msra.mxu3 %v10396_v61  ;;  %v13988_v61 = vld [vmem:[#allocation2 + $0x814] sm:$0xf0]  ;;  %v10571_v26 = vld [vmem:[#allocation2 + $0xac8] sm:$0xf] }
 0x18a   :  { %4074 = vmatpush.bf16.msra.mxu0 %v9996_v11  ;;  %v14112_v11 = vld [vmem:[#allocation2 + $0xbf4] sm:$0xf0]  ;;  %v10827_v60 = vld [vmem:[#allocation2 + $0xcc8] sm:$0xf] }
 0x18b   :  { %4088 = vmatpush.bf16.msra.mxu1 %v10124_v21  ;;  %v10092_v21 = vor.u32 %v13956_v55, %v10091_v12  ;;  %v10716_v7 = vor.u32 %v14112_v11, %v10715_v8  ;;  %v15495_v12 = vpop.f32.mrf.mxu1  ;;  %v10572_v55 = vor.u32 %v14076_v52, %v10571_v26  ;;  %v14104_v18 = vld [vmem:[#allocation2 + $0xbb4] sm:$0xf0]  ;;  %v10811_v8 = vld [vmem:[#allocation2 + $0xca8] sm:$0xf] }
 0x18c   :  { %4102 = vmatpush.bf16.msra.mxu2 %v10252_v25  ;;  %v10220_v25 = vor.u32 %v13988_v61, %v10219_v51  ;;  %v10700_v51 = vor.u32 %v14108_v62, %v10699_v13  ;;  %v10555_v61 = vld [vmem:[#allocation2 + $0xaa8] sm:$0xf]  ;;  %v14168_v52 = vld [vmem:[#allocation2 + $0xdb4] sm:$0xf0] }
 0x18d   :  { %4116 = vmatpush.bf16.msra.mxu3 %v10380_v29  ;;  %v10348_v29 = vor.u32 %v14020_v4, %v10347_v2  ;;  %v14072_v2 = vld [vmem:[#allocation2 + $0xab4] sm:$0xf0]  ;;  %v10683_v4 = vld [vmem:[#allocation2 + $0xba8] sm:$0xf] }
 0x18e   :  { %4075 = vmatpush.bf16.msra.mxu0 %v9980_v53  ;;  %v10972_v53 = vor.u32 %v14176_v45, %v10971_v28  ;;  %v10939_v11 = vld [vmem:[#allocation2 + $0xda8] sm:$0xf]  ;;  %v10684_v13 = vor.u32 %v14104_v18, %v10683_v4  ;;  %v15501_v28 = vpop.f32.mrf.mxu2  ;;  %v14164_v62 = vld [vmem:[#allocation2 + $0xd94] sm:$0xf0] }
 0x18f   :  { %4089 = vmatpush.bf16.msra.mxu1 %v10108_v0  ;;  %v10955_v0 = vld [vmem:[#allocation2 + $0xdc8] sm:$0xf]  ;;  %v10940_v45 = vor.u32 %v14168_v52, %v10939_v11  ;;  %v14096_v18 = vld [vmem:[#allocation2 + $0xb74] sm:$0xf0] }
 0x190   :  { %4103 = vmatpush.bf16.msra.mxu2 %v10236_v59  ;;  %v14172_v59 = vld [vmem:[#allocation2 + $0xdd4] sm:$0xf0]  ;;  %v10539_v24 = vld [vmem:[#allocation2 + $0xa88] sm:$0xf] }
 0x191   :  { %4117 = vmatpush.bf16.msra.mxu3 %v10364_v63  ;;  %v10828_v63 = vor.u32 %v14140_v5, %v10827_v60  ;;  %v10956_v14 = vor.u32 %v14172_v59, %v10955_v0  ;;  %v10556_v5 = vor.u32 %v14072_v2, %v10555_v61  ;;  %v14064_v61 = vld [vmem:[#allocation2 + $0xa74] sm:$0xf0]  ;;  %v10651_v2 = vld [vmem:[#allocation2 + $0xb68] sm:$0xf] }
 0x192   :  { %4076 = vmatpush.bf16.msra.mxu0 %v9964_v19  ;;  %v14136_v19 = vld [vmem:[#allocation2 + $0xcb4] sm:$0xf0]  ;;  %v3854_v26 = vpop.f32.mrf.mxu0  ;;  %v10907_v11 = vld [vmem:[#allocation2 + $0xd68] sm:$0xf] }
 0x193   :  { %4090 = vmatpush.bf16.msra.mxu1 %v10092_v21  ;;  %v10812_v54 = vor.u32 %v14136_v19, %v10811_v8  ;;  %v14068_v21 = vld [vmem:[#allocation2 + $0xa94] sm:$0xf0]  ;;  %v3855_v60 = vadd.f32 %v3854_v26, %v15491_v15  ;;  %v3868_v59 = vpop.f32.mrf.mxu1  ;;  %v10779_v8 = vld [vmem:[#allocation2 + $0xc68] sm:$0xf]  ;;  %v10652_v15 = vor.u32 %v14096_v18, %v10651_v2 }
 0x194   :  { %4104 = vmatpush.bf16.msra.mxu2 %v10220_v25  ;;  %v10667_v25 = vld [vmem:[#allocation2 + $0xb88] sm:$0xf]  ;;  %v10540_v0 = vor.u32 %v14068_v21, %v10539_v24  ;;  %v14128_v19 = vld [vmem:[#allocation2 + $0xc74] sm:$0xf0] }
 0x195   :  { %4118 = vmatpush.bf16.msra.mxu3 %v10348_v29  ;;  %4077 = vmatmul.bf16.vlgmr.msra.gmra.mxu0 %v15310_v43  ;;  %v14100_v29 = vld [vmem:[#allocation2 + $0xb94] sm:$0xf0]  ;;  %v10635_v21 = vld [vmem:[#allocation2 + $0xb48] sm:$0xf] }
 0x196   :  { %4125 = vmatpush.bf16.msrb.mxu0 %v10588_v48  ;;  %4091 = vmatmul.bf16.vlgmr.msra.gmra.mxu1 %v15314_v47  ;;  %v10795_v48 = vld [vmem:[#allocation2 + $0xc88] sm:$0xf]  ;;  %v14160_v52 = vld [vmem:[#allocation2 + $0xd74] sm:$0xf0] }
 0x197   :  { %4139 = vmatpush.bf16.msrb.mxu1 %v10716_v7  ;;  %4105 = vmatmul.bf16.vlgmr.msra.gmra.mxu2 %v15344_v31  ;;  %v14132_v7 = vld [vmem:[#allocation2 + $0xc94] sm:$0xf0]  ;;  %v10619_v2 = vld [vmem:[#allocation2 + $0xb28] sm:$0xf] }
 0x198   :  { %4153 = vmatpush.bf16.msrb.mxu2 %v10844_v34  ;;  %4119 = vmatmul.bf16.vlgmr.msra.gmra.mxu3 %v15348_v36  ;;  %v15503_v34 = vpop.f32.mrf.mxu3  ;;  %v14060_v24 = vld [vmem:[#allocation2 + $0xa54] sm:$0xf0] }
 0x199   :  { %4167 = vmatpush.bf16.msrb.mxu3 %v10972_v53  ;;  %15898 = vst [vmem:[#allocation37_spill] sm:$0xff] %v15503_v34  ;;  %v10923_v53 = vld [vmem:[#allocation2 + $0xd88] sm:$0xf]  ;;  %v14088_v18 = vld [vmem:[#allocation2 + $0xb34] sm:$0xf0] }
 0x19a   :  { %4126 = vmatpush.bf16.msrb.mxu0 %v10572_v55  ;;  %v10668_v55 = vor.u32 %v14100_v29, %v10667_v25  ;;  %v10924_v4 = vor.u32 %v14164_v62, %v10923_v53  ;;  %v10908_v25 = vor.u32 %v14160_v52, %v10907_v11  ;;  %v3882_v29 = vpop.f32.mrf.mxu2  ;;  %v10891_v62 = vld [vmem:[#allocation2 + $0xd48] sm:$0xf]  ;;  %v14152_v11 = vld [vmem:[#allocation2 + $0xd34] sm:$0xf0]  ;;  %v15508_v9 = vpop.f32.mrf.mxu0 }
 0x19b   :  { %4140 = vmatpush.bf16.msrb.mxu1 %v10700_v51  ;;  %v10796_v51 = vor.u32 %v14132_v7, %v10795_v48  ;;  %v10763_v48 = vld [vmem:[#allocation2 + $0xc48] sm:$0xf]  ;;  %v14124_v7 = vld [vmem:[#allocation2 + $0xc54] sm:$0xf0] }
 0x19c   :  { %4154 = vmatpush.bf16.msrb.mxu2 %v10828_v63  ;;  %v10523_v63 = vld [vmem:[#allocation2 + $0xa68] sm:$0xf]  ;;  %v14268_v34 = vld [vmem:[#allocation2 + $0x10d4] sm:$0xf0] }
 0x19d   :  { %4168 = vmatpush.bf16.msrb.mxu3 %v10956_v14  ;;  %v3869_v14 = vadd.f32 %v3868_v59, %v3855_v60  ;;  %v14156_v60 = vld [vmem:[#allocation2 + $0xd54] sm:$0xf0] }
 0x19e   :  { %4127 = vmatpush.bf16.msrb.mxu0 %v10556_v5  ;;  %v10524_v5 = vor.u32 %v14064_v61, %v10523_v63  ;;  %v10491_v63 = vld [vmem:[#allocation2 + $0xa28] sm:$0xf]  ;;  %v14056_v61 = vld [vmem:[#allocation2 + $0xa34] sm:$0xf0] }
 0x19f   :  { %4141 = vmatpush.bf16.msrb.mxu1 %v10684_v13  ;;  %v10780_v13 = vor.u32 %v14128_v19, %v10779_v8  ;;  %v3883_v26 = vadd.f32 %v3882_v29, %v3869_v14  ;;  %v10747_v8 = vld [vmem:[#allocation2 + $0xc28] sm:$0xf]  ;;  %v14120_v19 = vld [vmem:[#allocation2 + $0xc34] sm:$0xf0]  ;;  %v10492_v52 = vor.u32 %v14056_v61, %v10491_v63 }
 0x1a0   :  { %4155 = vmatpush.bf16.msrb.mxu2 %v10812_v54  ;;  %v10507_v54 = vld [vmem:[#allocation2 + $0xa48] sm:$0xf]  ;;  %v3896_v53 = vpop.f32.mrf.mxu3  ;;  %v14272_v61 = vld [vmem:[#allocation2 + $0x10f4] sm:$0xf0] }
 0x1a1   :  { %4169 = vmatpush.bf16.msrb.mxu3 %v10940_v45  ;;  %v14092_v45 = vld [vmem:[#allocation2 + $0xb54] sm:$0xf0]  ;;  %v15506_v59 = vadd.f32 %v3896_v53, %v3883_v26  ;;  %v10875_v14 = vld [vmem:[#allocation2 + $0xd28] sm:$0xf] }
 0x1a2   :  { %4128 = vmatpush.bf16.msrb.mxu0 %v10540_v0  ;;  %v10508_v0 = vor.u32 %v14060_v24, %v10507_v54  ;;  %v14052_v54 = vld [vmem:[#allocation2 + $0xa14] sm:$0xf0]  ;;  %v10603_v24 = vld [vmem:[#allocation2 + $0xb08] sm:$0xf] }
 0x1a3   :  { %4142 = vmatpush.bf16.msrb.mxu1 %v10668_v55  ;;  %v10636_v55 = vor.u32 %v14092_v45, %v10635_v21  ;;  %v14084_v21 = vld [vmem:[#allocation2 + $0xb14] sm:$0xf0]  ;;  %v10731_v29 = vld [vmem:[#allocation2 + $0xc08] sm:$0xf]  ;;  %v10876_v45 = vor.u32 %v14152_v11, %v10875_v14 }
 0x1a4   :  { %4156 = vmatpush.bf16.msrb.mxu2 %v10796_v51  ;;  %v10764_v51 = vor.u32 %v14124_v7, %v10763_v48  ;;  %v10859_v48 = vld [vmem:[#allocation2 + $0xd08] sm:$0xf]  ;;  %v14148_v7 = vld [vmem:[#allocation2 + $0xd14] sm:$0xf0] }
 0x1a5   :  { %4170 = vmatpush.bf16.msrb.mxu3 %v10924_v4  ;;  %v10892_v4 = vor.u32 %v14156_v60, %v10891_v62  ;;  %v11099_v26 = vld [vmem:[#allocation2 + $0xee8] sm:$0xf]  ;;  %v14208_v53 = vld [vmem:[#allocation2 + $0xef4] sm:$0xf0] }
 0x1a6   :  { %4129 = vmatpush.bf16.msrb.mxu0 %v10524_v5  ;;  %v10475_v5 = vld [vmem:[#allocation2 + $0xa08] sm:$0xf] }
 0x1a7   :  { %4143 = vmatpush.bf16.msrb.mxu1 %v10652_v15  ;;  %v10620_v15 = vor.u32 %v14088_v18, %v10619_v2  ;;  %v11227_v62 = vld [vmem:[#allocation2 + $0xfe8] sm:$0xf]  ;;  %v10476_v60 = vor.u32 %v14052_v54, %v10475_v5  ;;  %v13758_v2 = vld [vmem:[#allocation2 + $0xec] sm:$0xf]  ;;  %v9309_v18 = vld [vmem:[#allocation2 + $0xf8] sm:$0xf0] }
 0x1a8   :  { %4157 = vmatpush.bf16.msrb.mxu2 %v10780_v13  ;;  %v10748_v13 = vor.u32 %v14120_v19, %v10747_v8  ;;  %v11355_v63 = vld [vmem:[#allocation2 + $0x10e8] sm:$0xf]  ;;  %v11100_v8 = vor.u32 %v14208_v53, %v11099_v26  ;;  %v14236_v5 = vld [vmem:[#allocation2 + $0xfd4] sm:$0xf0] }
 0x1a9   :  { %4171 = vmatpush.bf16.msrb.mxu3 %v10908_v25  ;;  %v14116_v25 = vld [vmem:[#allocation2 + $0xc14] sm:$0xf0]  ;;  %v11356_v14 = vor.u32 %v14272_v61, %v11355_v63  ;;  %v11083_v11 = vld [vmem:[#allocation2 + $0xec8] sm:$0xf] }
 0x1aa   :  { %4130 = vmatpush.bf16.msrb.mxu0 %v10508_v0  ;;  %v14240_v0 = vld [vmem:[#allocation2 + $0xff4] sm:$0xf0]  ;;  %v11339_v54 = vld [vmem:[#allocation2 + $0x10c8] sm:$0xf] }
 0x1ab   :  { %4144 = vmatpush.bf16.msrb.mxu1 %v10636_v55  ;;  %v10604_v55 = vor.u32 %v14084_v21, %v10603_v24  ;;  %v11228_v19 = vor.u32 %v14240_v0, %v11227_v62  ;;  %v15510_v24 = vpop.f32.mrf.mxu1  ;;  %v11084_v21 = vor.u32 %v14204_v27, %v11083_v11  ;;  %v14232_v53 = vld [vmem:[#allocation2 + $0xfb4] sm:$0xf0]  ;;  %v11323_v62 = vld [vmem:[#allocation2 + $0x10a8] sm:$0xf]  ;;  %v13750_v0 = vld [vmem:[#allocation2 + $0xac] sm:$0xf] }
 0x1ac   :  { %4158 = vmatpush.bf16.msrb.mxu2 %v10764_v51  ;;  %v10732_v51 = vor.u32 %v14116_v25, %v10731_v29  ;;  %15899 = vst [vmem:[#allocation38_spill] sm:$0xff] %v15510_v24  ;;  %v11212_v29 = vor.u32 %v14236_v5, %v11211_v16  ;;  %v11067_v25 = vld [vmem:[#allocation2 + $0xea8] sm:$0xf]  ;;  %v9277_v27 = vld [vmem:[#allocation2 + $0xb8] sm:$0xf0] }
 0x1ad   :  { %4172 = vmatpush.bf16.msrb.mxu3 %v10892_v4  ;;  %v10860_v4 = vor.u32 %v14148_v7, %v10859_v48  ;;  %v14200_v48 = vld [vmem:[#allocation2 + $0xeb4] sm:$0xf0]  ;;  %v11195_v7 = vld [vmem:[#allocation2 + $0xfa8] sm:$0xf]  ;;  %v9261_v5 = vld [vmem:[#allocation2 + $0x98] sm:$0xf0] }
 0x1ae   :  { %4131 = vmatpush.bf16.msrb.mxu0 %v10492_v52  ;;  %v9312_v52 = vor.u32 %v13758_v2, %v9309_v18  ;;  %v11068_v16 = vor.u32 %v14200_v48, %v11067_v25  ;;  %v11051_v61 = vld [vmem:[#allocation2 + $0xe88] sm:$0xf]  ;;  %v15516_v2 = vpop.f32.mrf.mxu2  ;;  %v9280_v18 = vor.u32 %v13750_v0, %v9277_v27  ;;  %v14192_v25 = vld [vmem:[#allocation2 + $0xe74] sm:$0xf0]  ;;  %v13742_v0 = vld [vmem:[#allocation2 + $0x6c] sm:$0xf] }
 0x1af   :  { %4145 = vmatpush.bf16.msrb.mxu1 %v10620_v15  ;;  %v13754_v15 = vld [vmem:[#allocation2 + $0xcc] sm:$0xf]  ;;  %15900 = vst [vmem:[#allocation39_spill] sm:$0xff] %v15516_v2  ;;  %v11163_v48 = vld [vmem:[#allocation2 + $0xf68] sm:$0xf] }
 0x1b0   :  { %4159 = vmatpush.bf16.msrb.mxu2 %v10748_v13  ;;  %v9293_v13 = vld [vmem:[#allocation2 + $0xd8] sm:$0xf0] }
 0x1b1   :  { %4173 = vmatpush.bf16.msrb.mxu3 %v10876_v45  ;;  %v11340_v45 = vor.u32 %v14268_v34, %v11339_v54  ;;  %v9296_v26 = vor.u32 %v13754_v15, %v9293_v13  ;;  %v11196_v34 = vor.u32 %v14232_v53, %v11195_v7  ;;  %v14224_v53 = vld [vmem:[#allocation2 + $0xf74] sm:$0xf0]  ;;  %v9245_v27 = vld [vmem:[#allocation2 + $0x78] sm:$0xf0] }
 0x1b2   :  { %4132 = vmatpush.bf16.msrb.mxu0 %v10476_v60  ;;  %v14264_v60 = vld [vmem:[#allocation2 + $0x10b4] sm:$0xf0]  ;;  %v3910_v11 = vpop.f32.mrf.mxu0  ;;  %v9677_v2 = vld [vmem:[#allocation2 + $0x3d8] sm:$0xf0] }
 0x1b3   :  { %4146 = vmatpush.bf16.msrb.mxu1 %v10604_v55  ;;  %v11324_v63 = vor.u32 %v14264_v60, %v11323_v62  ;;  %v14196_v55 = vld [vmem:[#allocation2 + $0xe94] sm:$0xf0]  ;;  %v3911_v54 = vadd.f32 %v3910_v11, %v15506_v59  ;;  %v3924_v13 = vpop.f32.mrf.mxu1  ;;  %v11291_v62 = vld [vmem:[#allocation2 + $0x1068] sm:$0xf]  ;;  %v11164_v59 = vor.u32 %v14224_v53, %v11163_v48 }
 0x1b4   :  { %4160 = vmatpush.bf16.msrb.mxu2 %v10732_v51  ;;  %v11179_v51 = vld [vmem:[#allocation2 + $0xf88] sm:$0xf]  ;;  %v11052_v15 = vor.u32 %v14196_v55, %v11051_v61  ;;  %v14256_v60 = vld [vmem:[#allocation2 + $0x1074] sm:$0xf0] }
 0x1b5   :  { %4174 = vmatpush.bf16.msrb.mxu3 %v10860_v4  ;;  %4133 = vmatmul.bf16.vlgmr.msrb.gmra.mxu0 %v15346_v35  ;;  %v14228_v4 = vld [vmem:[#allocation2 + $0xf94] sm:$0xf0]  ;;  %v11147_v55 = vld [vmem:[#allocation2 + $0xf48] sm:$0xf] }
 0x1b6   :  { %4181 = vmatpush.bf16.msra.mxu0 %v11100_v8  ;;  %4147 = vmatmul.bf16.vlgmr.msrb.gmra.mxu1 %v15350_v40  ;;  %v11307_v8 = vld [vmem:[#allocation2 + $0x1088] sm:$0xf]  ;;  %v14188_v61 = vld [vmem:[#allocation2 + $0xe54] sm:$0xf0] }
 0x1b7   :  { %4195 = vmatpush.bf16.msra.mxu1 %v11228_v19  ;;  %4161 = vmatmul.bf16.vlgmr.msrb.gmra.mxu2 %v15380_v32  ;;  %v14260_v19 = vld [vmem:[#allocation2 + $0x1094] sm:$0xf0]  ;;  %v11131_v48 = vld [vmem:[#allocation2 + $0xf28] sm:$0xf] }
 0x1b8   :  { %4209 = vmatpush.bf16.msra.mxu2 %v11356_v14  ;;  %4175 = vmatmul.bf16.vlgmr.msrb.gmra.mxu3 %v15384_v41  ;;  %v15518_v14 = vpop.f32.mrf.mxu3  ;;  %v14216_v53 = vld [vmem:[#allocation2 + $0xf34] sm:$0xf0]  ;;  %v13818_v41 = vld [vmem:[#allocation2 + $0x2cc] sm:$0xf] }
 0x1b9   :  { %4223 = vmatpush.bf16.msra.mxu3 %v9312_v52  ;;  %15901 = vst [vmem:[#allocation40_spill] sm:$0xff] %v15518_v14  ;;  %v13746_v52 = vld [vmem:[#allocation2 + $0x8c] sm:$0xf]  ;;  %v9421_v14 = vld [vmem:[#allocation2 + $0x1d8] sm:$0xf0] }
 0x1ba   :  { %4182 = vmatpush.bf16.msra.mxu0 %v11084_v21  ;;  %v11180_v21 = vor.u32 %v14228_v4, %v11179_v51  ;;  %v9264_v7 = vor.u32 %v13746_v52, %v9261_v5  ;;  %v9248_v51 = vor.u32 %v13742_v0, %v9245_v27  ;;  %v3938_v4 = vpop.f32.mrf.mxu2  ;;  %v13738_v5 = vld [vmem:[#allocation2 + $0x4c] sm:$0xf]  ;;  %v9213_v0 = vld [vmem:[#allocation2 + $0x38] sm:$0xf0]  ;;  %v15523_v24 = vpop.f32.mrf.mxu0 }
 0x1bb   :  { %4196 = vmatpush.bf16.msra.mxu1 %v11212_v29  ;;  %v11308_v29 = vor.u32 %v14260_v19, %v11307_v8  ;;  %v11275_v8 = vld [vmem:[#allocation2 + $0x1048] sm:$0xf]  ;;  %v14252_v19 = vld [vmem:[#allocation2 + $0x1054] sm:$0xf0] }
 0x1bc   :  { %4210 = vmatpush.bf16.msra.mxu2 %v11340_v45  ;;  %v11035_v45 = vld [vmem:[#allocation2 + $0xe68] sm:$0xf] }
 0x1bd   :  { %4224 = vmatpush.bf16.msra.mxu3 %v9296_v26  ;;  %v3925_v26 = vadd.f32 %v3924_v13, %v3911_v54  ;;  %v9229_v54 = vld [vmem:[#allocation2 + $0x58] sm:$0xf0] }
 0x1be   :  { %4183 = vmatpush.bf16.msra.mxu0 %v11068_v16  ;;  %v11036_v16 = vor.u32 %v14192_v25, %v11035_v45  ;;  %v11003_v45 = vld [vmem:[#allocation2 + $0xe28] sm:$0xf]  ;;  %v14184_v25 = vld [vmem:[#allocation2 + $0xe34] sm:$0xf0] }
 0x1bf   :  { %4197 = vmatpush.bf16.msra.mxu1 %v11196_v34  ;;  %v11292_v34 = vor.u32 %v14256_v60, %v11291_v62  ;;  %v3939_v11 = vadd.f32 %v3938_v4, %v3925_v26  ;;  %v11259_v62 = vld [vmem:[#allocation2 + $0x1028] sm:$0xf]  ;;  %v14248_v60 = vld [vmem:[#allocation2 + $0x1034] sm:$0xf0]  ;;  %v13734_v26 = vld [vmem:[#allocation2 + $0x2c] sm:$0xf]  ;;  %v11004_v27 = vor.u32 %v14184_v25, %v11003_v45 }
 0x1c0   :  { %4211 = vmatpush.bf16.msra.mxu2 %v11324_v63  ;;  %v11019_v63 = vld [vmem:[#allocation2 + $0xe48] sm:$0xf]  ;;  %v3952_v52 = vpop.f32.mrf.mxu3  ;;  %v13854_v45 = vld [vmem:[#allocation2 + $0x3ec] sm:$0xf]  ;;  %v9693_v25 = vld [vmem:[#allocation2 + $0x3f8] sm:$0xf0] }
 0x1c1   :  { %4225 = vmatpush.bf16.msra.mxu3 %v9280_v18  ;;  %v14220_v18 = vld [vmem:[#allocation2 + $0xf54] sm:$0xf0]  ;;  %v15521_v13 = vadd.f32 %v3952_v52, %v3939_v11  ;;  %v11243_v4 = vld [vmem:[#allocation2 + $0x1008] sm:$0xf]  ;;  %v13790_v11 = vld [vmem:[#allocation2 + $0x1ec] sm:$0xf] }
 0x1c2   :  { %4184 = vmatpush.bf16.msra.mxu0 %v11052_v15  ;;  %v11020_v15 = vor.u32 %v14188_v61, %v11019_v63  ;;  %v14180_v63 = vld [vmem:[#allocation2 + $0xe14] sm:$0xf0]  ;;  %v11115_v61 = vld [vmem:[#allocation2 + $0xf08] sm:$0xf]  ;;  %v9437_v52 = vld [vmem:[#allocation2 + $0x1f8] sm:$0xf0] }
 0x1c3   :  { %4198 = vmatpush.bf16.msra.mxu1 %v11180_v21  ;;  %v11148_v21 = vor.u32 %v14220_v18, %v11147_v55  ;;  %v14212_v55 = vld [vmem:[#allocation2 + $0xf14] sm:$0xf0]  ;;  %v9216_v18 = vor.u32 %v13734_v26, %v9213_v0  ;;  %v9696_v26 = vor.u32 %v13854_v45, %v9693_v25  ;;  %v13786_v0 = vld [vmem:[#allocation2 + $0x1cc] sm:$0xf] }
 0x1c4   :  { %4212 = vmatpush.bf16.msra.mxu2 %v11308_v29  ;;  %v11276_v29 = vor.u32 %v14252_v19, %v11275_v8  ;;  %v13730_v8 = vld [vmem:[#allocation2 + $0xc] sm:$0xf]  ;;  %v9197_v19 = vld [vmem:[#allocation2 + $0x18] sm:$0xf0] }
 0x1c5   :  { %4226 = vmatpush.bf16.msra.mxu3 %v9264_v7  ;;  %v9232_v7 = vor.u32 %v13738_v5, %v9229_v54  ;;  %v13822_v5 = vld [vmem:[#allocation2 + $0x2ec] sm:$0xf] }
 0x1c6   :  { %4185 = vmatpush.bf16.msra.mxu0 %v11036_v16  ;;  %v10987_v16 = vld [vmem:[#allocation2 + $0xe08] sm:$0xf]  ;;  %v13778_v25 = vld [vmem:[#allocation2 + $0x18c] sm:$0xf] }
 0x1c7   :  { %4199 = vmatpush.bf16.msra.mxu1 %v11164_v59  ;;  %v11132_v59 = vor.u32 %v14216_v53, %v11131_v48  ;;  %v10988_v54 = vor.u32 %v14180_v63, %v10987_v16  ;;  %v13886_v48 = vld [vmem:[#allocation2 + $0x4ec] sm:$0xf]  ;;  %v9821_v53 = vld [vmem:[#allocation2 + $0x4f8] sm:$0xf0] }
 0x1c8   :  { %4213 = vmatpush.bf16.msra.mxu2 %v11292_v34  ;;  %v11260_v34 = vor.u32 %v14248_v60, %v11259_v62  ;;  %v9440_v62 = vor.u32 %v13790_v11, %v9437_v52  ;;  %v9549_v16 = vld [vmem:[#allocation2 + $0x2d8] sm:$0xf0]  ;;  %v13850_v63 = vld [vmem:[#allocation2 + $0x3cc] sm:$0xf] }
 0x1c9   :  { %4227 = vmatpush.bf16.msra.mxu3 %v9248_v51  ;;  %v14244_v51 = vld [vmem:[#allocation2 + $0x1014] sm:$0xf0]  ;;  %v9533_v52 = vld [vmem:[#allocation2 + $0x2b8] sm:$0xf0] }
 0x1ca   :  { %4186 = vmatpush.bf16.msra.mxu0 %v11020_v15  ;;  %v9565_v15 = vld [vmem:[#allocation2 + $0x2f8] sm:$0xf0] }
 0x1cb   :  { %4200 = vmatpush.bf16.msra.mxu1 %v11148_v21  ;;  %v11116_v21 = vor.u32 %v14212_v55, %v11115_v61  ;;  %v9568_v60 = vor.u32 %v13822_v5, %v9565_v15  ;;  %v15525_v61 = vpop.f32.mrf.mxu1  ;;  %v9424_v55 = vor.u32 %v13786_v0, %v9421_v14  ;;  %v13846_v5 = vld [vmem:[#allocation2 + $0x3ac] sm:$0xf]  ;;  %v9789_v14 = vld [vmem:[#allocation2 + $0x4b8] sm:$0xf0] }
 0x1cc   :  { %4214 = vmatpush.bf16.msra.mxu2 %v11276_v29  ;;  %v11244_v29 = vor.u32 %v14244_v51, %v11243_v4  ;;  %v9552_v4 = vor.u32 %v13818_v41, %v9549_v16  ;;  %v13782_v51 = vld [vmem:[#allocation2 + $0x1ac] sm:$0xf]  ;;  %v9773_v0 = vld [vmem:[#allocation2 + $0x498] sm:$0xf0] }
 0x1cd   :  { %4228 = vmatpush.bf16.msra.mxu3 %v9232_v7  ;;  %v9200_v7 = vor.u32 %v13730_v8, %v9197_v19  ;;  %v9405_v8 = vld [vmem:[#allocation2 + $0x1b8] sm:$0xf0]  ;;  %v13814_v19 = vld [vmem:[#allocation2 + $0x2ac] sm:$0xf] }
 0x1ce   :  { %4187 = vmatpush.bf16.msra.mxu0 %v11004_v27  ;;  %v9824_v27 = vor.u32 %v13886_v48, %v9821_v53  ;;  %v13878_v15 = vld [vmem:[#allocation2 + $0x4ac] sm:$0xf]  ;;  %v9408_v45 = vor.u32 %v13782_v51, %v9405_v8  ;;  %v9536_v41 = vor.u32 %v13814_v19, %v9533_v52  ;;  %v9517_v53 = vld [vmem:[#allocation2 + $0x298] sm:$0xf0] }
 0x1cf   :  { %4201 = vmatpush.bf16.msra.mxu1 %v11132_v59  ;;  %v13882_v59 = vld [vmem:[#allocation2 + $0x4cc] sm:$0xf]  ;;  %v9792_v48 = vor.u32 %v13878_v15, %v9789_v14  ;;  %v9501_v8 = vld [vmem:[#allocation2 + $0x278] sm:$0xf0] }
 0x1d0   :  { %4215 = vmatpush.bf16.msra.mxu2 %v11260_v34  ;;  %v9805_v34 = vld [vmem:[#allocation2 + $0x4d8] sm:$0xf0]  ;;  %v13838_v19 = vld [vmem:[#allocation2 + $0x36c] sm:$0xf] }
 0x1d1   :  { %4229 = vmatpush.bf16.msra.mxu3 %v9216_v18  ;;  %v9680_v18 = vor.u32 %v13850_v63, %v9677_v2  ;;  %v9808_v11 = vor.u32 %v13882_v59, %v9805_v34  ;;  %v13774_v34 = vld [vmem:[#allocation2 + $0x16c] sm:$0xf] }
 0x1d2   :  { %4188 = vmatpush.bf16.msra.mxu0 %v10988_v54  ;;  %v9661_v54 = vld [vmem:[#allocation2 + $0x3b8] sm:$0xf0]  ;;  %v13870_v52 = vld [vmem:[#allocation2 + $0x46c] sm:$0xf] }
 0x1d3   :  { %4202 = vmatpush.bf16.msra.mxu1 %v11116_v21  ;;  %v9664_v2 = vor.u32 %v13846_v5, %v9661_v54  ;;  %v9389_v21 = vld [vmem:[#allocation2 + $0x198] sm:$0xf0]  ;;  %v13770_v14 = vld [vmem:[#allocation2 + $0x14c] sm:$0xf] }
 0x1d4   :  { %4216 = vmatpush.bf16.msra.mxu2 %v11244_v29  ;;  %v13810_v29 = vld [vmem:[#allocation2 + $0x28c] sm:$0xf]  ;;  %v9392_v16 = vor.u32 %v13778_v25, %v9389_v21  ;;  %v9757_v5 = vld [vmem:[#allocation2 + $0x478] sm:$0xf0] }
 0x1d5   :  { %4230 = vmatpush.bf16.msra.mxu3 %v9200_v7  ;;  %4189 = vmatmul.bf16.vlgmr.msra.gmra.mxu0 %v15382_v38  ;;  %v13842_v7 = vld [vmem:[#allocation2 + $0x38c] sm:$0xf]  ;;  %v9520_v63 = vor.u32 %v13810_v29, %v9517_v53  ;;  %v9485_v25 = vld [vmem:[#allocation2 + $0x258] sm:$0xf0] }
 0x1d6   :  { %4237 = vmatpush.bf16.msrb.mxu0 %v9440_v62  ;;  %4203 = vmatmul.bf16.vlgmr.msra.gmra.mxu1 %v15386_v46  ;;  %v9645_v62 = vld [vmem:[#allocation2 + $0x398] sm:$0xf0]  ;;  %v13834_v21 = vld [vmem:[#allocation2 + $0x34c] sm:$0xf] }
 0x1d7   :  { %4251 = vmatpush.bf16.msrb.mxu1 %v9568_v60  ;;  %4217 = vmatmul.bf16.vlgmr.msra.gmra.mxu2 %v15398_v37  ;;  %v3966_v60 = vpop.f32.mrf.mxu0  ;;  %v9648_v59 = vor.u32 %v13842_v7, %v9645_v62  ;;  %v9613_v29 = vld [vmem:[#allocation2 + $0x358] sm:$0xf0] }
 0x1d8   :  { %4265 = vmatpush.bf16.msrb.mxu2 %v9696_v26  ;;  %4231 = vmatmul.bf16.vlgmr.msra.gmra.mxu3 %v15257_v58  ;;  %v13874_v26 = vld [vmem:[#allocation2 + $0x48c] sm:$0xf]  ;;  %v3980_v58 = vpop.f32.mrf.mxu1  ;;  %v9741_v53 = vld [vmem:[#allocation2 + $0x458] sm:$0xf0] }
 0x1d9   :  { %4279 = vmatpush.bf16.msrb.mxu3 %v9824_v27  ;;  %v3967_v27 = vadd.f32 %v3966_v60, %v15521_v13  ;;  %v9616_v60 = vor.u32 %v13834_v21, %v9613_v29  ;;  %v10077_v29 = vld [vmem:[#allocation2 + $0x6f8] sm:$0xf0] }
 0x1da   :  { %4238 = vmatpush.bf16.msrb.mxu0 %v9424_v55  ;;  %v9373_v55 = vld [vmem:[#allocation2 + $0x178] sm:$0xf0] }
 0x1db   :  { %4252 = vmatpush.bf16.msrb.mxu1 %v9552_v4  ;;  %v13806_v4 = vld [vmem:[#allocation2 + $0x26c] sm:$0xf]  ;;  %v15532_v51 = vadd.f32 %v3980_v58, %v3967_v27  ;;  %v9376_v13 = vor.u32 %v13774_v34, %v9373_v55  ;;  %v9469_v58 = vld [vmem:[#allocation2 + $0x238] sm:$0xf0] }
 0x1dc   :  { %4266 = vmatpush.bf16.msrb.mxu2 %v9680_v18  ;;  %v9776_v18 = vor.u32 %v13874_v26, %v9773_v0  ;;  %v9504_v54 = vor.u32 %v13806_v4, %v9501_v8  ;;  %v13766_v26 = vld [vmem:[#allocation2 + $0x12c] sm:$0xf]  ;;  %v9341_v0 = vld [vmem:[#allocation2 + $0x138] sm:$0xf0] }
 0x1dd   :  { %4280 = vmatpush.bf16.msrb.mxu3 %v9808_v11  ;;  %15902 = vst [vmem:[#allocation41_spill] sm:$0xff] %v15532_v51  ;;  %v9629_v11 = vld [vmem:[#allocation2 + $0x378] sm:$0xf0]  ;;  %v13798_v27 = vld [vmem:[#allocation2 + $0x22c] sm:$0xf]  ;;  %v9344_v4 = vor.u32 %v13766_v26, %v9341_v0 }
 0x1de   :  { %4239 = vmatpush.bf16.msrb.mxu0 %v9408_v45  ;;  %v9632_v15 = vor.u32 %v13838_v19, %v9629_v11  ;;  %v9357_v45 = vld [vmem:[#allocation2 + $0x158] sm:$0xf0]  ;;  %v13862_v34 = vld [vmem:[#allocation2 + $0x42c] sm:$0xf]  ;;  %v9472_v19 = vor.u32 %v13798_v27, %v9469_v58 }
 0x1df   :  { %4253 = vmatpush.bf16.msrb.mxu1 %v9536_v41  ;;  %v13802_v41 = vld [vmem:[#allocation2 + $0x24c] sm:$0xf]  ;;  %v9360_v7 = vor.u32 %v13770_v14, %v9357_v45  ;;  %v9725_v55 = vld [vmem:[#allocation2 + $0x438] sm:$0xf0] }
 0x1e0   :  { %4267 = vmatpush.bf16.msrb.mxu2 %v9664_v2  ;;  %v9760_v2 = vor.u32 %v13870_v52, %v9757_v5  ;;  %v9488_v62 = vor.u32 %v13802_v41, %v9485_v25  ;;  %v9325_v8 = vld [vmem:[#allocation2 + $0x118] sm:$0xf0]  ;;  %v13794_v52 = vld [vmem:[#allocation2 + $0x20c] sm:$0xf] }
 0x1e1   :  { %4281 = vmatpush.bf16.msrb.mxu3 %v9792_v48  ;;  %v13866_v48 = vld [vmem:[#allocation2 + $0x44c] sm:$0xf]  ;;  %v9453_v5 = vld [vmem:[#allocation2 + $0x218] sm:$0xf0] }
 0x1e2   :  { %4240 = vmatpush.bf16.msrb.mxu0 %v9392_v16  ;;  %v9744_v16 = vor.u32 %v13866_v48, %v9741_v53  ;;  %v13858_v14 = vld [vmem:[#allocation2 + $0x40c] sm:$0xf]  ;;  %v9709_v45 = vld [vmem:[#allocation2 + $0x418] sm:$0xf0] }
 0x1e3   :  { %4254 = vmatpush.bf16.msrb.mxu1 %v9520_v63  ;;  %v13830_v63 = vld [vmem:[#allocation2 + $0x32c] sm:$0xf]  ;;  %v10205_v53 = vld [vmem:[#allocation2 + $0x7f8] sm:$0xf0]  ;;  %v9712_v0 = vor.u32 %v13858_v14, %v9709_v45 }
 0x1e4   :  { %4268 = vmatpush.bf16.msrb.mxu2 %v9648_v59  ;;  %v9597_v59 = vld [vmem:[#allocation2 + $0x338] sm:$0xf0]  ;;  %v13918_v41 = vld [vmem:[#allocation2 + $0x5ec] sm:$0xf] }
 0x1e5   :  { %4282 = vmatpush.bf16.msrb.mxu3 %v9776_v18  ;;  %v13762_v18 = vld [vmem:[#allocation2 + $0x10c] sm:$0xf]  ;;  %v9600_v11 = vor.u32 %v13830_v63, %v9597_v59  ;;  %v10333_v26 = vld [vmem:[#allocation2 + $0x8f8] sm:$0xf0] }
 0x1e6   :  { %4241 = vmatpush.bf16.msrb.mxu0 %v9376_v13  ;;  %v13826_v13 = vld [vmem:[#allocation2 + $0x30c] sm:$0xf]  ;;  %v9328_v21 = vor.u32 %v13762_v18, %v9325_v8  ;;  %v9933_v59 = vld [vmem:[#allocation2 + $0x5d8] sm:$0xf0] }
 0x1e7   :  { %4255 = vmatpush.bf16.msrb.mxu1 %v9504_v54  ;;  %v9728_v54 = vor.u32 %v13862_v34, %v9725_v55  ;;  %v13950_v25 = vld [vmem:[#allocation2 + $0x6ec] sm:$0xf]  ;;  %v10189_v8 = vld [vmem:[#allocation2 + $0x7d8] sm:$0xf0] }
 0x1e8   :  { %4269 = vmatpush.bf16.msrb.mxu2 %v9632_v15  ;;  %v9581_v15 = vld [vmem:[#allocation2 + $0x318] sm:$0xf0]  ;;  %v13982_v48 = vld [vmem:[#allocation2 + $0x7ec] sm:$0xf] }
 0x1e9   :  { %4283 = vmatpush.bf16.msrb.mxu3 %v9760_v2  ;;  %v9949_v2 = vld [vmem:[#allocation2 + $0x5f8] sm:$0xf0]  ;;  %v10208_v58 = vor.u32 %v13982_v48, %v10205_v53  ;;  %v13914_v63 = vld [vmem:[#allocation2 + $0x5cc] sm:$0xf] }
 0x1ea   :  { %4242 = vmatpush.bf16.msrb.mxu0 %v9360_v7  ;;  %v9456_v7 = vor.u32 %v13794_v52, %v9453_v5  ;;  %v9952_v27 = vor.u32 %v13918_v41, %v9949_v2  ;;  %v13946_v34 = vld [vmem:[#allocation2 + $0x6cc] sm:$0xf]  ;;  %v9936_v52 = vor.u32 %v13914_v63, %v9933_v59  ;;  %v10045_v41 = vld [vmem:[#allocation2 + $0x6b8] sm:$0xf0] }
 0x1eb   :  { %4256 = vmatpush.bf16.msrb.mxu1 %v9488_v62  ;;  %v9584_v62 = vor.u32 %v13826_v13, %v9581_v15  ;;  %v13978_v18 = vld [vmem:[#allocation2 + $0x7cc] sm:$0xf]  ;;  %v9917_v15 = vld [vmem:[#allocation2 + $0x5b8] sm:$0xf0] }
 0x1ec   :  { %4270 = vmatpush.bf16.msrb.mxu2 %v9616_v60  ;;  %v14014_v60 = vld [vmem:[#allocation2 + $0x8ec] sm:$0xf]  ;;  %v10192_v13 = vor.u32 %v13978_v18, %v10189_v8  ;;  %v10013_v18 = vld [vmem:[#allocation2 + $0x678] sm:$0xf0] }
 0x1ed   :  { %4284 = vmatpush.bf16.msrb.mxu3 %v9744_v16  ;;  %v10080_v16 = vor.u32 %v13950_v25, %v10077_v29  ;;  %v10336_v55 = vor.u32 %v14014_v60, %v10333_v26  ;;  %v13942_v14 = vld [vmem:[#allocation2 + $0x6ac] sm:$0xf]  ;;  %v10173_v25 = vld [vmem:[#allocation2 + $0x7b8] sm:$0xf0] }
 0x1ee   :  { %4243 = vmatpush.bf16.msrb.mxu0 %v9344_v4  ;;  %v10061_v4 = vld [vmem:[#allocation2 + $0x6d8] sm:$0xf0]  ;;  %v13974_v2 = vld [vmem:[#allocation2 + $0x7ac] sm:$0xf]  ;;  %v10048_v53 = vor.u32 %v13942_v14, %v10045_v41 }
 0x1ef   :  { %4257 = vmatpush.bf16.msrb.mxu1 %v9472_v19  ;;  %v14010_v19 = vld [vmem:[#allocation2 + $0x8cc] sm:$0xf]  ;;  %v10064_v5 = vor.u32 %v13946_v34, %v10061_v4  ;;  %v10301_v29 = vld [vmem:[#allocation2 + $0x8b8] sm:$0xf0] }
 0x1f0   :  { %4271 = vmatpush.bf16.msrb.mxu2 %v9600_v11  ;;  %v10317_v11 = vld [vmem:[#allocation2 + $0x8d8] sm:$0xf0]  ;;  %v13938_v60 = vld [vmem:[#allocation2 + $0x68c] sm:$0xf] }
 0x1f1   :  { %4285 = vmatpush.bf16.msrb.mxu3 %v9728_v54  ;;  %v13910_v54 = vld [vmem:[#allocation2 + $0x5ac] sm:$0xf]  ;;  %v10320_v45 = vor.u32 %v14010_v19, %v10317_v11  ;;  %v9885_v34 = vld [vmem:[#allocation2 + $0x578] sm:$0xf0] }
 0x1f2   :  { %4244 = vmatpush.bf16.msrb.mxu0 %v9328_v21  ;;  %v14006_v21 = vld [vmem:[#allocation2 + $0x8ac] sm:$0xf]  ;;  %v9920_v48 = vor.u32 %v13910_v54, %v9917_v15  ;;  %v10141_v19 = vld [vmem:[#allocation2 + $0x778] sm:$0xf0] }
 0x1f3   :  { %4258 = vmatpush.bf16.msrb.mxu1 %v9456_v7  ;;  %v10176_v7 = vor.u32 %v13974_v2, %v10173_v25  ;;  %v10304_v26 = vor.u32 %v14006_v21, %v10301_v29  ;;  %v13902_v59 = vld [vmem:[#allocation2 + $0x56c] sm:$0xf]  ;;  %v9869_v14 = vld [vmem:[#allocation2 + $0x558] sm:$0xf0] }
 0x1f4   :  { %4272 = vmatpush.bf16.msrb.mxu2 %v9584_v62  ;;  %v13906_v62 = vld [vmem:[#allocation2 + $0x58c] sm:$0xf]  ;;  %v9997_v2 = vld [vmem:[#allocation2 + $0x658] sm:$0xf0] }
 0x1f5   :  { %4286 = vmatpush.bf16.msrb.mxu3 %v9712_v0  ;;  %4245 = vmatmul.bf16.vlgmr.msrb.gmra.mxu0 %v15275_v10  ;;  %v9901_v10 = vld [vmem:[#allocation2 + $0x598] sm:$0xf0]  ;;  %v13966_v8 = vld [vmem:[#allocation2 + $0x76c] sm:$0xf] }
 0x1f6   :  { %4293 = vmatpush.bf16.msra.mxu0 %v9952_v27  ;;  %4259 = vmatmul.bf16.vlgmr.msrb.gmra.mxu1 %v15262_v1  ;;  %v10029_v0 = vld [vmem:[#allocation2 + $0x698] sm:$0xf0]  ;;  %v13970_v27 = vld [vmem:[#allocation2 + $0x78c] sm:$0xf]  ;;  %v10144_v54 = vor.u32 %v13966_v8, %v10141_v19  ;;  %v15538_v19 = vpop.f32.mrf.mxu2 }
 0x1f7   :  { %4307 = vmatpush.bf16.msra.mxu1 %v10080_v16  ;;  %4273 = vmatmul.bf16.vlgmr.msrb.gmra.mxu2 %v15280_v17  ;;  %v10157_v17 = vld [vmem:[#allocation2 + $0x798] sm:$0xf0]  ;;  %v14002_v16 = vld [vmem:[#allocation2 + $0x88c] sm:$0xf]  ;;  %15903 = vst [vmem:[#allocation42_spill] sm:$0xff] %v15538_v19  ;;  %v15907_v19 = vperm.slane %v15400_v57, 0 }
 0x1f8   :  { %4321 = vmatpush.bf16.msra.mxu2 %v10208_v58  ;;  %4287 = vmatmul.bf16.vlgmr.msrb.gmra.mxu3 %v15308_v39  ;;  %v10285_v1 = vld [vmem:[#allocation2 + $0x898] sm:$0xf0]  ;;  %v9904_v58 = vor.u32 %v13906_v62, %v9901_v10  ;;  %v10032_v39 = vor.u32 %v13938_v60, %v10029_v0  ;;  %v10160_v63 = vor.u32 %v13970_v27, %v10157_v17  ;;  %v13998_v11 = vld [vmem:[#allocation2 + $0x86c] sm:$0xf] }
 0x1f9   :  { %4335 = vmatpush.bf16.msra.mxu3 %v10336_v55  ;;  %v13934_v55 = vld [vmem:[#allocation2 + $0x66c] sm:$0xf]  ;;  %v10288_v4 = vor.u32 %v14002_v16, %v10285_v1  ;;  %v10125_v21 = vld [vmem:[#allocation2 + $0x758] sm:$0xf0] }
 0x1fa   :  { %4294 = vmatpush.bf16.msra.mxu0 %v9936_v52  ;;  %v10269_v52 = vld [vmem:[#allocation2 + $0x878] sm:$0xf0]  ;;  %v13898_v15 = vld [vmem:[#allocation2 + $0x54c] sm:$0xf] }
 0x1fb   :  { %4308 = vmatpush.bf16.msra.mxu1 %v10064_v5  ;;  %v9888_v5 = vor.u32 %v13902_v59, %v9885_v34  ;;  %v10272_v41 = vor.u32 %v13998_v11, %v10269_v52  ;;  %v13962_v25 = vld [vmem:[#allocation2 + $0x74c] sm:$0xf]  ;;  %v9853_v60 = vld [vmem:[#allocation2 + $0x538] sm:$0xf0] }
 0x1fc   :  { %4322 = vmatpush.bf16.msra.mxu2 %v10192_v13  ;;  %v10016_v13 = vor.u32 %v13934_v55, %v10013_v18  ;;  %v13994_v29 = vld [vmem:[#allocation2 + $0x84c] sm:$0xf]  ;;  %v10128_v62 = vor.u32 %v13962_v25, %v10125_v21  ;;  %v9981_v27 = vld [vmem:[#allocation2 + $0x638] sm:$0xf0] }
 0x1fd   :  { %4336 = vmatpush.bf16.msra.mxu3 %v10320_v45  ;;  %v13930_v45 = vld [vmem:[#allocation2 + $0x64c] sm:$0xf]  ;;  %v10109_v16 = vld [vmem:[#allocation2 + $0x738] sm:$0xf0] }
 0x1fe   :  { %4295 = vmatpush.bf16.msra.mxu0 %v9920_v48  ;;  %v10253_v48 = vld [vmem:[#allocation2 + $0x858] sm:$0xf0]  ;;  %v13894_v10 = vld [vmem:[#allocation2 + $0x52c] sm:$0xf] }
 0x1ff   :  { %4309 = vmatpush.bf16.msra.mxu1 %v10048_v53  ;;  %v9872_v53 = vor.u32 %v13898_v15, %v9869_v14  ;;  %v10256_v0 = vor.u32 %v13994_v29, %v10253_v48  ;;  %v13958_v17 = vld [vmem:[#allocation2 + $0x72c] sm:$0xf]  ;;  %v9837_v59 = vld [vmem:[#allocation2 + $0x518] sm:$0xf0] }
 0x200   :  { %4323 = vmatpush.bf16.msra.mxu2 %v10176_v7  ;;  %v10000_v7 = vor.u32 %v13930_v45, %v9997_v2  ;;  %v13990_v1 = vld [vmem:[#allocation2 + $0x82c] sm:$0xf]  ;;  %v10112_v55 = vor.u32 %v13958_v17, %v10109_v16  ;;  %v9965_v18 = vld [vmem:[#allocation2 + $0x618] sm:$0xf0]  ;;  %v15540_v17 = vpop.f32.mrf.mxu3 }
 0x201   :  { %4337 = vmatpush.bf16.msra.mxu3 %v10304_v26  ;;  %v13926_v26 = vld [vmem:[#allocation2 + $0x62c] sm:$0xf]  ;;  %v10093_v52 = vld [vmem:[#allocation2 + $0x718] sm:$0xf0]  ;;  %15904 = vst [vmem:[#allocation43_spill] sm:$0xff] %v15540_v17 }
 0x202   :  { %4296 = vmatpush.bf16.msra.mxu0 %v9904_v58  ;;  %v10237_v58 = vld [vmem:[#allocation2 + $0x838] sm:$0xf0]  ;;  %v9984_v34 = vor.u32 %v13926_v26, %v9981_v27  ;;  %v13954_v8 = vld [vmem:[#allocation2 + $0x70c] sm:$0xf] }
 0x203   :  { %4310 = vmatpush.bf16.msra.mxu1 %v10032_v39  ;;  %v9856_v39 = vor.u32 %v13894_v10, %v9853_v60  ;;  %v10240_v11 = vor.u32 %v13990_v1, %v10237_v58  ;;  %v10461_v15 = vld [vmem:[#allocation2 + $0x9f8] sm:$0xf0]  ;;  %v14078_v14 = vld [vmem:[#allocation2 + $0xaec] sm:$0xf]  ;;  %v10096_v29 = vor.u32 %v13954_v8, %v10093_v52 }
 0x204   :  { %4324 = vmatpush.bf16.msra.mxu2 %v10160_v63  ;;  %v13890_v63 = vld [vmem:[#allocation2 + $0x50c] sm:$0xf]  ;;  %v10717_v25 = vld [vmem:[#allocation2 + $0xbf8] sm:$0xf0] }
 0x205   :  { %4338 = vmatpush.bf16.msra.mxu3 %v10288_v4  ;;  %v13922_v4 = vld [vmem:[#allocation2 + $0x60c] sm:$0xf]  ;;  %v9840_v45 = vor.u32 %v13890_v63, %v9837_v59  ;;  %v10573_v1 = vld [vmem:[#allocation2 + $0xad8] sm:$0xf0] }
 0x206   :  { %4297 = vmatpush.bf16.msra.mxu0 %v9888_v5  ;;  %v13986_v5 = vld [vmem:[#allocation2 + $0x80c] sm:$0xf]  ;;  %v9968_v21 = vor.u32 %v13922_v4, %v9965_v18  ;;  %v10829_v59 = vld [vmem:[#allocation2 + $0xcd8] sm:$0xf0] }
 0x207   :  { %4311 = vmatpush.bf16.msra.mxu1 %v10016_v13  ;;  %v10221_v13 = vld [vmem:[#allocation2 + $0x818] sm:$0xf0]  ;;  %v14110_v2 = vld [vmem:[#allocation2 + $0xbec] sm:$0xf] }
 0x208   :  { %4325 = vmatpush.bf16.msra.mxu2 %v10144_v54  ;;  %v14046_v54 = vld [vmem:[#allocation2 + $0x9ec] sm:$0xf]  ;;  %v10720_v60 = vor.u32 %v14110_v2, %v10717_v25  ;;  %v15548_v2 = vpop.f32.mrf.mxu0 }
 0x209   :  { %4339 = vmatpush.bf16.msra.mxu3 %v10272_v41  ;;  %v10589_v41 = vld [vmem:[#allocation2 + $0xaf8] sm:$0xf0]  ;;  %v14142_v48 = vld [vmem:[#allocation2 + $0xcec] sm:$0xf]  ;;  %15905 = vst [vmem:[#allocation44_spill] sm:$0xff] %v15548_v2 }
 0x20a   :  { %4298 = vmatpush.bf16.msra.mxu0 %v9872_v53  ;;  %v10845_v53 = vld [vmem:[#allocation2 + $0xcf8] sm:$0xf0]  ;;  %v10592_v10 = vor.u32 %v14078_v14, %v10589_v41  ;;  %v14042_v26 = vld [vmem:[#allocation2 + $0x9cc] sm:$0xf] }
 0x20b   :  { %4312 = vmatpush.bf16.msra.mxu1 %v10000_v7  ;;  %v10224_v7 = vor.u32 %v13986_v5, %v10221_v13  ;;  %v14074_v27 = vld [vmem:[#allocation2 + $0xacc] sm:$0xf]  ;;  %v10848_v16 = vor.u32 %v14142_v48, %v10845_v53  ;;  %v10557_v13 = vld [vmem:[#allocation2 + $0xab8] sm:$0xf0]  ;;  %v15550_v53 = vpop.f32.mrf.mxu1 }
 0x20c   :  { %4326 = vmatpush.bf16.msra.mxu2 %v10128_v62  ;;  %v10464_v62 = vor.u32 %v14046_v54, %v10461_v15  ;;  %v14106_v58 = vld [vmem:[#allocation2 + $0xbcc] sm:$0xf]  ;;  %v10576_v4 = vor.u32 %v14074_v27, %v10573_v1  ;;  %v10685_v15 = vld [vmem:[#allocation2 + $0xbb8] sm:$0xf0]  ;;  %15906 = vst [vmem:[#allocation45_spill] sm:$0xff] %v15550_v53 }
 0x20d   :  { %4340 = vmatpush.bf16.msra.mxu3 %v10256_v0  ;;  %v10445_v0 = vld [vmem:[#allocation2 + $0x9d8] sm:$0xf0]  ;;  %v14138_v63 = vld [vmem:[#allocation2 + $0xccc] sm:$0xf] }
 0x20e   :  { %4299 = vmatpush.bf16.msra.mxu0 %v9856_v39  ;;  %v10701_v39 = vld [vmem:[#allocation2 + $0xbd8] sm:$0xf0]  ;;  %v14038_v8 = vld [vmem:[#allocation2 + $0x9ac] sm:$0xf]  ;;  %v10832_v5 = vor.u32 %v14138_v63, %v10829_v59 }
 0x20f   :  { %4313 = vmatpush.bf16.msra.mxu1 %v9984_v34  ;;  %v15542_v34 = vpop.f32.mrf.mxu2  ;;  %v10704_v18 = vor.u32 %v14106_v58, %v10701_v39  ;;  %v14070_v52 = vld [vmem:[#allocation2 + $0xaac] sm:$0xf]  ;;  %v10397_v1 = vld [vmem:[#allocation2 + $0x978] sm:$0xf0] }
 0x210   :  { %4327 = vmatpush.bf16.msra.mxu2 %v10112_v55  ;;  %v10448_v55 = vor.u32 %v14042_v26, %v10445_v0  ;;  %v14102_v54 = vld [vmem:[#allocation2 + $0xbac] sm:$0xf]  ;;  %v10560_v25 = vor.u32 %v14070_v52, %v10557_v13  ;;  %v10525_v59 = vld [vmem:[#allocation2 + $0xa78] sm:$0xf0]  ;;  %v15556_v52 = vpop.f32.mrf.mxu0 }
 0x211   :  { %4341 = vmatpush.bf16.msra.mxu3 %v10240_v11  ;;  %v10429_v11 = vld [vmem:[#allocation2 + $0x9b8] sm:$0xf0]  ;;  %v14134_v14 = vld [vmem:[#allocation2 + $0xcac] sm:$0xf] }
 0x212   :  { %4300 = vmatpush.bf16.msra.mxu0 %v9840_v45  ;;  %v10813_v45 = vld [vmem:[#allocation2 + $0xcb8] sm:$0xf0]  ;;  %v10432_v41 = vor.u32 %v14038_v8, %v10429_v11  ;;  %v14066_v48 = vld [vmem:[#allocation2 + $0xa8c] sm:$0xf] }
 0x213   :  { %4314 = vmatpush.bf16.msra.mxu1 %v9968_v21  ;;  %v14034_v21 = vld [vmem:[#allocation2 + $0x98c] sm:$0xf]  ;;  %v10781_v8 = vld [vmem:[#allocation2 + $0xc78] sm:$0xf0] }
 0x214   :  { %4328 = vmatpush.bf16.msra.mxu2 %v10096_v29  ;;  %v10413_v29 = vld [vmem:[#allocation2 + $0x998] sm:$0xf0]  ;;  %v14062_v58 = vld [vmem:[#allocation2 + $0xa6c] sm:$0xf] }
 0x215   :  { %4342 = vmatpush.bf16.msra.mxu3 %v10224_v7  ;;  %4301 = vmatmul.bf16.vlgmr.msra.gmra.mxu0 %v15312_v44  ;;  %v10688_v44 = vor.u32 %v14102_v54, %v10685_v15  ;;  %v10541_v7 = vld [vmem:[#allocation2 + $0xa98] sm:$0xf0]  ;;  %v10416_v26 = vor.u32 %v14034_v21, %v10413_v29  ;;  %v14026_v54 = vld [vmem:[#allocation2 + $0x94c] sm:$0xf] }
 0x216   :  { %4349 = vmatpush.bf16.msrb.mxu0 %v10464_v62  ;;  %4315 = vmatmul.bf16.vlgmr.msra.gmra.mxu1 %v15310_v43  ;;  %v10816_v43 = vor.u32 %v14134_v14, %v10813_v45  ;;  %v14098_v62 = vld [vmem:[#allocation2 + $0xb8c] sm:$0xf]  ;;  %v10544_v0 = vor.u32 %v14066_v48, %v10541_v7  ;;  %v10381_v15 = vld [vmem:[#allocation2 + $0x958] sm:$0xf0]  ;;  %v15558_v45 = vpop.f32.mrf.mxu1 }
 0x217   :  { %4363 = vmatpush.bf16.msrb.mxu1 %v10592_v10  ;;  %4329 = vmatmul.bf16.vlgmr.msra.gmra.mxu2 %v15314_v47  ;;  %v15552_v47 = vpop.f32.mrf.mxu3  ;;  %v14130_v10 = vld [vmem:[#allocation2 + $0xc8c] sm:$0xf]  ;;  %v15554_v39 = vpop.f32.mrf.mxu2  ;;  %v10637_v21 = vld [vmem:[#allocation2 + $0xb58] sm:$0xf0]  ;;  %v10384_v7 = vor.u32 %v14026_v54, %v10381_v15 }
 0x218   :  { %4377 = vmatpush.bf16.msrb.mxu2 %v10720_v60  ;;  %4343 = vmatmul.bf16.vlgmr.msra.gmra.mxu3 %v15344_v31  ;;  %v10669_v31 = vld [vmem:[#allocation2 + $0xb98] sm:$0xf0]  ;;  %v14058_v14 = vld [vmem:[#allocation2 + $0xa4c] sm:$0xf] }
 0x219   :  { %4391 = vmatpush.bf16.msrb.mxu3 %v10848_v16  ;;  %v10797_v60 = vld [vmem:[#allocation2 + $0xc98] sm:$0xf0]  ;;  %v10672_v27 = vor.u32 %v14098_v62, %v10669_v31  ;;  %v14030_v16 = vld [vmem:[#allocation2 + $0x96c] sm:$0xf] }
 0x21a   :  { %4350 = vmatpush.bf16.msrb.mxu0 %v10448_v55  ;;  %v10800_v63 = vor.u32 %v14130_v10, %v10797_v60  ;;  %v14094_v55 = vld [vmem:[#allocation2 + $0xb6c] sm:$0xf]  ;;  %v10400_v11 = vor.u32 %v14030_v16, %v10397_v1  ;;  %v10765_v48 = vld [vmem:[#allocation2 + $0xc58] sm:$0xf0] }
 0x21b   :  { %4364 = vmatpush.bf16.msrb.mxu1 %v10576_v4  ;;  %v10653_v4 = vld [vmem:[#allocation2 + $0xb78] sm:$0xf0]  ;;  %v14122_v29 = vld [vmem:[#allocation2 + $0xc4c] sm:$0xf] }
 0x21c   :  { %4378 = vmatpush.bf16.msrb.mxu2 %v10704_v18  ;;  %v14126_v18 = vld [vmem:[#allocation2 + $0xc6c] sm:$0xf]  ;;  %v10656_v13 = vor.u32 %v14094_v55, %v10653_v4  ;;  %v10365_v60 = vld [vmem:[#allocation2 + $0x938] sm:$0xf0] }
 0x21d   :  { %4392 = vmatpush.bf16.msrb.mxu3 %v10832_v5  ;;  %v10528_v5 = vor.u32 %v14062_v58, %v10525_v59  ;;  %v14022_v10 = vld [vmem:[#allocation2 + $0x92c] sm:$0xf]  ;;  %v10621_v1 = vld [vmem:[#allocation2 + $0xb38] sm:$0xf0] }
 0x21e   :  { %4351 = vmatpush.bf16.msrb.mxu0 %v10432_v41  ;;  %v10784_v41 = vor.u32 %v14126_v18, %v10781_v8  ;;  %v14086_v16 = vld [vmem:[#allocation2 + $0xb2c] sm:$0xf]  ;;  %v10368_v55 = vor.u32 %v14022_v10, %v10365_v60  ;;  %v10349_v18 = vld [vmem:[#allocation2 + $0x918] sm:$0xf0] }
 0x21f   :  { %4365 = vmatpush.bf16.msrb.mxu1 %v10560_v25  ;;  %v10509_v25 = vld [vmem:[#allocation2 + $0xa58] sm:$0xf0]  ;;  %v14118_v58 = vld [vmem:[#allocation2 + $0xc2c] sm:$0xf]  ;;  %v15562_v59 = vpop.f32.mrf.mxu2 }
 0x220   :  { %4379 = vmatpush.bf16.msrb.mxu2 %v10688_v44  ;;  %v14090_v44 = vld [vmem:[#allocation2 + $0xb4c] sm:$0xf]  ;;  %v10512_v62 = vor.u32 %v14058_v14, %v10509_v25  ;;  %v10605_v14 = vld [vmem:[#allocation2 + $0xb18] sm:$0xf0] }
 0x221   :  { %4393 = vmatpush.bf16.msrb.mxu3 %v10816_v43  ;;  %v15560_v43 = vpop.f32.mrf.mxu3  ;;  %v10640_v31 = vor.u32 %v14090_v44, %v10637_v21  ;;  %v14018_v4 = vld [vmem:[#allocation2 + $0x90c] sm:$0xf]  ;;  %v10733_v25 = vld [vmem:[#allocation2 + $0xc18] sm:$0xf0]  ;;  %v15564_v44 = vpop.f32.mrf.mxu0 }
 0x222   :  { %4352 = vmatpush.bf16.msrb.mxu0 %v10416_v26  ;;  %v14054_v26 = vld [vmem:[#allocation2 + $0xa2c] sm:$0xf]  ;;  %v11229_v60 = vld [vmem:[#allocation2 + $0xff8] sm:$0xf0] }
 0x223   :  { %4366 = vmatpush.bf16.msrb.mxu1 %v10544_v0  ;;  %v10768_v0 = vor.u32 %v14122_v29, %v10765_v48  ;;  %v14082_v54 = vld [vmem:[#allocation2 + $0xb0c] sm:$0xf]  ;;  %v10973_v29 = vld [vmem:[#allocation2 + $0xdf8] sm:$0xf0] }
 0x224   :  { %4380 = vmatpush.bf16.msrb.mxu2 %v10672_v27  ;;  %v10493_v27 = vld [vmem:[#allocation2 + $0xa38] sm:$0xf0]  ;;  %v14174_v21 = vld [vmem:[#allocation2 + $0xdec] sm:$0xf] }
 0x225   :  { %4394 = vmatpush.bf16.msrb.mxu3 %v10800_v63  ;;  %v10749_v63 = vld [vmem:[#allocation2 + $0xc38] sm:$0xf0]  ;;  %v10496_v8 = vor.u32 %v14054_v26, %v10493_v27  ;;  %v14206_v48 = vld [vmem:[#allocation2 + $0xeec] sm:$0xf]  ;;  %v10976_v53 = vor.u32 %v14174_v21, %v10973_v29 }
 0x226   :  { %4353 = vmatpush.bf16.msrb.mxu0 %v10400_v11  ;;  %v10624_v11 = vor.u32 %v14086_v16, %v10621_v1  ;;  %v10752_v15 = vor.u32 %v14118_v58, %v10749_v63  ;;  %v14238_v10 = vld [vmem:[#allocation2 + $0xfec] sm:$0xf]  ;;  %v11357_v16 = vld [vmem:[#allocation2 + $0x10f8] sm:$0xf0]  ;;  %v14885_v1 = vld [vmem:[#allocation4] sm:$0xf] }
 0x227   :  { %4367 = vmatpush.bf16.msrb.mxu1 %v10528_v5  ;;  %v14050_v5 = vld [vmem:[#allocation2 + $0xa0c] sm:$0xf]  ;;  %v783_v58 = vperm.slane %v14885_v1, 2  ;;  %v11232_v17 = vor.u32 %v14238_v10, %v11229_v60  ;;  %v15577_v29 = vpop.f32.mrf.mxu2 }
 0x228   :  { %4381 = vmatpush.bf16.msrb.mxu2 %v10656_v13  ;;  %v10477_v13 = vld [vmem:[#allocation2 + $0xa18] sm:$0xf0]  ;;  %v14270_v27 = vld [vmem:[#allocation2 + $0x10ec] sm:$0xf] }
 0x229   :  { %4395 = vmatpush.bf16.msrb.mxu3 %v10784_v41  ;;  %v14114_v41 = vld [vmem:[#allocation2 + $0xc0c] sm:$0xf]  ;;  %v10480_v26 = vor.u32 %v14050_v5, %v10477_v13  ;;  %v15568_v63 = vpop.f32.mrf.mxu3  ;;  %v11085_v5 = vld [vmem:[#allocation2 + $0xed8] sm:$0xf0]  ;;  %v3995_v21 = vadd.f32 %v15542_v34, %v783_v58 }
 0x22a   :  { %4354 = vmatpush.bf16.msrb.mxu0 %v10384_v7  ;;  %v15566_v7 = vpop.f32.mrf.mxu1  ;;  %v10736_v51 = vor.u32 %v14114_v41, %v10733_v25  ;;  %v14234_v13 = vld [vmem:[#allocation2 + $0xfcc] sm:$0xf]  ;;  %v15908_v41 = vperm.slane %v15466_v50, 1 }
 0x22b   :  { %4368 = vmatpush.bf16.msrb.mxu1 %v10512_v62  ;;  %v10352_v62 = vor.u32 %v14018_v4, %v10349_v18  ;;  %v10957_v4 = vld [vmem:[#allocation2 + $0xdd8] sm:$0xf0]  ;;  %v14202_v18 = vld [vmem:[#allocation2 + $0xecc] sm:$0xf] }
 0x22c   :  { %4382 = vmatpush.bf16.msrb.mxu2 %v10640_v31  ;;  %v11101_v31 = vld [vmem:[#allocation2 + $0xef8] sm:$0xf0]  ;;  %v3759_v25 = vadd.f32 %v15480_v20, %v15908_v41  ;;  %v14198_v10 = vld [vmem:[#allocation2 + $0xeac] sm:$0xf] }
 0x22d   :  { %4396 = vmatpush.bf16.msrb.mxu3 %v10768_v0  ;;  %v10608_v0 = vor.u32 %v14082_v54, %v10605_v14  ;;  %v11104_v2 = vor.u32 %v14206_v48, %v11101_v31  ;;  %v11213_v54 = vld [vmem:[#allocation2 + $0xfd8] sm:$0xf0]  ;;  %v14266_v14 = vld [vmem:[#allocation2 + $0x10cc] sm:$0xf] }
 0x22e   :  { %4355 = vmatpush.bf16.msrb.mxu0 %v10368_v55  ;;  %v14170_v55 = vld [vmem:[#allocation2 + $0xdcc] sm:$0xf]  ;;  %v11216_v48 = vor.u32 %v14234_v13, %v11213_v54  ;;  %v10941_v31 = vld [vmem:[#allocation2 + $0xdb8] sm:$0xf0] }
 0x22f   :  { %4369 = vmatpush.bf16.msrb.mxu1 %v10496_v8  ;;  %v3521_v8 = vadd.f32 %v15411_v56, %v15907_v19  ;;  %v10960_v57 = vor.u32 %v14170_v55, %v10957_v4  ;;  %v15579_v56 = vpop.f32.mrf.mxu0  ;;  %v11088_v19 = vor.u32 %v14202_v18, %v11085_v5  ;;  %v14230_v34 = vld [vmem:[#allocation2 + $0xfac] sm:$0xf]  ;;  %v15597_v13 = vpop.f32.mrf.mxu2  ;;  %v10909_v41 = vld [vmem:[#allocation2 + $0xd78] sm:$0xf0] }
 0x230   :  { %4383 = vmatpush.bf16.msrb.mxu2 %v10624_v11  ;;  %v11360_v11 = vor.u32 %v14270_v27, %v11357_v16  ;;  %v14162_v1 = vld [vmem:[#allocation2 + $0xd8c] sm:$0xf] }
 0x231   :  { %4397 = vmatpush.bf16.msrb.mxu3 %v10752_v15  ;;  %v11341_v15 = vld [vmem:[#allocation2 + $0x10d8] sm:$0xf0]  ;;  %v3535_v50 = vadd.f32 %v15413_v6, %v3521_v8  ;;  %v4009_v6 = vadd.f32 %v15552_v47, %v3995_v21  ;;  %v14226_v4 = vld [vmem:[#allocation2 + $0xf8c] sm:$0xf] }
 0x232   :  { %4356 = vmatpush.bf16.msrb.mxu0 %v10352_v62  ;;  %v14166_v62 = vld [vmem:[#allocation2 + $0xdac] sm:$0xf]  ;;  %v15582_v60 = vpop.f32.mrf.mxu1  ;;  %v11344_v20 = vor.u32 %v14266_v14, %v11341_v15  ;;  %v11181_v47 = vld [vmem:[#allocation2 + $0xf98] sm:$0xf0] }
 0x233   :  { %4370 = vmatpush.bf16.msrb.mxu1 %v10480_v26  ;;  %v3997_v26 = vadd.f32 %v15554_v39, %v783_v58  ;;  %v10925_v39 = vld [vmem:[#allocation2 + $0xd98] sm:$0xf0]  ;;  %v14194_v58 = vld [vmem:[#allocation2 + $0xe8c] sm:$0xf]  ;;  %v4023_v5 = vadd.f32 %v15556_v52, %v4009_v6  ;;  %v11184_v14 = vor.u32 %v14226_v4, %v11181_v47 }
 0x234   :  { %4384 = vmatpush.bf16.msrb.mxu2 %v10608_v0  ;;  %v3773_v0 = vadd.f32 %v15486_v22, %v3759_v25  ;;  %v11053_v22 = vld [vmem:[#allocation2 + $0xe98] sm:$0xf0]  ;;  %v14258_v18 = vld [vmem:[#allocation2 + $0x108c] sm:$0xf]  ;;  %v10928_v54 = vor.u32 %v14162_v1, %v10925_v39 }
 0x235   :  { %4398 = vmatpush.bf16.msrb.mxu3 %v10736_v51  ;;  %4357 = vmatmul.bf16.vlgmr.msrb.gmra.mxu0 %v15348_v36  ;;  %v11069_v51 = vld [vmem:[#allocation2 + $0xeb8] sm:$0xf0]  ;;  %v10944_v36 = vor.u32 %v14166_v62, %v10941_v31  ;;  %v14158_v15 = vld [vmem:[#allocation2 + $0xd6c] sm:$0xf] }
 0x236   :  { %4405 = vmatpush.bf16.msra.mxu0 %v10976_v53  ;;  %v11197_v53 = vld [vmem:[#allocation2 + $0xfb8] sm:$0xf0]  ;;  %4371 = vmatmul.bf16.vlgmr.msrb.gmra.mxu1 %v15346_v35  ;;  %v11072_v27 = vor.u32 %v14198_v10, %v11069_v51  ;;  %v15592_v35 = vpop.f32.mrf.mxu3  ;;  %v14190_v25 = vld [vmem:[#allocation2 + $0xe6c] sm:$0xf]  ;;  %v10912_v51 = vor.u32 %v14158_v15, %v10909_v41 }
 0x237   :  { %4419 = vmatpush.bf16.msra.mxu1 %v11104_v2  ;;  %4385 = vmatmul.bf16.vlgmr.msrb.gmra.mxu2 %v15350_v40  ;;  %v11325_v2 = vld [vmem:[#allocation2 + $0x10b8] sm:$0xf0]  ;;  %v11200_v16 = vor.u32 %v14230_v34, %v11197_v53  ;;  %v3549_v40 = vadd.f32 %v15419_v23, %v3535_v50  ;;  %v11056_v23 = vor.u32 %v14194_v58, %v11053_v22  ;;  %v14254_v62 = vld [vmem:[#allocation2 + $0x106c] sm:$0xf] }
 0x238   :  { %4433 = vmatpush.bf16.msra.mxu2 %v11232_v17  ;;  %v14262_v17 = vld [vmem:[#allocation2 + $0x10ac] sm:$0xf]  ;;  %4399 = vmatmul.bf16.vlgmr.msrb.gmra.mxu3 %v15380_v32  ;;  %v4011_v32 = vadd.f32 %v15560_v43, %v3997_v26  ;;  %v11309_v8 = vld [vmem:[#allocation2 + $0x1098] sm:$0xf0]  ;;  %v4037_v50 = vadd.f32 %v15558_v45, %v4023_v5 }
 0x239   :  { %4447 = vmatpush.bf16.msra.mxu3 %v11360_v11  ;;  %v11328_v55 = vor.u32 %v14262_v17, %v11325_v2  ;;  %v3787_v11 = vadd.f32 %v15488_v3, %v3773_v0  ;;  %v3563_v21 = vadd.f32 %v15421_v30, %v3549_v40  ;;  %v11312_v43 = vor.u32 %v14258_v18, %v11309_v8  ;;  %v11165_v3 = vld [vmem:[#allocation2 + $0xf78] sm:$0xf0]  ;;  %v14154_v53 = vld [vmem:[#allocation2 + $0xd4c] sm:$0xf]  ;;  %v15616_v18 = vpop.f32.mrf.mxu2 }
 0x23a   :  { %4406 = vmatpush.bf16.msra.mxu0 %v10960_v57  ;;  %v11037_v57 = vld [vmem:[#allocation2 + $0xe78] sm:$0xf0]  ;;  %v4025_v52 = vadd.f32 %v15564_v44, %v4011_v32  ;;  %v14186_v17 = vld [vmem:[#allocation2 + $0xe4c] sm:$0xf]  ;;  %v4051_v39 = vadd.f32 %v15562_v59, %v4037_v50 }
 0x23b   :  { %4420 = vmatpush.bf16.msra.mxu1 %v11088_v19  ;;  %v14222_v19 = vld [vmem:[#allocation2 + $0xf6c] sm:$0xf]  ;;  %v11293_v31 = vld [vmem:[#allocation2 + $0x1078] sm:$0xf0]  ;;  %v3801_v10 = vadd.f32 %v15493_v33, %v3787_v11  ;;  %v11040_v30 = vor.u32 %v14190_v25, %v11037_v57  ;;  %v3577_v44 = vadd.f32 %v15426_v42, %v3563_v21 }
 0x23c   :  { %4434 = vmatpush.bf16.msra.mxu2 %v11216_v48  ;;  %v15601_v48 = vpop.f32.mrf.mxu0  ;;  %v11168_v34 = vor.u32 %v14222_v19, %v11165_v3  ;;  %v10893_v26 = vld [vmem:[#allocation2 + $0xd58] sm:$0xf0]  ;;  %v11296_v0 = vor.u32 %v14254_v62, %v11293_v31  ;;  %v14218_v6 = vld [vmem:[#allocation2 + $0xf4c] sm:$0xf]  ;;  %v4065_v15 = vadd.f32 %v15568_v63, %v4051_v39 }
 0x23d   :  { %4448 = vmatpush.bf16.msra.mxu3 %v11344_v20  ;;  %v15605_v20 = vpop.f32.mrf.mxu1  ;;  %v11021_v33 = vld [vmem:[#allocation2 + $0xe58] sm:$0xf0]  ;;  %v3815_v1 = vadd.f32 %v15495_v12, %v3801_v10  ;;  %v10896_v58 = vor.u32 %v14154_v53, %v10893_v26  ;;  %v14150_v22 = vld [vmem:[#allocation2 + $0xd2c] sm:$0xf]  ;;  %v3591_v32 = vadd.f32 %v15428_v49, %v3577_v44  ;;  %v11587_v53 = vld [vmem:[#allocation6 + $0x1c0] sm:$0xf] }
 0x23e   :  { %4407 = vmatpush.bf16.msra.mxu0 %v10944_v36  ;;  %v15608_v2 = vpop.f32.mrf.mxu3  ;;  %v11149_v45 = vld [vmem:[#allocation2 + $0xf58] sm:$0xf0]  ;;  %v4039_v36 = vadd.f32 %v15566_v7, %v4025_v52  ;;  %v11024_v42 = vor.u32 %v14186_v17, %v11021_v33  ;;  %v14182_v47 = vld [vmem:[#allocation2 + $0xe2c] sm:$0xf]  ;;  %v4079_v10 = vadd.f32 %v15579_v56, %v4065_v15  ;;  %v11843_v26 = vld [vmem:[#allocation6 + $0x3c0] sm:$0xf] }
 0x23f   :  { %4421 = vmatpush.bf16.msra.mxu1 %v11072_v27  ;;  %v14250_v27 = vld [vmem:[#allocation2 + $0x104c] sm:$0xf]  ;;  %v10877_v4 = vld [vmem:[#allocation2 + $0xd38] sm:$0xf0]  ;;  %v3829_v7 = vadd.f32 %v15501_v28, %v3815_v1  ;;  %v15911_v17 = vld [vmem:[#allocation26_spill] sm:$0xff] }
 0x240   :  { %4435 = vmatpush.bf16.msra.mxu2 %v11200_v16  ;;  %v11277_v16 = vld [vmem:[#allocation2 + $0x1058] sm:$0xf0]  ;;  %v4053_v40 = vadd.f32 %v15577_v29, %v4039_v36  ;;  %v14214_v8 = vld [vmem:[#allocation2 + $0xf2c] sm:$0xf]  ;;  %v10880_v49 = vor.u32 %v14150_v22, %v10877_v4  ;;  %v12099_v36 = vld [vmem:[#allocation6 + $0x5c0] sm:$0xf] }
 0x241   :  { %4449 = vmatpush.bf16.msra.mxu3 %v11328_v55  ;;  %v11152_v55 = vor.u32 %v14218_v6, %v11149_v45  ;;  %v11280_v12 = vor.u32 %v14250_v27, %v11277_v16  ;;  %v11005_v59 = vld [vmem:[#allocation2 + $0xe38] sm:$0xf0]  ;;  %v14246_v29 = vld [vmem:[#allocation2 + $0x102c] sm:$0xf]  ;;  %v14397_v45 = vld [vmem:[#allocation6 + $0x3dc] sm:$0xf0] }
 0x242   :  { %4408 = vmatpush.bf16.msra.mxu0 %v10928_v54  ;;  %v11133_v11 = vld [vmem:[#allocation2 + $0xf38] sm:$0xf0]  ;;  %v14146_v28 = vld [vmem:[#allocation2 + $0xd0c] sm:$0xf]  ;;  %v4067_v21 = vadd.f32 %v15592_v35, %v4053_v40  ;;  %v14333_v35 = vld [vmem:[#allocation6 + $0x1dc] sm:$0xf0] }
 0x243   :  { %4422 = vmatpush.bf16.msra.mxu1 %v11056_v23  ;;  %v11261_v54 = vld [vmem:[#allocation2 + $0x1038] sm:$0xf0]  ;;  %v11136_v57 = vor.u32 %v14214_v8, %v11133_v11  ;;  %v14178_v19 = vld [vmem:[#allocation2 + $0xe0c] sm:$0xf]  ;;  %v14461_v56 = vld [vmem:[#allocation6 + $0x5dc] sm:$0xf0] }
 0x244   :  { %4436 = vmatpush.bf16.msra.mxu2 %v11184_v14  ;;  %v15618_v5 = vpop.f32.mrf.mxu0  ;;  %v15909_v23 = vld [vmem:[#allocation25_spill] sm:$0xff]  ;;  %v14210_v52 = vld [vmem:[#allocation2 + $0xf0c] sm:$0xf]  ;;  %v11264_v63 = vor.u32 %v14246_v29, %v11261_v54  ;;  %v12100_v22 = vor.u32 %v14461_v56, %v12099_v36  ;;  %v11555_v4 = vld [vmem:[#allocation6 + $0x180] sm:$0xf] }
 0x245   :  { %4450 = vmatpush.bf16.msra.mxu3 %v11312_v43  ;;  %v3605_v14 = vadd.f32 %v15909_v23, %v3591_v32  ;;  %v15622_v41 = vpop.f32.mrf.mxu1  ;;  %v10861_v25 = vld [vmem:[#allocation2 + $0xd18] sm:$0xf0]  ;;  %v11008_v43 = vor.u32 %v14182_v47, %v11005_v59  ;;  %v15912_v1 = vld [vmem:[#allocation27_spill] sm:$0xff]  ;;  %v14325_v47 = vld [vmem:[#allocation6 + $0x19c] sm:$0xf0] }
 0x246   :  { %4409 = vmatpush.bf16.msra.mxu0 %v10912_v51  ;;  %v10989_v3 = vld [vmem:[#allocation2 + $0xe18] sm:$0xf0]  ;;  %v14242_v51 = vld [vmem:[#allocation2 + $0x100c] sm:$0xf]  ;;  %v4122_v33 = vpop.f32.mrf.mxu3  ;;  %v10864_v6 = vor.u32 %v14146_v28, %v10861_v25  ;;  %v11811_v32 = vld [vmem:[#allocation6 + $0x380] sm:$0xf]  ;;  %v11556_v28 = vor.u32 %v14325_v47, %v11555_v4 }
 0x247   :  { %4423 = vmatpush.bf16.msra.mxu1 %v11040_v30  ;;  %v15910_v62 = vld [vmem:[#allocation37_spill] sm:$0xff]  ;;  %v3619_v44 = vadd.f32 %v15911_v17, %v3605_v14  ;;  %v10992_v27 = vor.u32 %v14178_v19, %v10989_v3  ;;  %v14389_v8 = vld [vmem:[#allocation6 + $0x39c] sm:$0xf0]  ;;  %v15914_v23 = vld [vmem:[#allocation28_spill] sm:$0xff] }
 0x248   :  { %4437 = vmatpush.bf16.msra.mxu2 %v11168_v34  ;;  %v3843_v31 = vadd.f32 %v15910_v62, %v3829_v7  ;;  %v11117_v50 = vld [vmem:[#allocation2 + $0xf18] sm:$0xf0]  ;;  %v4081_v34 = vadd.f32 %v15601_v48, %v4067_v21  ;;  %v4093_v48 = vadd.f32 %v15582_v60, %v4079_v10  ;;  %v15913_v7 = vld [vmem:[#allocation38_spill] sm:$0xff]  ;;  %v15915_v14 = vld [vmem:[#allocation39_spill] sm:$0xff] }
 0x249   :  { %4451 = vmatpush.bf16.msra.mxu3 %v11296_v0  ;;  %v11245_v30 = vld [vmem:[#allocation2 + $0x1018] sm:$0xf0]  ;;  %v11120_v16 = vor.u32 %v14210_v52, %v11117_v50  ;;  %v3633_v39 = vadd.f32 %v15912_v1, %v3619_v44  ;;  %v12067_v11 = vld [vmem:[#allocation6 + $0x580] sm:$0xf]  ;;  %v15917_v62 = vld [vmem:[#allocation24_spill] sm:$0xff] }
 0x24a   :  { %4410 = vmatpush.bf16.msra.mxu0 %v10896_v58  ;;  %v3857_v0 = vadd.f32 %v15508_v9, %v3843_v31  ;;  %v15632_v58 = vpop.f32.mrf.mxu2  ;;  %v11248_v40 = vor.u32 %v14242_v51, %v11245_v30  ;;  %v4095_v9 = vadd.f32 %v15605_v20, %v4081_v34  ;;  %v4107_v59 = vadd.f32 %v15597_v13, %v4093_v48  ;;  %v14453_v60 = vld [vmem:[#allocation6 + $0x59c] sm:$0xf0]  ;;  %v15916_v19 = vld [vmem:[#allocation29_spill] sm:$0xff]  ;;  %v15918_v51 = vld [vmem:[#allocation40_spill] sm:$0xff] }
 0x24b   :  { %4424 = vmatpush.bf16.msra.mxu1 %v11024_v42  ;;  %v11588_v42 = vor.u32 %v14333_v35, %v11587_v53  ;;  %v3647_v20 = vadd.f32 %v15914_v23, %v3633_v39  ;;  %v11812_v13 = vor.u32 %v14389_v8, %v11811_v32  ;;  %v12068_v25 = vor.u32 %v14453_v60, %v12067_v11  ;;  %v11523_v21 = vld [vmem:[#allocation6 + $0x140] sm:$0xf] }
 0x24c   :  { %4438 = vmatpush.bf16.msra.mxu2 %v11152_v55  ;;  %v11844_v55 = vor.u32 %v14397_v45, %v11843_v26  ;;  %v4109_v29 = vadd.f32 %v15616_v18, %v4095_v9  ;;  %v4136_v54 = vpop.f32.mrf.mxu0  ;;  %v4121_v3 = vadd.f32 %v15608_v2, %v4107_v59  ;;  %v14381_v31 = vld [vmem:[#allocation6 + $0x35c] sm:$0xf0] }
 0x24d   :  { %4452 = vmatpush.bf16.msra.mxu3 %v11280_v12  ;;  %v3871_v12 = vadd.f32 %v15913_v7, %v3857_v0  ;;  %v3661_v18 = vadd.f32 %v15916_v19, %v3647_v20  ;;  %v12035_v10 = vld [vmem:[#allocation6 + $0x540] sm:$0xf]  ;;  %v15924_v19 = vld [vmem:[#allocation43_spill] sm:$0xff] }
 0x24e   :  { %4411 = vmatpush.bf16.msra.mxu0 %v10880_v49  ;;  %v4150_v49 = vpop.f32.mrf.mxu1  ;;  %v4176_v52 = vpop.f32.mrf.mxu3  ;;  %v4123_v50 = vadd.f32 %v4122_v33, %v4109_v29  ;;  %v4135_v34 = vadd.f32 %v15618_v5, %v4121_v3  ;;  %v14309_v17 = vld [vmem:[#allocation6 + $0x11c] sm:$0xf0]  ;;  %v15920_v5 = vld [vmem:[#allocation31_spill] sm:$0xff] }
 0x24f   :  { %4425 = vmatpush.bf16.msra.mxu1 %v11008_v43  ;;  %v3885_v15 = vadd.f32 %v15915_v14, %v3871_v12  ;;  %v14317_v43 = vld [vmem:[#allocation6 + $0x15c] sm:$0xf0] }
 0x250   :  { %4439 = vmatpush.bf16.msra.mxu2 %v11136_v57  ;;  %v11779_v57 = vld [vmem:[#allocation6 + $0x340] sm:$0xf]  ;;  %v11524_v53 = vor.u32 %v14317_v43, %v11523_v21  ;;  %v4137_v2 = vadd.f32 %v4136_v54, %v4123_v50 }
 0x251   :  { %4453 = vmatpush.bf16.msra.mxu3 %v11264_v63  ;;  %v14445_v63 = vld [vmem:[#allocation6 + $0x55c] sm:$0xf0]  ;;  %v3899_v30 = vadd.f32 %v15918_v51, %v3885_v15  ;;  %v11780_v35 = vor.u32 %v14381_v31, %v11779_v57  ;;  %v15923_v15 = vld [vmem:[#allocation33_spill] sm:$0xff] }
 0x252   :  { %4412 = vmatpush.bf16.msra.mxu0 %v10864_v6  ;;  %v12036_v26 = vor.u32 %v14445_v63, %v12035_v10  ;;  %v11747_v44 = vld [vmem:[#allocation6 + $0x300] sm:$0xf]  ;;  %v4164_v6 = vpop.f32.mrf.mxu2  ;;  %v4151_v48 = vadd.f32 %v4150_v49, %v4137_v2 }
 0x253   :  { %4426 = vmatpush.bf16.msra.mxu1 %v10992_v27  ;;  %v15919_v0 = vld [vmem:[#allocation30_spill] sm:$0xff] }
 0x254   :  { %4440 = vmatpush.bf16.msra.mxu2 %v11120_v16  ;;  %v3675_v33 = vadd.f32 %v15919_v0, %v3661_v18  ;;  %v12003_v45 = vld [vmem:[#allocation6 + $0x500] sm:$0xf]  ;;  %v4190_v56 = vpop.f32.mrf.mxu0  ;;  %v4149_v16 = vadd.f32 %v15622_v41, %v4135_v34  ;;  %v4165_v12 = vadd.f32 %v4164_v6, %v4151_v48  ;;  %v15921_v41 = vld [vmem:[#allocation32_spill] sm:$0xff] }
 0x255   :  { %4454 = vmatpush.bf16.msra.mxu3 %v11248_v40  ;;  %4413 = vmatmul.bf16.vlgmr.msra.gmra.mxu0 %v15917_v62  ;;  %v14437_v36 = vld [vmem:[#allocation6 + $0x51c] sm:$0xf0] }
 0x256   :  { %6027 = vmatpush.bf16.msrb.mxu0 %v11588_v42  ;;  %4427 = vmatmul.bf16.vlgmr.msra.gmra.mxu1 %v15382_v38  ;;  %v11491_v38 = vld [vmem:[#allocation6 + $0x100] sm:$0xf]  ;;  %v3689_v27 = vadd.f32 %v15920_v5, %v3675_v33  ;;  %v4204_v39 = vpop.f32.mrf.mxu1  ;;  %v12004_v42 = vor.u32 %v14437_v36, %v12003_v45  ;;  %v4163_v4 = vadd.f32 %v15632_v58, %v4149_v16  ;;  %v4178_v60 = vpop.f32.mrf.mxu3  ;;  %v15928_v16 = vld [vmem:[#allocation45_spill] sm:$0xff] }
 0x257   :  { %6041 = vmatpush.bf16.msrb.mxu1 %v11844_v55  ;;  %4441 = vmatmul.bf16.vlgmr.msra.gmra.mxu2 %v15386_v46  ;;  %v3913_v46 = vadd.f32 %v15523_v24, %v3899_v30  ;;  %v11492_v1 = vor.u32 %v14309_v17, %v11491_v38  ;;  %v11459_v9 = vld [vmem:[#allocation6 + $0xc0] sm:$0xf]  ;;  %v4179_v43 = vadd.f32 %v4178_v60, %v4165_v12  ;;  %v14457_v12 = vld [vmem:[#allocation6 + $0x5c4] sm:$0xf] }
 0x258   :  { %6055 = vmatpush.bf16.msrb.mxu2 %v12100_v22  ;;  %4455 = vmatmul.bf16.vlgmr.msra.gmra.mxu3 %v15398_v37  ;;  %v14373_v37 = vld [vmem:[#allocation6 + $0x31c] sm:$0xf0]  ;;  %v3703_v59 = vadd.f32 %v15921_v41, %v3689_v27  ;;  %v4177_v49 = vadd.f32 %v4176_v52, %v4163_v4  ;;  %v11845_v4 = vld [vmem:[#allocation6 + $0x3e0] sm:$0xf0] }
 0x259   :  { %v11748_v40 = vor.u32 %v14373_v37, %v11747_v44  ;;  %v14301_v55 = vld [vmem:[#allocation6 + $0xdc] sm:$0xf0]  ;;  %v3927_v22 = vadd.f32 %v15525_v61, %v3913_v46  ;;  %v15927_v44 = vld [vmem:[#allocation36_spill] sm:$0xff]  ;;  %v12101_v41 = vld [vmem:[#allocation6 + $0x5e0] sm:$0xf0] }
 0x25a   :  { %6028 = vmatpush.bf16.msrb.mxu0 %v11556_v28  ;;  %v11715_v24 = vld [vmem:[#allocation6 + $0x2c0] sm:$0xf]  ;;  %v11460_v29 = vor.u32 %v14301_v55, %v11459_v9  ;;  %v3717_v58 = vadd.f32 %v15923_v15, %v3703_v59  ;;  %v4218_v28 = vpop.f32.mrf.mxu2  ;;  %v4191_v3 = vadd.f32 %v4190_v56, %v4177_v49  ;;  %v14329_v55 = vld [vmem:[#allocation6 + $0x1c4] sm:$0xf] }
 0x25b   :  { %6042 = vmatpush.bf16.msrb.mxu1 %v11812_v13  ;;  %v14365_v47 = vld [vmem:[#allocation6 + $0x2dc] sm:$0xf0]  ;;  %v11557_v15 = vld [vmem:[#allocation6 + $0x1a0] sm:$0xf0] }
 0x25c   :  { %6056 = vmatpush.bf16.msrb.mxu2 %v12068_v25  ;;  %v11971_v32 = vld [vmem:[#allocation6 + $0x4c0] sm:$0xf]  ;;  %v11716_v54 = vor.u32 %v14365_v47, %v11715_v24  ;;  %v4192_v57 = vpop.f32.mrf.mxu0  ;;  %v4205_v33 = vadd.f32 %v4204_v39, %v4191_v3  ;;  %v11589_v39 = vld [vmem:[#allocation6 + $0x1e0] sm:$0xf0]  ;;  %v15929_v47 = vld [vmem:[#allocation35_spill] sm:$0xff] }
 0x25d   :  { %v14429_v7 = vld [vmem:[#allocation6 + $0x4dc] sm:$0xf0]  ;;  %v4193_v31 = vadd.f32 %v4192_v57, %v4179_v43  ;;  %v11813_v49 = vld [vmem:[#allocation6 + $0x3a0] sm:$0xf0] }
 0x25e   :  { %6029 = vmatpush.bf16.msrb.mxu0 %v11524_v53  ;;  %v15922_v8 = vld [vmem:[#allocation42_spill] sm:$0xff]  ;;  %v11972_v23 = vor.u32 %v14429_v7, %v11971_v32  ;;  %v15926_v53 = vld [vmem:[#allocation44_spill] sm:$0xff]  ;;  %v4219_v48 = vadd.f32 %v4218_v28, %v4205_v33  ;;  %v4461_v32 = vmax.f32 %v15929_v47, 0.0  ;;  %v15930_v28 = vld [vmem:[#allocation41_spill] sm:$0xff] }
 0x25f   :  { %6043 = vmatpush.bf16.msrb.mxu1 %v11780_v35  ;;  %v3941_v11 = vadd.f32 %v15922_v8, %v3927_v22  ;;  %v11427_v20 = vld [vmem:[#allocation6 + $0x80] sm:$0xf]  ;;  %v4206_v35 = vpop.f32.mrf.mxu1  ;;  %v14393_v22 = vld [vmem:[#allocation6 + $0x3c4] sm:$0xf] }
 0x260   :  { %6057 = vmatpush.bf16.msrb.mxu2 %v12036_v26  ;;  %v14293_v14 = vld [vmem:[#allocation6 + $0x9c] sm:$0xf0]  ;;  %v4207_v37 = vadd.f32 %v4206_v35, %v4193_v31  ;;  %v12069_v43 = vld [vmem:[#allocation6 + $0x5a0] sm:$0xf0] }
 0x261   :  { %v11683_v61 = vld [vmem:[#allocation6 + $0x280] sm:$0xf]  ;;  %v3955_v18 = vadd.f32 %v15924_v19, %v3941_v11  ;;  %v11428_v62 = vor.u32 %v14293_v14, %v11427_v20  ;;  %v11848_v20 = vor.u32 %v14393_v22, %v11845_v4  ;;  %v14321_v14 = vld [vmem:[#allocation6 + $0x184] sm:$0xf] }
 0x262   :  { %6030 = vmatpush.bf16.msrb.mxu0 %v11492_v1  ;;  %v14357_v13 = vld [vmem:[#allocation6 + $0x29c] sm:$0xf0]  ;;  %v11493_v35 = vld [vmem:[#allocation6 + $0x120] sm:$0xf0] }
 0x263   :  { %6044 = vmatpush.bf16.msrb.mxu1 %v11748_v40  ;;  %v11939_v25 = vld [vmem:[#allocation6 + $0x480] sm:$0xf]  ;;  %v11684_v10 = vor.u32 %v14357_v13, %v11683_v61  ;;  %v3969_v2 = vadd.f32 %v15926_v53, %v3955_v18  ;;  %v4220_v40 = vpop.f32.mrf.mxu2  ;;  %v12104_v61 = vor.u32 %v14457_v12, %v12101_v41  ;;  %v4462_v13 = vmax.f32 %v15930_v28, 0.0  ;;  %v14305_v53 = vld [vmem:[#allocation6 + $0x104] sm:$0xf] }
 0x264   :  { %6058 = vmatpush.bf16.msrb.mxu2 %v12004_v42  ;;  %v14421_v21 = vld [vmem:[#allocation6 + $0x49c] sm:$0xf0]  ;;  %v4221_v24 = vadd.f32 %v4220_v40, %v4207_v37  ;;  %v11560_v18 = vor.u32 %v14321_v14, %v11557_v15  ;;  %v11461_v37 = vld [vmem:[#allocation6 + $0xe0] sm:$0xf0]  ;;  %v11595_v15 = vld [vmem:[#allocation6 + $0x1c8] sm:$0xf] }
 0x265   :  { %v11940_v63 = vor.u32 %v14421_v21, %v11939_v25  ;;  %v11395_v50 = vld [vmem:[#allocation6 + $0x40] sm:$0xf]  ;;  %v3983_v1 = vadd.f32 %v15928_v16, %v3969_v2  ;;  %v14449_v21 = vld [vmem:[#allocation6 + $0x584] sm:$0xf]  ;;  %v14398_v28 = vld [vmem:[#allocation6 + $0x3e4] sm:$0xf0] }
 0x266   :  { %6031 = vmatpush.bf16.msrb.mxu0 %v11460_v29  ;;  %v14285_v51 = vld [vmem:[#allocation6 + $0x5c] sm:$0xf0]  ;;  %v4467_v8 = vmax.f32 %v4221_v24, 0.0  ;;  %v12072_v31 = vor.u32 %v14449_v21, %v12069_v43  ;;  %v11429_v40 = vld [vmem:[#allocation6 + $0xa0] sm:$0xf0] }
 0x267   :  { %6045 = vmatpush.bf16.msrb.mxu1 %v11716_v54  ;;  %v11651_v30 = vld [vmem:[#allocation6 + $0x240] sm:$0xf]  ;;  %v11396_v46 = vor.u32 %v14285_v51, %v11395_v50  ;;  %v4466_v29 = vmax.f32 %v3983_v1, 0.0  ;;  %v4463_v54 = vmax.f32 %v4219_v48, 0.0  ;;  %v11781_v50 = vld [vmem:[#allocation6 + $0x360] sm:$0xf0] }
 0x268   :  { %6059 = vmatpush.bf16.msrb.mxu2 %v11972_v23  ;;  %v15925_v52 = vld [vmem:[#allocation34_spill] sm:$0xff]  ;;  %v11592_v23 = vor.u32 %v14329_v55, %v11589_v39  ;;  %v14462_v21 = vld [vmem:[#allocation6 + $0x5e4] sm:$0xf0] }
 0x269   :  { %v3731_v34 = vadd.f32 %v15925_v52, %v3717_v58  ;;  %v14349_v26 = vld [vmem:[#allocation6 + $0x25c] sm:$0xf0]  ;;  %v14385_v58 = vld [vmem:[#allocation6 + $0x384] sm:$0xf]  ;;  %v15664_v25 = vpack.c.bf16 %v4467_v8, %v4463_v54  ;;  %v15668_v19 = vpack.c.bf16 %v4466_v29, %v4462_v13  ;;  %v12107_v13 = vld [vmem:[#allocation6 + $0x5c8] sm:$0xf] }
 0x26a   :  { %v11907_v38 = vld [vmem:[#allocation6 + $0x440] sm:$0xf]  ;;  %6032 = vmatpush.bf16.msrb.mxu0 %v11428_v62  ;;  %v11652_v45 = vor.u32 %v14349_v26, %v11651_v30  ;;  %v11816_v3 = vor.u32 %v14385_v58, %v11813_v49  ;;  %v14313_v62 = vld [vmem:[#allocation6 + $0x144] sm:$0xf]  ;;  %v14334_v58 = vld [vmem:[#allocation6 + $0x1e4] sm:$0xf0] }
 0x26b   :  { %v14413_v17 = vld [vmem:[#allocation6 + $0x45c] sm:$0xf0]  ;;  %v3745_v0 = vadd.f32 %v15927_v44, %v3731_v34  ;;  %6046 = vmatpush.bf16.msrb.mxu1 %v11684_v10  ;;  %v11525_v10 = vld [vmem:[#allocation6 + $0x160] sm:$0xf0]  ;;  %v11851_v49 = vld [vmem:[#allocation6 + $0x3c8] sm:$0xf] }
 0x26c   :  { %v11363_v6 = vld [vmem:[#allocation6] sm:$0xf]  ;;  %6060 = vmatpush.bf16.msrb.mxu2 %v11940_v63  ;;  %v11908_v36 = vor.u32 %v14413_v17, %v11907_v38  ;;  %v14377_v63 = vld [vmem:[#allocation6 + $0x344] sm:$0xf]  ;;  %v11528_v52 = vor.u32 %v14313_v62, %v11525_v10  ;;  %v11596_v62 = vor.u32 %v14334_v58, %v11595_v15  ;;  %v12108_v10 = vor.u32 %v14462_v21, %v12107_v13  ;;  %v11691_v15 = vld [vmem:[#allocation6 + $0x288] sm:$0xf] }
 0x26d   :  { %v14277_v56 = vld [vmem:[#allocation6 + $0x1c] sm:$0xf0]  ;;  %v4465_v59 = vmax.f32 %v3745_v0, 0.0  ;;  %v14441_v51 = vld [vmem:[#allocation6 + $0x544] sm:$0xf]  ;;  %v11784_v34 = vor.u32 %v14377_v63, %v11781_v50  ;;  %v11496_v0 = vor.u32 %v14305_v53, %v11493_v35 }
 0x26e   :  { %v11619_v5 = vld [vmem:[#allocation6 + $0x200] sm:$0xf]  ;;  %6033 = vmatpush.bf16.msrb.mxu0 %v11396_v46  ;;  %v11364_v7 = vor.u32 %v14277_v56, %v11363_v6  ;;  %v12037_v30 = vld [vmem:[#allocation6 + $0x560] sm:$0xf0]  ;;  %v11563_v63 = vld [vmem:[#allocation6 + $0x188] sm:$0xf] }
 0x26f   :  { %v14341_v27 = vld [vmem:[#allocation6 + $0x21c] sm:$0xf0]  ;;  %6047 = vmatpush.bf16.msrb.mxu1 %v11652_v45  ;;  %v15666_v57 = vpack.c.bf16 %v4465_v59, %v4461_v32  ;;  %v12040_v2 = vor.u32 %v14441_v51, %v12037_v30  ;;  %v14369_v26 = vld [vmem:[#allocation6 + $0x304] sm:$0xf]  ;;  %v14326_v50 = vld [vmem:[#allocation6 + $0x1a4] sm:$0xf0] }
 0x270   :  { %v11875_v42 = vld [vmem:[#allocation6 + $0x400] sm:$0xf]  ;;  %6061 = vmatpush.bf16.msrb.mxu2 %v11908_v36  ;;  %v11620_v11 = vor.u32 %v14341_v27, %v11619_v5  ;;  %v11749_v38 = vld [vmem:[#allocation6 + $0x320] sm:$0xf0]  ;;  %v11819_v51 = vld [vmem:[#allocation6 + $0x388] sm:$0xf]  ;;  %v11564_v53 = vor.u32 %v14326_v50, %v11563_v63 }
 0x271   :  { %v14405_v9 = vld [vmem:[#allocation6 + $0x41c] sm:$0xf0]  ;;  %v14433_v17 = vld [vmem:[#allocation6 + $0x504] sm:$0xf]  ;;  %v11752_v33 = vor.u32 %v14369_v26, %v11749_v38  ;;  %v14390_v30 = vld [vmem:[#allocation6 + $0x3a4] sm:$0xf0]  ;;  %v15673_v26 = vpop.f32.mrf.mxu3 }
 0x272   :  { %v11876_v60 = vor.u32 %v14405_v9, %v11875_v42  ;;  %6034 = vmatpush.bf16.msrb.mxu0 %v11364_v7  ;;  %v12005_v44 = vld [vmem:[#allocation6 + $0x520] sm:$0xf0]  ;;  %v14318_v35 = vld [vmem:[#allocation6 + $0x164] sm:$0xf0]  ;;  %v11820_v38 = vor.u32 %v14390_v30, %v11819_v51  ;;  %v12259_v58 = vld [vmem:[#allocation6 + $0x700] sm:$0xf] }
 0x273   :  { %6048 = vmatpush.bf16.msrb.mxu1 %v11620_v11  ;;  %v14297_v46 = vld [vmem:[#allocation6 + $0xc4] sm:$0xf]  ;;  %v12008_v6 = vor.u32 %v14433_v17, %v12005_v44  ;;  %v11787_v44 = vld [vmem:[#allocation6 + $0x348] sm:$0xf] }
 0x274   :  { %6062 = vmatpush.bf16.msrb.mxu2 %v11876_v60  ;;  %v14361_v45 = vld [vmem:[#allocation6 + $0x2c4] sm:$0xf]  ;;  %v11464_v27 = vor.u32 %v14297_v46, %v11461_v37  ;;  %v14446_v46 = vld [vmem:[#allocation6 + $0x564] sm:$0xf0]  ;;  %v14525_v37 = vld [vmem:[#allocation6 + $0x7dc] sm:$0xf0] }
 0x275   :  { %6035 = vmatmul.bf16.vlgmr.msrb.gmra.mxu0 %v15666_v57  ;;  %v11717_v36 = vld [vmem:[#allocation6 + $0x2e0] sm:$0xf0]  ;;  %v14358_v13 = vld [vmem:[#allocation6 + $0x2a4] sm:$0xf0] }
 0x276   :  { %6083 = vmatpush.bf16.msra.mxu0 %v11592_v23  ;;  %6049 = vmatmul.bf16.vlgmr.msrb.gmra.mxu1 %v15668_v19  ;;  %v14425_v56 = vld [vmem:[#allocation6 + $0x4c4] sm:$0xf]  ;;  %v11720_v16 = vor.u32 %v14361_v45, %v11717_v36  ;;  %v11947_v21 = vld [vmem:[#allocation6 + $0x488] sm:$0xf]  ;;  %v11692_v63 = vor.u32 %v14358_v13, %v11691_v15  ;;  %v14314_v15 = vld [vmem:[#allocation6 + $0x14c] sm:$0xf] }
 0x277   :  { %6097 = vmatpush.bf16.msra.mxu1 %v11848_v20  ;;  %6063 = vmatmul.bf16.vlgmr.msrb.gmra.mxu2 %v15664_v25  ;;  %v11973_v5 = vld [vmem:[#allocation6 + $0x4e0] sm:$0xf0]  ;;  %v11659_v51 = vld [vmem:[#allocation6 + $0x248] sm:$0xf] }
 0x278   :  { %6111 = vmatpush.bf16.msra.mxu2 %v12104_v61  ;;  %v14289_v1 = vld [vmem:[#allocation6 + $0x84] sm:$0xf]  ;;  %v11976_v48 = vor.u32 %v14425_v56, %v11973_v5  ;;  %v11499_v56 = vld [vmem:[#allocation6 + $0x108] sm:$0xf] }
 0x279   :  { %v14353_v42 = vld [vmem:[#allocation6 + $0x284] sm:$0xf]  ;;  %v11432_v39 = vor.u32 %v14289_v1, %v11429_v40  ;;  %v14310_v5 = vld [vmem:[#allocation6 + $0x124] sm:$0xf0]  ;;  %v14517_v40 = vld [vmem:[#allocation6 + $0x79c] sm:$0xf0] }
 0x27a   :  { %6084 = vmatpush.bf16.msra.mxu0 %v11560_v18  ;;  %v11685_v9 = vld [vmem:[#allocation6 + $0x2a0] sm:$0xf0]  ;;  %v11755_v1 = vld [vmem:[#allocation6 + $0x308] sm:$0xf] }
 0x27b   :  { %6098 = vmatpush.bf16.msra.mxu1 %v11816_v3  ;;  %v14417_v55 = vld [vmem:[#allocation6 + $0x484] sm:$0xf]  ;;  %v11688_v22 = vor.u32 %v14353_v42, %v11685_v9  ;;  %v14374_v42 = vld [vmem:[#allocation6 + $0x324] sm:$0xf0] }
 0x27c   :  { %6112 = vmatpush.bf16.msra.mxu2 %v12072_v31  ;;  %v11941_v24 = vld [vmem:[#allocation6 + $0x4a0] sm:$0xf0]  ;;  %v11852_v31 = vor.u32 %v14398_v28, %v11851_v49  ;;  %v12011_v9 = vld [vmem:[#allocation6 + $0x508] sm:$0xf]  ;;  %v14501_v49 = vld [vmem:[#allocation6 + $0x71c] sm:$0xf0]  ;;  %v15680_v28 = vpop.f32.mrf.mxu0 }
 0x27d   :  { %v14281_v4 = vld [vmem:[#allocation6 + $0x44] sm:$0xf]  ;;  %v11944_v47 = vor.u32 %v14417_v55, %v11941_v24  ;;  %v14438_v55 = vld [vmem:[#allocation6 + $0x524] sm:$0xf0] }
 0x27e   :  { %6085 = vmatpush.bf16.msra.mxu0 %v11528_v52  ;;  %v11397_v32 = vld [vmem:[#allocation6 + $0x60] sm:$0xf0]  ;;  %v12075_v52 = vld [vmem:[#allocation6 + $0x588] sm:$0xf] }
 0x27f   :  { %6099 = vmatpush.bf16.msra.mxu1 %v11784_v34  ;;  %v14345_v7 = vld [vmem:[#allocation6 + $0x244] sm:$0xf]  ;;  %v11400_v8 = vor.u32 %v14281_v4, %v11397_v32  ;;  %v14454_v34 = vld [vmem:[#allocation6 + $0x5a4] sm:$0xf0]  ;;  %v12012_v32 = vor.u32 %v14438_v55, %v12011_v9 }
 0x280   :  { %6113 = vmatpush.bf16.msra.mxu2 %v12040_v2  ;;  %v11653_v12 = vld [vmem:[#allocation6 + $0x260] sm:$0xf0]  ;;  %v11531_v2 = vld [vmem:[#allocation6 + $0x148] sm:$0xf]  ;;  %v12076_v17 = vor.u32 %v14454_v34, %v12075_v52 }
 0x281   :  { %v14409_v41 = vld [vmem:[#allocation6 + $0x444] sm:$0xf]  ;;  %v11656_v11 = vor.u32 %v14345_v7, %v11653_v12  ;;  %v11532_v36 = vor.u32 %v14318_v35, %v11531_v2  ;;  %v14302_v4 = vld [vmem:[#allocation6 + $0xe4] sm:$0xf0]  ;;  %v12291_v12 = vld [vmem:[#allocation6 + $0x740] sm:$0xf] }
 0x282   :  { %6086 = vmatpush.bf16.msra.mxu0 %v11496_v0  ;;  %v11909_v59 = vld [vmem:[#allocation6 + $0x460] sm:$0xf0]  ;;  %v14382_v0 = vld [vmem:[#allocation6 + $0x364] sm:$0xf0]  ;;  %v14493_v2 = vld [vmem:[#allocation6 + $0x6dc] sm:$0xf0] }
 0x283   :  { %6100 = vmatpush.bf16.msra.mxu1 %v11752_v33  ;;  %v14273_v60 = vld [vmem:[#allocation6 + $0x4] sm:$0xf]  ;;  %v11912_v23 = vor.u32 %v14409_v41, %v11909_v59  ;;  %v12043_v33 = vld [vmem:[#allocation6 + $0x548] sm:$0xf]  ;;  %v14509_v41 = vld [vmem:[#allocation6 + $0x75c] sm:$0xf0] }
 0x284   :  { %6114 = vmatpush.bf16.msra.mxu2 %v12008_v6  ;;  %v11365_v29 = vld [vmem:[#allocation6 + $0x20] sm:$0xf0]  ;;  %v12355_v6 = vld [vmem:[#allocation6 + $0x7c0] sm:$0xf]  ;;  %v11723_v7 = vld [vmem:[#allocation6 + $0x2c8] sm:$0xf]  ;;  %v15688_v9 = vpop.f32.mrf.mxu0 }
 0x285   :  { %v14337_v54 = vld [vmem:[#allocation6 + $0x204] sm:$0xf]  ;;  %v11368_v43 = vor.u32 %v14273_v60, %v11365_v29  ;;  %v12356_v45 = vor.u32 %v14525_v37, %v12355_v6  ;;  %v14366_v59 = vld [vmem:[#allocation6 + $0x2e4] sm:$0xf0]  ;;  %v12292_v60 = vor.u32 %v14509_v41, %v12291_v12  ;;  %v15678_v29 = vpop.f32.mrf.mxu3  ;;  %v14322_v41 = vld [vmem:[#allocation6 + $0x18c] sm:$0xf] }
 0x286   :  { %6087 = vmatpush.bf16.msra.mxu0 %v11464_v27  ;;  %v11621_v20 = vld [vmem:[#allocation6 + $0x220] sm:$0xf0]  ;;  %v11788_v27 = vor.u32 %v14382_v0, %v11787_v44  ;;  %v14350_v30 = vld [vmem:[#allocation6 + $0x264] sm:$0xf0] }
 0x287   :  { %6101 = vmatpush.bf16.msra.mxu1 %v11720_v16  ;;  %v14401_v14 = vld [vmem:[#allocation6 + $0x404] sm:$0xf]  ;;  %v11624_v18 = vor.u32 %v14337_v54, %v11621_v20  ;;  %v12044_v16 = vor.u32 %v14446_v46, %v12043_v33  ;;  %6069 = vmatpush.bf16.msrb.mxu3 %v12356_v45  ;;  %v14294_v20 = vld [vmem:[#allocation6 + $0xa4] sm:$0xf0]  ;;  %v15684_v33 = vpop.f32.mrf.mxu2  ;;  %v11660_v6 = vor.u32 %v14350_v30, %v11659_v51  ;;  %v11789_v51 = vld [vmem:[#allocation6 + $0x368] sm:$0xf0] }
 0x288   :  { %6115 = vmatpush.bf16.msra.mxu2 %v11976_v48  ;;  %v11877_v61 = vld [vmem:[#allocation6 + $0x420] sm:$0xf0]  ;;  %v12323_v48 = vld [vmem:[#allocation6 + $0x780] sm:$0xf]  ;;  %v11915_v52 = vld [vmem:[#allocation6 + $0x448] sm:$0xf] }
 0x289   :  { %v11880_v3 = vor.u32 %v14401_v14, %v11877_v61  ;;  %v12324_v24 = vor.u32 %v14517_v40, %v12323_v48  ;;  %v11724_v14 = vor.u32 %v14366_v59, %v11723_v7  ;;  %v14414_v34 = vld [vmem:[#allocation6 + $0x464] sm:$0xf0]  ;;  %v11597_v48 = vld [vmem:[#allocation6 + $0x1e8] sm:$0xf0]  ;;  %v12163_v59 = vld [vmem:[#allocation6 + $0x640] sm:$0xf] }
 0x28a   :  { %6088 = vmatpush.bf16.msra.mxu0 %v11432_v39  ;;  %v11500_v39 = vor.u32 %v14310_v5, %v11499_v56  ;;  %v14278_v44 = vld [vmem:[#allocation6 + $0x24] sm:$0xf0]  ;;  %v11916_v37 = vor.u32 %v14414_v34, %v11915_v52  ;;  %v14485_v56 = vld [vmem:[#allocation6 + $0x69c] sm:$0xf0]  ;;  %v14394_v40 = vld [vmem:[#allocation6 + $0x3cc] sm:$0xf] }
 0x28b   :  { %6102 = vmatpush.bf16.msra.mxu1 %v11688_v22  ;;  %v11467_v22 = vld [vmem:[#allocation6 + $0xc8] sm:$0xf]  ;;  %6070 = vmatpush.bf16.msrb.mxu3 %v12324_v24  ;;  %v14458_v24 = vld [vmem:[#allocation6 + $0x5cc] sm:$0xf] }
 0x28c   :  { %6116 = vmatpush.bf16.msra.mxu2 %v11944_v47  ;;  %v11756_v47 = vor.u32 %v14374_v42, %v11755_v1  ;;  %v11468_v54 = vor.u32 %v14302_v4, %v11467_v22  ;;  %v11627_v0 = vld [vmem:[#allocation6 + $0x208] sm:$0xf]  ;;  %v11853_v42 = vld [vmem:[#allocation6 + $0x3e8] sm:$0xf0]  ;;  %v15690_v22 = vld [vmem:[#allocation4] sm:$0xf] }
 0x28d   :  { %v15686_v46 = vpop.f32.mrf.mxu3  ;;  %v14342_v45 = vld [vmem:[#allocation6 + $0x224] sm:$0xf0]  ;;  %v784_v4 = vperm.slane %v15690_v22, 3  ;;  %v11856_v12 = vor.u32 %v14394_v40, %v11853_v42  ;;  %v14442_v30 = vld [vmem:[#allocation6 + $0x54c] sm:$0xf] }
 0x28e   :  { %6089 = vmatpush.bf16.msra.mxu0 %v11400_v8  ;;  %v11979_v8 = vld [vmem:[#allocation6 + $0x4c8] sm:$0xf]  ;;  %v12045_v34 = vld [vmem:[#allocation6 + $0x568] sm:$0xf0] }
 0x28f   :  { %6103 = vmatpush.bf16.msra.mxu1 %v11656_v11  ;;  %v14430_v11 = vld [vmem:[#allocation6 + $0x4e4] sm:$0xf0]  ;;  %6071 = vmatpush.bf16.msrb.mxu3 %v12292_v60  ;;  %v14298_v42 = vld [vmem:[#allocation6 + $0xcc] sm:$0xf] }
 0x290   :  { %6117 = vmatpush.bf16.msra.mxu2 %v11912_v23  ;;  %v11435_v23 = vld [vmem:[#allocation6 + $0x88] sm:$0xf]  ;;  %v11980_v61 = vor.u32 %v14430_v11, %v11979_v8  ;;  %v14477_v8 = vld [vmem:[#allocation6 + $0x65c] sm:$0xf0] }
 0x291   :  { %v11883_v5 = vld [vmem:[#allocation6 + $0x408] sm:$0xf] }
 0x292   :  { %6090 = vmatpush.bf16.msra.mxu0 %v11368_v43  ;;  %v14422_v43 = vld [vmem:[#allocation6 + $0x4a4] sm:$0xf0]  ;;  %v15703_v52 = vpop.f32.mrf.mxu0 }
 0x293   :  { %6104 = vmatpush.bf16.msra.mxu1 %v11624_v18  ;;  %v12260_v18 = vor.u32 %v14501_v49, %v12259_v58  ;;  %v11948_v50 = vor.u32 %v14422_v43, %v11947_v21  ;;  %v12164_v58 = vor.u32 %v14477_v8, %v12163_v59  ;;  %v11533_v21 = vld [vmem:[#allocation6 + $0x168] sm:$0xf0]  ;;  %v12131_v43 = vld [vmem:[#allocation6 + $0x600] sm:$0xf]  ;;  %v12293_v59 = vld [vmem:[#allocation6 + $0x760] sm:$0xf0] }
 0x294   :  { %6118 = vmatpush.bf16.msra.mxu2 %v11880_v3  ;;  %v11436_v3 = vor.u32 %v14294_v20, %v11435_v23  ;;  %v14386_v23 = vld [vmem:[#allocation6 + $0x38c] sm:$0xf] }
 0x295   :  { %6091 = vmatmul.bf16.vlgmr.msra.gmra.mxu0 %v15666_v57  ;;  %6072 = vmatpush.bf16.msrb.mxu3 %v12260_v18  ;;  %v11821_v20 = vld [vmem:[#allocation6 + $0x3a8] sm:$0xf0]  ;;  %v14469_v18 = vld [vmem:[#allocation6 + $0x61c] sm:$0xf0] }
 0x296   :  { %6139 = vmatpush.bf16.msrb.mxu0 %v11596_v62  ;;  %6105 = vmatmul.bf16.vlgmr.msra.gmra.mxu1 %v15668_v19  ;;  %v11403_v62 = vld [vmem:[#allocation6 + $0x48] sm:$0xf]  ;;  %v11824_v13 = vor.u32 %v14386_v23, %v11821_v20  ;;  %v14290_v23 = vld [vmem:[#allocation6 + $0x8c] sm:$0xf] }
 0x297   :  { %6153 = vmatpush.bf16.msrb.mxu1 %v11852_v31  ;;  %6119 = vmatmul.bf16.vlgmr.msra.gmra.mxu2 %v15664_v25  ;;  %v14286_v31 = vld [vmem:[#allocation6 + $0x64] sm:$0xf0]  ;;  %v11437_v20 = vld [vmem:[#allocation6 + $0xa8] sm:$0xf0] }
 0x298   :  { %6167 = vmatpush.bf16.msrb.mxu2 %v12108_v10  ;;  %v15682_v10 = vpop.f32.mrf.mxu1 }
 0x29a   :  { %6140 = vmatpush.bf16.msrb.mxu0 %v11564_v53  ;;  %v12227_v53 = vld [vmem:[#allocation6 + $0x6c0] sm:$0xf] }
 0x29b   :  { %6154 = vmatpush.bf16.msrb.mxu1 %v11820_v38  ;;  %v12228_v35 = vor.u32 %v14493_v2, %v12227_v53  ;;  %v11404_v38 = vor.u32 %v14286_v31, %v11403_v62  ;;  %v15698_v62 = vpop.f32.mrf.mxu2  ;;  %v15700_v31 = vpop.f32.mrf.mxu3  ;;  %v14521_v53 = vld [vmem:[#allocation6 + $0x7c4] sm:$0xf]  ;;  %v12132_v2 = vor.u32 %v14469_v18, %v12131_v43 }
 0x29c   :  { %6168 = vmatpush.bf16.msrb.mxu2 %v12076_v17  ;;  %v11371_v17 = vld [vmem:[#allocation6 + $0x8] sm:$0xf]  ;;  %v14497_v43 = vld [vmem:[#allocation6 + $0x704] sm:$0xf] }
 0x29d   :  { %6073 = vmatpush.bf16.msrb.mxu3 %v12228_v35  ;;  %v11372_v55 = vor.u32 %v14278_v44, %v11371_v17  ;;  %v11536_v35 = vor.u32 %v14314_v15, %v11533_v21  ;;  %v14306_v17 = vld [vmem:[#allocation6 + $0x10c] sm:$0xf] }
 0x29e   :  { %6141 = vmatpush.bf16.msrb.mxu0 %v11532_v36  ;;  %v12195_v36 = vld [vmem:[#allocation6 + $0x680] sm:$0xf]  ;;  %v11501_v44 = vld [vmem:[#allocation6 + $0x128] sm:$0xf0] }
 0x29f   :  { %6155 = vmatpush.bf16.msrb.mxu1 %v11788_v27  ;;  %v14406_v27 = vld [vmem:[#allocation6 + $0x424] sm:$0xf0]  ;;  %v12196_v1 = vor.u32 %v14485_v56, %v12195_v36  ;;  %v11757_v36 = vld [vmem:[#allocation6 + $0x328] sm:$0xf0]  ;;  %v11504_v40 = vor.u32 %v14306_v17, %v11501_v44  ;;  %v14489_v44 = vld [vmem:[#allocation6 + $0x6c4] sm:$0xf] }
 0x2a0   :  { %6169 = vmatpush.bf16.msrb.mxu2 %v12044_v16  ;;  %v14330_v16 = vld [vmem:[#allocation6 + $0x1cc] sm:$0xf]  ;;  %v15693_v11 = vpop.f32.mrf.mxu1 }
 0x2a1   :  { %v11600_v7 = vor.u32 %v14330_v16, %v11597_v48  ;;  %6074 = vmatpush.bf16.msrb.mxu3 %v12196_v1  ;;  %v14434_v56 = vld [vmem:[#allocation6 + $0x50c] sm:$0xf]  ;;  %v14513_v16 = vld [vmem:[#allocation6 + $0x784] sm:$0xf]  ;;  %v4235_v48 = vadd.f32 %v15678_v29, %v784_v4 }
 0x2a2   :  { %6142 = vmatpush.bf16.msrb.mxu0 %v11500_v39  ;;  %v12109_v39 = vld [vmem:[#allocation6 + $0x5e8] sm:$0xf0]  ;;  %v12325_v1 = vld [vmem:[#allocation6 + $0x7a0] sm:$0xf0] }
 0x2a3   :  { %6156 = vmatpush.bf16.msrb.mxu1 %v11756_v47  ;;  %v11628_v47 = vor.u32 %v14342_v45, %v11627_v0  ;;  %v12112_v60 = vor.u32 %v14458_v24, %v12109_v39  ;;  %v14370_v45 = vld [vmem:[#allocation6 + $0x30c] sm:$0xf]  ;;  %v15714_v39 = vpop.f32.mrf.mxu2  ;;  %v12328_v22 = vor.u32 %v14513_v16, %v12325_v1  ;;  %v4249_v8 = vadd.f32 %v15688_v9, %v4235_v48  ;;  %v12261_v9 = vld [vmem:[#allocation6 + $0x720] sm:$0xf0] }
 0x2a4   :  { %6170 = vmatpush.bf16.msrb.mxu2 %v12012_v32  ;;  %v11884_v32 = vor.u32 %v14406_v27, %v11883_v5  ;;  %v12013_v27 = vld [vmem:[#allocation6 + $0x528] sm:$0xf0] }
 0x2a5   :  { %6075 = vmatpush.bf16.msrb.mxu3 %v12164_v58  ;;  %v11981_v29 = vld [vmem:[#allocation6 + $0x4e8] sm:$0xf0] }
 0x2a6   :  { %6143 = vmatpush.bf16.msrb.mxu0 %v11468_v54  ;;  %v11565_v54 = vld [vmem:[#allocation6 + $0x1a8] sm:$0xf0] }
 0x2a7   :  { %6157 = vmatpush.bf16.msrb.mxu1 %v11724_v14  ;;  %v14450_v14 = vld [vmem:[#allocation6 + $0x58c] sm:$0xf]  ;;  %v11568_v49 = vor.u32 %v14322_v41, %v11565_v54 }
 0x2a8   :  { %6171 = vmatpush.bf16.msrb.mxu2 %v11980_v61  ;;  %v12077_v61 = vld [vmem:[#allocation6 + $0x5a8] sm:$0xf0] }
 0x2a9   :  { %6076 = vmatpush.bf16.msrb.mxu3 %v12132_v2  ;;  %v14426_v41 = vld [vmem:[#allocation6 + $0x4cc] sm:$0xf] }
 0x2aa   :  { %6144 = vmatpush.bf16.msrb.mxu0 %v11436_v3  ;;  %v4233_v3 = vadd.f32 %v15673_v26, %v784_v4  ;;  %v12357_v26 = vld [vmem:[#allocation6 + $0x7e0] sm:$0xf0]  ;;  %v14354_v15 = vld [vmem:[#allocation6 + $0x28c] sm:$0xf] }
 0x2ab   :  { %6158 = vmatpush.bf16.msrb.mxu1 %v11692_v63  ;;  %v12080_v63 = vor.u32 %v14450_v14, %v12077_v61  ;;  %v12360_v5 = vor.u32 %v14521_v53, %v12357_v26  ;;  %v14505_v4 = vld [vmem:[#allocation6 + $0x744] sm:$0xf]  ;;  %v11984_v61 = vor.u32 %v14426_v41, %v11981_v29  ;;  %v11693_v58 = vld [vmem:[#allocation6 + $0x2a8] sm:$0xf0]  ;;  %v12115_v41 = vld [vmem:[#allocation6 + $0x5d0] sm:$0xf] }
 0x2ac   :  { %6172 = vmatpush.bf16.msrb.mxu2 %v11948_v50  ;;  %v14378_v50 = vld [vmem:[#allocation6 + $0x34c] sm:$0xf]  ;;  %v4247_v0 = vadd.f32 %v15680_v28, %v4233_v3  ;;  %v11760_v28 = vor.u32 %v14370_v45, %v11757_v36  ;;  %v4263_v3 = vadd.f32 %v15693_v11, %v4249_v8  ;;  %v12229_v11 = vld [vmem:[#allocation6 + $0x6e0] sm:$0xf0] }
 0x2ad   :  { %6125 = vmatpush.bf16.msra.mxu3 %v12360_v5  ;;  %v11949_v21 = vld [vmem:[#allocation6 + $0x4a8] sm:$0xf0] }
 0x2ae   :  { %6145 = vmatpush.bf16.msrb.mxu0 %v11404_v38  ;;  %v11792_v38 = vor.u32 %v14378_v50, %v11789_v51  ;;  %v4261_v24 = vadd.f32 %v15682_v10, %v4247_v0  ;;  %v11696_v50 = vor.u32 %v14354_v15, %v11693_v58  ;;  %v14282_v51 = vld [vmem:[#allocation6 + $0x4c] sm:$0xf]  ;;  %v11827_v15 = vld [vmem:[#allocation6 + $0x390] sm:$0xf] }
 0x2af   :  { %6159 = vmatpush.bf16.msrb.mxu1 %v11660_v6  ;;  %v15708_v6 = vpop.f32.mrf.mxu1  ;;  %v14346_v53 = vld [vmem:[#allocation6 + $0x24c] sm:$0xf] }
 0x2b0   :  { %6173 = vmatpush.bf16.msrb.mxu2 %v11916_v37  ;;  %v12048_v37 = vor.u32 %v14442_v30, %v12045_v34  ;;  %v4275_v14 = vadd.f32 %v15684_v33, %v4261_v24  ;;  %v11405_v33 = vld [vmem:[#allocation6 + $0x68] sm:$0xf0]  ;;  %v11859_v24 = vld [vmem:[#allocation6 + $0x3d0] sm:$0xf] }
 0x2b1   :  { %6126 = vmatpush.bf16.msra.mxu3 %v12328_v22  ;;  %v11661_v26 = vld [vmem:[#allocation6 + $0x268] sm:$0xf0]  ;;  %v14463_v22 = vld [vmem:[#allocation6 + $0x5ec] sm:$0xf0] }
 0x2b2   :  { %6146 = vmatpush.bf16.msrb.mxu0 %v11372_v55  ;;  %v11469_v55 = vld [vmem:[#allocation6 + $0xe8] sm:$0xf0]  ;;  %v4289_v30 = vadd.f32 %v15686_v46, %v4275_v14  ;;  %v11408_v46 = vor.u32 %v14282_v51, %v11405_v33  ;;  %v11571_v14 = vld [vmem:[#allocation6 + $0x190] sm:$0xf] }
 0x2b3   :  { %6160 = vmatpush.bf16.msrb.mxu1 %v11628_v47  ;;  %v15716_v47 = vpop.f32.mrf.mxu3  ;;  %v11472_v10 = vor.u32 %v14298_v42, %v11469_v55  ;;  %v14410_v2 = vld [vmem:[#allocation6 + $0x44c] sm:$0xf]  ;;  %v11603_v42 = vld [vmem:[#allocation6 + $0x1d0] sm:$0xf] }
 0x2b4   :  { %6174 = vmatpush.bf16.msrb.mxu2 %v11884_v32  ;;  %v12016_v32 = vor.u32 %v14434_v56, %v12013_v27  ;;  %v11917_v17 = vld [vmem:[#allocation6 + $0x468] sm:$0xf0]  ;;  %v4303_v0 = vadd.f32 %v15703_v52, %v4289_v30  ;;  %v11664_v56 = vor.u32 %v14346_v53, %v11661_v26  ;;  %v14335_v55 = vld [vmem:[#allocation6 + $0x1ec] sm:$0xf0] }
 0x2b5   :  { %6147 = vmatmul.bf16.vlgmr.msrb.gmra.mxu0 %v15666_v57  ;;  %v14274_v5 = vld [vmem:[#allocation6 + $0xc] sm:$0xf]  ;;  %v11920_v1 = vor.u32 %v14410_v2, %v11917_v17  ;;  %v11539_v53 = vld [vmem:[#allocation6 + $0x150] sm:$0xf] }
 0x2b6   :  { %6195 = vmatpush.bf16.msra.mxu0 %v11600_v7  ;;  %6161 = vmatmul.bf16.vlgmr.msrb.gmra.mxu1 %v15668_v19  ;;  %v14362_v7 = vld [vmem:[#allocation6 + $0x2cc] sm:$0xf]  ;;  %v14319_v26 = vld [vmem:[#allocation6 + $0x16c] sm:$0xf0] }
 0x2b7   :  { %6209 = vmatpush.bf16.msra.mxu1 %v11856_v12  ;;  %6175 = vmatmul.bf16.vlgmr.msrb.gmra.mxu2 %v15664_v25  ;;  %v11725_v12 = vld [vmem:[#allocation6 + $0x2e8] sm:$0xf0]  ;;  %v15722_v18 = vpop.f32.mrf.mxu1  ;;  %v11795_v2 = vld [vmem:[#allocation6 + $0x350] sm:$0xf] }
 0x2b8   :  { %6223 = vmatpush.bf16.msra.mxu2 %v12112_v60  ;;  %v15719_v60 = vpop.f32.mrf.mxu0  ;;  %v11728_v54 = vor.u32 %v14362_v7, %v11725_v12  ;;  %v11373_v27 = vld [vmem:[#allocation6 + $0x28] sm:$0xf0]  ;;  %v14399_v12 = vld [vmem:[#allocation6 + $0x3ec] sm:$0xf0] }
 0x2b9   :  { %v14338_v16 = vld [vmem:[#allocation6 + $0x20c] sm:$0xf] }
 0x2ba   :  { %6196 = vmatpush.bf16.msra.mxu0 %v11568_v49  ;;  %v14418_v49 = vld [vmem:[#allocation6 + $0x48c] sm:$0xf] }
 0x2bb   :  { %6210 = vmatpush.bf16.msra.mxu1 %v11824_v13  ;;  %v12296_v13 = vor.u32 %v14505_v4, %v12293_v59  ;;  %v11952_v34 = vor.u32 %v14418_v49, %v11949_v21  ;;  %v15728_v45 = vpop.f32.mrf.mxu3  ;;  %v14402_v48 = vld [vmem:[#allocation6 + $0x40c] sm:$0xf]  ;;  %v11376_v4 = vor.u32 %v14274_v5, %v11373_v27  ;;  %v14455_v21 = vld [vmem:[#allocation6 + $0x5ac] sm:$0xf0] }
 0x2bc   :  { %6224 = vmatpush.bf16.msra.mxu2 %v12080_v63  ;;  %v11440_v63 = vor.u32 %v14290_v23, %v11437_v20  ;;  %v12197_v23 = vld [vmem:[#allocation6 + $0x6a0] sm:$0xf0]  ;;  %v12116_v20 = vor.u32 %v14463_v22, %v12115_v41  ;;  %v11507_v27 = vld [vmem:[#allocation6 + $0x110] sm:$0xf] }
 0x2bd   :  { %6127 = vmatpush.bf16.msra.mxu3 %v12296_v13  ;;  %v12083_v13 = vld [vmem:[#allocation6 + $0x590] sm:$0xf] }
 0x2be   :  { %6197 = vmatpush.bf16.msra.mxu0 %v11536_v35  ;;  %v12264_v35 = vor.u32 %v14497_v43, %v12261_v9 }
 0x2bf   :  { %6211 = vmatpush.bf16.msra.mxu1 %v11792_v38  ;;  %v4277_v38 = vadd.f32 %v15698_v62, %v4263_v3  ;;  %v11629_v62 = vld [vmem:[#allocation6 + $0x228] sm:$0xf0]  ;;  %v15734_v7 = vpop.f32.mrf.mxu1 }
 0x2c0   :  { %6225 = vmatpush.bf16.msra.mxu2 %v12048_v37  ;;  %v4332_v37 = vpop.f32.mrf.mxu2  ;;  %v15730_v36 = vpop.f32.mrf.mxu0  ;;  %v11632_v59 = vor.u32 %v14338_v16, %v11629_v62  ;;  %v14311_v16 = vld [vmem:[#allocation6 + $0x12c] sm:$0xf0] }
 0x2c1   :  { %6128 = vmatpush.bf16.msra.mxu3 %v12264_v35  ;;  %v4291_v52 = vadd.f32 %v15700_v31, %v4277_v38  ;;  %v14447_v35 = vld [vmem:[#allocation6 + $0x56c] sm:$0xf0] }
 0x2c2   :  { %6198 = vmatpush.bf16.msra.mxu0 %v11504_v40  ;;  %v11885_v40 = vld [vmem:[#allocation6 + $0x428] sm:$0xf0]  ;;  %v14375_v62 = vld [vmem:[#allocation6 + $0x32c] sm:$0xf0] }
 0x2c3   :  { %6212 = vmatpush.bf16.msra.mxu1 %v11760_v28  ;;  %v12232_v28 = vor.u32 %v14489_v44, %v12229_v11  ;;  %v4305_v29 = vadd.f32 %v15719_v60, %v4291_v52  ;;  %v11888_v31 = vor.u32 %v14402_v48, %v11885_v40  ;;  %v15738_v49 = vpop.f32.mrf.mxu3  ;;  %v14391_v60 = vld [vmem:[#allocation6 + $0x3ac] sm:$0xf0]  ;;  %v11540_v11 = vor.u32 %v14319_v26, %v11539_v53 }
 0x2c4   :  { %6226 = vmatpush.bf16.msra.mxu2 %v12016_v32  ;;  %v4317_v32 = vadd.f32 %v15708_v6, %v4303_v0  ;;  %v11860_v6 = vor.u32 %v14399_v12, %v11859_v24  ;;  %v11828_v30 = vor.u32 %v14391_v60, %v11827_v15  ;;  %v14465_v0 = vld [vmem:[#allocation6 + $0x604] sm:$0xf]  ;;  %v14439_v48 = vld [vmem:[#allocation6 + $0x52c] sm:$0xf0]  ;;  %v11508_v24 = vor.u32 %v14311_v16, %v11507_v27  ;;  %v14331_v16 = vld [vmem:[#allocation6 + $0x1d4] sm:$0xf] }
 0x2c5   :  { %6129 = vmatpush.bf16.msra.mxu3 %v12232_v28  ;;  %v4319_v43 = vadd.f32 %v15722_v18, %v4305_v29  ;;  %v14383_v18 = vld [vmem:[#allocation6 + $0x36c] sm:$0xf0] }
 0x2c6   :  { %6199 = vmatpush.bf16.msra.mxu0 %v11472_v10  ;;  %v4331_v8 = vadd.f32 %v15714_v39, %v4317_v32  ;;  %v11604_v10 = vor.u32 %v14335_v55, %v11603_v42  ;;  %v14303_v29 = vld [vmem:[#allocation6 + $0xec] sm:$0xf0] }
 0x2c7   :  { %6213 = vmatpush.bf16.msra.mxu1 %v11728_v54  ;;  %v14481_v54 = vld [vmem:[#allocation6 + $0x684] sm:$0xf]  ;;  %v4333_v51 = vadd.f32 %v4332_v37, %v4319_v43  ;;  %v4374_v44 = vpop.f32.mrf.mxu1  ;;  %v14295_v15 = vld [vmem:[#allocation6 + $0xac] sm:$0xf0] }
 0x2c8   :  { %6227 = vmatpush.bf16.msra.mxu2 %v11984_v61  ;;  %v14327_v61 = vld [vmem:[#allocation6 + $0x1ac] sm:$0xf0]  ;;  %v4386_v58 = vpop.f32.mrf.mxu2  ;;  %v12200_v39 = vor.u32 %v14481_v54, %v12197_v23  ;;  %v4345_v9 = vadd.f32 %v15716_v47, %v4331_v8  ;;  %v4360_v33 = vpop.f32.mrf.mxu0  ;;  %v12133_v37 = vld [vmem:[#allocation6 + $0x620] sm:$0xf0] }
 0x2c9   :  { %v11572_v3 = vor.u32 %v14327_v61, %v11571_v14  ;;  %v12051_v47 = vld [vmem:[#allocation6 + $0x550] sm:$0xf]  ;;  %v12136_v52 = vor.u32 %v14465_v0, %v12133_v37 }
 0x2ca   :  { %6200 = vmatpush.bf16.msra.mxu0 %v11440_v63  ;;  %v14473_v63 = vld [vmem:[#allocation6 + $0x644] sm:$0xf]  ;;  %v4359_v38 = vadd.f32 %v15730_v36, %v4345_v9  ;;  %6130 = vmatpush.bf16.msra.mxu3 %v12200_v39  ;;  %v12052_v5 = vor.u32 %v14447_v35, %v12051_v47  ;;  %v12019_v36 = vld [vmem:[#allocation6 + $0x510] sm:$0xf] }
 0x2cb   :  { %6214 = vmatpush.bf16.msra.mxu1 %v11696_v50  ;;  %v12165_v50 = vld [vmem:[#allocation6 + $0x660] sm:$0xf0]  ;;  %v4402_v55 = vpop.f32.mrf.mxu3  ;;  %v12020_v22 = vor.u32 %v14439_v48, %v12019_v36  ;;  %v11987_v8 = vld [vmem:[#allocation6 + $0x4d0] sm:$0xf]  ;;  %v14395_v36 = vld [vmem:[#allocation6 + $0x3d4] sm:$0xf] }
 0x2cc   :  { %6228 = vmatpush.bf16.msra.mxu2 %v11952_v34  ;;  %v12084_v34 = vor.u32 %v14455_v21, %v12083_v13  ;;  %v12168_v17 = vor.u32 %v14473_v63, %v12165_v50  ;;  %v4373_v40 = vadd.f32 %v15734_v7, %v4359_v38  ;;  %v11443_v61 = vld [vmem:[#allocation6 + $0x90] sm:$0xf]  ;;  %v11861_v48 = vld [vmem:[#allocation6 + $0x3f0] sm:$0xf0] }
 0x2cd   :  { %v14359_v60 = vld [vmem:[#allocation6 + $0x2ac] sm:$0xf0] }
 0x2ce   :  { %6201 = vmatpush.bf16.msra.mxu0 %v11408_v46  ;;  %v4347_v46 = vadd.f32 %v15728_v45, %v4333_v51  ;;  %6131 = vmatpush.bf16.msra.mxu3 %v12168_v17  ;;  %v11475_v45 = vld [vmem:[#allocation6 + $0xd0] sm:$0xf]  ;;  %v4387_v32 = vadd.f32 %v4386_v58, %v4373_v40 }
 0x2cf   :  { %6215 = vmatpush.bf16.msra.mxu1 %v11664_v56  ;;  %v11796_v56 = vor.u32 %v14383_v18, %v11795_v2  ;;  %v11476_v54 = vor.u32 %v14303_v29, %v11475_v45  ;;  %v11699_v58 = vld [vmem:[#allocation6 + $0x290] sm:$0xf]  ;;  %v14323_v29 = vld [vmem:[#allocation6 + $0x194] sm:$0xf] }
 0x2d0   :  { %6229 = vmatpush.bf16.msra.mxu2 %v11920_v1  ;;  %v11763_v1 = vld [vmem:[#allocation6 + $0x310] sm:$0xf]  ;;  %v4361_v28 = vadd.f32 %v4360_v33, %v4347_v46  ;;  %v4388_v42 = vpop.f32.mrf.mxu2 }
 0x2d1   :  { %v11764_v41 = vor.u32 %v14375_v62, %v11763_v1  ;;  %v11955_v13 = vld [vmem:[#allocation6 + $0x490] sm:$0xf]  ;;  %v11605_v62 = vld [vmem:[#allocation6 + $0x1f0] sm:$0xf0] }
 0x2d2   :  { %6202 = vmatpush.bf16.msra.mxu0 %v11376_v4  ;;  %v4414_v12 = vpop.f32.mrf.mxu0  ;;  %v11731_v4 = vld [vmem:[#allocation6 + $0x2d0] sm:$0xf]  ;;  %v4375_v7 = vadd.f32 %v4374_v44, %v4361_v28  ;;  %6132 = vmatpush.bf16.msra.mxu3 %v12136_v52 }
 0x2d3   :  { %6216 = vmatpush.bf16.msra.mxu1 %v11632_v59  ;;  %v14367_v59 = vld [vmem:[#allocation6 + $0x2ec] sm:$0xf0] }
 0x2d4   :  { %6230 = vmatpush.bf16.msra.mxu2 %v11888_v31  ;;  %v14431_v31 = vld [vmem:[#allocation6 + $0x4ec] sm:$0xf0]  ;;  %v11732_v23 = vor.u32 %v14367_v59, %v11731_v4  ;;  %v11573_v4 = vld [vmem:[#allocation6 + $0x1b0] sm:$0xf0] }
 0x2d5   :  { %6203 = vmatmul.bf16.vlgmr.msra.gmra.mxu0 %v15666_v57  ;;  %v11988_v14 = vor.u32 %v14431_v31, %v11987_v8  ;;  %v14423_v21 = vld [vmem:[#allocation6 + $0x4ac] sm:$0xf0]  ;;  %v14387_v31 = vld [vmem:[#allocation6 + $0x394] sm:$0xf] }
 0x2d6   :  { %6251 = vmatpush.bf16.msrb.mxu0 %v11604_v10  ;;  %6217 = vmatmul.bf16.vlgmr.msra.gmra.mxu1 %v15668_v19  ;;  %v4428_v10 = vpop.f32.mrf.mxu1  ;;  %v11956_v51 = vor.u32 %v14423_v21, %v11955_v13  ;;  %v11411_v33 = vld [vmem:[#allocation6 + $0x50] sm:$0xf] }
 0x2d7   :  { %6265 = vmatpush.bf16.msrb.mxu1 %v11860_v6  ;;  %6231 = vmatmul.bf16.vlgmr.msra.gmra.mxu2 %v15664_v25  ;;  %v4401_v6 = vadd.f32 %v15738_v49, %v4387_v32  ;;  %v11700_v49 = vor.u32 %v14359_v60, %v11699_v58  ;;  %v14351_v53 = vld [vmem:[#allocation6 + $0x26c] sm:$0xf0]  ;;  %v14315_v58 = vld [vmem:[#allocation6 + $0x154] sm:$0xf] }
 0x2d8   :  { %6279 = vmatpush.bf16.msrb.mxu2 %v12116_v20  ;;  %v4389_v20 = vadd.f32 %v4388_v42, %v4375_v7  ;;  %v11923_v26 = vld [vmem:[#allocation6 + $0x450] sm:$0xf]  ;;  %v14459_v42 = vld [vmem:[#allocation6 + $0x5d4] sm:$0xf] }
 0x2d9   :  { %v4415_v43 = vadd.f32 %v4414_v12, %v4401_v6  ;;  %v14415_v2 = vld [vmem:[#allocation6 + $0x46c] sm:$0xf0]  ;;  %v11829_v7 = vld [vmem:[#allocation6 + $0x3b0] sm:$0xf0]  ;;  %v14526_v6 = vld [vmem:[#allocation6 + $0x7e4] sm:$0xf0] }
 0x2da   :  { %6252 = vmatpush.bf16.msrb.mxu0 %v11572_v3  ;;  %v4442_v39 = vpop.f32.mrf.mxu2  ;;  %v11444_v3 = vor.u32 %v14295_v15, %v11443_v61  ;;  %v4403_v63 = vadd.f32 %v4402_v55, %v4389_v20  ;;  %v4416_v50 = vpop.f32.mrf.mxu0  ;;  %v11379_v38 = vld [vmem:[#allocation6 + $0x10] sm:$0xf]  ;;  %v12117_v55 = vld [vmem:[#allocation6 + $0x5f0] sm:$0xf0]  ;;  %v11576_v61 = vor.u32 %v14323_v29, %v11573_v4  ;;  %v11832_v15 = vor.u32 %v14387_v31, %v11829_v7 }
 0x2db   :  { %6266 = vmatpush.bf16.msrb.mxu1 %v11828_v30  ;;  %v4456_v9 = vpop.f32.mrf.mxu3  ;;  %v14287_v30 = vld [vmem:[#allocation6 + $0x6c] sm:$0xf0]  ;;  %v4429_v18 = vadd.f32 %v4428_v10, %v4415_v43  ;;  %v12120_v8 = vor.u32 %v14459_v42, %v12117_v55  ;;  %v14451_v10 = vld [vmem:[#allocation6 + $0x594] sm:$0xf] }
 0x2dc   :  { %6280 = vmatpush.bf16.msrb.mxu2 %v12084_v34  ;;  %v11667_v34 = vld [vmem:[#allocation6 + $0x250] sm:$0xf]  ;;  %v4417_v47 = vadd.f32 %v4416_v50, %v4403_v63  ;;  %v11412_v35 = vor.u32 %v14287_v30, %v11411_v33  ;;  %v11541_v60 = vld [vmem:[#allocation6 + $0x170] sm:$0xf0]  ;;  %v12331_v50 = vld [vmem:[#allocation6 + $0x788] sm:$0xf] }
 0x2dd   :  { %v4443_v17 = vadd.f32 %v4442_v39, %v4429_v18  ;;  %v11668_v44 = vor.u32 %v14351_v53, %v11667_v34  ;;  %v14279_v0 = vld [vmem:[#allocation6 + $0x2c] sm:$0xf0]  ;;  %v14379_v39 = vld [vmem:[#allocation6 + $0x354] sm:$0xf] }
 0x2de   :  { %6253 = vmatpush.bf16.msrb.mxu0 %v11540_v11  ;;  %v11924_v11 = vor.u32 %v14415_v2, %v11923_v26  ;;  %v11635_v37 = vld [vmem:[#allocation6 + $0x210] sm:$0xf]  ;;  %v11380_v28 = vor.u32 %v14279_v0, %v11379_v38  ;;  %v12053_v63 = vld [vmem:[#allocation6 + $0x570] sm:$0xf0]  ;;  %v12299_v38 = vld [vmem:[#allocation6 + $0x748] sm:$0xf] }
 0x2df   :  { %6267 = vmatpush.bf16.msrb.mxu1 %v11796_v56  ;;  %v14343_v46 = vld [vmem:[#allocation6 + $0x22c] sm:$0xf0]  ;;  %v4430_v56 = vpop.f32.mrf.mxu1  ;;  %v14307_v30 = vld [vmem:[#allocation6 + $0x114] sm:$0xf] }
 0x2e0   :  { %6281 = vmatpush.bf16.msrb.mxu2 %v12052_v5  ;;  %v11891_v5 = vld [vmem:[#allocation6 + $0x410] sm:$0xf]  ;;  %v4431_v1 = vadd.f32 %v4430_v56, %v4417_v47  ;;  %v11636_v52 = vor.u32 %v14343_v46, %v11635_v37  ;;  %v11509_v34 = vld [vmem:[#allocation6 + $0x130] sm:$0xf0] }
 0x2e1   :  { %v14407_v27 = vld [vmem:[#allocation6 + $0x42c] sm:$0xf0]  ;;  %v14371_v2 = vld [vmem:[#allocation6 + $0x314] sm:$0xf] }
 0x2e2   :  { %6254 = vmatpush.bf16.msrb.mxu0 %v11508_v24  ;;  %v4444_v40 = vpop.f32.mrf.mxu2  ;;  %v4457_v24 = vadd.f32 %v4456_v9, %v4443_v17  ;;  %v11892_v32 = vor.u32 %v14407_v27, %v11891_v5  ;;  %v11797_v9 = vld [vmem:[#allocation6 + $0x370] sm:$0xf0]  ;;  %v14510_v17 = vld [vmem:[#allocation6 + $0x764] sm:$0xf0] }
 0x2e3   :  { %6268 = vmatpush.bf16.msrb.mxu1 %v11764_v41  ;;  %v4445_v45 = vadd.f32 %v4444_v40, %v4431_v1  ;;  %v4458_v12 = vpop.f32.mrf.mxu3  ;;  %v11608_v41 = vor.u32 %v14331_v16, %v11605_v62  ;;  %v11800_v33 = vor.u32 %v14379_v39, %v11797_v9  ;;  %v11765_v18 = vld [vmem:[#allocation6 + $0x330] sm:$0xf0]  ;;  %v12300_v56 = vor.u32 %v14510_v17, %v12299_v38  ;;  %v12267_v62 = vld [vmem:[#allocation6 + $0x708] sm:$0xf] }
 0x2e4   :  { %6282 = vmatpush.bf16.msrb.mxu2 %v12020_v22  ;;  %v11864_v22 = vor.u32 %v14395_v36, %v11861_v48  ;;  %v4464_v20 = vmax.f32 %v4457_v24, 0.0  ;;  %v14435_v47 = vld [vmem:[#allocation6 + $0x514] sm:$0xf]  ;;  %v14502_v36 = vld [vmem:[#allocation6 + $0x724] sm:$0xf0] }
 0x2e5   :  { %v4459_v59 = vadd.f32 %v4458_v12, %v4445_v45  ;;  %v14299_v0 = vld [vmem:[#allocation6 + $0xd4] sm:$0xf]  ;;  %v12268_v55 = vor.u32 %v14502_v36, %v12267_v62  ;;  %v12139_v38 = vld [vmem:[#allocation6 + $0x608] sm:$0xf]  ;;  %v12365_v62 = vld [vmem:[#allocation6 + $0x7e8] sm:$0xf0] }
 0x2e6   :  { %6255 = vmatpush.bf16.msrb.mxu0 %v11476_v54  ;;  %v12085_v54 = vld [vmem:[#allocation6 + $0x5b0] sm:$0xf0] }
 0x2e7   :  { %6269 = vmatpush.bf16.msrb.mxu1 %v11732_v23  ;;  %v12363_v23 = vld [vmem:[#allocation6 + $0x7c8] sm:$0xf]  ;;  %v12088_v21 = vor.u32 %v14451_v10, %v12085_v54  ;;  %v11477_v37 = vld [vmem:[#allocation6 + $0xf0] sm:$0xf0] }
 0x2e8   :  { %6283 = vmatpush.bf16.msrb.mxu2 %v11988_v14  ;;  %v4468_v14 = vmax.f32 %v4459_v59, 0.0  ;;  %v12364_v43 = vor.u32 %v14526_v6, %v12363_v23  ;;  %v14363_v5 = vld [vmem:[#allocation6 + $0x2d4] sm:$0xf]  ;;  %v11480_v48 = vor.u32 %v14299_v0, %v11477_v37  ;;  %v11579_v0 = vld [vmem:[#allocation6 + $0x198] sm:$0xf] }
 0x2e9   :  { %v11733_v27 = vld [vmem:[#allocation6 + $0x2f0] sm:$0xf0]  ;;  %v14328_v37 = vld [vmem:[#allocation6 + $0x1b4] sm:$0xf0] }
 0x2ea   :  { %6256 = vmatpush.bf16.msrb.mxu0 %v11444_v3  ;;  %v15749_v13 = vpack.c.bf16 %v4468_v14, %v4464_v20  ;;  %v14443_v3 = vld [vmem:[#allocation6 + $0x554] sm:$0xf]  ;;  %v11736_v40 = vor.u32 %v14363_v5, %v11733_v27  ;;  %v12203_v20 = vld [vmem:[#allocation6 + $0x688] sm:$0xf]  ;;  %v14392_v5 = vld [vmem:[#allocation6 + $0x3b4] sm:$0xf0] }
 0x2eb   :  { %6270 = vmatpush.bf16.msrb.mxu1 %v11700_v49  ;;  %v14518_v49 = vld [vmem:[#allocation6 + $0x7a4] sm:$0xf0]  ;;  %v12056_v53 = vor.u32 %v14443_v3, %v12053_v63  ;;  %v14427_v16 = vld [vmem:[#allocation6 + $0x4d4] sm:$0xf]  ;;  %v12091_v27 = vld [vmem:[#allocation6 + $0x598] sm:$0xf] }
 0x2ec   :  { %6284 = vmatpush.bf16.msrb.mxu2 %v11956_v51  ;;  %6077 = vmatmul.bf16.vlgmr.msrb.gmra.mxu3 %v15749_v13  ;;  %v11544_v51 = vor.u32 %v14315_v58, %v11541_v60  ;;  %v12332_v26 = vor.u32 %v14518_v49, %v12331_v50  ;;  %v11989_v1 = vld [vmem:[#allocation6 + $0x4f0] sm:$0xf0]  ;;  %v14486_v14 = vld [vmem:[#allocation6 + $0x6a4] sm:$0xf0] }
 0x2ed   :  { %6181 = vmatpush.bf16.msrb.mxu3 %v12364_v43  ;;  %v11992_v42 = vor.u32 %v14427_v16, %v11989_v1  ;;  %v14355_v24 = vld [vmem:[#allocation6 + $0x294] sm:$0xf]  ;;  %v12204_v39 = vor.u32 %v14486_v14, %v12203_v20  ;;  %v12171_v50 = vld [vmem:[#allocation6 + $0x648] sm:$0xf]  ;;  %v14456_v16 = vld [vmem:[#allocation6 + $0x5b4] sm:$0xf0] }
 0x2ee   :  { %6257 = vmatpush.bf16.msrb.mxu0 %v11412_v35  ;;  %v12021_v35 = vld [vmem:[#allocation6 + $0x530] sm:$0xf0]  ;;  %v14478_v49 = vld [vmem:[#allocation6 + $0x664] sm:$0xf0]  ;;  %v14522_v1 = vld [vmem:[#allocation6 + $0x7cc] sm:$0xf] }
 0x2ef   :  { %6271 = vmatpush.bf16.msrb.mxu1 %v11668_v44  ;;  %v11512_v44 = vor.u32 %v14307_v30, %v11509_v34  ;;  %v12024_v46 = vor.u32 %v14435_v47, %v12021_v35  ;;  %v11701_v45 = vld [vmem:[#allocation6 + $0x2b0] sm:$0xf0]  ;;  %v11867_v30 = vld [vmem:[#allocation6 + $0x3d8] sm:$0xf]  ;;  %v12172_v35 = vor.u32 %v14478_v49, %v12171_v50  ;;  %v14506_v20 = vld [vmem:[#allocation6 + $0x74c] sm:$0xf] }
 0x2f0   :  { %6285 = vmatpush.bf16.msrb.mxu2 %v11924_v11  ;;  %v11768_v11 = vor.u32 %v14371_v2, %v11765_v18  ;;  %v11957_v12 = vld [vmem:[#allocation6 + $0x4b0] sm:$0xf0]  ;;  %v11704_v4 = vor.u32 %v14355_v24, %v11701_v45  ;;  %v14400_v34 = vld [vmem:[#allocation6 + $0x3f4] sm:$0xf0]  ;;  %v12301_v14 = vld [vmem:[#allocation6 + $0x768] sm:$0xf0] }
 0x2f1   :  { %6182 = vmatpush.bf16.msrb.mxu3 %v12332_v26  ;;  %v14283_v59 = vld [vmem:[#allocation6 + $0x54] sm:$0xf]  ;;  %v12123_v2 = vld [vmem:[#allocation6 + $0x5d8] sm:$0xf]  ;;  %v14498_v50 = vld [vmem:[#allocation6 + $0x70c] sm:$0xf] }
 0x2f2   :  { %6258 = vmatpush.bf16.msrb.mxu0 %v11380_v28  ;;  %v14291_v28 = vld [vmem:[#allocation6 + $0x94] sm:$0xf]  ;;  %v14464_v18 = vld [vmem:[#allocation6 + $0x5f4] sm:$0xf0]  ;;  %v12269_v49 = vld [vmem:[#allocation6 + $0x728] sm:$0xf0] }
 0x2f3   :  { %6272 = vmatpush.bf16.msrb.mxu1 %v11636_v52  ;;  %v11445_v52 = vld [vmem:[#allocation6 + $0xb0] sm:$0xf0]  ;;  %v11803_v24 = vld [vmem:[#allocation6 + $0x358] sm:$0xf] }
 0x2f4   :  { %6286 = vmatpush.bf16.msrb.mxu2 %v11892_v32  ;;  %v14419_v32 = vld [vmem:[#allocation6 + $0x494] sm:$0xf]  ;;  %v11448_v29 = vor.u32 %v14291_v28, %v11445_v52  ;;  %v11547_v28 = vld [vmem:[#allocation6 + $0x158] sm:$0xf] }
 0x2f5   :  { %6259 = vmatmul.bf16.vlgmr.msrb.gmra.mxu0 %v15666_v57  ;;  %6183 = vmatpush.bf16.msrb.mxu3 %v12300_v56  ;;  %v11960_v31 = vor.u32 %v14419_v32, %v11957_v12  ;;  %v14347_v10 = vld [vmem:[#allocation6 + $0x254] sm:$0xf]  ;;  %v11835_v56 = vld [vmem:[#allocation6 + $0x398] sm:$0xf] }
 0x2f6   :  { %6307 = vmatpush.bf16.msra.mxu0 %v11608_v41  ;;  %6273 = vmatmul.bf16.vlgmr.msrb.gmra.mxu1 %v15668_v19  ;;  %v12235_v41 = vld [vmem:[#allocation6 + $0x6c8] sm:$0xf]  ;;  %v11669_v54 = vld [vmem:[#allocation6 + $0x270] sm:$0xf0]  ;;  %v14320_v52 = vld [vmem:[#allocation6 + $0x174] sm:$0xf0] }
 0x2f7   :  { %6321 = vmatpush.bf16.msra.mxu1 %v11864_v22  ;;  %6287 = vmatmul.bf16.vlgmr.msrb.gmra.mxu2 %v15664_v25  ;;  %v14494_v22 = vld [vmem:[#allocation6 + $0x6e4] sm:$0xf0]  ;;  %v14411_v23 = vld [vmem:[#allocation6 + $0x454] sm:$0xf]  ;;  %v14384_v45 = vld [vmem:[#allocation6 + $0x374] sm:$0xf0] }
 0x2f8   :  { %6335 = vmatpush.bf16.msra.mxu2 %v12120_v8  ;;  %v11413_v8 = vld [vmem:[#allocation6 + $0x70] sm:$0xf0]  ;;  %v12236_v7 = vor.u32 %v14494_v22, %v12235_v41  ;;  %v12059_v32 = vld [vmem:[#allocation6 + $0x558] sm:$0xf]  ;;  %v14514_v41 = vld [vmem:[#allocation6 + $0x78c] sm:$0xf] }
 0x2f9   :  { %6184 = vmatpush.bf16.msrb.mxu3 %v12268_v55  ;;  %v11925_v6 = vld [vmem:[#allocation6 + $0x470] sm:$0xf0]  ;;  %v12368_v55 = vor.u32 %v14522_v1, %v12365_v62  ;;  %v14448_v12 = vld [vmem:[#allocation6 + $0x574] sm:$0xf0]  ;;  %v12333_v22 = vld [vmem:[#allocation6 + $0x7a8] sm:$0xf0] }
 0x2fa   :  { %6308 = vmatpush.bf16.msra.mxu0 %v11576_v61  ;;  %v11416_v61 = vor.u32 %v14283_v59, %v11413_v8  ;;  %v14275_v58 = vld [vmem:[#allocation6 + $0x14] sm:$0xf]  ;;  %v11928_v43 = vor.u32 %v14411_v23, %v11925_v6  ;;  %v11515_v59 = vld [vmem:[#allocation6 + $0x118] sm:$0xf]  ;;  %v14482_v62 = vld [vmem:[#allocation6 + $0x68c] sm:$0xf] }
 0x2fb   :  { %6322 = vmatpush.bf16.msra.mxu1 %v11832_v15  ;;  %v11672_v15 = vor.u32 %v14347_v10, %v11669_v54  ;;  %v11381_v60 = vld [vmem:[#allocation6 + $0x30] sm:$0xf0]  ;;  %v14312_v8 = vld [vmem:[#allocation6 + $0x134] sm:$0xf0] }
 0x2fc   :  { %6336 = vmatpush.bf16.msra.mxu2 %v12088_v21  ;;  %6133 = vmatmul.bf16.vlgmr.msra.gmra.mxu3 %v15749_v13  ;;  %v14339_v21 = vld [vmem:[#allocation6 + $0x214] sm:$0xf]  ;;  %v11771_v10 = vld [vmem:[#allocation6 + $0x318] sm:$0xf] }
 0x2fd   :  { %6185 = vmatpush.bf16.msrb.mxu3 %v12236_v7  ;;  %v11637_v9 = vld [vmem:[#allocation6 + $0x230] sm:$0xf0]  ;;  %v12336_v7 = vor.u32 %v14514_v41, %v12333_v22  ;;  %v14376_v54 = vld [vmem:[#allocation6 + $0x334] sm:$0xf0]  ;;  %v14474_v41 = vld [vmem:[#allocation6 + $0x64c] sm:$0xf] }
 0x2fe   :  { %6309 = vmatpush.bf16.msra.mxu0 %v11544_v51  ;;  %v14403_v3 = vld [vmem:[#allocation6 + $0x414] sm:$0xf]  ;;  %v11611_v51 = vld [vmem:[#allocation6 + $0x1d8] sm:$0xf]  ;;  %v11640_v26 = vor.u32 %v14339_v21, %v11637_v9  ;;  %v12173_v22 = vld [vmem:[#allocation6 + $0x668] sm:$0xf0] }
 0x2ff   :  { %6323 = vmatpush.bf16.msra.mxu1 %v11800_v33  ;;  %v11893_v63 = vld [vmem:[#allocation6 + $0x430] sm:$0xf0]  ;;  %v14336_v33 = vld [vmem:[#allocation6 + $0x1f4] sm:$0xf0] }
 0x300   :  { %6337 = vmatpush.bf16.msra.mxu2 %v12056_v53  ;;  %v11384_v53 = vor.u32 %v14275_v58, %v11381_v60  ;;  %v11896_v47 = vor.u32 %v14403_v3, %v11893_v63  ;;  %v11612_v17 = vor.u32 %v14336_v33, %v11611_v51  ;;  %v12027_v23 = vld [vmem:[#allocation6 + $0x518] sm:$0xf] }
 0x301   :  { %6186 = vmatpush.bf16.msrb.mxu3 %v12204_v39  ;;  %v14440_v6 = vld [vmem:[#allocation6 + $0x534] sm:$0xf0] }
 0x302   :  { %6310 = vmatpush.bf16.msra.mxu0 %v11512_v44  ;;  %v11868_v44 = vor.u32 %v14400_v34, %v11867_v30  ;;  %v11483_v58 = vld [vmem:[#allocation6 + $0xd8] sm:$0xf]  ;;  %v12028_v21 = vor.u32 %v14440_v6, %v12027_v23  ;;  %v12176_v6 = vor.u32 %v14474_v41, %v12173_v22  ;;  %v12275_v41 = vld [vmem:[#allocation6 + $0x710] sm:$0xf] }
 0x303   :  { %6324 = vmatpush.bf16.msra.mxu1 %v11768_v11  ;;  %v14470_v11 = vld [vmem:[#allocation6 + $0x624] sm:$0xf0]  ;;  %v14304_v60 = vld [vmem:[#allocation6 + $0xf4] sm:$0xf0]  ;;  %v14503_v22 = vld [vmem:[#allocation6 + $0x72c] sm:$0xf0] }
 0x304   :  { %6338 = vmatpush.bf16.msra.mxu2 %v12024_v46  ;;  %v12124_v46 = vor.u32 %v14464_v18, %v12123_v2  ;;  %v12140_v36 = vor.u32 %v14470_v11, %v12139_v38  ;;  %v11739_v39 = vld [vmem:[#allocation6 + $0x2d8] sm:$0xf]  ;;  %v11484_v51 = vor.u32 %v14304_v60, %v11483_v58  ;;  %v14490_v38 = vld [vmem:[#allocation6 + $0x6cc] sm:$0xf]  ;;  %v14324_v58 = vld [vmem:[#allocation6 + $0x19c] sm:$0xf] }
 0x305   :  { %6187 = vmatpush.bf16.msrb.mxu3 %v12172_v35  ;;  %v14368_v9 = vld [vmem:[#allocation6 + $0x2f4] sm:$0xf0]  ;;  %v11581_v60 = vld [vmem:[#allocation6 + $0x1b8] sm:$0xf0] }
 0x306   :  { %6311 = vmatpush.bf16.msra.mxu0 %v11480_v48  ;;  %v11580_v48 = vor.u32 %v14328_v37, %v11579_v0  ;;  %v11995_v3 = vld [vmem:[#allocation6 + $0x4d8] sm:$0xf]  ;;  %v11740_v33 = vor.u32 %v14368_v9, %v11739_v39  ;;  %v11837_v39 = vld [vmem:[#allocation6 + $0x3b8] sm:$0xf0] }
 0x307   :  { %6325 = vmatpush.bf16.msra.mxu1 %v11736_v40  ;;  %v11836_v40 = vor.u32 %v14392_v5, %v11835_v56  ;;  %v14432_v63 = vld [vmem:[#allocation6 + $0x4f4] sm:$0xf0]  ;;  %v14452_v9 = vld [vmem:[#allocation6 + $0x59c] sm:$0xf] }
 0x308   :  { %6339 = vmatpush.bf16.msra.mxu2 %v11992_v42  ;;  %v12092_v42 = vor.u32 %v14456_v16, %v12091_v27  ;;  %v11451_v30 = vld [vmem:[#allocation6 + $0x98] sm:$0xf] }
 0x309   :  { %6188 = vmatpush.bf16.msrb.mxu3 %v12140_v36  ;;  %v14296_v34 = vld [vmem:[#allocation6 + $0xb4] sm:$0xf0]  ;;  %v12205_v36 = vld [vmem:[#allocation6 + $0x6a8] sm:$0xf0] }
 0x30a   :  { %6312 = vmatpush.bf16.msra.mxu0 %v11448_v29  ;;  %v11548_v29 = vor.u32 %v14320_v52, %v11547_v28  ;;  %v11707_v2 = vld [vmem:[#allocation6 + $0x298] sm:$0xf] }
 0x30b   :  { %6326 = vmatpush.bf16.msra.mxu1 %v11704_v4  ;;  %v11804_v4 = vor.u32 %v14384_v45, %v11803_v24  ;;  %v14360_v18 = vld [vmem:[#allocation6 + $0x2b4] sm:$0xf0]  ;;  %v12208_v24 = vor.u32 %v14482_v62, %v12205_v36  ;;  %v12307_v62 = vld [vmem:[#allocation6 + $0x750] sm:$0xf] }
 0x30c   :  { %6340 = vmatpush.bf16.msra.mxu2 %v11960_v31  ;;  %v12060_v31 = vor.u32 %v14448_v12, %v12059_v32  ;;  %6189 = vmatmul.bf16.vlgmr.msrb.gmra.mxu3 %v15749_v13  ;;  %v14424_v35 = vld [vmem:[#allocation6 + $0x4b4] sm:$0xf0]  ;;  %v11708_v11 = vor.u32 %v14360_v18, %v11707_v2  ;;  %v14380_v2 = vld [vmem:[#allocation6 + $0x35c] sm:$0xf]  ;;  %v14511_v36 = vld [vmem:[#allocation6 + $0x76c] sm:$0xf0] }
 0x30d   :  { %6237 = vmatpush.bf16.msra.mxu3 %v12368_v55  ;;  %v11419_v0 = vld [vmem:[#allocation6 + $0x58] sm:$0xf]  ;;  %v11805_v18 = vld [vmem:[#allocation6 + $0x378] sm:$0xf0] }
 0x30e   :  { %6313 = vmatpush.bf16.msra.mxu0 %v11416_v61  ;;  %v11516_v61 = vor.u32 %v14312_v8, %v11515_v59  ;;  %v14288_v37 = vld [vmem:[#allocation6 + $0x74] sm:$0xf0]  ;;  %v14396_v59 = vld [vmem:[#allocation6 + $0x3dc] sm:$0xf] }
 0x30f   :  { %6327 = vmatpush.bf16.msra.mxu1 %v11672_v15  ;;  %v11772_v15 = vor.u32 %v14376_v54, %v11771_v10  ;;  %v11675_v5 = vld [vmem:[#allocation6 + $0x258] sm:$0xf]  ;;  %v11869_v8 = vld [vmem:[#allocation6 + $0x3f8] sm:$0xf0] }
 0x310   :  { %6341 = vmatpush.bf16.msra.mxu2 %v11928_v43  ;;  %v12304_v43 = vor.u32 %v14506_v20, %v12301_v14  ;;  %v14352_v27 = vld [vmem:[#allocation6 + $0x274] sm:$0xf0]  ;;  %v14460_v10 = vld [vmem:[#allocation6 + $0x5dc] sm:$0xf]  ;;  %v14466_v20 = vld [vmem:[#allocation6 + $0x60c] sm:$0xf] }
 0x311   :  { %6238 = vmatpush.bf16.msra.mxu3 %v12336_v7  ;;  %v11931_v16 = vld [vmem:[#allocation6 + $0x458] sm:$0xf]  ;;  %v12125_v54 = vld [vmem:[#allocation6 + $0x5f8] sm:$0xf0] }
 0x312   :  { %6314 = vmatpush.bf16.msra.mxu0 %v11384_v53  ;;  %v11996_v53 = vor.u32 %v14432_v63, %v11995_v3  ;;  %v14416_v1 = vld [vmem:[#allocation6 + $0x474] sm:$0xf0]  ;;  %v12093_v3 = vld [vmem:[#allocation6 + $0x5b8] sm:$0xf0]  ;;  %v12371_v63 = vld [vmem:[#allocation6 + $0x7d0] sm:$0xf] }
 0x313   :  { %6328 = vmatpush.bf16.msra.mxu1 %v11640_v26  ;;  %v12272_v26 = vor.u32 %v14498_v50, %v12269_v49  ;;  %v11387_v28 = vld [vmem:[#allocation6 + $0x18] sm:$0xf]  ;;  %v11932_v55 = vor.u32 %v14416_v1, %v11931_v16  ;;  %v14527_v50 = vld [vmem:[#allocation6 + $0x7ec] sm:$0xf0]  ;;  %v14436_v16 = vld [vmem:[#allocation6 + $0x51c] sm:$0xf] }
 0x314   :  { %6342 = vmatpush.bf16.msra.mxu2 %v11896_v47  ;;  %v11963_v47 = vld [vmem:[#allocation6 + $0x498] sm:$0xf]  ;;  %v12029_v1 = vld [vmem:[#allocation6 + $0x538] sm:$0xf0] }
 0x315   :  { %6315 = vmatmul.bf16.vlgmr.msra.gmra.mxu0 %v15666_v57  ;;  %6239 = vmatpush.bf16.msra.mxu3 %v12304_v43  ;;  %v14280_v52 = vld [vmem:[#allocation6 + $0x34] sm:$0xf0]  ;;  %v14388_v43 = vld [vmem:[#allocation6 + $0x39c] sm:$0xf] }
 0x316   :  { %6363 = vmatpush.bf16.msrb.mxu0 %v11612_v17  ;;  %6329 = vmatmul.bf16.vlgmr.msra.gmra.mxu1 %v15668_v19  ;;  %v12237_v17 = vld [vmem:[#allocation6 + $0x6e8] sm:$0xf0]  ;;  %v14344_v45 = vld [vmem:[#allocation6 + $0x234] sm:$0xf0] }
 0x317   :  { %6377 = vmatpush.bf16.msrb.mxu1 %v11868_v44  ;;  %6343 = vmatmul.bf16.vlgmr.msra.gmra.mxu2 %v15664_v25  ;;  %v11452_v44 = vor.u32 %v14296_v34, %v11451_v30  ;;  %v12240_v56 = vor.u32 %v14490_v38, %v12237_v17  ;;  %v11899_v32 = vld [vmem:[#allocation6 + $0x418] sm:$0xf]  ;;  %v14316_v30 = vld [vmem:[#allocation6 + $0x15c] sm:$0xf]  ;;  %v12339_v38 = vld [vmem:[#allocation6 + $0x790] sm:$0xf] }
 0x318   :  { %6391 = vmatpush.bf16.msrb.mxu2 %v12124_v46  ;;  %v11964_v46 = vor.u32 %v14424_v35, %v11963_v47  ;;  %v14408_v12 = vld [vmem:[#allocation6 + $0x434] sm:$0xf0]  ;;  %v11549_v34 = vld [vmem:[#allocation6 + $0x178] sm:$0xf0]  ;;  %v14519_v17 = vld [vmem:[#allocation6 + $0x7ac] sm:$0xf0] }
 0x319   :  { %6240 = vmatpush.bf16.msra.mxu3 %v12272_v26  ;;  %v11900_v23 = vor.u32 %v14408_v12, %v11899_v32  ;;  %v12372_v26 = vor.u32 %v14527_v50, %v12371_v63  ;;  %v14444_v47 = vld [vmem:[#allocation6 + $0x55c] sm:$0xf]  ;;  %v12211_v50 = vld [vmem:[#allocation6 + $0x690] sm:$0xf] }
 0x31a   :  { %6364 = vmatpush.bf16.msrb.mxu0 %v11580_v48  ;;  %v11420_v48 = vor.u32 %v14288_v37, %v11419_v0  ;;  %v12061_v35 = vld [vmem:[#allocation6 + $0x578] sm:$0xf0] }
 0x31b   :  { %6378 = vmatpush.bf16.msrb.mxu1 %v11836_v40  ;;  %v11676_v40 = vor.u32 %v14352_v27, %v11675_v5  ;;  %v14308_v0 = vld [vmem:[#allocation6 + $0x11c] sm:$0xf] }
 0x31c   :  { %6392 = vmatpush.bf16.msrb.mxu2 %v12092_v42  ;;  %v11643_v42 = vld [vmem:[#allocation6 + $0x218] sm:$0xf]  ;;  %v11517_v37 = vld [vmem:[#allocation6 + $0x138] sm:$0xf0] }
 0x31d   :  { %6241 = vmatpush.bf16.msra.mxu3 %v12240_v56  ;;  %v11644_v7 = vor.u32 %v14344_v45, %v11643_v42  ;;  %v12340_v56 = vor.u32 %v14519_v17, %v12339_v38  ;;  %v14372_v5 = vld [vmem:[#allocation6 + $0x31c] sm:$0xf]  ;;  %v12032_v42 = vor.u32 %v14436_v16, %v12029_v1  ;;  %v12179_v38 = vld [vmem:[#allocation6 + $0x650] sm:$0xf]  ;;  %v12499_v16 = vld [vmem:[#allocation9 + $0xe0] sm:$0xf] }
 0x31e   :  { %6365 = vmatpush.bf16.msrb.mxu0 %v11548_v29  ;;  %v14332_v29 = vld [vmem:[#allocation6 + $0x1dc] sm:$0xf]  ;;  %v14479_v17 = vld [vmem:[#allocation6 + $0x66c] sm:$0xf0]  ;;  %v14559_v1 = vld [vmem:[#allocation9 + $0xec] sm:$0xf0] }
 0x31f   :  { %6379 = vmatpush.bf16.msrb.mxu1 %v11804_v4  ;;  %v11613_v4 = vld [vmem:[#allocation6 + $0x1f8] sm:$0xf0] }
 0x320   :  { %6393 = vmatpush.bf16.msrb.mxu2 %v12060_v31  ;;  %v11388_v31 = vor.u32 %v14280_v52, %v11387_v28  ;;  %v11616_v14 = vor.u32 %v14332_v29, %v11613_v4  ;;  %v11773_v27 = vld [vmem:[#allocation6 + $0x338] sm:$0xf0] }
 0x321   :  { %6242 = vmatpush.bf16.msra.mxu3 %v12208_v24  ;;  %v14300_v28 = vld [vmem:[#allocation6 + $0xdc] sm:$0xf] }
 0x322   :  { %6366 = vmatpush.bf16.msrb.mxu0 %v11516_v61  ;;  %v11872_v61 = vor.u32 %v14396_v59, %v11869_v8  ;;  %v11485_v52 = vld [vmem:[#allocation6 + $0xf8] sm:$0xf0] }
 0x323   :  { %6380 = vmatpush.bf16.msrb.mxu1 %v11772_v15  ;;  %v12141_v15 = vld [vmem:[#allocation6 + $0x628] sm:$0xf0]  ;;  %v14364_v24 = vld [vmem:[#allocation6 + $0x2dc] sm:$0xf]  ;;  %v11488_v29 = vor.u32 %v14300_v28, %v11485_v52  ;;  %v12341_v28 = vld [vmem:[#allocation6 + $0x7b0] sm:$0xf0] }
 0x324   :  { %6394 = vmatpush.bf16.msrb.mxu2 %v12028_v21  ;;  %v12128_v21 = vor.u32 %v14460_v10, %v12125_v54  ;;  %v12144_v49 = vor.u32 %v14466_v20, %v12141_v15  ;;  %v11741_v45 = vld [vmem:[#allocation6 + $0x2f8] sm:$0xf0]  ;;  %v12243_v20 = vld [vmem:[#allocation6 + $0x6d0] sm:$0xf]  ;;  %v12483_v52 = vld [vmem:[#allocation9 + $0xc0] sm:$0xf] }
 0x325   :  { %6243 = vmatpush.bf16.msra.mxu3 %v12176_v6  ;;  %v14428_v32 = vld [vmem:[#allocation6 + $0x4dc] sm:$0xf]  ;;  %v11744_v4 = vor.u32 %v14364_v24, %v11741_v45  ;;  %v14507_v45 = vld [vmem:[#allocation6 + $0x754] sm:$0xf] }
 0x326   :  { %6367 = vmatpush.bf16.msrb.mxu0 %v11484_v51  ;;  %v11584_v51 = vor.u32 %v14324_v58, %v11581_v60  ;;  %v11997_v12 = vld [vmem:[#allocation6 + $0x4f8] sm:$0xf0] }
 0x327   :  { %6381 = vmatpush.bf16.msrb.mxu1 %v11740_v33  ;;  %v11840_v33 = vor.u32 %v14388_v43, %v11837_v39  ;;  %v14292_v59 = vld [vmem:[#allocation6 + $0x9c] sm:$0xf] }
 0x328   :  { %6395 = vmatpush.bf16.msrb.mxu2 %v11996_v53  ;;  %v12096_v53 = vor.u32 %v14452_v9, %v12093_v3  ;;  %v11453_v8 = vld [vmem:[#allocation6 + $0xb8] sm:$0xf0] }
 0x329   :  { %6244 = vmatpush.bf16.msra.mxu3 %v12144_v49  ;;  %v14356_v10 = vld [vmem:[#allocation6 + $0x29c] sm:$0xf]  ;;  %v14487_v49 = vld [vmem:[#allocation6 + $0x6ac] sm:$0xf0] }
 0x32a   :  { %6368 = vmatpush.bf16.msrb.mxu0 %v11452_v44  ;;  %v11552_v44 = vor.u32 %v14316_v30, %v11549_v34  ;;  %v11709_v54 = vld [vmem:[#allocation6 + $0x2b8] sm:$0xf0] }
 0x32b   :  { %6382 = vmatpush.bf16.msrb.mxu1 %v11708_v11  ;;  %v11808_v11 = vor.u32 %v14380_v2, %v11805_v18  ;;  %v11965_v6 = vld [vmem:[#allocation6 + $0x4b8] sm:$0xf0]  ;;  %v11712_v15 = vor.u32 %v14356_v10, %v11709_v54  ;;  %v12435_v10 = vld [vmem:[#allocation9 + $0x60] sm:$0xf]  ;;  %v14543_v54 = vld [vmem:[#allocation9 + $0x6c] sm:$0xf0] }
 0x32c   :  { %6396 = vmatpush.bf16.msrb.mxu2 %v11964_v46  ;;  %v12064_v46 = vor.u32 %v14444_v47, %v12061_v35  ;;  %6245 = vmatmul.bf16.vlgmr.msra.gmra.mxu3 %v15749_v13  ;;  %v14284_v58 = vld [vmem:[#allocation6 + $0x5c] sm:$0xf] }
 0x32d   :  { %6293 = vmatpush.bf16.msrb.mxu3 %v12372_v26  ;;  %v11421_v60 = vld [vmem:[#allocation6 + $0x78] sm:$0xf0]  ;;  %v12212_v26 = vor.u32 %v14487_v49, %v12211_v50  ;;  %v14475_v50 = vld [vmem:[#allocation6 + $0x654] sm:$0xf] }
 0x32e   :  { %6369 = vmatpush.bf16.msrb.mxu0 %v11420_v48  ;;  %v11520_v48 = vor.u32 %v14308_v0, %v11517_v37  ;;  %v14348_v39 = vld [vmem:[#allocation6 + $0x25c] sm:$0xf]  ;;  %v12180_v37 = vor.u32 %v14479_v17, %v12179_v38  ;;  %v12181_v49 = vld [vmem:[#allocation6 + $0x670] sm:$0xf0]  ;;  %v14531_v38 = vld [vmem:[#allocation9 + $0xc] sm:$0xf0] }
 0x32f   :  { %6383 = vmatpush.bf16.msrb.mxu1 %v11676_v40  ;;  %v11776_v40 = vor.u32 %v14372_v5, %v11773_v27  ;;  %v11677_v9 = vld [vmem:[#allocation6 + $0x278] sm:$0xf0]  ;;  %v14523_v5 = vld [vmem:[#allocation6 + $0x7d4] sm:$0xf]  ;;  %v12579_v17 = vld [vmem:[#allocation9 + $0x180] sm:$0xf] }
 0x330   :  { %6397 = vmatpush.bf16.msrb.mxu2 %v11932_v55  ;;  %v12308_v55 = vor.u32 %v14511_v36, %v12307_v62  ;;  %v14412_v3 = vld [vmem:[#allocation6 + $0x45c] sm:$0xf]  ;;  %v12373_v27 = vld [vmem:[#allocation6 + $0x7f0] sm:$0xf0]  ;;  %v12500_v36 = vor.u32 %v14559_v1, %v12499_v16  ;;  %v12347_v16 = vld [vmem:[#allocation6 + $0x798] sm:$0xf] }
 0x331   :  { %6294 = vmatpush.bf16.msrb.mxu3 %v12340_v56  ;;  %v11933_v63 = vld [vmem:[#allocation6 + $0x478] sm:$0xf0]  ;;  %v14471_v56 = vld [vmem:[#allocation6 + $0x62c] sm:$0xf0]  ;;  %v14520_v1 = vld [vmem:[#allocation6 + $0x7b4] sm:$0xf0] }
 0x332   :  { %6370 = vmatpush.bf16.msrb.mxu0 %v11388_v31  ;;  %v12000_v31 = vor.u32 %v14428_v32, %v11997_v12  ;;  %v14276_v30 = vld [vmem:[#allocation6 + $0x1c] sm:$0xf]  ;;  %v12309_v32 = vld [vmem:[#allocation6 + $0x770] sm:$0xf0]  ;;  %v12467_v12 = vld [vmem:[#allocation9 + $0xa0] sm:$0xf] }
 0x333   :  { %6384 = vmatpush.bf16.msrb.mxu1 %v11644_v7  ;;  %v12276_v7 = vor.u32 %v14503_v22, %v12275_v41  ;;  %v11389_v34 = vld [vmem:[#allocation6 + $0x38] sm:$0xf0]  ;;  %v14499_v22 = vld [vmem:[#allocation6 + $0x714] sm:$0xf] }
 0x334   :  { %6398 = vmatpush.bf16.msrb.mxu2 %v11900_v23  ;;  %v14420_v23 = vld [vmem:[#allocation6 + $0x49c] sm:$0xf] }
 0x335   :  { %6371 = vmatmul.bf16.vlgmr.msrb.gmra.mxu0 %v15666_v57  ;;  %6295 = vmatpush.bf16.msrb.mxu3 %v12308_v55  ;;  %v14340_v2 = vld [vmem:[#allocation6 + $0x21c] sm:$0xf] }
 0x336   :  { %6419 = vmatpush.bf16.msra.mxu0 %v11616_v14  ;;  %6385 = vmatmul.bf16.vlgmr.msrb.gmra.mxu1 %v15668_v19  ;;  %v14495_v14 = vld [vmem:[#allocation6 + $0x6ec] sm:$0xf0]  ;;  %v11645_v18 = vld [vmem:[#allocation6 + $0x238] sm:$0xf0] }
 0x337   :  { %6433 = vmatpush.bf16.msra.mxu1 %v11872_v61  ;;  %6399 = vmatmul.bf16.vlgmr.msrb.gmra.mxu2 %v15664_v25  ;;  %v11456_v61 = vor.u32 %v14292_v59, %v11453_v8  ;;  %v12244_v43 = vor.u32 %v14495_v14, %v12243_v20  ;;  %v14404_v47 = vld [vmem:[#allocation6 + $0x41c] sm:$0xf]  ;;  %v14591_v20 = vld [vmem:[#allocation9 + $0x1ec] sm:$0xf0] }
 0x338   :  { %6447 = vmatpush.bf16.msra.mxu2 %v12128_v21  ;;  %v11968_v21 = vor.u32 %v14420_v23, %v11965_v6  ;;  %v11901_v35 = vld [vmem:[#allocation6 + $0x438] sm:$0xf0]  ;;  %v12627_v23 = vld [vmem:[#allocation9 + $0x1e0] sm:$0xf]  ;;  %v12436_v6 = vor.u32 %v14543_v54, %v12435_v10 }
 0x339   :  { %6296 = vmatpush.bf16.msrb.mxu3 %v12276_v7  ;;  %v11904_v0 = vor.u32 %v14404_v47, %v11901_v35  ;;  %v12245_v7 = vld [vmem:[#allocation6 + $0x6f0] sm:$0xf0]  ;;  %v12387_v35 = vld [vmem:[#allocation9] sm:$0xf] }
 0x33a   :  { %6420 = vmatpush.bf16.msra.mxu0 %v11584_v51  ;;  %v11424_v51 = vor.u32 %v14284_v58, %v11421_v60  ;;  %v12628_v58 = vor.u32 %v14591_v20, %v12627_v23  ;;  %v12419_v60 = vld [vmem:[#allocation9 + $0x40] sm:$0xf]  ;;  %v14615_v20 = vld [vmem:[#allocation9 + $0x2ac] sm:$0xf0] }
 0x33b   :  { %6434 = vmatpush.bf16.msra.mxu1 %v11840_v33  ;;  %v11680_v33 = vor.u32 %v14348_v39, %v11677_v9  ;;  %v14587_v9 = vld [vmem:[#allocation9 + $0x1cc] sm:$0xf0]  ;;  %v12723_v10 = vld [vmem:[#allocation9 + $0x2a0] sm:$0xf] }
 0x33c   :  { %6448 = vmatpush.bf16.msra.mxu2 %v12096_v53  ;;  %v11936_v53 = vor.u32 %v14412_v3, %v11933_v63 }
 0x33d   :  { %6297 = vmatpush.bf16.msrb.mxu3 %v12244_v43  ;;  %v12611_v43 = vld [vmem:[#allocation9 + $0x1c0] sm:$0xf] }
 0x33e   :  { %6421 = vmatpush.bf16.msra.mxu0 %v11552_v44  ;;  %v11392_v44 = vor.u32 %v14276_v30, %v11389_v34  ;;  %v12612_v3 = vor.u32 %v14587_v9, %v12611_v43  ;;  %v12595_v30 = vld [vmem:[#allocation9 + $0x1a0] sm:$0xf] }
 0x33f   :  { %6435 = vmatpush.bf16.msra.mxu1 %v11808_v11  ;;  %v11648_v11 = vor.u32 %v14340_v2, %v11645_v18  ;;  %v14467_v2 = vld [vmem:[#allocation6 + $0x614] sm:$0xf]  ;;  %v12707_v43 = vld [vmem:[#allocation9 + $0x280] sm:$0xf] }
 0x340   :  { %6449 = vmatpush.bf16.msra.mxu2 %v12064_v46  ;;  %v12147_v46 = vld [vmem:[#allocation6 + $0x610] sm:$0xf]  ;;  %v12149_v18 = vld [vmem:[#allocation6 + $0x630] sm:$0xf0] }
 0x341   :  { %6298 = vmatpush.bf16.msrb.mxu3 %v12212_v26  ;;  %v12148_v62 = vor.u32 %v14471_v56, %v12147_v46  ;;  %v12184_v26 = vor.u32 %v14475_v50, %v12181_v49  ;;  %v12152_v56 = vor.u32 %v14467_v2, %v12149_v18  ;;  %v14607_v2 = vld [vmem:[#allocation9 + $0x26c] sm:$0xf0] }
 0x342   :  { %6422 = vmatpush.bf16.msra.mxu0 %v11520_v48  ;;  %v12376_v48 = vor.u32 %v14523_v5, %v12373_v27  ;;  %v6036_v5 = vpop.f32.mrf.mxu0 }
 0x343   :  { %6436 = vmatpush.bf16.msra.mxu1 %v11776_v40  ;;  %v14515_v40 = vld [vmem:[#allocation6 + $0x794] sm:$0xf] }
 0x344   :  { %6450 = vmatpush.bf16.msra.mxu2 %v12032_v42  ;;  %v14555_v42 = vld [vmem:[#allocation9 + $0xcc] sm:$0xf0]  ;;  %v12344_v24 = vor.u32 %v14515_v40, %v12341_v28 }
 0x345   :  { %6299 = vmatpush.bf16.msrb.mxu3 %v12180_v37  ;;  %v12484_v55 = vor.u32 %v14555_v42, %v12483_v52  ;;  %v14579_v37 = vld [vmem:[#allocation9 + $0x18c] sm:$0xf0]  ;;  %v12348_v42 = vor.u32 %v14520_v1, %v12347_v16 }
 0x346   :  { %6423 = vmatpush.bf16.msra.mxu0 %v11488_v29  ;;  %v12277_v29 = vld [vmem:[#allocation6 + $0x730] sm:$0xf0]  ;;  %v12580_v46 = vor.u32 %v14579_v37, %v12579_v17  ;;  %v14623_v28 = vld [vmem:[#allocation9 + $0x2ec] sm:$0xf0]  ;;  %v12675_v37 = vld [vmem:[#allocation9 + $0x240] sm:$0xf] }
 0x347   :  { %6437 = vmatpush.bf16.msra.mxu1 %v11744_v4  ;;  %v14547_v4 = vld [vmem:[#allocation9 + $0x8c] sm:$0xf0]  ;;  %v12280_v8 = vor.u32 %v14499_v22, %v12277_v29  ;;  %v15769_v29 = vld [vmem:[#allocation7] sm:$0xff] }
 0x348   :  { %6451 = vmatpush.bf16.msra.mxu2 %v12000_v31  ;;  %v14491_v31 = vld [vmem:[#allocation6 + $0x6d4] sm:$0xf]  ;;  %v14619_v22 = vld [vmem:[#allocation9 + $0x2cc] sm:$0xf0]  ;;  %v4731_v54 = vperm.slane %v15769_v29, 0  ;;  %v4732_v1 = vperm.slane %v15769_v29, 1 }
 0x349   :  { %6300 = vmatpush.bf16.msrb.mxu3 %v12148_v62  ;;  %v12248_v14 = vor.u32 %v14491_v31, %v12245_v7  ;;  %v12563_v62 = vld [vmem:[#allocation9 + $0x160] sm:$0xf]  ;;  %v14567_v7 = vld [vmem:[#allocation9 + $0x12c] sm:$0xf0] }
 0x34a   :  { %6424 = vmatpush.bf16.msra.mxu0 %v11456_v61  ;;  %v14483_v61 = vld [vmem:[#allocation6 + $0x694] sm:$0xf]  ;;  %v12531_v31 = vld [vmem:[#allocation9 + $0x120] sm:$0xf]  ;;  %v6038_v23 = vpop.f32.mrf.mxu0 }
 0x34b   :  { %6438 = vmatpush.bf16.msra.mxu1 %v11712_v15  ;;  %v12213_v15 = vld [vmem:[#allocation6 + $0x6b0] sm:$0xf0]  ;;  %v6039_v49 = vadd.f32 %v6038_v23, %v4731_v54  ;;  %v13011_v23 = vld [vmem:[#allocation9 + $0x4e0] sm:$0xf] }
 0x34c   :  { %6452 = vmatpush.bf16.msra.mxu2 %v11968_v21  ;;  %6301 = vmatmul.bf16.vlgmr.msrb.gmra.mxu3 %v15749_v13  ;;  %v14539_v21 = vld [vmem:[#allocation9 + $0x4c] sm:$0xf0]  ;;  %v12216_v63 = vor.u32 %v14483_v61, %v12213_v15 }
 0x34d   :  { %6349 = vmatpush.bf16.msra.mxu3 %v12376_v48  ;;  %v12420_v39 = vor.u32 %v14539_v21, %v12419_v60  ;;  %v12755_v48 = vld [vmem:[#allocation9 + $0x2e0] sm:$0xf]  ;;  %v12251_v15 = vld [vmem:[#allocation6 + $0x6d8] sm:$0xf] }
 0x34e   :  { %6425 = vmatpush.bf16.msra.mxu0 %v11424_v51  ;;  %v12403_v51 = vld [vmem:[#allocation9 + $0x20] sm:$0xf]  ;;  %v12756_v52 = vor.u32 %v14623_v28, %v12755_v48  ;;  %v14563_v21 = vld [vmem:[#allocation9 + $0x10c] sm:$0xf0] }
 0x34f   :  { %6439 = vmatpush.bf16.msra.mxu1 %v11680_v33  ;;  %v14535_v33 = vld [vmem:[#allocation9 + $0x2c] sm:$0xf0]  ;;  %v12515_v60 = vld [vmem:[#allocation9 + $0x100] sm:$0xf] }
 0x350   :  { %6453 = vmatpush.bf16.msra.mxu2 %v11936_v53  ;;  %v12404_v34 = vor.u32 %v14535_v33, %v12403_v51  ;;  %v14583_v53 = vld [vmem:[#allocation9 + $0x1ac] sm:$0xf0]  ;;  %v12516_v9 = vor.u32 %v14563_v21, %v12515_v60  ;;  %v14508_v21 = vld [vmem:[#allocation6 + $0x75c] sm:$0xf] }
 0x351   :  { %6350 = vmatpush.bf16.msra.mxu3 %v12344_v24  ;;  %v12596_v47 = vor.u32 %v14583_v53, %v12595_v30  ;;  %v14512_v24 = vld [vmem:[#allocation6 + $0x774] sm:$0xf0] }
 0x352   :  { %6426 = vmatpush.bf16.msra.mxu0 %v11392_v44  ;;  %v12379_v44 = vld [vmem:[#allocation6 + $0x7d8] sm:$0xf] }
 0x353   :  { %6440 = vmatpush.bf16.msra.mxu1 %v11648_v11  ;;  %v14528_v11 = vld [vmem:[#allocation6 + $0x7f4] sm:$0xf0] }
 0x354   :  { %6454 = vmatpush.bf16.msra.mxu2 %v11904_v0  ;;  %v12388_v0 = vor.u32 %v14531_v38, %v12387_v35  ;;  %v12380_v27 = vor.u32 %v14528_v11, %v12379_v44  ;;  %v14488_v53 = vld [vmem:[#allocation6 + $0x6b4] sm:$0xf0] }
 0x355   :  { %6427 = vmatmul.bf16.vlgmr.msra.gmra.mxu0 %v15666_v57  ;;  %v14551_v57 = vld [vmem:[#allocation9 + $0xac] sm:$0xf0] }
 0x356   :  { %6441 = vmatmul.bf16.vlgmr.msra.gmra.mxu1 %v15668_v19  ;;  %8045 = vmatpush.bf16.msrb.mxu0 %v12500_v36  ;;  %v12468_v41 = vor.u32 %v14551_v57, %v12467_v12  ;;  %v12312_v19 = vor.u32 %v14507_v45, %v12309_v32  ;;  %v14575_v36 = vld [vmem:[#allocation9 + $0x16c] sm:$0xf0]  ;;  %v12547_v45 = vld [vmem:[#allocation9 + $0x140] sm:$0xf]  ;;  %v6050_v12 = vpop.f32.mrf.mxu1  ;;  %v6064_v57 = vpop.f32.mrf.mxu2 }
 0x357   :  { %6455 = vmatmul.bf16.vlgmr.msra.gmra.mxu2 %v15664_v25  ;;  %v12451_v25 = vld [vmem:[#allocation9 + $0x80] sm:$0xf]  ;;  %8059 = vmatpush.bf16.msrb.mxu1 %v12628_v58  ;;  %v12564_v40 = vor.u32 %v14575_v36, %v12563_v62  ;;  %v14571_v32 = vld [vmem:[#allocation9 + $0x14c] sm:$0xf0] }
 0x358   :  { %v12452_v59 = vor.u32 %v14547_v4, %v12451_v25  ;;  %6351 = vmatpush.bf16.msra.mxu3 %v12312_v19  ;;  %8073 = vmatpush.bf16.msrb.mxu2 %v12756_v52  ;;  %v12739_v19 = vld [vmem:[#allocation9 + $0x2c0] sm:$0xf]  ;;  %v14496_v58 = vld [vmem:[#allocation6 + $0x6f4] sm:$0xf0] }
 0x359   :  { %v12740_v25 = vor.u32 %v14619_v22, %v12739_v19  ;;  %v12252_v30 = vor.u32 %v14496_v58, %v12251_v15  ;;  %v12187_v11 = vld [vmem:[#allocation6 + $0x658] sm:$0xf] }
 0x35a   :  { %8046 = vmatpush.bf16.msrb.mxu0 %v12484_v55  ;;  %v12315_v55 = vld [vmem:[#allocation6 + $0x758] sm:$0xf] }
 0x35b   :  { %8060 = vmatpush.bf16.msrb.mxu1 %v12612_v3  ;;  %v12316_v4 = vor.u32 %v14512_v24, %v12315_v55  ;;  %v14611_v3 = vld [vmem:[#allocation9 + $0x28c] sm:$0xf0] }
 0x35c   :  { %6352 = vmatpush.bf16.msra.mxu3 %v12280_v8  ;;  %v14504_v8 = vld [vmem:[#allocation6 + $0x734] sm:$0xf0]  ;;  %8074 = vmatpush.bf16.msrb.mxu2 %v12740_v25  ;;  %v12708_v50 = vor.u32 %v14611_v3, %v12707_v43  ;;  %v12317_v43 = vld [vmem:[#allocation6 + $0x778] sm:$0xf0] }
 0x35d   :  { %v12155_v28 = vld [vmem:[#allocation6 + $0x618] sm:$0xf] }
 0x35e   :  { %8047 = vmatpush.bf16.msrb.mxu0 %v12468_v41  ;;  %v12548_v41 = vor.u32 %v14571_v32, %v12547_v45  ;;  %v6052_v51 = vpop.f32.mrf.mxu1  ;;  %v6066_v33 = vpop.f32.mrf.mxu2  ;;  %v14472_v52 = vld [vmem:[#allocation6 + $0x634] sm:$0xf0]  ;;  %v14524_v32 = vld [vmem:[#allocation6 + $0x7dc] sm:$0xf] }
 0x35f   :  { %8061 = vmatpush.bf16.msrb.mxu1 %v12596_v47  ;;  %v6092_v47 = vpop.f32.mrf.mxu0  ;;  %v6053_v17 = vadd.f32 %v6052_v51, %v6039_v49  ;;  %v14599_v55 = vld [vmem:[#allocation9 + $0x22c] sm:$0xf0]  ;;  %v12156_v22 = vor.u32 %v14472_v52, %v12155_v28  ;;  %v12320_v51 = vor.u32 %v14508_v21, %v12317_v43  ;;  %v12947_v52 = vld [vmem:[#allocation9 + $0x460] sm:$0xf] }
 0x360   :  { %6353 = vmatpush.bf16.msra.mxu3 %v12248_v14  ;;  %v12724_v14 = vor.u32 %v14615_v20, %v12723_v10 }
 0x362   :  { %8048 = vmatpush.bf16.msrb.mxu0 %v12452_v59  ;;  %v12283_v59 = vld [vmem:[#allocation6 + $0x718] sm:$0xf]  ;;  %8075 = vmatpush.bf16.msrb.mxu2 %v12724_v14 }
 0x363   :  { %8062 = vmatpush.bf16.msrb.mxu1 %v12580_v46  ;;  %v12284_v61 = vor.u32 %v14504_v8, %v12283_v59  ;;  %v14603_v46 = vld [vmem:[#allocation9 + $0x24c] sm:$0xf0]  ;;  %v6093_v8 = vadd.f32 %v6092_v47, %v4732_v1 }
 0x364   :  { %6354 = vmatpush.bf16.msra.mxu3 %v12216_v63  ;;  %v14595_v59 = vld [vmem:[#allocation9 + $0x20c] sm:$0xf0] }
 0x366   :  { %8049 = vmatpush.bf16.msrb.mxu0 %v12436_v6  ;;  %v12532_v6 = vor.u32 %v14567_v7, %v12531_v31  ;;  %8076 = vmatpush.bf16.msrb.mxu2 %v12708_v50  ;;  %v6106_v62 = vpop.f32.mrf.mxu1  ;;  %v6120_v36 = vpop.f32.mrf.mxu2  ;;  %v14516_v31 = vld [vmem:[#allocation6 + $0x79c] sm:$0xf] }
 0x367   :  { %8063 = vmatpush.bf16.msrb.mxu1 %v12564_v40  ;;  %v12349_v7 = vld [vmem:[#allocation6 + $0x7b8] sm:$0xf0]  ;;  %v6107_v15 = vadd.f32 %v6106_v62, %v6093_v8 }
 0x368   :  { %6355 = vmatpush.bf16.msra.mxu3 %v12184_v26  ;;  %v12691_v26 = vld [vmem:[#allocation9 + $0x260] sm:$0xf] }
 0x369   :  { %v12692_v35 = vor.u32 %v14607_v2, %v12691_v26  ;;  %v6121_v3 = vadd.f32 %v6120_v36, %v6107_v15  ;;  %v12979_v26 = vld [vmem:[#allocation9 + $0x4a0] sm:$0xf]  ;;  %v14679_v2 = vld [vmem:[#allocation9 + $0x4ac] sm:$0xf0] }
 0x36a   :  { %8050 = vmatpush.bf16.msrb.mxu0 %v12420_v39  ;;  %v6037_v39 = vadd.f32 %v6036_v5, %v4731_v54  ;;  %v12980_v47 = vor.u32 %v14679_v2, %v12979_v26  ;;  %v12915_v15 = vld [vmem:[#allocation9 + $0x420] sm:$0xf]  ;;  %v14557_v26 = vld [vmem:[#allocation9 + $0xe4] sm:$0xf] }
 0x36b   :  { %8064 = vmatpush.bf16.msrb.mxu1 %v12548_v41  ;;  %8077 = vmatpush.bf16.msrb.mxu2 %v12692_v35  ;;  %v6094_v41 = vpop.f32.mrf.mxu0 }
 0x36c   :  { %6356 = vmatpush.bf16.msra.mxu3 %v12152_v56  ;;  %v6051_v18 = vadd.f32 %v6050_v12, %v6037_v39  ;;  %v6067_v56 = vadd.f32 %v6066_v33, %v6053_v17  ;;  %v12381_v12 = vld [vmem:[#allocation6 + $0x7f8] sm:$0xf0]  ;;  %v6095_v20 = vadd.f32 %v6094_v41, %v4732_v1  ;;  %v12995_v39 = vld [vmem:[#allocation9 + $0x4c0] sm:$0xf] }
 0x36d   :  { %v12384_v25 = vor.u32 %v14524_v32, %v12381_v12  ;;  %v14500_v33 = vld [vmem:[#allocation6 + $0x71c] sm:$0xf] }
 0x36e   :  { %8051 = vmatpush.bf16.msrb.mxu0 %v12404_v34  ;;  %v12219_v34 = vld [vmem:[#allocation6 + $0x698] sm:$0xf]  ;;  %v6065_v38 = vadd.f32 %v6064_v57, %v6051_v18  ;;  %v6108_v58 = vpop.f32.mrf.mxu1  ;;  %v6122_v60 = vpop.f32.mrf.mxu2  ;;  %v14476_v12 = vld [vmem:[#allocation6 + $0x65c] sm:$0xf] }
 0x36f   :  { %6357 = vmatmul.bf16.vlgmr.msra.gmra.mxu3 %v15749_v13  ;;  %8065 = vmatpush.bf16.msrb.mxu1 %v12532_v6  ;;  %v6078_v63 = vpop.f32.mrf.mxu3  ;;  %v12220_v44 = vor.u32 %v14488_v53, %v12219_v34  ;;  %v14687_v6 = vld [vmem:[#allocation9 + $0x4ec] sm:$0xf0]  ;;  %v12285_v53 = vld [vmem:[#allocation6 + $0x738] sm:$0xf0] }
 0x370   :  { %6405 = vmatpush.bf16.msrb.mxu3 %v12380_v27  ;;  %v6079_v5 = vadd.f32 %v6078_v63, %v6065_v38  ;;  %v12676_v27 = vor.u32 %v14603_v46, %v12675_v37  ;;  %v13012_v14 = vor.u32 %v14687_v6, %v13011_v23  ;;  %v6109_v63 = vadd.f32 %v6108_v58, %v6095_v20  ;;  %v14492_v37 = vld [vmem:[#allocation6 + $0x6dc] sm:$0xf]  ;;  %v12883_v6 = vld [vmem:[#allocation9 + $0x3e0] sm:$0xf]  ;;  %v14663_v58 = vld [vmem:[#allocation9 + $0x42c] sm:$0xf0] }
 0x371   :  { %v12288_v38 = vor.u32 %v14500_v33, %v12285_v53  ;;  %v12253_v46 = vld [vmem:[#allocation6 + $0x6f8] sm:$0xf0]  ;;  %v12916_v21 = vor.u32 %v14663_v58, %v12915_v15  ;;  %v14659_v33 = vld [vmem:[#allocation9 + $0x40c] sm:$0xf0] }
 0x372   :  { %8052 = vmatpush.bf16.msrb.mxu0 %v12388_v0  ;;  %v14480_v0 = vld [vmem:[#allocation6 + $0x674] sm:$0xf0]  ;;  %8078 = vmatpush.bf16.msrb.mxu2 %v12676_v27  ;;  %v6475_v24 = vmax.f32 %v6079_v5, 0.0  ;;  %v12963_v5 = vld [vmem:[#allocation9 + $0x480] sm:$0xf]  ;;  %v12256_v62 = vor.u32 %v14492_v37, %v12253_v46 }
 0x373   :  { %8066 = vmatpush.bf16.msrb.mxu1 %v12516_v9  ;;  %v12188_v40 = vor.u32 %v14480_v0, %v12187_v11  ;;  %v14683_v9 = vld [vmem:[#allocation9 + $0x4cc] sm:$0xf0]  ;;  %v6148_v50 = vpop.f32.mrf.mxu0  ;;  %v12157_v23 = vld [vmem:[#allocation6 + $0x638] sm:$0xf0]  ;;  %v14553_v37 = vld [vmem:[#allocation9 + $0xc4] sm:$0xf] }
 0x374   :  { %6406 = vmatpush.bf16.msrb.mxu3 %v12348_v42  ;;  %v12659_v42 = vld [vmem:[#allocation9 + $0x220] sm:$0xf]  ;;  %v12996_v49 = vor.u32 %v14683_v9, %v12995_v39  ;;  %v14675_v27 = vld [vmem:[#allocation9 + $0x48c] sm:$0xf0]  ;;  %v12437_v15 = vld [vmem:[#allocation9 + $0x70] sm:$0xf0] }
 0x375   :  { %v12660_v57 = vor.u32 %v14599_v55, %v12659_v42  ;;  %v12964_v1 = vor.u32 %v14675_v27, %v12963_v5  ;;  %v14671_v42 = vld [vmem:[#allocation9 + $0x46c] sm:$0xf0] }
 0x376   :  { %8101 = vmatpush.bf16.msra.mxu0 %v13012_v14  ;;  %v6162_v17 = vpop.f32.mrf.mxu1  ;;  %v14719_v53 = vld [vmem:[#allocation9 + $0x5ec] sm:$0xf0] }
 0x377   :  { %v6080_v16 = vpop.f32.mrf.mxu3  ;;  %8079 = vmatpush.bf16.msrb.mxu2 %v12660_v57  ;;  %v12189_v57 = vld [vmem:[#allocation6 + $0x678] sm:$0xf0] }
 0x378   :  { %6407 = vmatpush.bf16.msrb.mxu3 %v12316_v4  ;;  %v6081_v48 = vadd.f32 %v6080_v16, %v6067_v56  ;;  %v12643_v4 = vld [vmem:[#allocation9 + $0x200] sm:$0xf]  ;;  %v4733_v56 = vperm.slane %v15769_v29, 2 }
 0x379   :  { %v12644_v10 = vor.u32 %v14595_v59, %v12643_v4 }
 0x37a   :  { %v6483_v45 = vmax.f32 %v6081_v48, 0.0  ;;  %8102 = vmatpush.bf16.msra.mxu0 %v12996_v49  ;;  %v14484_v48 = vld [vmem:[#allocation6 + $0x69c] sm:$0xf]  ;;  %v6149_v28 = vadd.f32 %v6148_v50, %v4733_v56 }
 0x37b   :  { %8080 = vmatpush.bf16.msrb.mxu2 %v12644_v10  ;;  %v6150_v36 = vpop.f32.mrf.mxu0  ;;  %v12192_v10 = vor.u32 %v14476_v12, %v12189_v57  ;;  %v13091_v57 = vld [vmem:[#allocation9 + $0x580] sm:$0xf] }
 0x37c   :  { %6408 = vmatpush.bf16.msrb.mxu3 %v12284_v61  ;;  %v15773_v19 = vpack.c.bf16 %v6483_v45, %v6475_v24  ;;  %v12352_v61 = vor.u32 %v14516_v31, %v12349_v7  ;;  %v12948_v24 = vor.u32 %v14671_v42, %v12947_v52  ;;  %v6151_v45 = vadd.f32 %v6150_v36, %v4733_v56  ;;  %v12485_v56 = vld [vmem:[#allocation9 + $0xd0] sm:$0xf0]  ;;  %v14643_v36 = vld [vmem:[#allocation9 + $0x38c] sm:$0xf0] }
 0x37d   :  { %v6163_v41 = vadd.f32 %v6162_v17, %v6149_v28  ;;  %v12851_v17 = vld [vmem:[#allocation9 + $0x3a0] sm:$0xf]  ;;  %v14549_v28 = vld [vmem:[#allocation9 + $0xa4] sm:$0xf]  ;;  %v12469_v42 = vld [vmem:[#allocation9 + $0xb0] sm:$0xf0] }
 0x37e   :  { %8053 = vmatmul.bf16.vlgmr.msrb.gmra.mxu0 %v15773_v19  ;;  %v6164_v4 = vpop.f32.mrf.mxu1 }
 0x37f   :  { %v6134_v54 = vpop.f32.mrf.mxu3  ;;  %8103 = vmatpush.bf16.msra.mxu0 %v12980_v47  ;;  %v6165_v7 = vadd.f32 %v6164_v4, %v6151_v45  ;;  %v12501_v47 = vld [vmem:[#allocation9 + $0xf0] sm:$0xf0]  ;;  %v14639_v45 = vld [vmem:[#allocation9 + $0x36c] sm:$0xf0] }
 0x380   :  { %6409 = vmatpush.bf16.msrb.mxu3 %v12252_v30  ;;  %v6123_v30 = vadd.f32 %v6122_v60, %v6109_v63  ;;  %v6135_v34 = vadd.f32 %v6134_v54, %v6121_v3  ;;  %v14468_v54 = vld [vmem:[#allocation6 + $0x61c] sm:$0xf]  ;;  %v12867_v3 = vld [vmem:[#allocation9 + $0x3c0] sm:$0xf]  ;;  %v14651_v63 = vld [vmem:[#allocation9 + $0x3cc] sm:$0xf0] }
 0x381   :  { %v12160_v39 = vor.u32 %v14468_v54, %v12157_v23  ;;  %v13075_v23 = vld [vmem:[#allocation9 + $0x560] sm:$0xf] }
 0x382   :  { %v6476_v11 = vmax.f32 %v6135_v34, 0.0  ;;  %v13139_v34 = vld [vmem:[#allocation9 + $0x5e0] sm:$0xf] }
 0x383   :  { %8104 = vmatpush.bf16.msra.mxu0 %v12964_v1  ;;  %v6204_v5 = vpop.f32.mrf.mxu0  ;;  %v12488_v1 = vor.u32 %v14553_v37, %v12485_v56  ;;  %v12405_v56 = vld [vmem:[#allocation9 + $0x30] sm:$0xf0] }
 0x384   :  { %6410 = vmatpush.bf16.msrb.mxu3 %v12220_v44  ;;  %v6176_v44 = vpop.f32.mrf.mxu2 }
 0x385   :  { %v6177_v31 = vadd.f32 %v6176_v44, %v6163_v41  ;;  %v14647_v44 = vld [vmem:[#allocation9 + $0x3ac] sm:$0xf0] }
 0x386   :  { %v12852_v27 = vor.u32 %v14647_v44, %v12851_v17  ;;  %v14707_v41 = vld [vmem:[#allocation9 + $0x58c] sm:$0xf0]  ;;  %v13043_v17 = vld [vmem:[#allocation9 + $0x520] sm:$0xf] }
 0x387   :  { %v6136_v18 = vpop.f32.mrf.mxu3  ;;  %8105 = vmatpush.bf16.msra.mxu0 %v12948_v24  ;;  %v12819_v24 = vld [vmem:[#allocation9 + $0x360] sm:$0xf]  ;;  %v13092_v4 = vor.u32 %v14707_v41, %v13091_v57  ;;  %v14695_v44 = vld [vmem:[#allocation9 + $0x52c] sm:$0xf0] }
 0x388   :  { %6411 = vmatpush.bf16.msrb.mxu3 %v12188_v40  ;;  %v6137_v35 = vadd.f32 %v6136_v18, %v6123_v30  ;;  %v12221_v40 = vld [vmem:[#allocation6 + $0x6b8] sm:$0xf0]  ;;  %v13140_v18 = vor.u32 %v14719_v53, %v13139_v34 }
 0x389   :  { %v12224_v32 = vor.u32 %v14484_v48, %v12221_v40  ;;  %v13107_v48 = vld [vmem:[#allocation9 + $0x5a0] sm:$0xf]  ;;  %v14711_v40 = vld [vmem:[#allocation9 + $0x5ac] sm:$0xf0] }
 0x38a   :  { %v6484_v0 = vmax.f32 %v6137_v35, 0.0  ;;  %v12868_v35 = vor.u32 %v14651_v63, %v12867_v3  ;;  %8115 = vmatpush.bf16.msra.mxu1 %v13140_v18  ;;  %v13108_v52 = vor.u32 %v14711_v40, %v13107_v48  ;;  %v13059_v3 = vld [vmem:[#allocation9 + $0x540] sm:$0xf]  ;;  %v14699_v63 = vld [vmem:[#allocation9 + $0x54c] sm:$0xf0] }
 0x38b   :  { %v6206_v54 = vpop.f32.mrf.mxu0  ;;  %v14691_v48 = vld [vmem:[#allocation9 + $0x50c] sm:$0xf0]  ;;  %v14529_v40 = vld [vmem:[#allocation9 + $0x4] sm:$0xf] }
 0x38c   :  { %6412 = vmatpush.bf16.msrb.mxu3 %v12156_v22  ;;  %v15778_v16 = vpack.c.bf16 %v6484_v0, %v6476_v11  ;;  %v12931_v22 = vld [vmem:[#allocation9 + $0x440] sm:$0xf]  ;;  %v6178_v59 = vpop.f32.mrf.mxu2  ;;  %v14715_v0 = vld [vmem:[#allocation9 + $0x5cc] sm:$0xf0] }
 0x38d   :  { %v6179_v20 = vadd.f32 %v6178_v59, %v6165_v7  ;;  %v13123_v11 = vld [vmem:[#allocation9 + $0x5c0] sm:$0xf]  ;;  %v12453_v59 = vld [vmem:[#allocation9 + $0x90] sm:$0xf0] }
 0x38e   :  { %8067 = vmatmul.bf16.vlgmr.msrb.gmra.mxu1 %v15778_v16  ;;  %v13124_v46 = vor.u32 %v14715_v0, %v13123_v11  ;;  %v12803_v7 = vld [vmem:[#allocation9 + $0x340] sm:$0xf]  ;;  %v14533_v11 = vld [vmem:[#allocation9 + $0x24] sm:$0xf] }
 0x38f   :  { %6413 = vmatmul.bf16.vlgmr.msrb.gmra.mxu3 %v15749_v13  ;;  %v6190_v55 = vpop.f32.mrf.mxu3 }
 0x390   :  { %6461 = vmatpush.bf16.msra.mxu3 %v12384_v25  ;;  %v14667_v25 = vld [vmem:[#allocation9 + $0x44c] sm:$0xf0]  ;;  %v6191_v14 = vadd.f32 %v6190_v55, %v6177_v31  ;;  %8116 = vmatpush.bf16.msra.mxu1 %v13124_v46  ;;  %v12472_v55 = vor.u32 %v14549_v28, %v12469_v42  ;;  %v13044_v46 = vor.u32 %v14695_v44, %v13043_v17 }
 0x391   :  { %v12932_v8 = vor.u32 %v14667_v25, %v12931_v22  ;;  %v14545_v22 = vld [vmem:[#allocation9 + $0x84] sm:$0xf]  ;;  %v4734_v25 = vperm.slane %v15769_v29, 3 }
 0x392   :  { %v6477_v50 = vmax.f32 %v6191_v14, 0.0  ;;  %v12456_v31 = vor.u32 %v14545_v22, %v12453_v59  ;;  %v14585_v59 = vld [vmem:[#allocation9 + $0x1c4] sm:$0xf] }
 0x393   :  { %8106 = vmatpush.bf16.msra.mxu0 %v12932_v8  ;;  %v12820_v8 = vor.u32 %v14639_v45, %v12819_v24  ;;  %v6205_v14 = vadd.f32 %v6204_v5, %v4734_v25  ;;  %v14751_v45 = vld [vmem:[#allocation9 + $0x6ec] sm:$0xf0] }
 0x394   :  { %6462 = vmatpush.bf16.msra.mxu3 %v12352_v61  ;;  %v14655_v61 = vld [vmem:[#allocation9 + $0x3ec] sm:$0xf0]  ;;  %8117 = vmatpush.bf16.msra.mxu1 %v13108_v52  ;;  %v6232_v12 = vpop.f32.mrf.mxu2 }
 0x395   :  { %v12884_v9 = vor.u32 %v14655_v61, %v12883_v6  ;;  %v14703_v6 = vld [vmem:[#allocation9 + $0x56c] sm:$0xf0] }
 0x396   :  { %v13076_v61 = vor.u32 %v14703_v6, %v13075_v23  ;;  %v14743_v23 = vld [vmem:[#allocation9 + $0x6ac] sm:$0xf0]  ;;  %v14581_v6 = vld [vmem:[#allocation9 + $0x1a4] sm:$0xf] }
 0x397   :  { %v6192_v60 = vpop.f32.mrf.mxu3  ;;  %8107 = vmatpush.bf16.msra.mxu0 %v12916_v21 }
 0x398   :  { %6463 = vmatpush.bf16.msra.mxu3 %v12320_v51  ;;  %v6193_v43 = vadd.f32 %v6192_v60, %v6179_v20  ;;  %v12899_v51 = vld [vmem:[#allocation9 + $0x400] sm:$0xf]  ;;  %8118 = vmatpush.bf16.msra.mxu1 %v13092_v4  ;;  %v14541_v20 = vld [vmem:[#allocation9 + $0x64] sm:$0xf]  ;;  %v14747_v4 = vld [vmem:[#allocation9 + $0x6cc] sm:$0xf0] }
 0x399   :  { %v12900_v30 = vor.u32 %v14659_v33, %v12899_v51  ;;  %v12440_v21 = vor.u32 %v14541_v20, %v12437_v15  ;;  %v13060_v51 = vor.u32 %v14699_v63, %v13059_v3  ;;  %v12421_v33 = vld [vmem:[#allocation9 + $0x50] sm:$0xf0]  ;;  %v13219_v15 = vld [vmem:[#allocation9 + $0x680] sm:$0xf]  ;;  %v4735_v63 = vperm.slane %v15769_v29, 4 }
 0x39a   :  { %v6485_v49 = vmax.f32 %v6193_v43, 0.0  ;;  %v6207_v43 = vadd.f32 %v6206_v54, %v4734_v25  ;;  %v13251_v25 = vld [vmem:[#allocation9 + $0x6c0] sm:$0xf] }
 0x39b   :  { %8108 = vmatpush.bf16.msra.mxu0 %v12900_v30  ;;  %v13235_v54 = vld [vmem:[#allocation9 + $0x6a0] sm:$0xf] }
 0x39c   :  { %6464 = vmatpush.bf16.msra.mxu3 %v12288_v38  ;;  %v15781_v2 = vpack.c.bf16 %v6485_v49, %v6477_v50  ;;  %v12504_v38 = vor.u32 %v14557_v26, %v12501_v47  ;;  %8119 = vmatpush.bf16.msra.mxu1 %v13076_v61  ;;  %v14537_v50 = vld [vmem:[#allocation9 + $0x44] sm:$0xf]  ;;  %v6234_v34 = vpop.f32.mrf.mxu2  ;;  %v13236_v20 = vor.u32 %v14743_v23, %v13235_v54 }
 0x39d   :  { %v12424_v26 = vor.u32 %v14537_v50, %v12421_v33  ;;  %v13203_v50 = vld [vmem:[#allocation9 + $0x660] sm:$0xf]  ;;  %v14621_v23 = vld [vmem:[#allocation9 + $0x2e4] sm:$0xf] }
 0x39e   :  { %8081 = vmatmul.bf16.vlgmr.msrb.gmra.mxu2 %v15781_v2 }
 0x39f   :  { %8157 = vmatpush.bf16.msrb.mxu0 %v12504_v38  ;;  %v14627_v38 = vld [vmem:[#allocation9 + $0x30c] sm:$0xf0] }
 0x3a0   :  { %6465 = vmatpush.bf16.msra.mxu3 %v12256_v62  ;;  %v12835_v62 = vld [vmem:[#allocation9 + $0x380] sm:$0xf]  ;;  %8120 = vmatpush.bf16.msra.mxu1 %v13060_v51  ;;  %v14573_v51 = vld [vmem:[#allocation9 + $0x164] sm:$0xf] }
 0x3a3   :  { %8158 = vmatpush.bf16.msrb.mxu0 %v12488_v1  ;;  %v12408_v1 = vor.u32 %v14533_v11, %v12405_v56  ;;  %v12549_v11 = vld [vmem:[#allocation9 + $0x150] sm:$0xf0] }
 0x3a4   :  { %6466 = vmatpush.bf16.msra.mxu3 %v12224_v32  ;;  %v6218_v32 = vpop.f32.mrf.mxu1  ;;  %8121 = vmatpush.bf16.msra.mxu1 %v13044_v46 }
 0x3a5   :  { %v6219_v49 = vadd.f32 %v6218_v32, %v6205_v14  ;;  %v14589_v32 = vld [vmem:[#allocation9 + $0x1e4] sm:$0xf]  ;;  %v12597_v14 = vld [vmem:[#allocation9 + $0x1b0] sm:$0xf0] }
 0x3a6   :  { %v12600_v61 = vor.u32 %v14581_v6, %v12597_v14  ;;  %v12757_v6 = vld [vmem:[#allocation9 + $0x2f0] sm:$0xf0]  ;;  %v14681_v14 = vld [vmem:[#allocation9 + $0x4c4] sm:$0xf] }
 0x3a7   :  { %8159 = vmatpush.bf16.msrb.mxu0 %v12472_v55  ;;  %v6233_v18 = vadd.f32 %v6232_v12, %v6219_v49  ;;  %v13267_v55 = vld [vmem:[#allocation9 + $0x6e0] sm:$0xf]  ;;  %v12629_v12 = vld [vmem:[#allocation9 + $0x1f0] sm:$0xf0]  ;;  %v14735_v49 = vld [vmem:[#allocation9 + $0x66c] sm:$0xf0] }
 0x3a8   :  { %6467 = vmatpush.bf16.msra.mxu3 %v12192_v10  ;;  %v14635_v10 = vld [vmem:[#allocation9 + $0x34c] sm:$0xf0]  ;;  %v13268_v41 = vor.u32 %v14751_v45, %v13267_v55  ;;  %v12632_v22 = vor.u32 %v14589_v32, %v12629_v12  ;;  %v14685_v55 = vld [vmem:[#allocation9 + $0x4e4] sm:$0xf]  ;;  %v13155_v32 = vld [vmem:[#allocation9 + $0x600] sm:$0xf] }
 0x3a9   :  { %v12804_v60 = vor.u32 %v14635_v10, %v12803_v7  ;;  %v6260_v10 = vpop.f32.mrf.mxu0  ;;  %v14723_v12 = vld [vmem:[#allocation9 + $0x60c] sm:$0xf0] }
 0x3aa   :  { %8129 = vmatpush.bf16.msra.mxu2 %v13268_v41  ;;  %v14561_v41 = vld [vmem:[#allocation9 + $0x104] sm:$0xf] }
 0x3ab   :  { %8160 = vmatpush.bf16.msrb.mxu0 %v12456_v31  ;;  %v12613_v31 = vld [vmem:[#allocation9 + $0x1d0] sm:$0xf0] }
 0x3ac   :  { %6468 = vmatpush.bf16.msra.mxu3 %v12160_v39  ;;  %v12787_v39 = vld [vmem:[#allocation9 + $0x320] sm:$0xf]  ;;  %v6220_v30 = vpop.f32.mrf.mxu1  ;;  %v12616_v7 = vor.u32 %v14585_v59, %v12613_v31 }
 0x3ad   :  { %v6221_v47 = vadd.f32 %v6220_v30, %v6207_v43  ;;  %v12581_v43 = vld [vmem:[#allocation9 + $0x190] sm:$0xf0]  ;;  %v13204_v30 = vor.u32 %v14735_v49, %v13203_v50  ;;  %v13395_v31 = vld [vmem:[#allocation9 + $0x7e0] sm:$0xf] }
 0x3ae   :  { %v12981_v49 = vld [vmem:[#allocation9 + $0x4b0] sm:$0xf0] }
 0x3af   :  { %6469 = vmatmul.bf16.vlgmr.msra.gmra.mxu3 %v15749_v13  ;;  %v12836_v13 = vor.u32 %v14643_v36, %v12835_v62  ;;  %v6246_v58 = vpop.f32.mrf.mxu3  ;;  %8161 = vmatpush.bf16.msrb.mxu0 %v12440_v21  ;;  %v6235_v0 = vadd.f32 %v6234_v34, %v6221_v47  ;;  %v13027_v36 = vld [vmem:[#allocation9 + $0x500] sm:$0xf]  ;;  %v12565_v34 = vld [vmem:[#allocation9 + $0x170] sm:$0xf0] }
 0x3b0   :  { %8087 = vmatpush.bf16.msrb.mxu3 %v12884_v9  ;;  %v14631_v9 = vld [vmem:[#allocation9 + $0x32c] sm:$0xf0]  ;;  %v6247_v37 = vadd.f32 %v6246_v58, %v6233_v18  ;;  %v13028_v42 = vor.u32 %v14691_v48, %v13027_v36  ;;  %v13187_v47 = vld [vmem:[#allocation9 + $0x640] sm:$0xf]  ;;  %v14565_v36 = vld [vmem:[#allocation9 + $0x124] sm:$0xf] }
 0x3b1   :  { %v12788_v53 = vor.u32 %v14631_v9, %v12787_v39  ;;  %v14739_v58 = vld [vmem:[#allocation9 + $0x68c] sm:$0xf0]  ;;  %v6288_v9 = vpop.f32.mrf.mxu2  ;;  %v6262_v33 = vpop.f32.mrf.mxu0 }
 0x3b2   :  { %v6478_v28 = vmax.f32 %v6247_v37, 0.0  ;;  %8122 = vmatpush.bf16.msra.mxu1 %v13028_v42  ;;  %v13220_v21 = vor.u32 %v14739_v58, %v13219_v15  ;;  %v6263_v17 = vadd.f32 %v6262_v33, %v4735_v63  ;;  %v12760_v15 = vor.u32 %v14621_v23, %v12757_v6  ;;  %v13379_v58 = vld [vmem:[#allocation9 + $0x7c0] sm:$0xf]  ;;  %v14775_v33 = vld [vmem:[#allocation9 + $0x7ac] sm:$0xf0] }
 0x3b3   :  { %8162 = vmatpush.bf16.msrb.mxu0 %v12424_v26  ;;  %v12568_v26 = vor.u32 %v14573_v51, %v12565_v34  ;;  %v13363_v51 = vld [vmem:[#allocation9 + $0x7a0] sm:$0xf]  ;;  %v14613_v34 = vld [vmem:[#allocation9 + $0x2a4] sm:$0xf]  ;;  %v12917_v6 = vld [vmem:[#allocation9 + $0x430] sm:$0xf0] }
 0x3b4   :  { %8088 = vmatpush.bf16.msrb.mxu3 %v12868_v35  ;;  %v12771_v35 = vld [vmem:[#allocation9 + $0x300] sm:$0xf]  ;;  %v6274_v39 = vpop.f32.mrf.mxu1  ;;  %v14661_v23 = vld [vmem:[#allocation9 + $0x424] sm:$0xf] }
 0x3b6   :  { %8171 = vmatpush.bf16.msrb.mxu1 %v12632_v22  ;;  %v13156_v22 = vor.u32 %v14723_v12, %v13155_v32 }
 0x3b7   :  { %v6248_v5 = vpop.f32.mrf.mxu3  ;;  %8163 = vmatpush.bf16.msrb.mxu0 %v12408_v1  ;;  %v13171_v1 = vld [vmem:[#allocation9 + $0x620] sm:$0xf] }
 0x3b8   :  { %8089 = vmatpush.bf16.msrb.mxu3 %v12852_v27  ;;  %v12772_v27 = vor.u32 %v14627_v38, %v12771_v35  ;;  %v6249_v62 = vadd.f32 %v6248_v5, %v6235_v0  ;;  %v14731_v35 = vld [vmem:[#allocation9 + $0x64c] sm:$0xf0]  ;;  %v14569_v38 = vld [vmem:[#allocation9 + $0x144] sm:$0xf] }
 0x3b9   :  { %v13188_v44 = vor.u32 %v14731_v35, %v13187_v47  ;;  %v12552_v0 = vor.u32 %v14569_v38, %v12549_v11  ;;  %v6290_v56 = vpop.f32.mrf.mxu2  ;;  %v6316_v50 = vpop.f32.mrf.mxu0  ;;  %v14673_v47 = vld [vmem:[#allocation9 + $0x484] sm:$0xf]  ;;  %v12965_v35 = vld [vmem:[#allocation9 + $0x490] sm:$0xf0]  ;;  %v13347_v38 = vld [vmem:[#allocation9 + $0x780] sm:$0xf] }
 0x3ba   :  { %v6486_v52 = vmax.f32 %v6249_v62, 0.0  ;;  %8172 = vmatpush.bf16.msrb.mxu1 %v12616_v7  ;;  %v14727_v62 = vld [vmem:[#allocation9 + $0x62c] sm:$0xf0] }
 0x3bb   :  { %v13172_v48 = vor.u32 %v14727_v62, %v13171_v1  ;;  %v14783_v7 = vld [vmem:[#allocation9 + $0x7ec] sm:$0xf0]  ;;  %v14669_v1 = vld [vmem:[#allocation9 + $0x464] sm:$0xf]  ;;  %v12949_v62 = vld [vmem:[#allocation9 + $0x470] sm:$0xf0] }
 0x3bc   :  { %8090 = vmatpush.bf16.msrb.mxu3 %v12836_v13  ;;  %v12389_v13 = vld [vmem:[#allocation9 + $0x10] sm:$0xf0]  ;;  %v15786_v57 = vpack.c.bf16 %v6486_v52, %v6478_v28  ;;  %v6276_v46 = vpop.f32.mrf.mxu1  ;;  %v13396_v54 = vor.u32 %v14783_v7, %v13395_v31 }
 0x3bd   :  { %v12392_v24 = vor.u32 %v14529_v40, %v12389_v13  ;;  %v12533_v40 = vld [vmem:[#allocation9 + $0x130] sm:$0xf0] }
 0x3be   :  { %8173 = vmatpush.bf16.msrb.mxu1 %v12600_v61  ;;  %v12536_v42 = vor.u32 %v14565_v36, %v12533_v40  ;;  %v12997_v61 = vld [vmem:[#allocation9 + $0x4d0] sm:$0xf0]  ;;  %v13331_v36 = vld [vmem:[#allocation9 + $0x760] sm:$0xf]  ;;  %v14605_v40 = vld [vmem:[#allocation9 + $0x264] sm:$0xf] }
 0x3bf   :  { %8164 = vmatpush.bf16.msrb.mxu0 %v12392_v24  ;;  %v13013_v24 = vld [vmem:[#allocation9 + $0x4f0] sm:$0xf0] }
 0x3c0   :  { %8091 = vmatpush.bf16.msrb.mxu3 %v12820_v8  ;;  %v13252_v8 = vor.u32 %v14747_v4, %v13251_v25  ;;  %v12517_v25 = vld [vmem:[#allocation9 + $0x110] sm:$0xf0] }
 0x3c2   :  { %8130 = vmatpush.bf16.msra.mxu2 %v13252_v8  ;;  %v12520_v8 = vor.u32 %v14561_v41, %v12517_v25  ;;  %v14763_v41 = vld [vmem:[#allocation9 + $0x74c] sm:$0xf0] }
 0x3c4   :  { %8092 = vmatpush.bf16.msrb.mxu3 %v12804_v60  ;;  %v14577_v60 = vld [vmem:[#allocation9 + $0x184] sm:$0xf] }
 0x3c5   :  { %v12584_v3 = vor.u32 %v14577_v60, %v12581_v43  ;;  %v14779_v60 = vld [vmem:[#allocation9 + $0x7cc] sm:$0xf0] }
 0x3c6   :  { %8131 = vmatpush.bf16.msra.mxu2 %v13236_v20  ;;  %v13380_v43 = vor.u32 %v14779_v60, %v13379_v58  ;;  %v14759_v58 = vld [vmem:[#allocation9 + $0x72c] sm:$0xf0]  ;;  %v14597_v60 = vld [vmem:[#allocation9 + $0x224] sm:$0xf] }
 0x3c7   :  { %8174 = vmatpush.bf16.msrb.mxu1 %v12584_v3  ;;  %v14677_v3 = vld [vmem:[#allocation9 + $0x4a4] sm:$0xf] }
 0x3c8   :  { %8093 = vmatpush.bf16.msrb.mxu3 %v12788_v53  ;;  %v6261_v53 = vadd.f32 %v6260_v10, %v4735_v63  ;;  %v13016_v10 = vor.u32 %v14685_v55, %v13013_v24  ;;  %v12952_v55 = vor.u32 %v14669_v1, %v12949_v62  ;;  %v14665_v24 = vld [vmem:[#allocation9 + $0x444] sm:$0xf]  ;;  %v12885_v1 = vld [vmem:[#allocation9 + $0x3f0] sm:$0xf0] }
 0x3ca   :  { %8132 = vmatpush.bf16.msra.mxu2 %v13220_v21  ;;  %v6275_v37 = vadd.f32 %v6274_v39, %v6261_v53  ;;  %v14617_v21 = vld [vmem:[#allocation9 + $0x2c4] sm:$0xf]  ;;  %v12741_v39 = vld [vmem:[#allocation9 + $0x2d0] sm:$0xf0] }
 0x3cb   :  { %8175 = vmatpush.bf16.msrb.mxu1 %v12568_v26  ;;  %v12744_v63 = vor.u32 %v14617_v21, %v12741_v39  ;;  %v12725_v53 = vld [vmem:[#allocation9 + $0x2b0] sm:$0xf0] }
 0x3cc   :  { %8094 = vmatpush.bf16.msrb.mxu3 %v12772_v27  ;;  %v6289_v5 = vadd.f32 %v6288_v9, %v6275_v37  ;;  %v6277_v27 = vadd.f32 %v6276_v46, %v6263_v17  ;;  %v13000_v9 = vor.u32 %v14681_v14, %v12997_v61  ;;  %v12728_v26 = vor.u32 %v14613_v34, %v12725_v53  ;;  %v14771_v17 = vld [vmem:[#allocation9 + $0x78c] sm:$0xf0]  ;;  %v6330_v37 = vpop.f32.mrf.mxu1  ;;  %v6344_v46 = vpop.f32.mrf.mxu2  ;;  %v12507_v34 = vld [vmem:[#allocation9 + $0xe8] sm:$0xf]  ;;  %v14560_v53 = vld [vmem:[#allocation9 + $0xf4] sm:$0xf0] }
 0x3cd   :  { %v13348_v11 = vor.u32 %v14771_v17, %v13347_v38  ;;  %v12645_v17 = vld [vmem:[#allocation9 + $0x210] sm:$0xf0] }
 0x3ce   :  { %8133 = vmatpush.bf16.msra.mxu2 %v13204_v30  ;;  %v6291_v28 = vadd.f32 %v6290_v56, %v6277_v27  ;;  %v13364_v30 = vor.u32 %v14775_v33, %v13363_v51  ;;  %v12968_v27 = vor.u32 %v14673_v47, %v12965_v35  ;;  %v14755_v47 = vld [vmem:[#allocation9 + $0x70c] sm:$0xf0]  ;;  %v14593_v35 = vld [vmem:[#allocation9 + $0x204] sm:$0xf] }
 0x3cf   :  { %8095 = vmatmul.bf16.vlgmr.msrb.gmra.mxu3 %v15786_v57  ;;  %v6302_v18 = vpop.f32.mrf.mxu3  ;;  %8176 = vmatpush.bf16.msrb.mxu1 %v12552_v0  ;;  %v12709_v0 = vld [vmem:[#allocation9 + $0x290] sm:$0xf0] }
 0x3d0   :  { %v6303_v52 = vadd.f32 %v6302_v18, %v6289_v5  ;;  %8143 = vmatpush.bf16.msra.mxu3 %v13396_v54  ;;  %v12984_v18 = vor.u32 %v14677_v3, %v12981_v49  ;;  %v4736_v5 = vperm.slane %v15769_v29, 5  ;;  %v13315_v29 = vld [vmem:[#allocation9 + $0x740] sm:$0xf]  ;;  %v12920_v3 = vor.u32 %v14661_v23, %v12917_v6  ;;  %v14717_v49 = vld [vmem:[#allocation9 + $0x5e4] sm:$0xf] }
 0x3d2   :  { %8134 = vmatpush.bf16.msra.mxu2 %v13188_v44  ;;  %v6479_v4 = vmax.f32 %v6303_v52, 0.0  ;;  %v14609_v44 = vld [vmem:[#allocation9 + $0x284] sm:$0xf] }
 0x3d3   :  { %8177 = vmatpush.bf16.msrb.mxu1 %v12536_v42  ;;  %v12712_v56 = vor.u32 %v14609_v44, %v12709_v0  ;;  %v12693_v42 = vld [vmem:[#allocation9 + $0x270] sm:$0xf0] }
 0x3d4   :  { %8144 = vmatpush.bf16.msra.mxu3 %v13380_v43  ;;  %v12696_v32 = vor.u32 %v14605_v40, %v12693_v42  ;;  %v6346_v54 = vpop.f32.mrf.mxu2  ;;  %v12661_v43 = vld [vmem:[#allocation9 + $0x230] sm:$0xf0]  ;;  %v14556_v40 = vld [vmem:[#allocation9 + $0xd4] sm:$0xf0] }
 0x3d5   :  { %v12664_v51 = vor.u32 %v14597_v60, %v12661_v43  ;;  %v12869_v42 = vld [vmem:[#allocation9 + $0x3d0] sm:$0xf0]  ;;  %v14701_v43 = vld [vmem:[#allocation9 + $0x564] sm:$0xf] }
 0x3d6   :  { %8135 = vmatpush.bf16.msra.mxu2 %v13172_v48  ;;  %v14767_v48 = vld [vmem:[#allocation9 + $0x76c] sm:$0xf0] }
 0x3d7   :  { %v6304_v13 = vpop.f32.mrf.mxu3  ;;  %8178 = vmatpush.bf16.msrb.mxu1 %v12520_v8  ;;  %v13332_v52 = vor.u32 %v14767_v48, %v13331_v36  ;;  %v13125_v36 = vld [vmem:[#allocation9 + $0x5d0] sm:$0xf0]  ;;  %v12491_v48 = vld [vmem:[#allocation9 + $0xc8] sm:$0xf] }
 0x3d8   :  { %v6305_v45 = vadd.f32 %v6304_v13, %v6291_v28  ;;  %8145 = vmatpush.bf16.msra.mxu3 %v13364_v30  ;;  %v6318_v28 = vpop.f32.mrf.mxu0  ;;  %v6317_v13 = vadd.f32 %v6316_v50, %v4736_v5  ;;  %v12901_v50 = vld [vmem:[#allocation9 + $0x410] sm:$0xf0] }
 0x3d9   :  { %v6319_v25 = vadd.f32 %v6318_v28, %v4736_v5  ;;  %v13141_v30 = vld [vmem:[#allocation9 + $0x5f0] sm:$0xf0]  ;;  %v14713_v5 = vld [vmem:[#allocation9 + $0x5c4] sm:$0xf] }
 0x3da   :  { %v6487_v59 = vmax.f32 %v6305_v45, 0.0  ;;  %8136 = vmatpush.bf16.msra.mxu2 %v13156_v22  ;;  %v12933_v45 = vld [vmem:[#allocation9 + $0x450] sm:$0xf0]  ;;  %v14601_v22 = vld [vmem:[#allocation9 + $0x244] sm:$0xf]  ;;  %v6331_v31 = vadd.f32 %v6330_v37, %v6317_v13  ;;  %v12648_v37 = vor.u32 %v14593_v35, %v12645_v17 }
 0x3db   :  { %v12936_v7 = vor.u32 %v14665_v24, %v12933_v45  ;;  %v12492_v24 = vor.u32 %v14556_v40, %v12491_v48  ;;  %v14709_v45 = vld [vmem:[#allocation9 + $0x5a4] sm:$0xf]  ;;  %v12427_v35 = vld [vmem:[#allocation9 + $0x48] sm:$0xf]  ;;  %v14536_v40 = vld [vmem:[#allocation9 + $0x34] sm:$0xf0] }
 0x3dc   :  { %v15790_v20 = vpack.c.bf16 %v6487_v59, %v6479_v4  ;;  %8146 = vmatpush.bf16.msra.mxu3 %v13348_v11  ;;  %v13316_v4 = vor.u32 %v14763_v41, %v13315_v29  ;;  %v12677_v59 = vld [vmem:[#allocation9 + $0x250] sm:$0xf0]  ;;  %v6345_v14 = vadd.f32 %v6344_v46, %v6331_v31  ;;  %v13144_v46 = vor.u32 %v14717_v49, %v13141_v30  ;;  %v14552_v29 = vld [vmem:[#allocation9 + $0xb4] sm:$0xf0]  ;;  %v6400_v6 = vpop.f32.mrf.mxu2  ;;  %v14637_v49 = vld [vmem:[#allocation9 + $0x364] sm:$0xf] }
 0x3dd   :  { %v12680_v8 = vor.u32 %v14601_v22, %v12677_v59  ;;  %v14645_v22 = vld [vmem:[#allocation9 + $0x3a4] sm:$0xf]  ;;  %v13093_v31 = vld [vmem:[#allocation9 + $0x590] sm:$0xf0]  ;;  %v12411_v48 = vld [vmem:[#allocation9 + $0x28] sm:$0xf] }
 0x3de   :  { %8109 = vmatmul.bf16.vlgmr.msra.gmra.mxu0 %v15790_v20  ;;  %8185 = vmatpush.bf16.msrb.mxu2 %v12760_v15  ;;  %v13299_v15 = vld [vmem:[#allocation9 + $0x720] sm:$0xf] }
 0x3df   :  { %8213 = vmatpush.bf16.msra.mxu0 %v13016_v10  ;;  %v6332_v10 = vpop.f32.mrf.mxu1  ;;  %v13300_v21 = vor.u32 %v14759_v58, %v13299_v15  ;;  %v15799_v15 = vld [vmem:[#allocation7] sm:$0xff] }
 0x3e0   :  { %8147 = vmatpush.bf16.msra.mxu3 %v13332_v52  ;;  %v6333_v61 = vadd.f32 %v6332_v10, %v6319_v25  ;;  %v14649_v52 = vld [vmem:[#allocation9 + $0x3c4] sm:$0xf]  ;;  %v6372_v13 = vpop.f32.mrf.mxu0  ;;  %v12853_v25 = vld [vmem:[#allocation9 + $0x3b0] sm:$0xf0]  ;;  %v14548_v10 = vld [vmem:[#allocation9 + $0x94] sm:$0xf0] }
 0x3e1   :  { %v12872_v41 = vor.u32 %v14649_v52, %v12869_v42  ;;  %v4737_v58 = vperm.slane %v15799_v15, 6 }
 0x3e2   :  { %8186 = vmatpush.bf16.msrb.mxu2 %v12744_v63  ;;  %v6347_v39 = vadd.f32 %v6346_v54, %v6333_v61  ;;  %v14657_v63 = vld [vmem:[#allocation9 + $0x404] sm:$0xf]  ;;  %v12856_v54 = vor.u32 %v14645_v22, %v12853_v25  ;;  %v12837_v61 = vld [vmem:[#allocation9 + $0x390] sm:$0xf0]  ;;  %v12395_v22 = vld [vmem:[#allocation9 + $0x8] sm:$0xf] }
 0x3e3   :  { %8214 = vmatpush.bf16.msra.mxu0 %v13000_v9  ;;  %v12904_v0 = vor.u32 %v14657_v63, %v12901_v50  ;;  %v14532_v25 = vld [vmem:[#allocation9 + $0x14] sm:$0xf0] }
 0x3e4   :  { %8148 = vmatpush.bf16.msra.mxu3 %v13316_v4 }
 0x3e6   :  { %8187 = vmatpush.bf16.msrb.mxu2 %v12728_v26 }
 0x3e7   :  { %8215 = vmatpush.bf16.msra.mxu0 %v12984_v18  ;;  %v13283_v18 = vld [vmem:[#allocation9 + $0x700] sm:$0xf]  ;;  %v6386_v23 = vpop.f32.mrf.mxu1 }
 0x3e8   :  { %8149 = vmatpush.bf16.msra.mxu3 %v13300_v21  ;;  %v13284_v38 = vor.u32 %v14755_v47, %v13283_v18  ;;  %v6374_v50 = vpop.f32.mrf.mxu0  ;;  %v13061_v47 = vld [vmem:[#allocation9 + $0x550] sm:$0xf0] }
 0x3ea   :  { %8188 = vmatpush.bf16.msrb.mxu2 %v12712_v56  ;;  %v12508_v56 = vor.u32 %v14560_v53, %v12507_v34  ;;  %v14697_v53 = vld [vmem:[#allocation9 + $0x544] sm:$0xf] }
 0x3eb   :  { %8216 = vmatpush.bf16.msra.mxu0 %v12968_v27  ;;  %v14653_v27 = vld [vmem:[#allocation9 + $0x3e4] sm:$0xf] }
 0x3ec   :  { %8150 = vmatpush.bf16.msra.mxu3 %v13284_v38  ;;  %v12888_v28 = vor.u32 %v14653_v27, %v12885_v1  ;;  %v14540_v38 = vld [vmem:[#allocation9 + $0x54] sm:$0xf0]  ;;  %v14693_v27 = vld [vmem:[#allocation9 + $0x524] sm:$0xf] }
 0x3ee   :  { %8165 = vmatmul.bf16.vlgmr.msrb.gmra.mxu0 %v15773_v19  ;;  %8189 = vmatpush.bf16.msrb.mxu2 %v12696_v32  ;;  %v13109_v32 = vld [vmem:[#allocation9 + $0x5b0] sm:$0xf0] }
 0x3ef   :  { %8217 = vmatpush.bf16.msra.mxu0 %v12952_v55  ;;  %v13128_v55 = vor.u32 %v14713_v5, %v13125_v36  ;;  %v13112_v4 = vor.u32 %v14709_v45, %v13109_v32  ;;  %v12428_v5 = vor.u32 %v14540_v38, %v12427_v35  ;;  %v13045_v36 = vld [vmem:[#allocation9 + $0x530] sm:$0xf0]  ;;  %v12412_v32 = vor.u32 %v14536_v40, %v12411_v48  ;;  %v14741_v35 = vld [vmem:[#allocation9 + $0x6a4] sm:$0xf]  ;;  %v12603_v38 = vld [vmem:[#allocation9 + $0x1a8] sm:$0xf] }
 0x3f0   :  { %8199 = vmatpush.bf16.msrb.mxu3 %v12888_v28  ;;  %v13048_v45 = vor.u32 %v14693_v27, %v13045_v36  ;;  %v12587_v27 = vld [vmem:[#allocation9 + $0x188] sm:$0xf]  ;;  %v13221_v36 = vld [vmem:[#allocation9 + $0x690] sm:$0xf0]  ;;  %v14676_v40 = vld [vmem:[#allocation9 + $0x494] sm:$0xf0] }
 0x3f1   :  { %v12971_v48 = vld [vmem:[#allocation9 + $0x488] sm:$0xf] }
 0x3f2   :  { %v6358_v12 = vpop.f32.mrf.mxu3  ;;  %8190 = vmatpush.bf16.msrb.mxu2 %v12680_v8  ;;  %v14705_v8 = vld [vmem:[#allocation9 + $0x584] sm:$0xf] }
 0x3f3   :  { %v6359_v9 = vadd.f32 %v6358_v12, %v6345_v14  ;;  %8218 = vmatpush.bf16.msra.mxu0 %v12936_v7  ;;  %v12475_v12 = vld [vmem:[#allocation9 + $0xa8] sm:$0xf]  ;;  %v14641_v14 = vld [vmem:[#allocation9 + $0x384] sm:$0xf]  ;;  %v13096_v60 = vor.u32 %v14705_v8, %v13093_v31 }
 0x3f4   :  { %v12476_v59 = vor.u32 %v14552_v29, %v12475_v12  ;;  %v12459_v7 = vld [vmem:[#allocation9 + $0x88] sm:$0xf]  ;;  %8200 = vmatpush.bf16.msrb.mxu3 %v12872_v41  ;;  %v12840_v63 = vor.u32 %v14641_v14, %v12837_v61  ;;  %v14689_v12 = vld [vmem:[#allocation9 + $0x504] sm:$0xf]  ;;  %v13029_v41 = vld [vmem:[#allocation9 + $0x510] sm:$0xf0] }
 0x3f5   :  { %v6480_v44 = vmax.f32 %v6359_v9, 0.0  ;;  %v12460_v21 = vor.u32 %v14548_v10, %v12459_v7  ;;  %v12443_v9 = vld [vmem:[#allocation9 + $0x68] sm:$0xf]  ;;  %v14749_v8 = vld [vmem:[#allocation9 + $0x6e4] sm:$0xf]  ;;  %v13032_v61 = vor.u32 %v14689_v12, %v13029_v41 }
 0x3f6   :  { %8191 = vmatpush.bf16.msrb.mxu2 %v12664_v51  ;;  %v12821_v51 = vld [vmem:[#allocation9 + $0x370] sm:$0xf0]  ;;  %v12635_v31 = vld [vmem:[#allocation9 + $0x1e8] sm:$0xf]  ;;  %v14592_v7 = vld [vmem:[#allocation9 + $0x1f4] sm:$0xf0] }
 0x3f7   :  { %8219 = vmatpush.bf16.msra.mxu0 %v12920_v3  ;;  %v14544_v3 = vld [vmem:[#allocation9 + $0x74] sm:$0xf0]  ;;  %v12824_v17 = vor.u32 %v14637_v49, %v12821_v51  ;;  %v13269_v10 = vld [vmem:[#allocation9 + $0x6f0] sm:$0xf0]  ;;  %v12955_v41 = vld [vmem:[#allocation9 + $0x468] sm:$0xf] }
 0x3f8   :  { %8201 = vmatpush.bf16.msrb.mxu3 %v12856_v54  ;;  %v12444_v34 = vor.u32 %v14544_v3, %v12443_v9  ;;  %v13019_v54 = vld [vmem:[#allocation9 + $0x4e8] sm:$0xf]  ;;  %v13272_v9 = vor.u32 %v14749_v8, %v13269_v10  ;;  %v14588_v49 = vld [vmem:[#allocation9 + $0x1d4] sm:$0xf0]  ;;  %v13253_v51 = vld [vmem:[#allocation9 + $0x6d0] sm:$0xf0] }
 0x3f9   :  { %v14576_v12 = vld [vmem:[#allocation9 + $0x174] sm:$0xf0]  ;;  %v12555_v10 = vld [vmem:[#allocation9 + $0x148] sm:$0xf] }
 0x3fa   :  { %v6360_v33 = vpop.f32.mrf.mxu3  ;;  %8192 = vmatpush.bf16.msrb.mxu2 %v12648_v37  ;;  %v6388_v37 = vpop.f32.mrf.mxu1 }
 0x3fb   :  { %v6361_v26 = vadd.f32 %v6360_v33, %v6347_v39  ;;  %8220 = vmatpush.bf16.msra.mxu0 %v12904_v0  ;;  %v13077_v39 = vld [vmem:[#allocation9 + $0x570] sm:$0xf0]  ;;  %v6373_v33 = vadd.f32 %v6372_v13, %v4737_v58  ;;  %v14629_v13 = vld [vmem:[#allocation9 + $0x324] sm:$0xf] }
 0x3fc   :  { %v13080_v30 = vor.u32 %v14701_v43, %v13077_v39  ;;  %8202 = vmatpush.bf16.msrb.mxu3 %v12840_v63  ;;  %v12773_v43 = vld [vmem:[#allocation9 + $0x310] sm:$0xf0]  ;;  %v14745_v63 = vld [vmem:[#allocation9 + $0x6c4] sm:$0xf] }
 0x3fd   :  { %v6488_v11 = vmax.f32 %v6361_v26, 0.0  ;;  %v6375_v26 = vadd.f32 %v6374_v50, %v4737_v58  ;;  %v6387_v0 = vadd.f32 %v6386_v23, %v6373_v33  ;;  %v14688_v23 = vld [vmem:[#allocation9 + $0x4f4] sm:$0xf0]  ;;  %v12396_v58 = vor.u32 %v14532_v25, %v12395_v22  ;;  %v12619_v50 = vld [vmem:[#allocation9 + $0x1c8] sm:$0xf] }
 0x3fe   :  { %8221 = vmatmul.bf16.vlgmr.msra.gmra.mxu0 %v15790_v20  ;;  %v13020_v3 = vor.u32 %v14688_v23, %v13019_v54  ;;  %v13003_v33 = vld [vmem:[#allocation9 + $0x4c8] sm:$0xf]  ;;  %v14672_v22 = vld [vmem:[#allocation9 + $0x474] sm:$0xf0] }
 0x3ff   :  { %v15795_v62 = vpack.c.bf16 %v6488_v11, %v6480_v44  ;;  %8269 = vmatpush.bf16.msrb.mxu0 %v12508_v56  ;;  %v14633_v44 = vld [vmem:[#allocation9 + $0x344] sm:$0xf]  ;;  %v12805_v11 = vld [vmem:[#allocation9 + $0x350] sm:$0xf0]  ;;  %v13064_v56 = vor.u32 %v14697_v53, %v13061_v47  ;;  %v6389_v1 = vadd.f32 %v6388_v37, %v6375_v26  ;;  %v6401_v52 = vadd.f32 %v6400_v6, %v6387_v0  ;;  %v6428_v26 = vpop.f32.mrf.mxu0  ;;  %v14680_v0 = vld [vmem:[#allocation9 + $0x4b4] sm:$0xf0] }
 0x400   :  { %8203 = vmatpush.bf16.msrb.mxu3 %v12824_v17  ;;  %v12808_v28 = vor.u32 %v14633_v44, %v12805_v11  ;;  %v12620_v53 = vor.u32 %v14588_v49, %v12619_v50  ;;  %v14584_v17 = vld [vmem:[#allocation9 + $0x1b4] sm:$0xf0]  ;;  %v13237_v44 = vld [vmem:[#allocation9 + $0x6b0] sm:$0xf0]  ;;  %v12987_v11 = vld [vmem:[#allocation9 + $0x4a8] sm:$0xf] }
 0x401   :  { %8123 = vmatmul.bf16.vlgmr.msra.gmra.mxu1 %v15795_v62  ;;  %v12604_v37 = vor.u32 %v14584_v17, %v12603_v38  ;;  %v14572_v54 = vld [vmem:[#allocation9 + $0x154] sm:$0xf0]  ;;  %v12539_v50 = vld [vmem:[#allocation9 + $0x128] sm:$0xf]  ;;  %v13157_v38 = vld [vmem:[#allocation9 + $0x610] sm:$0xf0] }
 0x402   :  { %8227 = vmatpush.bf16.msra.mxu1 %v13144_v46  ;;  %v6402_v46 = vpop.f32.mrf.mxu2  ;;  %v14568_v49 = vld [vmem:[#allocation9 + $0x134] sm:$0xf0]  ;;  %v12523_v17 = vld [vmem:[#allocation9 + $0x108] sm:$0xf] }
 0x403   :  { %8270 = vmatpush.bf16.msrb.mxu0 %v12492_v24  ;;  %v6403_v42 = vadd.f32 %v6402_v46, %v6389_v1  ;;  %v13240_v46 = vor.u32 %v14741_v35, %v13237_v44  ;;  %v14580_v1 = vld [vmem:[#allocation9 + $0x194] sm:$0xf0]  ;;  %v14721_v35 = vld [vmem:[#allocation9 + $0x604] sm:$0xf] }
 0x404   :  { %8204 = vmatpush.bf16.msrb.mxu3 %v12808_v28  ;;  %v6442_v28 = vpop.f32.mrf.mxu1 }
 0x406   :  { %8228 = vmatpush.bf16.msra.mxu1 %v13128_v55  ;;  %v12789_v55 = vld [vmem:[#allocation9 + $0x330] sm:$0xf0] }
 0x407   :  { %8271 = vmatpush.bf16.msrb.mxu0 %v12476_v59  ;;  %v6430_v25 = vpop.f32.mrf.mxu0 }
 0x40a   :  { %8229 = vmatpush.bf16.msra.mxu1 %v13112_v4  ;;  %v12792_v4 = vor.u32 %v14629_v13, %v12789_v55  ;;  %v12588_v13 = vor.u32 %v14580_v1, %v12587_v27  ;;  %v14781_v27 = vld [vmem:[#allocation9 + $0x7e4] sm:$0xf]  ;;  %v13397_v1 = vld [vmem:[#allocation9 + $0x7f0] sm:$0xf0] }
 0x40b   :  { %8272 = vmatpush.bf16.msrb.mxu0 %v12460_v21  ;;  %v14625_v21 = vld [vmem:[#allocation9 + $0x304] sm:$0xf] }
 0x40c   :  { %8205 = vmatpush.bf16.msrb.mxu3 %v12792_v4 }
 0x40e   :  { %8230 = vmatpush.bf16.msra.mxu1 %v13096_v60  ;;  %v12636_v60 = vor.u32 %v14592_v7, %v12635_v31  ;;  %v12956_v31 = vor.u32 %v14672_v22, %v12955_v41  ;;  %v14729_v7 = vld [vmem:[#allocation9 + $0x644] sm:$0xf] }
 0x40f   :  { %8273 = vmatpush.bf16.msrb.mxu0 %v12444_v34  ;;  %v12776_v34 = vor.u32 %v14625_v21, %v12773_v43  ;;  %v6444_v21 = vpop.f32.mrf.mxu1  ;;  %v14777_v22 = vld [vmem:[#allocation9 + $0x7c4] sm:$0xf] }
 0x411   :  { %8179 = vmatmul.bf16.vlgmr.msrb.gmra.mxu1 %v15778_v16  ;;  %8206 = vmatpush.bf16.msrb.mxu3 %v12776_v34  ;;  %v12923_v34 = vld [vmem:[#allocation9 + $0x428] sm:$0xf] }
 0x412   :  { %v6414_v18 = vpop.f32.mrf.mxu3  ;;  %8231 = vmatpush.bf16.msra.mxu1 %v13080_v30  ;;  %v14684_v30 = vld [vmem:[#allocation9 + $0x4d4] sm:$0xf0] }
 0x413   :  { %v6415_v24 = vadd.f32 %v6414_v18, %v6401_v52  ;;  %8274 = vmatpush.bf16.msrb.mxu0 %v12428_v5  ;;  %v13256_v18 = vor.u32 %v14745_v63, %v13253_v51  ;;  %v13004_v47 = vor.u32 %v14684_v30, %v13003_v33  ;;  %v14737_v5 = vld [vmem:[#allocation9 + $0x684] sm:$0xf]  ;;  %v6456_v52 = vpop.f32.mrf.mxu2  ;;  %v13173_v30 = vld [vmem:[#allocation9 + $0x630] sm:$0xf0] }
 0x414   :  { %v13224_v55 = vor.u32 %v14737_v5, %v13221_v36  ;;  %v14725_v63 = vld [vmem:[#allocation9 + $0x624] sm:$0xf]  ;;  %v12763_v36 = vld [vmem:[#allocation9 + $0x2e8] sm:$0xf] }
 0x415   :  { %v6481_v6 = vmax.f32 %v6415_v24, 0.0  ;;  %v12972_v24 = vor.u32 %v14676_v40, %v12971_v48  ;;  %v14624_v48 = vld [vmem:[#allocation9 + $0x2f4] sm:$0xf0]  ;;  %v13147_v40 = vld [vmem:[#allocation9 + $0x5e8] sm:$0xf] }
 0x416   :  { %8232 = vmatpush.bf16.msra.mxu1 %v13064_v56  ;;  %v12988_v56 = vor.u32 %v14680_v0, %v12987_v11  ;;  %v13176_v11 = vor.u32 %v14725_v63, %v13173_v30  ;;  %v12764_v41 = vor.u32 %v14624_v48, %v12763_v36  ;;  %v14550_v63 = vld [vmem:[#allocation9 + $0xac] sm:$0xf]  ;;  %v13349_v30 = vld [vmem:[#allocation9 + $0x790] sm:$0xf0]  ;;  %v14704_v36 = vld [vmem:[#allocation9 + $0x574] sm:$0xf0] }
 0x417   :  { %8275 = vmatpush.bf16.msrb.mxu0 %v12412_v32  ;;  %v12571_v32 = vld [vmem:[#allocation9 + $0x168] sm:$0xf]  ;;  %v14542_v48 = vld [vmem:[#allocation9 + $0x6c] sm:$0xf] }
 0x41a   :  { %v6416_v29 = vpop.f32.mrf.mxu3  ;;  %8233 = vmatpush.bf16.msra.mxu1 %v13048_v45  ;;  %v14733_v45 = vld [vmem:[#allocation9 + $0x664] sm:$0xf] }
 0x41b   :  { %v6417_v59 = vadd.f32 %v6416_v29, %v6403_v42  ;;  %8276 = vmatpush.bf16.msrb.mxu0 %v12396_v58  ;;  %v4738_v42 = vperm.slane %v15799_v15, 7  ;;  %v13205_v29 = vld [vmem:[#allocation9 + $0x670] sm:$0xf0]  ;;  %v6458_v43 = vpop.f32.mrf.mxu2 }
 0x41c   :  { %v13208_v15 = vor.u32 %v14733_v45, %v13205_v29  ;;  %v13160_v45 = vor.u32 %v14721_v35, %v13157_v38  ;;  %v13400_v29 = vor.u32 %v14781_v27, %v13397_v1  ;;  %v14708_v35 = vld [vmem:[#allocation9 + $0x594] sm:$0xf0]  ;;  %v14546_v38 = vld [vmem:[#allocation9 + $0x8c] sm:$0xf]  ;;  %v13083_v1 = vld [vmem:[#allocation9 + $0x568] sm:$0xf] }
 0x41d   :  { %v6489_v14 = vmax.f32 %v6417_v59, 0.0  ;;  %v6429_v4 = vadd.f32 %v6428_v26, %v4738_v42  ;;  %v12572_v59 = vor.u32 %v14576_v12, %v12571_v32  ;;  %v6431_v23 = vadd.f32 %v6430_v25, %v4738_v42  ;;  %v13381_v25 = vld [vmem:[#allocation9 + $0x7d0] sm:$0xf0]  ;;  %v14608_v27 = vld [vmem:[#allocation9 + $0x274] sm:$0xf0] }
 0x41e   :  { %8234 = vmatpush.bf16.msra.mxu1 %v13032_v61  ;;  %8277 = vmatmul.bf16.vlgmr.msrb.gmra.mxu0 %v15773_v19  ;;  %v14668_v61 = vld [vmem:[#allocation9 + $0x454] sm:$0xf0] }
 0x41f   :  { %v15803_v39 = vpack.c.bf16 %v6489_v14, %v6481_v6  ;;  %8325 = vmatpush.bf16.msra.mxu0 %v13020_v3  ;;  %v13189_v6 = vld [vmem:[#allocation9 + $0x650] sm:$0xf0]  ;;  %v12939_v14 = vld [vmem:[#allocation9 + $0x448] sm:$0xf]  ;;  %v6443_v58 = vadd.f32 %v6442_v28, %v6429_v4  ;;  %v6445_v33 = vadd.f32 %v6444_v21, %v6431_v23  ;;  %v14720_v28 = vld [vmem:[#allocation9 + $0x5f4] sm:$0xf0]  ;;  %v13384_v23 = vor.u32 %v14777_v22, %v13381_v25 }
 0x420   :  { %v12940_v3 = vor.u32 %v14668_v61, %v12939_v14  ;;  %v13148_v4 = vor.u32 %v14720_v28, %v13147_v40  ;;  %v14773_v14 = vld [vmem:[#allocation9 + $0x7a4] sm:$0xf]  ;;  %v13365_v61 = vld [vmem:[#allocation9 + $0x7b0] sm:$0xf0]  ;;  %v12731_v21 = vld [vmem:[#allocation9 + $0x2a8] sm:$0xf] }
 0x421   :  { %8137 = vmatmul.bf16.vlgmr.msra.gmra.mxu2 %v15803_v39  ;;  %8235 = vmatmul.bf16.vlgmr.msra.gmra.mxu1 %v15795_v62  ;;  %v6457_v51 = vadd.f32 %v6456_v52, %v6443_v58  ;;  %v6459_v26 = vadd.f32 %v6458_v43, %v6445_v33  ;;  %v14616_v43 = vld [vmem:[#allocation9 + $0x2b4] sm:$0xf0]  ;;  %v14769_v33 = vld [vmem:[#allocation9 + $0x784] sm:$0xf]  ;;  %v12445_v40 = vld [vmem:[#allocation9 + $0x78] sm:$0xf0] }
 0x422   :  { %8283 = vmatpush.bf16.msrb.mxu1 %v12636_v60  ;;  %8241 = vmatpush.bf16.msra.mxu2 %v13272_v9  ;;  %v12556_v60 = vor.u32 %v14572_v54, %v12555_v10  ;;  %v13192_v9 = vor.u32 %v14729_v7, %v13189_v6  ;;  %v14716_v7 = vld [vmem:[#allocation9 + $0x5d4] sm:$0xf0]  ;;  %v14554_v10 = vld [vmem:[#allocation9 + $0xcc] sm:$0xf]  ;;  %v12493_v54 = vld [vmem:[#allocation9 + $0xd8] sm:$0xf0] }
 0x423   :  { %8326 = vmatpush.bf16.msra.mxu0 %v13004_v47  ;;  %v12540_v47 = vor.u32 %v14568_v49, %v12539_v50  ;;  %v12477_v50 = vld [vmem:[#allocation9 + $0xb8] sm:$0xf0]  ;;  %v13368_v49 = vor.u32 %v14773_v14, %v13365_v61  ;;  %v14538_v22 = vld [vmem:[#allocation9 + $0x4c] sm:$0xf] }
 0x424   :  { %v12429_v25 = vld [vmem:[#allocation9 + $0x58] sm:$0xf0]  ;;  %v14534_v14 = vld [vmem:[#allocation9 + $0x2c] sm:$0xf] }
 0x425   :  { %v12413_v61 = vld [vmem:[#allocation9 + $0x38] sm:$0xf0] }
 0x426   :  { %8284 = vmatpush.bf16.msrb.mxu1 %v12620_v53  ;;  %8242 = vmatpush.bf16.msra.mxu2 %v13256_v18  ;;  %v14664_v53 = vld [vmem:[#allocation9 + $0x434] sm:$0xf0] }
 0x427   :  { %8327 = vmatpush.bf16.msra.mxu0 %v12988_v56  ;;  %v12924_v0 = vor.u32 %v14664_v53, %v12923_v34  ;;  %v14660_v56 = vld [vmem:[#allocation9 + $0x414] sm:$0xf0]  ;;  %v12480_v53 = vor.u32 %v14550_v63, %v12477_v50  ;;  %v12416_v50 = vor.u32 %v14534_v14, %v12413_v61  ;;  %v13227_v14 = vld [vmem:[#allocation9 + $0x688] sm:$0xf] }
 0x428   :  { %v14740_v61 = vld [vmem:[#allocation9 + $0x694] sm:$0xf0] }
 0x42a   :  { %8285 = vmatpush.bf16.msrb.mxu1 %v12604_v37  ;;  %8243 = vmatpush.bf16.msra.mxu2 %v13240_v46  ;;  %v14564_v37 = vld [vmem:[#allocation9 + $0x114] sm:$0xf0]  ;;  %v12907_v46 = vld [vmem:[#allocation9 + $0x408] sm:$0xf] }
 0x42b   :  { %8328 = vmatpush.bf16.msra.mxu0 %v12972_v24  ;;  %v12509_v24 = vld [vmem:[#allocation9 + $0xf8] sm:$0xf0]  ;;  %v12908_v32 = vor.u32 %v14660_v56, %v12907_v46 }
 0x42e   :  { %8286 = vmatpush.bf16.msrb.mxu1 %v12588_v13  ;;  %8244 = vmatpush.bf16.msra.mxu2 %v13224_v55  ;;  %v12524_v13 = vor.u32 %v14564_v37, %v12523_v17  ;;  %v14558_v55 = vld [vmem:[#allocation9 + $0xec] sm:$0xf]  ;;  %v12461_v17 = vld [vmem:[#allocation9 + $0x98] sm:$0xf0]  ;;  %v13333_v37 = vld [vmem:[#allocation9 + $0x770] sm:$0xf0] }
 0x42f   :  { %8329 = vmatpush.bf16.msra.mxu0 %v12956_v31  ;;  %v13131_v31 = vld [vmem:[#allocation9 + $0x5c8] sm:$0xf]  ;;  %v12464_v56 = vor.u32 %v14546_v38, %v12461_v17  ;;  %v12637_v17 = vld [vmem:[#allocation9 + $0x1f8] sm:$0xf0] }
 0x430   :  { %v13132_v58 = vor.u32 %v14716_v7, %v13131_v31  ;;  %v12432_v7 = vor.u32 %v14538_v22, %v12429_v25  ;;  %v13243_v22 = vld [vmem:[#allocation9 + $0x6a8] sm:$0xf]  ;;  %v14744_v25 = vld [vmem:[#allocation9 + $0x6b4] sm:$0xf0] }
 0x431   :  { %8193 = vmatmul.bf16.vlgmr.msrb.gmra.mxu2 %v15781_v2 }
 0x432   :  { %v6470_v8 = vpop.f32.mrf.mxu3  ;;  %8287 = vmatpush.bf16.msrb.mxu1 %v12572_v59  ;;  %8245 = vmatpush.bf16.msra.mxu2 %v13208_v15  ;;  %v12512_v59 = vor.u32 %v14558_v55, %v12509_v24  ;;  %v14620_v15 = vld [vmem:[#allocation9 + $0x2d4] sm:$0xf0]  ;;  %v13084_v55 = vor.u32 %v14704_v36, %v13083_v1  ;;  %v12448_v24 = vor.u32 %v14542_v48, %v12445_v40  ;;  %v13259_v48 = vld [vmem:[#allocation9 + $0x6c8] sm:$0xf] }
 0x433   :  { %v6471_v18 = vadd.f32 %v6470_v8, %v6457_v51  ;;  %8330 = vmatpush.bf16.msra.mxu0 %v12940_v3  ;;  %v12747_v8 = vld [vmem:[#allocation9 + $0x2c8] sm:$0xf]  ;;  %v14712_v3 = vld [vmem:[#allocation9 + $0x5b4] sm:$0xf0]  ;;  %v12732_v51 = vor.u32 %v14616_v43, %v12731_v21  ;;  %v13285_v43 = vld [vmem:[#allocation9 + $0x710] sm:$0xf0] }
 0x434   :  { %v12748_v6 = vor.u32 %v14620_v15, %v12747_v8  ;;  %v14757_v8 = vld [vmem:[#allocation9 + $0x724] sm:$0xf]  ;;  %v13301_v15 = vld [vmem:[#allocation9 + $0x730] sm:$0xf0]  ;;  %v14748_v40 = vld [vmem:[#allocation9 + $0x6d4] sm:$0xf0] }
 0x435   :  { %v6482_v52 = vmax.f32 %v6471_v18, 0.0  ;;  %v14612_v18 = vld [vmem:[#allocation9 + $0x294] sm:$0xf0] }
 0x436   :  { %8288 = vmatpush.bf16.msrb.mxu1 %v12556_v60  ;;  %8246 = vmatpush.bf16.msra.mxu2 %v13192_v9  ;;  %v12496_v60 = vor.u32 %v14554_v10, %v12493_v54  ;;  %v13115_v9 = vld [vmem:[#allocation9 + $0x5a8] sm:$0xf]  ;;  %v14600_v54 = vld [vmem:[#allocation9 + $0x234] sm:$0xf0] }
 0x437   :  { %8331 = vmatpush.bf16.msra.mxu0 %v12924_v0  ;;  %v13116_v34 = vor.u32 %v14712_v3, %v13115_v9  ;;  %v14765_v0 = vld [vmem:[#allocation9 + $0x764] sm:$0xf]  ;;  %v12667_v10 = vld [vmem:[#allocation9 + $0x228] sm:$0xf]  ;;  %v14596_v3 = vld [vmem:[#allocation9 + $0x214] sm:$0xf0] }
 0x438   :  { %v13336_v28 = vor.u32 %v14765_v0, %v13333_v37  ;;  %v12668_v21 = vor.u32 %v14600_v54, %v12667_v10  ;;  %v12651_v9 = vld [vmem:[#allocation9 + $0x208] sm:$0xf]  ;;  %v14644_v54 = vld [vmem:[#allocation9 + $0x394] sm:$0xf0] }
 0x439   :  { %v12652_v38 = vor.u32 %v14596_v3, %v12651_v9  ;;  %v12843_v10 = vld [vmem:[#allocation9 + $0x388] sm:$0xf]  ;;  %v13228_v9 = vor.u32 %v14740_v61, %v13227_v14  ;;  %v12765_v14 = vld [vmem:[#allocation9 + $0x2f8] sm:$0xf0] }
 0x43a   :  { %v6472_v44 = vpop.f32.mrf.mxu3  ;;  %8289 = vmatpush.bf16.msrb.mxu1 %v12540_v47  ;;  %8247 = vmatpush.bf16.msra.mxu2 %v13176_v11  ;;  %v13099_v47 = vld [vmem:[#allocation9 + $0x588] sm:$0xf] }
 0x43b   :  { %v6473_v5 = vadd.f32 %v6472_v44, %v6459_v26  ;;  %8332 = vmatpush.bf16.msra.mxu0 %v12908_v32  ;;  %v12715_v26 = vld [vmem:[#allocation9 + $0x288] sm:$0xf]  ;;  %v13352_v44 = vor.u32 %v14769_v33, %v13349_v30  ;;  %v13100_v46 = vor.u32 %v14708_v35, %v13099_v47  ;;  %v14604_v32 = vld [vmem:[#allocation9 + $0x254] sm:$0xf0]  ;;  %v14530_v33 = vld [vmem:[#allocation9 + $0xc] sm:$0xf] }
 0x43c   :  { %v12716_v11 = vor.u32 %v14612_v18, %v12715_v26  ;;  %v12397_v30 = vld [vmem:[#allocation9 + $0x18] sm:$0xf0]  ;;  %v13275_v26 = vld [vmem:[#allocation9 + $0x6e8] sm:$0xf]  ;;  %v14752_v18 = vld [vmem:[#allocation9 + $0x6f4] sm:$0xf0] }
 0x43d   :  { %v6490_v42 = vmax.f32 %v6473_v5, 0.0  ;;  %v12699_v5 = vld [vmem:[#allocation9 + $0x268] sm:$0xf]  ;;  %v14590_v47 = vld [vmem:[#allocation9 + $0x1ec] sm:$0xf]  ;;  %v12400_v37 = vor.u32 %v14530_v33, %v12397_v30 }
 0x43e   :  { %8290 = vmatpush.bf16.msrb.mxu1 %v12524_v13  ;;  %8248 = vmatpush.bf16.msra.mxu2 %v13160_v45  ;;  %v13317_v13 = vld [vmem:[#allocation9 + $0x750] sm:$0xf0]  ;;  %v12683_v45 = vld [vmem:[#allocation9 + $0x248] sm:$0xf]  ;;  %v12640_v1 = vor.u32 %v14590_v47, %v12637_v17  ;;  %v14736_v33 = vld [vmem:[#allocation9 + $0x674] sm:$0xf0] }
 0x43f   :  { %v15810_v12 = vpack.c.bf16 %v6490_v42, %v6482_v52  ;;  %8381 = vmatpush.bf16.msrb.mxu0 %v12512_v59  ;;  %v12700_v52 = vor.u32 %v14608_v27, %v12699_v5  ;;  %v14761_v42 = vld [vmem:[#allocation9 + $0x744] sm:$0xf]  ;;  %v12684_v59 = vor.u32 %v14604_v32, %v12683_v45  ;;  %v12875_v5 = vld [vmem:[#allocation9 + $0x3c8] sm:$0xf]  ;;  %v14652_v27 = vld [vmem:[#allocation9 + $0x3d4] sm:$0xf0] }
 0x440   :  { %8333 = vmatmul.bf16.vlgmr.msra.gmra.mxu0 %v15790_v20  ;;  %v12859_v45 = vld [vmem:[#allocation9 + $0x3a8] sm:$0xf]  ;;  %v14648_v32 = vld [vmem:[#allocation9 + $0x3b4] sm:$0xf0]  ;;  %v14574_v30 = vld [vmem:[#allocation9 + $0x16c] sm:$0xf] }
 0x441   :  { %8151 = vmatmul.bf16.vlgmr.msra.gmra.mxu3 %v15810_v12  ;;  %8291 = vmatmul.bf16.vlgmr.msrb.gmra.mxu1 %v15778_v16  ;;  %v12827_v3 = vld [vmem:[#allocation9 + $0x368] sm:$0xf] }
 0x442   :  { %8255 = vmatpush.bf16.msra.mxu3 %v13400_v29  ;;  %8297 = vmatpush.bf16.msrb.mxu2 %v12764_v41  ;;  %v13067_v29 = vld [vmem:[#allocation9 + $0x548] sm:$0xf]  ;;  %v14700_v41 = vld [vmem:[#allocation9 + $0x554] sm:$0xf0] }
 0x443   :  { %8339 = vmatpush.bf16.msra.mxu1 %v13148_v4  ;;  %8249 = vmatmul.bf16.vlgmr.msra.gmra.mxu2 %v15803_v39  ;;  %v13320_v4 = vor.u32 %v14761_v42, %v13317_v13  ;;  %v13068_v31 = vor.u32 %v14700_v41, %v13067_v29  ;;  %v14682_v42 = vld [vmem:[#allocation9 + $0x4cc] sm:$0xf]  ;;  %v13005_v13 = vld [vmem:[#allocation9 + $0x4d8] sm:$0xf0] }
 0x444   :  { %8382 = vmatpush.bf16.msrb.mxu0 %v12496_v60  ;;  %v13304_v60 = vor.u32 %v14757_v8, %v13301_v15  ;;  %v13008_v41 = vor.u32 %v14682_v42, %v13005_v13  ;;  %v14678_v8 = vld [vmem:[#allocation9 + $0x4ac] sm:$0xf]  ;;  %v12989_v15 = vld [vmem:[#allocation9 + $0x4b8] sm:$0xf0]  ;;  %v14728_v42 = vld [vmem:[#allocation9 + $0x634] sm:$0xf0] }
 0x445   :  { %v14566_v13 = vld [vmem:[#allocation9 + $0x12c] sm:$0xf] }
 0x446   :  { %8256 = vmatpush.bf16.msra.mxu3 %v13384_v23  ;;  %8298 = vmatpush.bf16.msrb.mxu2 %v12748_v6  ;;  %v13051_v23 = vld [vmem:[#allocation9 + $0x528] sm:$0xf]  ;;  %v14696_v6 = vld [vmem:[#allocation9 + $0x534] sm:$0xf0] }
 0x447   :  { %8340 = vmatpush.bf16.msra.mxu1 %v13132_v58  ;;  %v14753_v58 = vld [vmem:[#allocation9 + $0x704] sm:$0xf]  ;;  %v13052_v63 = vor.u32 %v14696_v6, %v13051_v23  ;;  %v12992_v6 = vor.u32 %v14678_v8, %v12989_v15  ;;  %v14724_v8 = vld [vmem:[#allocation9 + $0x614] sm:$0xf0]  ;;  %v14562_v15 = vld [vmem:[#allocation9 + $0x10c] sm:$0xf] }
 0x448   :  { %8383 = vmatpush.bf16.msrb.mxu0 %v12480_v53  ;;  %v14656_v53 = vld [vmem:[#allocation9 + $0x3f4] sm:$0xf0]  ;;  %v13288_v35 = vor.u32 %v14753_v58, %v13285_v43  ;;  %v14578_v58 = vld [vmem:[#allocation9 + $0x18c] sm:$0xf]  ;;  %v12973_v43 = vld [vmem:[#allocation9 + $0x498] sm:$0xf0] }
 0x44a   :  { %8257 = vmatpush.bf16.msra.mxu3 %v13368_v49  ;;  %8299 = vmatpush.bf16.msrb.mxu2 %v12732_v51  ;;  %v13035_v49 = vld [vmem:[#allocation9 + $0x508] sm:$0xf]  ;;  %v14692_v51 = vld [vmem:[#allocation9 + $0x514] sm:$0xf0] }
 0x44b   :  { %8341 = vmatpush.bf16.msra.mxu1 %v13116_v34  ;;  %v12891_v34 = vld [vmem:[#allocation9 + $0x3e8] sm:$0xf]  ;;  %v13036_v0 = vor.u32 %v14692_v51, %v13035_v49 }
 0x44c   :  { %8384 = vmatpush.bf16.msrb.mxu0 %v12464_v56  ;;  %v13276_v56 = vor.u32 %v14752_v18, %v13275_v26  ;;  %v13211_v51 = vld [vmem:[#allocation9 + $0x668] sm:$0xf]  ;;  %v12957_v26 = vld [vmem:[#allocation9 + $0x478] sm:$0xf0] }
 0x44d   :  { %v13212_v47 = vor.u32 %v14736_v33, %v13211_v51  ;;  %v14618_v51 = vld [vmem:[#allocation9 + $0x2cc] sm:$0xf]  ;;  %v12749_v33 = vld [vmem:[#allocation9 + $0x2d8] sm:$0xf0] }
 0x44e   :  { %8258 = vmatpush.bf16.msra.mxu3 %v13352_v44  ;;  %8300 = vmatpush.bf16.msrb.mxu2 %v12716_v11  ;;  %v14686_v44 = vld [vmem:[#allocation9 + $0x4ec] sm:$0xf]  ;;  %v13021_v11 = vld [vmem:[#allocation9 + $0x4f8] sm:$0xf0] }
 0x44f   :  { %8342 = vmatpush.bf16.msra.mxu1 %v13100_v46  ;;  %v12892_v46 = vor.u32 %v14656_v53, %v12891_v34  ;;  %v13024_v36 = vor.u32 %v14686_v44, %v13021_v11  ;;  %v12573_v34 = vld [vmem:[#allocation9 + $0x178] sm:$0xf0]  ;;  %v14670_v53 = vld [vmem:[#allocation9 + $0x46c] sm:$0xf]  ;;  %v13195_v11 = vld [vmem:[#allocation9 + $0x648] sm:$0xf] }
 0x450   :  { %8385 = vmatpush.bf16.msrb.mxu0 %v12448_v24  ;;  %v13260_v24 = vor.u32 %v14748_v40, %v13259_v48  ;;  %v12576_v17 = vor.u32 %v14574_v30, %v12573_v34  ;;  %v12960_v44 = vor.u32 %v14670_v53, %v12957_v26  ;;  %v14632_v48 = vld [vmem:[#allocation9 + $0x334] sm:$0xf0]  ;;  %v14714_v30 = vld [vmem:[#allocation9 + $0x5cc] sm:$0xf]  ;;  %v13133_v34 = vld [vmem:[#allocation9 + $0x5d8] sm:$0xf0]  ;;  %v12752_v26 = vor.u32 %v14618_v51, %v12749_v33 }
 0x451   :  { %8207 = vmatmul.bf16.vlgmr.msrb.gmra.mxu3 %v15786_v57 }
 0x452   :  { %8259 = vmatpush.bf16.msra.mxu3 %v13336_v28  ;;  %8301 = vmatpush.bf16.msrb.mxu2 %v12700_v52  ;;  %v14586_v28 = vld [vmem:[#allocation9 + $0x1cc] sm:$0xf]  ;;  %v12621_v52 = vld [vmem:[#allocation9 + $0x1d8] sm:$0xf0] }
 0x453   :  { %8343 = vmatpush.bf16.msra.mxu1 %v13084_v55  ;;  %v12876_v55 = vor.u32 %v14652_v27, %v12875_v5  ;;  %v12624_v29 = vor.u32 %v14586_v28, %v12621_v52  ;;  %v12941_v5 = vld [vmem:[#allocation9 + $0x458] sm:$0xf0]  ;;  %v13179_v52 = vld [vmem:[#allocation9 + $0x628] sm:$0xf] }
 0x454   :  { %8386 = vmatpush.bf16.msrb.mxu0 %v12432_v7  ;;  %v13244_v7 = vor.u32 %v14744_v25, %v13243_v22  ;;  %v14628_v22 = vld [vmem:[#allocation9 + $0x314] sm:$0xf0]  ;;  %v13163_v25 = vld [vmem:[#allocation9 + $0x608] sm:$0xf] }
 0x456   :  { %8260 = vmatpush.bf16.msra.mxu3 %v13320_v4  ;;  %8302 = vmatpush.bf16.msrb.mxu2 %v12684_v59  ;;  %v14582_v4 = vld [vmem:[#allocation9 + $0x1ac] sm:$0xf]  ;;  %v12605_v59 = vld [vmem:[#allocation9 + $0x1b8] sm:$0xf0] }
 0x457   :  { %8344 = vmatpush.bf16.msra.mxu1 %v13068_v31  ;;  %v12860_v31 = vor.u32 %v14648_v32, %v12859_v45  ;;  %v12608_v23 = vor.u32 %v14582_v4, %v12605_v59  ;;  %v12925_v45 = vld [vmem:[#allocation9 + $0x438] sm:$0xf0] }
 0x458   :  { %8387 = vmatpush.bf16.msrb.mxu0 %v12416_v50 }
 0x45a   :  { %8261 = vmatpush.bf16.msra.mxu3 %v13304_v60  ;;  %8303 = vmatpush.bf16.msrb.mxu2 %v12668_v21  ;;  %v12589_v60 = vld [vmem:[#allocation9 + $0x198] sm:$0xf0]  ;;  %v14674_v21 = vld [vmem:[#allocation9 + $0x48c] sm:$0xf] }
 0x45b   :  { %8345 = vmatpush.bf16.msra.mxu1 %v13052_v63  ;;  %v14640_v63 = vld [vmem:[#allocation9 + $0x374] sm:$0xf0]  ;;  %v12592_v50 = vor.u32 %v14578_v58, %v12589_v60  ;;  %v12976_v49 = vor.u32 %v14674_v21, %v12973_v43  ;;  %v13164_v58 = vor.u32 %v14724_v8, %v13163_v25  ;;  %v14718_v60 = vld [vmem:[#allocation9 + $0x5ec] sm:$0xf]  ;;  %v13149_v21 = vld [vmem:[#allocation9 + $0x5f8] sm:$0xf0] }
 0x45c   :  { %8388 = vmatpush.bf16.msrb.mxu0 %v12400_v37  ;;  %v12828_v18 = vor.u32 %v14640_v63, %v12827_v3  ;;  %v14570_v37 = vld [vmem:[#allocation9 + $0x14c] sm:$0xf]  ;;  %v13387_v63 = vld [vmem:[#allocation9 + $0x7c8] sm:$0xf] }
 0x45d   :  { %v13323_v25 = vld [vmem:[#allocation9 + $0x748] sm:$0xf]  ;;  %v14602_v8 = vld [vmem:[#allocation9 + $0x24c] sm:$0xf] }
 0x45e   :  { %8262 = vmatpush.bf16.msra.mxu3 %v13288_v35  ;;  %8304 = vmatpush.bf16.msrb.mxu2 %v12652_v38  ;;  %v12811_v35 = vld [vmem:[#allocation9 + $0x348] sm:$0xf]  ;;  %v14636_v38 = vld [vmem:[#allocation9 + $0x354] sm:$0xf0] }
 0x45f   :  { %8346 = vmatpush.bf16.msra.mxu1 %v13036_v0  ;;  %8389 = vmatmul.bf16.vlgmr.msrb.gmra.mxu0 %v15773_v19  ;;  %v12844_v19 = vor.u32 %v14644_v54, %v12843_v10  ;;  %v14732_v0 = vld [vmem:[#allocation9 + $0x654] sm:$0xf0]  ;;  %v12812_v27 = vor.u32 %v14636_v38, %v12811_v35  ;;  %v12909_v10 = vld [vmem:[#allocation9 + $0x418] sm:$0xf0]  ;;  %v13403_v54 = vld [vmem:[#allocation9 + $0x7e8] sm:$0xf] }
 0x460   :  { %8437 = vmatpush.bf16.msra.mxu0 %v13024_v36  ;;  %v12795_v36 = vld [vmem:[#allocation9 + $0x328] sm:$0xf]  ;;  %v14776_v35 = vld [vmem:[#allocation9 + $0x7b4] sm:$0xf0]  ;;  %v14614_v38 = vld [vmem:[#allocation9 + $0x2ac] sm:$0xf] }
 0x461   :  { %8305 = vmatmul.bf16.vlgmr.msrb.gmra.mxu2 %v15781_v2  ;;  %8263 = vmatmul.bf16.vlgmr.msra.gmra.mxu3 %v15810_v12  ;;  %v12796_v32 = vor.u32 %v14632_v48, %v12795_v36  ;;  %v14706_v36 = vld [vmem:[#allocation9 + $0x58c] sm:$0xf]  ;;  %v13101_v48 = vld [vmem:[#allocation9 + $0x598] sm:$0xf0] }
 0x462   :  { %8311 = vmatpush.bf16.msrb.mxu3 %v12892_v46  ;;  %8353 = vmatpush.bf16.msra.mxu2 %v13276_v56  ;;  %v12557_v46 = vld [vmem:[#allocation9 + $0x158] sm:$0xf0]  ;;  %v14666_v56 = vld [vmem:[#allocation9 + $0x44c] sm:$0xf] }
 0x463   :  { %8395 = vmatpush.bf16.msrb.mxu1 %v12640_v1  ;;  %v13196_v1 = vor.u32 %v14732_v0, %v13195_v11  ;;  %v12560_v40 = vor.u32 %v14570_v37, %v12557_v46  ;;  %v12944_v28 = vor.u32 %v14666_v56, %v12941_v5  ;;  %v13117_v11 = vld [vmem:[#allocation9 + $0x5b8] sm:$0xf0]  ;;  %v13355_v46 = vld [vmem:[#allocation9 + $0x788] sm:$0xf]  ;;  %v14772_v5 = vld [vmem:[#allocation9 + $0x794] sm:$0xf0] }
 0x464   :  { %8347 = vmatmul.bf16.vlgmr.msra.gmra.mxu1 %v15795_v62  ;;  %8438 = vmatpush.bf16.msra.mxu0 %v13008_v41  ;;  %v12779_v41 = vld [vmem:[#allocation9 + $0x308] sm:$0xf] }
 0x465   :  { %v12780_v61 = vor.u32 %v14628_v22, %v12779_v41 }
 0x466   :  { %8312 = vmatpush.bf16.msrb.mxu3 %v12876_v55  ;;  %8354 = vmatpush.bf16.msra.mxu2 %v13260_v24  ;;  %v12541_v55 = vld [vmem:[#allocation9 + $0x138] sm:$0xf0]  ;;  %v14662_v24 = vld [vmem:[#allocation9 + $0x42c] sm:$0xf] }
 0x467   :  { %8396 = vmatpush.bf16.msrb.mxu1 %v12624_v29  ;;  %v13180_v29 = vor.u32 %v14728_v42, %v13179_v52  ;;  %v12544_v4 = vor.u32 %v14566_v13, %v12541_v55  ;;  %v12928_v59 = vor.u32 %v14662_v24, %v12925_v45  ;;  %v14768_v52 = vld [vmem:[#allocation9 + $0x774] sm:$0xf0]  ;;  %v14606_v42 = vld [vmem:[#allocation9 + $0x26c] sm:$0xf]  ;;  %v12701_v13 = vld [vmem:[#allocation9 + $0x278] sm:$0xf0] }
 0x468   :  { %8439 = vmatpush.bf16.msra.mxu0 %v12992_v6  ;;  %v14622_v6 = vld [vmem:[#allocation9 + $0x2ec] sm:$0xf]  ;;  %v13085_v24 = vld [vmem:[#allocation9 + $0x578] sm:$0xf0]  ;;  %v13467_v45 = vld [vmem:[#allocation12 + $0x70] sm:$0xf]  ;;  %v12704_v22 = vor.u32 %v14606_v42, %v12701_v13 }
 0x469   :  { %v12768_v3 = vor.u32 %v14622_v6, %v12765_v14  ;;  %v14702_v55 = vld [vmem:[#allocation9 + $0x56c] sm:$0xf] }
 0x46a   :  { %8313 = vmatpush.bf16.msrb.mxu3 %v12860_v31  ;;  %8355 = vmatpush.bf16.msra.mxu2 %v13244_v7  ;;  %v12525_v31 = vld [vmem:[#allocation9 + $0x118] sm:$0xf0]  ;;  %v14658_v7 = vld [vmem:[#allocation9 + $0x40c] sm:$0xf] }
 0x46b   :  { %8397 = vmatpush.bf16.msrb.mxu1 %v12608_v23  ;;  %v14784_v23 = vld [vmem:[#allocation9 + $0x7f4] sm:$0xf0]  ;;  %v12528_v43 = vor.u32 %v14562_v15, %v12525_v31  ;;  %v12685_v15 = vld [vmem:[#allocation9 + $0x258] sm:$0xf0]  ;;  %v14698_v31 = vld [vmem:[#allocation9 + $0x54c] sm:$0xf] }
 0x46c   :  { %8440 = vmatpush.bf16.msra.mxu0 %v12976_v49  ;;  %v14780_v49 = vld [vmem:[#allocation9 + $0x7d4] sm:$0xf0]  ;;  %v12688_v14 = vor.u32 %v14602_v8, %v12685_v15  ;;  %v14646_v13 = vld [vmem:[#allocation9 + $0x3ac] sm:$0xf]  ;;  %v12845_v15 = vld [vmem:[#allocation9 + $0x398] sm:$0xf0] }
 0x46d   :  { %v13388_v53 = vor.u32 %v14780_v49, %v13387_v63  ;;  %v14796_v63 = vld [vmem:[#allocation12 + $0x54] sm:$0xf0] }
 0x46e   :  { %8314 = vmatpush.bf16.msrb.mxu3 %v12844_v19  ;;  %8356 = vmatpush.bf16.msra.mxu2 %v13228_v9  ;;  %v12912_v19 = vor.u32 %v14658_v7, %v12909_v10  ;;  %v13404_v9 = vor.u32 %v14784_v23, %v13403_v54  ;;  %v13069_v7 = vld [vmem:[#allocation9 + $0x558] sm:$0xf0]  ;;  %v13459_v10 = vld [vmem:[#allocation12 + $0x60] sm:$0xf]  ;;  %v14798_v54 = vld [vmem:[#allocation12 + $0x64] sm:$0xf0] }
 0x46f   :  { %8398 = vmatpush.bf16.msrb.mxu1 %v12592_v50  ;;  %v13152_v50 = vor.u32 %v14718_v60, %v13149_v21  ;;  %v13460_v23 = vor.u32 %v14798_v54, %v13459_v10  ;;  %v13072_v60 = vor.u32 %v14698_v31, %v13069_v7  ;;  %v14598_v21 = vld [vmem:[#allocation9 + $0x22c] sm:$0xf]  ;;  %v13419_v31 = vld [vmem:[#allocation12 + $0x10] sm:$0xf]  ;;  %v14788_v7 = vld [vmem:[#allocation12 + $0x14] sm:$0xf0] }
 0x470   :  { %8441 = vmatpush.bf16.msra.mxu0 %v12960_v44  ;;  %v14710_v44 = vld [vmem:[#allocation9 + $0x5ac] sm:$0xf]  ;;  %v13229_v54 = vld [vmem:[#allocation9 + $0x698] sm:$0xf0] }
 0x471   :  { %v13120_v56 = vor.u32 %v14710_v44, %v13117_v11  ;;  %v14794_v44 = vld [vmem:[#allocation12 + $0x44] sm:$0xf0] }
 0x472   :  { %8315 = vmatpush.bf16.msrb.mxu3 %v12828_v18  ;;  %8357 = vmatpush.bf16.msra.mxu2 %v13212_v47  ;;  %v13371_v18 = vld [vmem:[#allocation9 + $0x7a8] sm:$0xf]  ;;  %v13136_v47 = vor.u32 %v14714_v30, %v13133_v34  ;;  %v14756_v30 = vld [vmem:[#allocation9 + $0x714] sm:$0xf0]  ;;  %v14594_v34 = vld [vmem:[#allocation9 + $0x20c] sm:$0xf] }
 0x473   :  { %8399 = vmatpush.bf16.msrb.mxu1 %v12576_v17  ;;  %v12733_v17 = vld [vmem:[#allocation9 + $0x2b8] sm:$0xf0]  ;;  %v13372_v0 = vor.u32 %v14776_v35, %v13371_v18  ;;  %v14690_v18 = vld [vmem:[#allocation9 + $0x50c] sm:$0xf] }
 0x474   :  { %8442 = vmatpush.bf16.msra.mxu0 %v12944_v28  ;;  %v12736_v37 = vor.u32 %v14614_v38, %v12733_v17  ;;  %v13339_v28 = vld [vmem:[#allocation9 + $0x768] sm:$0xf]  ;;  %v14654_v35 = vld [vmem:[#allocation9 + $0x3ec] sm:$0xf]  ;;  %v12893_v38 = vld [vmem:[#allocation9 + $0x3f8] sm:$0xf0] }
 0x475   :  { %v13340_v41 = vor.u32 %v14768_v52, %v13339_v28  ;;  %v13443_v17 = vld [vmem:[#allocation12 + $0x40] sm:$0xf]  ;;  %v14750_v11 = vld [vmem:[#allocation9 + $0x6ec] sm:$0xf]  ;;  %v13261_v52 = vld [vmem:[#allocation9 + $0x6d8] sm:$0xf0] }
 0x476   :  { %8316 = vmatpush.bf16.msrb.mxu3 %v12812_v27  ;;  %8358 = vmatpush.bf16.msra.mxu2 %v13196_v1  ;;  %v14610_v27 = vld [vmem:[#allocation9 + $0x28c] sm:$0xf]  ;;  %v12717_v1 = vld [vmem:[#allocation9 + $0x298] sm:$0xf0] }
 0x477   :  { %8400 = vmatpush.bf16.msrb.mxu1 %v12560_v40  ;;  %v13356_v40 = vor.u32 %v14772_v5, %v13355_v46  ;;  %v14746_v28 = vld [vmem:[#allocation9 + $0x6cc] sm:$0xf] }
 0x478   :  { %8443 = vmatpush.bf16.msra.mxu0 %v12928_v59  ;;  %v13088_v59 = vor.u32 %v14702_v55, %v13085_v24  ;;  %v13264_v55 = vor.u32 %v14746_v28, %v13261_v52  ;;  %v12861_v24 = vld [vmem:[#allocation9 + $0x3b8] sm:$0xf0]  ;;  %v14738_v10 = vld [vmem:[#allocation9 + $0x68c] sm:$0xf] }
 0x479   :  { %v14626_v28 = vld [vmem:[#allocation9 + $0x30c] sm:$0xf] }
 0x47a   :  { %8317 = vmatpush.bf16.msrb.mxu3 %v12796_v32  ;;  %8359 = vmatpush.bf16.msra.mxu2 %v13180_v29  ;;  %v14800_v32 = vld [vmem:[#allocation12 + $0x74] sm:$0xf0] }
 0x47b   :  { %8401 = vmatpush.bf16.msrb.mxu1 %v12544_v4  ;;  %v13468_v29 = vor.u32 %v14800_v32, %v13467_v45  ;;  %v14764_v4 = vld [vmem:[#allocation9 + $0x754] sm:$0xf0]  ;;  %v13427_v45 = vld [vmem:[#allocation12 + $0x20] sm:$0xf]  ;;  %v14790_v32 = vld [vmem:[#allocation12 + $0x24] sm:$0xf0] }
 0x47c   :  { %8444 = vmatpush.bf16.msra.mxu0 %v12912_v19  ;;  %v13324_v6 = vor.u32 %v14764_v4, %v13323_v25  ;;  %v14694_v19 = vld [vmem:[#allocation9 + $0x52c] sm:$0xf]  ;;  %v12864_v25 = vor.u32 %v14646_v13, %v12861_v24 }
 0x47d   :  { %v14642_v4 = vld [vmem:[#allocation9 + $0x38c] sm:$0xf] }
 0x47e   :  { %8318 = vmatpush.bf16.msrb.mxu3 %v12780_v61  ;;  %8360 = vmatpush.bf16.msra.mxu2 %v13164_v58  ;;  %v13307_v61 = vld [vmem:[#allocation9 + $0x728] sm:$0xf]  ;;  %v14760_v58 = vld [vmem:[#allocation9 + $0x734] sm:$0xf0]  ;;  %v14722_v13 = vld [vmem:[#allocation9 + $0x60c] sm:$0xf] }
 0x47f   :  { %8402 = vmatpush.bf16.msrb.mxu1 %v12528_v43  ;;  %8445 = vmatmul.bf16.vlgmr.msra.gmra.mxu0 %v15790_v20  ;;  %v13104_v20 = vor.u32 %v14706_v36, %v13101_v48  ;;  %v12669_v43 = vld [vmem:[#allocation9 + $0x238] sm:$0xf0]  ;;  %v13308_v51 = vor.u32 %v14760_v58, %v13307_v61  ;;  %v15830_v61 = vpop.f32.mrf.mxu1  ;;  %v14734_v58 = vld [vmem:[#allocation9 + $0x66c] sm:$0xf] }
 0x480   :  { %8895 = vmatpush.bf16.msrb.mxu0 %v13468_v29  ;;  %v12672_v33 = vor.u32 %v14598_v21, %v12669_v43  ;;  %v12877_v48 = vld [vmem:[#allocation9 + $0x3d8] sm:$0xf0]  ;;  %v14742_v29 = vld [vmem:[#allocation9 + $0x6ac] sm:$0xf] }
 0x481   :  { %8319 = vmatmul.bf16.vlgmr.msrb.gmra.mxu3 %v15786_v57  ;;  %8361 = vmatmul.bf16.vlgmr.msra.gmra.mxu2 %v15803_v39  ;;  %v14786_v21 = vld [vmem:[#allocation12 + $0x4] sm:$0xf0]  ;;  %v13213_v43 = vld [vmem:[#allocation9 + $0x678] sm:$0xf0] }
 0x482   :  { %8367 = vmatpush.bf16.msra.mxu3 %v13404_v9  ;;  %8409 = vmatpush.bf16.msrb.mxu2 %v12768_v3  ;;  %v13053_v9 = vld [vmem:[#allocation9 + $0x538] sm:$0xf0]  ;;  %v13451_v3 = vld [vmem:[#allocation12 + $0x50] sm:$0xf] }
 0x483   :  { %8451 = vmatpush.bf16.msra.mxu1 %v13152_v50  ;;  %v13291_v50 = vld [vmem:[#allocation9 + $0x708] sm:$0xf]  ;;  %v13452_v49 = vor.u32 %v14796_v63, %v13451_v3  ;;  %v13469_v3 = vld [vmem:[#allocation12 + $0x78] sm:$0xf0] }
 0x484   :  { %8403 = vmatmul.bf16.vlgmr.msrb.gmra.mxu1 %v15778_v16  ;;  %v12720_v16 = vor.u32 %v14610_v27, %v12717_v1  ;;  %8896 = vmatpush.bf16.msrb.mxu0 %v13460_v23  ;;  %v13292_v46 = vor.u32 %v14756_v30, %v13291_v50  ;;  %v12896_v27 = vor.u32 %v14654_v35, %v12893_v38  ;;  %v14650_v1 = vld [vmem:[#allocation9 + $0x3cc] sm:$0xf]  ;;  %v14797_v35 = vld [vmem:[#allocation12 + $0x64] sm:$0xf]  ;;  %v13461_v38 = vld [vmem:[#allocation12 + $0x68] sm:$0xf0] }
 0x485   :  { %v12880_v42 = vor.u32 %v14650_v1, %v12877_v48  ;;  %v13420_v23 = vor.u32 %v14788_v7, %v13419_v31  ;;  %v13216_v30 = vor.u32 %v14734_v58, %v13213_v43  ;;  %v13181_v1 = vld [vmem:[#allocation9 + $0x638] sm:$0xf0]  ;;  %v14795_v48 = vld [vmem:[#allocation12 + $0x54] sm:$0xf]  ;;  %v13437_v43 = vld [vmem:[#allocation12 + $0x38] sm:$0xf0] }
 0x486   :  { %8368 = vmatpush.bf16.msra.mxu3 %v13388_v53  ;;  %8410 = vmatpush.bf16.msrb.mxu2 %v12752_v26  ;;  %v12653_v53 = vld [vmem:[#allocation9 + $0x218] sm:$0xf0]  ;;  %v13056_v26 = vor.u32 %v14694_v19, %v13053_v9  ;;  %v14799_v9 = vld [vmem:[#allocation12 + $0x74] sm:$0xf] }
 0x487   :  { %8452 = vmatpush.bf16.msra.mxu1 %v13136_v47  ;;  %v13037_v47 = vld [vmem:[#allocation9 + $0x518] sm:$0xf0]  ;;  %v13472_v63 = vor.u32 %v14799_v9, %v13469_v3 }
 0x488   :  { %8897 = vmatpush.bf16.msrb.mxu0 %v13452_v49  ;;  %v13040_v5 = vor.u32 %v14690_v18, %v13037_v47  ;;  %v14634_v49 = vld [vmem:[#allocation9 + $0x34c] sm:$0xf]  ;;  %v13197_v18 = vld [vmem:[#allocation9 + $0x658] sm:$0xf0] }
 0x489   :  { %v13389_v58 = vld [vmem:[#allocation9 + $0x7d8] sm:$0xf0] }
 0x48a   :  { %8369 = vmatpush.bf16.msra.mxu3 %v13372_v0  ;;  %8411 = vmatpush.bf16.msrb.mxu2 %v12736_v37  ;;  %v13277_v0 = vld [vmem:[#allocation9 + $0x6f8] sm:$0xf0]  ;;  %v13444_v37 = vor.u32 %v14794_v44, %v13443_v17  ;;  %v13464_v44 = vor.u32 %v14797_v35, %v13461_v38 }
 0x48b   :  { %8453 = vmatpush.bf16.msra.mxu1 %v13120_v56  ;;  %v12656_v56 = vor.u32 %v14594_v34, %v12653_v53  ;;  %v13280_v36 = vor.u32 %v14750_v11, %v13277_v0  ;;  %v14730_v34 = vld [vmem:[#allocation9 + $0x64c] sm:$0xf]  ;;  %v13531_v53 = vld [vmem:[#allocation12 + $0xf0] sm:$0xf] }
 0x48c   :  { %8898 = vmatpush.bf16.msrb.mxu0 %v13444_v37  ;;  %v14630_v0 = vld [vmem:[#allocation9 + $0x32c] sm:$0xf]  ;;  %v12797_v37 = vld [vmem:[#allocation9 + $0x338] sm:$0xf0] }
 0x48e   :  { %8370 = vmatpush.bf16.msra.mxu3 %v13356_v40  ;;  %8412 = vmatpush.bf16.msrb.mxu2 %v12720_v16  ;;  %v13435_v40 = vld [vmem:[#allocation12 + $0x30] sm:$0xf]  ;;  %v14792_v16 = vld [vmem:[#allocation12 + $0x34] sm:$0xf0] }
 0x48f   :  { %8454 = vmatpush.bf16.msra.mxu1 %v13104_v20  ;;  %v13436_v20 = vor.u32 %v14792_v16, %v13435_v40  ;;  %v13453_v40 = vld [vmem:[#allocation12 + $0x58] sm:$0xf0]  ;;  %v15836_v16 = vpop.f32.mrf.mxu1 }
 0x490   :  { %v13456_v52 = vor.u32 %v14795_v48, %v13453_v40 }
 0x491   :  { %8899 = vmatpush.bf16.msrb.mxu0 %v13436_v20  ;;  %v12800_v20 = vor.u32 %v14630_v0, %v12797_v37 }
 0x492   :  { %8371 = vmatpush.bf16.msra.mxu3 %v13340_v41  ;;  %8413 = vmatpush.bf16.msrb.mxu2 %v12704_v22  ;;  %v13245_v41 = vld [vmem:[#allocation9 + $0x6b8] sm:$0xf0]  ;;  %v13428_v22 = vor.u32 %v14790_v32, %v13427_v45  ;;  %v13515_v45 = vld [vmem:[#allocation12 + $0xd0] sm:$0xf] }
 0x493   :  { %8455 = vmatpush.bf16.msra.mxu1 %v13088_v59  ;;  %v15828_v59 = vpop.f32.mrf.mxu0  ;;  %v13248_v8 = vor.u32 %v14742_v29, %v13245_v41  ;;  %v14812_v32 = vld [vmem:[#allocation12 + $0xd4] sm:$0xf0]  ;;  %v14793_v29 = vld [vmem:[#allocation12 + $0x44] sm:$0xf]  ;;  %v15838_v41 = vpop.f32.mrf.mxu3 }
 0x495   :  { %8900 = vmatpush.bf16.msrb.mxu0 %v13428_v22  ;;  %v14782_v22 = vld [vmem:[#allocation9 + $0x7ec] sm:$0xf] }
 0x496   :  { %8372 = vmatpush.bf16.msra.mxu3 %v13324_v6  ;;  %8414 = vmatpush.bf16.msrb.mxu2 %v12688_v14  ;;  %v14638_v6 = vld [vmem:[#allocation9 + $0x36c] sm:$0xf]  ;;  %v12829_v14 = vld [vmem:[#allocation9 + $0x378] sm:$0xf0] }
 0x497   :  { %8456 = vmatpush.bf16.msra.mxu1 %v13072_v60  ;;  %v13411_v60 = vld [vmem:[#allocation12] sm:$0xf]  ;;  %v12832_v50 = vor.u32 %v14638_v6, %v12829_v14  ;;  %v14778_v6 = vld [vmem:[#allocation9 + $0x7cc] sm:$0xf]  ;;  %v15847_v9 = vpop.f32.mrf.mxu1 }
 0x498   :  { %v13412_v19 = vor.u32 %v14786_v21, %v13411_v60  ;;  %v13507_v14 = vld [vmem:[#allocation12 + $0xc0] sm:$0xf]  ;;  %v14791_v21 = vld [vmem:[#allocation12 + $0x34] sm:$0xf] }
 0x499   :  { %8901 = vmatpush.bf16.msrb.mxu0 %v13420_v23  ;;  %v13440_v3 = vor.u32 %v14791_v21, %v13437_v43  ;;  %v14758_v21 = vld [vmem:[#allocation9 + $0x72c] sm:$0xf]  ;;  %v13309_v43 = vld [vmem:[#allocation9 + $0x738] sm:$0xf0] }
 0x49a   :  { %8373 = vmatpush.bf16.msra.mxu3 %v13308_v51  ;;  %8415 = vmatpush.bf16.msrb.mxu2 %v12672_v33  ;;  %v12813_v51 = vld [vmem:[#allocation9 + $0x358] sm:$0xf0]  ;;  %v15832_v33 = vpop.f32.mrf.mxu2 }
 0x49b   :  { %8457 = vmatpush.bf16.msra.mxu1 %v13056_v26  ;;  %v14816_v26 = vld [vmem:[#allocation12 + $0xf4] sm:$0xf0]  ;;  %v15834_v17 = vpop.f32.mrf.mxu0  ;;  %v12816_v11 = vor.u32 %v14634_v49, %v12813_v51  ;;  %v14789_v49 = vld [vmem:[#allocation12 + $0x24] sm:$0xf]  ;;  %v13392_v51 = vor.u32 %v14778_v6, %v13389_v58  ;;  %v13533_v6 = vld [vmem:[#allocation12 + $0xf8] sm:$0xf0] }
 0x49c   :  { %v13532_v47 = vor.u32 %v14816_v26, %v13531_v53  ;;  %v13491_v53 = vld [vmem:[#allocation12 + $0xa0] sm:$0xf]  ;;  %v14806_v26 = vld [vmem:[#allocation12 + $0xa4] sm:$0xf0] }
 0x49d   :  { %8902 = vmatpush.bf16.msrb.mxu0 %v13412_v19 }
 0x49e   :  { %8374 = vmatpush.bf16.msra.mxu3 %v13292_v46  ;;  %8416 = vmatpush.bf16.msrb.mxu2 %v12656_v56  ;;  %v13200_v46 = vor.u32 %v14730_v34, %v13197_v18  ;;  %v14726_v56 = vld [vmem:[#allocation9 + $0x62c] sm:$0xf]  ;;  %v13429_v34 = vld [vmem:[#allocation12 + $0x28] sm:$0xf0] }
 0x49f   :  { %8458 = vmatpush.bf16.msra.mxu1 %v13040_v5  ;;  %v13523_v5 = vld [vmem:[#allocation12 + $0xe0] sm:$0xf]  ;;  %v13184_v24 = vor.u32 %v14726_v56, %v13181_v1  ;;  %v14774_v18 = vld [vmem:[#allocation9 + $0x7ac] sm:$0xf]  ;;  %v13432_v35 = vor.u32 %v14789_v49, %v13429_v34  ;;  %v13421_v1 = vld [vmem:[#allocation12 + $0x18] sm:$0xf0] }
 0x4a0   :  { %v14770_v56 = vld [vmem:[#allocation9 + $0x78c] sm:$0xf] }
 0x4a1   :  { %8375 = vmatmul.bf16.vlgmr.msra.gmra.mxu3 %v15810_v12  ;;  %8417 = vmatmul.bf16.vlgmr.msrb.gmra.mxu2 %v15781_v2  ;;  %v12848_v2 = vor.u32 %v14642_v4, %v12845_v15  ;;  %v13516_v4 = vor.u32 %v14812_v32, %v13515_v45  ;;  %v13413_v45 = vld [vmem:[#allocation12 + $0x8] sm:$0xf0] }
 0x4a2   :  { %8423 = vmatpush.bf16.msrb.mxu3 %v12896_v27  ;;  %8465 = vmatpush.bf16.msra.mxu2 %v13280_v36  ;;  %v14814_v27 = vld [vmem:[#allocation12 + $0xe4] sm:$0xf0]  ;;  %v15840_v15 = vpop.f32.mrf.mxu2 }
 0x4a3   :  { %8459 = vmatmul.bf16.vlgmr.msra.gmra.mxu1 %v15795_v62  ;;  %v13232_v62 = vor.u32 %v14738_v10, %v13229_v54  ;;  %8951 = vmatpush.bf16.msra.mxu0 %v13472_v63  ;;  %v13524_v36 = vor.u32 %v14814_v27, %v13523_v5  ;;  %v15842_v31 = vpop.f32.mrf.mxu0  ;;  %v15844_v10 = vld [vmem:[#allocation10] sm:$0xf]  ;;  %v13499_v63 = vld [vmem:[#allocation12 + $0xb0] sm:$0xf]  ;;  %v13357_v5 = vld [vmem:[#allocation9 + $0x798] sm:$0xf0] }
 0x4a4   :  { %8909 = vmatpush.bf16.msrb.mxu1 %v13532_v47  ;;  %v6757_v19 = vperm.slane %v15844_v10, 0  ;;  %v13373_v47 = vld [vmem:[#allocation9 + $0x7b8] sm:$0xf0]  ;;  %v14787_v27 = vld [vmem:[#allocation12 + $0x14] sm:$0xf] }
 0x4a6   :  { %8424 = vmatpush.bf16.msrb.mxu3 %v12880_v42  ;;  %8466 = vmatpush.bf16.msra.mxu2 %v13264_v55  ;;  %v12781_v42 = vld [vmem:[#allocation9 + $0x318] sm:$0xf0]  ;;  %v8055_v0 = vadd.f32 %v15828_v59, %v6757_v19  ;;  %v13360_v59 = vor.u32 %v14770_v56, %v13357_v5  ;;  %v14809_v56 = vld [vmem:[#allocation12 + $0xc4] sm:$0xf]  ;;  %v13509_v5 = vld [vmem:[#allocation12 + $0xc8] sm:$0xf0] }
 0x4a7   :  { %8952 = vmatpush.bf16.msra.mxu0 %v13464_v44  ;;  %v13165_v55 = vld [vmem:[#allocation9 + $0x618] sm:$0xf0]  ;;  %v12784_v54 = vor.u32 %v14626_v28, %v12781_v42  ;;  %v8098_v44 = vpop.f32.mrf.mxu3  ;;  %v8126_v28 = vpop.f32.mrf.mxu1 }
 0x4a8   :  { %8910 = vmatpush.bf16.msrb.mxu1 %v13524_v36  ;;  %v13168_v23 = vor.u32 %v14722_v13, %v13165_v55  ;;  %v8057_v36 = vadd.f32 %v15834_v17, %v6757_v19  ;;  %v8069_v48 = vadd.f32 %v15830_v61, %v8055_v0  ;;  %v14804_v42 = vld [vmem:[#allocation12 + $0x94] sm:$0xf0]  ;;  %v14813_v19 = vld [vmem:[#allocation12 + $0xe4] sm:$0xf] }
 0x4a9   :  { %v13341_v13 = vld [vmem:[#allocation9 + $0x778] sm:$0xf0] }
 0x4aa   :  { %8425 = vmatpush.bf16.msrb.mxu3 %v12864_v25  ;;  %8467 = vmatpush.bf16.msra.mxu2 %v13248_v8  ;;  %v13405_v25 = vld [vmem:[#allocation9 + $0x7f8] sm:$0xf0]  ;;  %v13445_v8 = vld [vmem:[#allocation12 + $0x48] sm:$0xf0]  ;;  %v8138_v38 = vpop.f32.mrf.mxu2  ;;  %v8083_v40 = vadd.f32 %v15832_v33, %v8069_v48 }
 0x4ab   :  { %8953 = vmatpush.bf16.msra.mxu0 %v13456_v52  ;;  %v13448_v7 = vor.u32 %v14793_v29, %v13445_v8  ;;  %v8112_v37 = vpop.f32.mrf.mxu0  ;;  %v14766_v52 = vld [vmem:[#allocation9 + $0x76c] sm:$0xf]  ;;  %v13475_v8 = vld [vmem:[#allocation12 + $0x80] sm:$0xf] }
 0x4ac   :  { %8911 = vmatpush.bf16.msrb.mxu1 %v13516_v4  ;;  %v8097_v61 = vadd.f32 %v15838_v41, %v8083_v40  ;;  %v14762_v4 = vld [vmem:[#allocation9 + $0x74c] sm:$0xf]  ;;  %v14805_v40 = vld [vmem:[#allocation12 + $0xa4] sm:$0xf] }
 0x4ae   :  { %8426 = vmatpush.bf16.msrb.mxu3 %v12848_v2  ;;  %8468 = vmatpush.bf16.msra.mxu2 %v13232_v62  ;;  %v13408_v2 = vor.u32 %v14782_v22, %v13405_v25  ;;  %v14810_v62 = vld [vmem:[#allocation12 + $0xc4] sm:$0xf0]  ;;  %v8111_v33 = vadd.f32 %v15842_v31, %v8097_v61  ;;  %v13344_v25 = vor.u32 %v14766_v52, %v13341_v13 }
 0x4af   :  { %8954 = vmatpush.bf16.msra.mxu0 %v13448_v7  ;;  %v13508_v60 = vor.u32 %v14810_v62, %v13507_v14  ;;  %v14802_v7 = vld [vmem:[#allocation12 + $0x84] sm:$0xf0] }
 0x4b0   :  { %v8125_v41 = vadd.f32 %v15847_v9, %v8111_v33  ;;  %v14754_v9 = vld [vmem:[#allocation9 + $0x70c] sm:$0xf] }
 0x4b1   :  { %8912 = vmatpush.bf16.msrb.mxu1 %v13508_v60 }
 0x4b2   :  { %8427 = vmatpush.bf16.msrb.mxu3 %v12832_v50  ;;  %8469 = vmatpush.bf16.msra.mxu2 %v13216_v30  ;;  %v14808_v50 = vld [vmem:[#allocation12 + $0xb4] sm:$0xf0]  ;;  %v8140_v22 = vpop.f32.mrf.mxu2  ;;  %v8139_v60 = vadd.f32 %v8138_v38, %v8125_v41 }
 0x4b3   :  { %v13500_v30 = vor.u32 %v14808_v50, %v13499_v63  ;;  %8955 = vmatpush.bf16.msra.mxu0 %v13440_v3  ;;  %v8166_v14 = vpop.f32.mrf.mxu0  ;;  %v13525_v3 = vld [vmem:[#allocation12 + $0xe8] sm:$0xf0]  ;;  %v8180_v63 = vpop.f32.mrf.mxu1 }
 0x4b5   :  { %8913 = vmatpush.bf16.msrb.mxu1 %v13500_v30 }
 0x4b6   :  { %8428 = vmatpush.bf16.msrb.mxu3 %v12816_v11  ;;  %8470 = vmatpush.bf16.msra.mxu2 %v13200_v46  ;;  %v13492_v11 = vor.u32 %v14806_v26, %v13491_v53  ;;  %v13376_v46 = vor.u32 %v14774_v18, %v13373_v47  ;;  %v13312_v53 = vor.u32 %v14758_v21, %v13309_v43  ;;  %v13293_v26 = vld [vmem:[#allocation9 + $0x718] sm:$0xf0]  ;;  %v14811_v18 = vld [vmem:[#allocation12 + $0xd4] sm:$0xf]  ;;  %v13517_v47 = vld [vmem:[#allocation12 + $0xd8] sm:$0xf0] }
 0x4b7   :  { %8956 = vmatpush.bf16.msra.mxu0 %v13432_v35 }
 0x4b9   :  { %8914 = vmatpush.bf16.msrb.mxu1 %v13492_v11  ;;  %v13520_v11 = vor.u32 %v14811_v18, %v13517_v47 }
 0x4ba   :  { %8429 = vmatpush.bf16.msrb.mxu3 %v12800_v20  ;;  %8471 = vmatpush.bf16.msra.mxu2 %v13184_v24  ;;  %v13483_v20 = vld [vmem:[#allocation12 + $0x90] sm:$0xf]  ;;  %v14785_v24 = vld [vmem:[#allocation12 + $0x4] sm:$0xf]  ;;  %v8194_v35 = vpop.f32.mrf.mxu2 }
 0x4bb   :  { %v13484_v55 = vor.u32 %v14804_v42, %v13483_v20  ;;  %v13416_v32 = vor.u32 %v14785_v24, %v13413_v45  ;;  %v8168_v0 = vpop.f32.mrf.mxu0  ;;  %v8182_v48 = vpop.f32.mrf.mxu1 }
 0x4bd   :  { %8915 = vmatpush.bf16.msrb.mxu1 %v13484_v55 }
 0x4be   :  { %8430 = vmatpush.bf16.msrb.mxu3 %v12784_v54  ;;  %8472 = vmatpush.bf16.msra.mxu2 %v13168_v23  ;;  %v13325_v54 = vld [vmem:[#allocation9 + $0x758] sm:$0xf0]  ;;  %v13476_v23 = vor.u32 %v14802_v7, %v13475_v8  ;;  %v14801_v7 = vld [vmem:[#allocation12 + $0x84] sm:$0xf] }
 0x4bf   :  { %v13328_v31 = vor.u32 %v14762_v4, %v13325_v54  ;;  %v14832_v8 = vld [vmem:[#allocation12 + $0x174] sm:$0xf0] }
 0x4c1   :  { %8431 = vmatmul.bf16.vlgmr.msrb.gmra.mxu3 %v15786_v57  ;;  %8473 = vmatmul.bf16.vlgmr.msra.gmra.mxu2 %v15803_v39  ;;  %v13424_v57 = vor.u32 %v14787_v27, %v13421_v1  ;;  %v8071_v39 = vadd.f32 %v15836_v16, %v8057_v36  ;;  %v13512_v27 = vor.u32 %v14809_v56, %v13509_v5  ;;  %v6758_v36 = vperm.slane %v15844_v10, 1 }
 0x4c2   :  { %8479 = vmatpush.bf16.msra.mxu3 %v13408_v2  ;;  %v14815_v2 = vld [vmem:[#allocation12 + $0xf4] sm:$0xf]  ;;  %8916 = vmatpush.bf16.msrb.mxu1 %v13476_v23  ;;  %v8196_v52 = vpop.f32.mrf.mxu2 }
 0x4c3   :  { %8957 = vmatpush.bf16.msra.mxu0 %v13424_v57  ;;  %v8085_v17 = vadd.f32 %v15840_v15, %v8071_v39  ;;  %v13536_v62 = vor.u32 %v14815_v2, %v13533_v6  ;;  %v14807_v57 = vld [vmem:[#allocation12 + $0xb4] sm:$0xf]  ;;  %v13501_v39 = vld [vmem:[#allocation12 + $0xb8] sm:$0xf0]  ;;  %v8167_v42 = vadd.f32 %v8166_v14, %v6758_v36  ;;  %v8222_v13 = vpop.f32.mrf.mxu0  ;;  %v8169_v55 = vadd.f32 %v8168_v0, %v6758_v36  ;;  %v13477_v2 = vld [vmem:[#allocation12 + $0x88] sm:$0xf0] }
 0x4c4   :  { %v8152_v29 = vpop.f32.mrf.mxu3 }
 0x4c5   :  { %v8099_v16 = vadd.f32 %v8098_v44, %v8085_v17  ;;  %v8153_v49 = vadd.f32 %v8152_v29, %v8139_v60  ;;  %v8181_v24 = vadd.f32 %v8180_v63, %v8167_v42  ;;  %v8183_v17 = vadd.f32 %v8182_v48, %v8169_v55  ;;  %v13485_v29 = vld [vmem:[#allocation12 + $0x98] sm:$0xf0]  ;;  %v14828_v63 = vld [vmem:[#allocation12 + $0x154] sm:$0xf0]  ;;  %v13539_v48 = vld [vmem:[#allocation12 + $0x100] sm:$0xf] }
 0x4c6   :  { %8480 = vmatpush.bf16.msra.mxu3 %v13392_v51  ;;  %8965 = vmatpush.bf16.msra.mxu1 %v13536_v62  ;;  %v13528_v51 = vor.u32 %v14813_v19, %v13525_v3  ;;  %v13587_v62 = vld [vmem:[#allocation12 + $0x160] sm:$0xf]  ;;  %v13579_v3 = vld [vmem:[#allocation12 + $0x150] sm:$0xf]  ;;  %v13589_v42 = vld [vmem:[#allocation12 + $0x168] sm:$0xf0] }
 0x4c7   :  { %8958 = vmatpush.bf16.msra.mxu0 %v13416_v32  ;;  %v8113_v15 = vadd.f32 %v8112_v37, %v8099_v16  ;;  %v8493_v38 = vmax.f32 %v8153_v49, 0.0  ;;  %v8195_v61 = vadd.f32 %v8194_v35, %v8181_v24  ;;  %v14803_v32 = vld [vmem:[#allocation12 + $0x94] sm:$0xf]  ;;  %v8236_v16 = vpop.f32.mrf.mxu1 }
 0x4c8   :  { %v13488_v33 = vor.u32 %v14803_v32, %v13485_v29  ;;  %v14827_v24 = vld [vmem:[#allocation12 + $0x154] sm:$0xf]  ;;  %v14825_v32 = vld [vmem:[#allocation12 + $0x144] sm:$0xf]  ;;  %v13573_v29 = vld [vmem:[#allocation12 + $0x148] sm:$0xf0] }
 0x4c9   :  { %v8127_v58 = vadd.f32 %v8126_v28, %v8113_v15  ;;  %v13504_v28 = vor.u32 %v14807_v57, %v13501_v39  ;;  %v13480_v15 = vor.u32 %v14801_v7, %v13477_v2  ;;  %v14818_v57 = vld [vmem:[#allocation12 + $0x104] sm:$0xf0]  ;;  %v14821_v7 = vld [vmem:[#allocation12 + $0x124] sm:$0xf] }
 0x4ca   :  { %8481 = vmatpush.bf16.msra.mxu3 %v13376_v46  ;;  %8966 = vmatpush.bf16.msra.mxu1 %v13528_v51  ;;  %v13296_v46 = vor.u32 %v14754_v9, %v13293_v26  ;;  %v8250_v54 = vpop.f32.mrf.mxu2  ;;  %v14826_v9 = vld [vmem:[#allocation12 + $0x144] sm:$0xf0]  ;;  %v13540_v39 = vor.u32 %v14818_v57, %v13539_v48 }
 0x4cb   :  { %v8141_v50 = vadd.f32 %v8140_v22, %v8127_v58  ;;  %v8197_v22 = vadd.f32 %v8196_v52, %v8183_v17  ;;  %v8224_v14 = vpop.f32.mrf.mxu0  ;;  %v14830_v58 = vld [vmem:[#allocation12 + $0x164] sm:$0xf0] }
 0x4cc   :  { %v8154_v30 = vpop.f32.mrf.mxu3 }
 0x4cd   :  { %v8155_v34 = vadd.f32 %v8154_v30, %v8141_v50  ;;  %v13580_v50 = vor.u32 %v14828_v63, %v13579_v3 }
 0x4ce   :  { %8482 = vmatpush.bf16.msra.mxu3 %v13360_v59  ;;  %8967 = vmatpush.bf16.msra.mxu1 %v13520_v11  ;;  %v13493_v59 = vld [vmem:[#allocation12 + $0xa8] sm:$0xf0]  ;;  %v14824_v11 = vld [vmem:[#allocation12 + $0x134] sm:$0xf0] }
 0x4cf   :  { %v8497_v44 = vmax.f32 %v8155_v34, 0.0  ;;  %v13496_v20 = vor.u32 %v14805_v40, %v13493_v59  ;;  %v8238_v43 = vpop.f32.mrf.mxu1  ;;  %v14831_v40 = vld [vmem:[#allocation12 + $0x174] sm:$0xf] }
 0x4d1   :  { %v8501_v37 = vpack.c.bf16 %v8497_v44, %v8493_v38  ;;  %v13563_v44 = vld [vmem:[#allocation12 + $0x130] sm:$0xf] }
 0x4d2   :  { %8483 = vmatpush.bf16.msra.mxu3 %v13344_v25  ;;  %8968 = vmatpush.bf16.msra.mxu1 %v13512_v27  ;;  %v8252_v51 = vpop.f32.mrf.mxu2  ;;  %v13564_v0 = vor.u32 %v14824_v11, %v13563_v44  ;;  %v13547_v27 = vld [vmem:[#allocation12 + $0x110] sm:$0xf]  ;;  %v13651_v44 = vld [vmem:[#allocation12 + $0x1e0] sm:$0xf]  ;;  %v14846_v11 = vld [vmem:[#allocation12 + $0x1e4] sm:$0xf0] }
 0x4d3   :  { %8903 = vmatmul.bf16.vlgmr.msrb.gmra.mxu0 %v8501_v37  ;;  %v8278_v52 = vpop.f32.mrf.mxu0 }
 0x4d4   :  { %v8208_v1 = vpop.f32.mrf.mxu3 }
 0x4d5   :  { %v8209_v25 = vadd.f32 %v8208_v1, %v8195_v61  ;;  %v14820_v1 = vld [vmem:[#allocation12 + $0x114] sm:$0xf0] }
 0x4d6   :  { %8484 = vmatpush.bf16.msra.mxu3 %v13328_v31  ;;  %8969 = vmatpush.bf16.msra.mxu1 %v13504_v28  ;;  %v13588_v31 = vor.u32 %v14830_v58, %v13587_v62  ;;  %v13548_v36 = vor.u32 %v14820_v1, %v13547_v27  ;;  %v13597_v28 = vld [vmem:[#allocation12 + $0x178] sm:$0xf0]  ;;  %v13643_v27 = vld [vmem:[#allocation12 + $0x1d0] sm:$0xf]  ;;  %v14844_v1 = vld [vmem:[#allocation12 + $0x1d4] sm:$0xf0] }
 0x4d7   :  { %v8223_v6 = vadd.f32 %v8222_v13, %v8209_v25  ;;  %v13600_v59 = vor.u32 %v14831_v40, %v13597_v28  ;;  %v8292_v55 = vpop.f32.mrf.mxu1  ;;  %v14823_v25 = vld [vmem:[#allocation12 + $0x134] sm:$0xf]  ;;  %v13635_v28 = vld [vmem:[#allocation12 + $0x1c0] sm:$0xf] }
 0x4d9   :  { %v8237_v21 = vadd.f32 %v8236_v16, %v8223_v6  ;;  %v13576_v16 = vor.u32 %v14825_v32, %v13573_v29  ;;  %v14819_v6 = vld [vmem:[#allocation12 + $0x114] sm:$0xf]  ;;  %v14838_v32 = vld [vmem:[#allocation12 + $0x1a4] sm:$0xf0] }
 0x4da   :  { %8485 = vmatpush.bf16.msra.mxu3 %v13312_v53  ;;  %8970 = vmatpush.bf16.msra.mxu1 %v13496_v20  ;;  %v13571_v53 = vld [vmem:[#allocation12 + $0x140] sm:$0xf]  ;;  %v14829_v20 = vld [vmem:[#allocation12 + $0x164] sm:$0xf] }
 0x4db   :  { %v8251_v49 = vadd.f32 %v8250_v54, %v8237_v21  ;;  %v13572_v18 = vor.u32 %v14826_v9, %v13571_v53  ;;  %v13592_v13 = vor.u32 %v14829_v20, %v13589_v42  ;;  %v13557_v54 = vld [vmem:[#allocation12 + $0x128] sm:$0xf0]  ;;  %v14817_v21 = vld [vmem:[#allocation12 + $0x104] sm:$0xf]  ;;  %v13659_v53 = vld [vmem:[#allocation12 + $0x1f0] sm:$0xf] }
 0x4dc   :  { %v8210_v45 = vpop.f32.mrf.mxu3  ;;  %v13560_v2 = vor.u32 %v14821_v7, %v13557_v54  ;;  %v14848_v9 = vld [vmem:[#allocation12 + $0x1f4] sm:$0xf0]  ;;  %v14847_v7 = vld [vmem:[#allocation12 + $0x1f4] sm:$0xf]  ;;  %v13661_v54 = vld [vmem:[#allocation12 + $0x1f8] sm:$0xf0] }
 0x4dd   :  { %v8211_v4 = vadd.f32 %v8210_v45, %v8197_v22  ;;  %v13581_v45 = vld [vmem:[#allocation12 + $0x158] sm:$0xf0] }
 0x4de   :  { %8486 = vmatpush.bf16.msra.mxu3 %v13296_v46  ;;  %8971 = vmatpush.bf16.msra.mxu1 %v13488_v33  ;;  %v14822_v46 = vld [vmem:[#allocation12 + $0x124] sm:$0xf0]  ;;  %v13584_v17 = vor.u32 %v14827_v24, %v13581_v45  ;;  %v8280_v33 = vpop.f32.mrf.mxu0  ;;  %v13627_v24 = vld [vmem:[#allocation12 + $0x1b0] sm:$0xf]  ;;  %v14840_v45 = vld [vmem:[#allocation12 + $0x1b4] sm:$0xf0] }
 0x4df   :  { %v8225_v41 = vadd.f32 %v8224_v14, %v8211_v4  ;;  %v13565_v4 = vld [vmem:[#allocation12 + $0x138] sm:$0xf0] }
 0x4e1   :  { %8487 = vmatmul.bf16.vlgmr.msra.gmra.mxu3 %v15810_v12  ;;  %v13595_v12 = vld [vmem:[#allocation12 + $0x170] sm:$0xf]  ;;  %v8239_v19 = vadd.f32 %v8238_v43, %v8225_v41  ;;  %v13541_v43 = vld [vmem:[#allocation12 + $0x108] sm:$0xf0] }
 0x4e2   :  { %v13596_v23 = vor.u32 %v14832_v8, %v13595_v12  ;;  %8972 = vmatpush.bf16.msra.mxu1 %v13480_v15  ;;  %v6759_v12 = vperm.slane %v15844_v10, 2  ;;  %v13568_v8 = vor.u32 %v14823_v25, %v13565_v4  ;;  %v13549_v15 = vld [vmem:[#allocation12 + $0x118] sm:$0xf0]  ;;  %v13603_v4 = vld [vmem:[#allocation12 + $0x180] sm:$0xf] }
 0x4e3   :  { %8959 = vmatmul.bf16.vlgmr.msra.gmra.mxu0 %v8501_v37  ;;  %v8253_v34 = vadd.f32 %v8252_v51, %v8239_v19  ;;  %v13555_v37 = vld [vmem:[#allocation12 + $0x120] sm:$0xf] }
 0x4e4   :  { %8923 = vmatpush.bf16.msrb.mxu2 %v13596_v23  ;;  %v8264_v60 = vpop.f32.mrf.mxu3  ;;  %v13556_v5 = vor.u32 %v14822_v46, %v13555_v37  ;;  %v8306_v61 = vpop.f32.mrf.mxu2  ;;  %v8279_v14 = vadd.f32 %v8278_v52, %v6759_v12  ;;  %v8281_v58 = vadd.f32 %v8280_v33, %v6759_v12  ;;  %v13652_v37 = vor.u32 %v14846_v11, %v13651_v44  ;;  %v13611_v33 = vld [vmem:[#allocation12 + $0x190] sm:$0xf]  ;;  %v14834_v12 = vld [vmem:[#allocation12 + $0x184] sm:$0xf0] }
 0x4e5   :  { %v8265_v30 = vadd.f32 %v8264_v60, %v8251_v49  ;;  %v8294_v23 = vpop.f32.mrf.mxu1 }
 0x4e6   :  { %v8334_v41 = vpop.f32.mrf.mxu0  ;;  %v8293_v60 = vadd.f32 %v8292_v55, %v8279_v14  ;;  %v8295_v19 = vadd.f32 %v8294_v23, %v8281_v58  ;;  %v13664_v23 = vor.u32 %v14847_v7, %v13661_v54  ;;  %v13645_v58 = vld [vmem:[#allocation12 + $0x1d8] sm:$0xf0] }
 0x4e7   :  { %v8494_v35 = vmax.f32 %v8265_v30, 0.0  ;;  %v13544_v30 = vor.u32 %v14817_v21, %v13541_v43  ;;  %v14841_v21 = vld [vmem:[#allocation12 + $0x1c4] sm:$0xf]  ;;  %v13637_v43 = vld [vmem:[#allocation12 + $0x1c8] sm:$0xf0]  ;;  %v14852_v7 = vld [vmem:[#allocation15 + $0x18] sm:$0xff] }
 0x4e8   :  { %8924 = vmatpush.bf16.msrb.mxu2 %v13588_v31  ;;  %v13552_v31 = vor.u32 %v14819_v6, %v13549_v15  ;;  %v8307_v3 = vadd.f32 %v8306_v61, %v8293_v60  ;;  %v13619_v61 = vld [vmem:[#allocation12 + $0x1a0] sm:$0xf]  ;;  %v14845_v6 = vld [vmem:[#allocation12 + $0x1e4] sm:$0xf]  ;;  %v13653_v15 = vld [vmem:[#allocation12 + $0x1e8] sm:$0xf0] }
 0x4e9   :  { %v13656_v14 = vor.u32 %v14845_v6, %v13653_v15  ;;  %v14864_v54 = vld [vmem:[#allocation15 + $0x78] sm:$0xff]  ;;  %v14850_v6 = vld [vmem:[#allocation15 + $0x8] sm:$0xff] }
 0x4ea   :  { %v14862_v15 = vld [vmem:[#allocation15 + $0x68] sm:$0xff] }
 0x4ec   :  { %8925 = vmatpush.bf16.msrb.mxu2 %v13580_v50  ;;  %v8266_v26 = vpop.f32.mrf.mxu3  ;;  %v8308_v62 = vpop.f32.mrf.mxu2 }
 0x4ed   :  { %v8267_v47 = vadd.f32 %v8266_v26, %v8253_v34  ;;  %v8348_v63 = vpop.f32.mrf.mxu1  ;;  %v8309_v49 = vadd.f32 %v8308_v62, %v8295_v19  ;;  %v14843_v62 = vld [vmem:[#allocation12 + $0x1d4] sm:$0xf]  ;;  %v13640_v19 = vor.u32 %v14841_v21, %v13637_v43  ;;  %v14858_v43 = vld [vmem:[#allocation15 + $0x48] sm:$0xff] }
 0x4ee   :  { %v13648_v60 = vor.u32 %v14843_v62, %v13645_v58  ;;  %v14860_v62 = vld [vmem:[#allocation15 + $0x58] sm:$0xff] }
 0x4ef   :  { %v8498_v38 = vmax.f32 %v8267_v47, 0.0 }
 0x4f0   :  { %8926 = vmatpush.bf16.msrb.mxu2 %v13572_v18  ;;  %v13660_v18 = vor.u32 %v14848_v9, %v13659_v53  ;;  %v13621_v53 = vld [vmem:[#allocation12 + $0x1a8] sm:$0xf0] }
 0x4f1   :  { %v8502_v56 = vpack.c.bf16 %v8498_v38, %v8494_v35  ;;  %v8336_v35 = vpop.f32.mrf.mxu0 }
 0x4f2   :  { %8937 = vmatpush.bf16.msrb.mxu3 %v13660_v18  ;;  %v14835_v18 = vld [vmem:[#allocation12 + $0x194] sm:$0xf] }
 0x4f3   :  { %8917 = vmatmul.bf16.vlgmr.msrb.gmra.mxu1 %v8502_v56 }
 0x4f4   :  { %8927 = vmatpush.bf16.msrb.mxu2 %v13564_v0  ;;  %9159 = vmatpush.bf16.msrb.mxu1 %v14864_v54 }
 0x4f6   :  { %8938 = vmatpush.bf16.msrb.mxu3 %v13652_v37 }
 0x4f8   :  { %8928 = vmatpush.bf16.msrb.mxu2 %v13556_v5 }
 0x4fc   :  { %8929 = vmatpush.bf16.msrb.mxu2 %v13548_v36  ;;  %v13644_v36 = vor.u32 %v14844_v1, %v13643_v27 }
 0x4fe   :  { %8939 = vmatpush.bf16.msrb.mxu3 %v13644_v36  ;;  %v14833_v36 = vld [vmem:[#allocation12 + $0x184] sm:$0xf] }
 0x500   :  { %8930 = vmatpush.bf16.msrb.mxu2 %v13540_v39 }
 0x503   :  { %8973 = vmatmul.bf16.vlgmr.msra.gmra.mxu1 %v8502_v56  ;;  %v8350_v56 = vpop.f32.mrf.mxu1 }
 0x504   :  { %8979 = vmatpush.bf16.msra.mxu2 %v13600_v59  ;;  %v8320_v22 = vpop.f32.mrf.mxu3  ;;  %v8362_v26 = vpop.f32.mrf.mxu2  ;;  %v14842_v59 = vld [vmem:[#allocation12 + $0x1c4] sm:$0xf0] }
 0x505   :  { %v8321_v51 = vadd.f32 %v8320_v22, %v8307_v3  ;;  %v13636_v20 = vor.u32 %v14842_v59, %v13635_v28  ;;  %v14836_v22 = vld [vmem:[#allocation12 + $0x194] sm:$0xf0] }
 0x506   :  { %v13612_v25 = vor.u32 %v14836_v22, %v13611_v33 }
 0x507   :  { %v8335_v47 = vadd.f32 %v8334_v41, %v8321_v51  ;;  %8940 = vmatpush.bf16.msrb.mxu3 %v13636_v20  ;;  %v6760_v51 = vperm.slane %v15844_v10, 3 }
 0x508   :  { %8980 = vmatpush.bf16.msra.mxu2 %v13592_v13 }
 0x509   :  { %v8349_v46 = vadd.f32 %v8348_v63, %v8335_v47  ;;  %v13613_v47 = vld [vmem:[#allocation12 + $0x198] sm:$0xf0] }
 0x50a   :  { %v13616_v37 = vor.u32 %v14835_v18, %v13613_v47 }
 0x50b   :  { %v8363_v48 = vadd.f32 %v8362_v26, %v8349_v46  ;;  %v8404_v41 = vpop.f32.mrf.mxu1 }
 0x50c   :  { %8981 = vmatpush.bf16.msra.mxu2 %v13584_v17  ;;  %v8322_v50 = vpop.f32.mrf.mxu3  ;;  %v8364_v57 = vpop.f32.mrf.mxu2  ;;  %v13628_v17 = vor.u32 %v14840_v45, %v13627_v24 }
 0x50d   :  { %v8323_v34 = vadd.f32 %v8322_v50, %v8309_v49  ;;  %v14839_v50 = vld [vmem:[#allocation12 + $0x1b4] sm:$0xf]  ;;  %v13629_v49 = vld [vmem:[#allocation12 + $0x1b8] sm:$0xf0] }
 0x50e   :  { %8941 = vmatpush.bf16.msrb.mxu3 %v13628_v17 }
 0x50f   :  { %v8337_v38 = vadd.f32 %v8336_v35, %v8323_v34  ;;  %v14837_v34 = vld [vmem:[#allocation12 + $0x1a4] sm:$0xf] }
 0x510   :  { %8982 = vmatpush.bf16.msra.mxu2 %v13576_v16  ;;  %v13620_v16 = vor.u32 %v14838_v32, %v13619_v61  ;;  %v13624_v26 = vor.u32 %v14837_v34, %v13621_v53 }
 0x511   :  { %v8351_v5 = vadd.f32 %v8350_v56, %v8337_v38 }
 0x512   :  { %8942 = vmatpush.bf16.msrb.mxu3 %v13620_v16 }
 0x513   :  { %v8365_v39 = vadd.f32 %v8364_v57, %v8351_v5  ;;  %v8406_v9 = vpop.f32.mrf.mxu1 }
 0x514   :  { %8983 = vmatpush.bf16.msra.mxu2 %v13568_v8  ;;  %v13604_v8 = vor.u32 %v14834_v12, %v13603_v4  ;;  %v14855_v4 = vld [vmem:[#allocation15 + $0x30] sm:$0xff]  ;;  %v14854_v12 = vld [vmem:[#allocation15 + $0x28] sm:$0xff] }
 0x516   :  { %8943 = vmatpush.bf16.msrb.mxu3 %v13612_v25  ;;  %v14856_v25 = vld [vmem:[#allocation15 + $0x38] sm:$0xff] }
 0x517   :  { %9145 = vmatpush.bf16.msrb.mxu0 %v14856_v25 }
 0x518   :  { %8984 = vmatpush.bf16.msra.mxu2 %v13560_v2  ;;  %v8390_v2 = vpop.f32.mrf.mxu0 }
 0x519   :  { %v8391_v35 = vadd.f32 %v8390_v2, %v6760_v51  ;;  %v14863_v2 = vld [vmem:[#allocation15 + $0x70] sm:$0xff] }
 0x51a   :  { %8944 = vmatpush.bf16.msrb.mxu3 %v13604_v8  ;;  %v14853_v8 = vld [vmem:[#allocation15 + $0x20] sm:$0xff]  ;;  %9160 = vmatpush.bf16.msrb.mxu1 %v14863_v2 }
 0x51b   :  { %9146 = vmatpush.bf16.msrb.mxu0 %v14855_v4 }
 0x51c   :  { %8985 = vmatpush.bf16.msra.mxu2 %v13552_v31 }
 0x51e   :  { %8993 = vmatpush.bf16.msra.mxu3 %v13664_v23  ;;  %v14851_v23 = vld [vmem:[#allocation15 + $0x10] sm:$0xff]  ;;  %9161 = vmatpush.bf16.msrb.mxu1 %v14862_v15 }
 0x51f   :  { %9147 = vmatpush.bf16.msrb.mxu0 %v14854_v12 }
 0x520   :  { %8986 = vmatpush.bf16.msra.mxu2 %v13544_v30  ;;  %v8392_v3 = vpop.f32.mrf.mxu0  ;;  %v13632_v30 = vor.u32 %v14839_v50, %v13629_v49  ;;  %v8460_v5 = vpop.f32.mrf.mxu1 }
 0x521   :  { %v8393_v11 = vadd.f32 %v8392_v3, %v6760_v51  ;;  %v14857_v3 = vld [vmem:[#allocation15 + $0x40] sm:$0xff] }
 0x522   :  { %8994 = vmatpush.bf16.msra.mxu3 %v13656_v14  ;;  %v14849_v14 = vld [vmem:[#allocation15] sm:$0xff] }
 0x523   :  { %v8407_v46 = vadd.f32 %v8406_v9, %v8393_v11  ;;  %9148 = vmatpush.bf16.msrb.mxu0 %v14853_v8 }
 0x524   :  { %v8376_v0 = vpop.f32.mrf.mxu3  ;;  %v8418_v31 = vpop.f32.mrf.mxu2 }
 0x525   :  { %v8377_v40 = vadd.f32 %v8376_v0, %v8363_v48  ;;  %v8405_v0 = vadd.f32 %v8404_v41, %v8391_v35  ;;  %v13605_v48 = vld [vmem:[#allocation12 + $0x188] sm:$0xf0]  ;;  %v14861_v41 = vld [vmem:[#allocation15 + $0x60] sm:$0xff] }
 0x526   :  { %8995 = vmatpush.bf16.msra.mxu3 %v13648_v60  ;;  %v13608_v57 = vor.u32 %v14833_v36, %v13605_v48  ;;  %9162 = vmatpush.bf16.msrb.mxu1 %v14861_v41  ;;  %v14859_v60 = vld [vmem:[#allocation15 + $0x50] sm:$0xff] }
 0x527   :  { %v8495_v13 = vmax.f32 %v8377_v40, 0.0  ;;  %v8419_v56 = vadd.f32 %v8418_v31, %v8405_v0  ;;  %9149 = vmatpush.bf16.msrb.mxu0 %v14852_v7 }
 0x528   :  { %v8446_v38 = vpop.f32.mrf.mxu0 }
 0x52a   :  { %8996 = vmatpush.bf16.msra.mxu3 %v13640_v19  ;;  %9163 = vmatpush.bf16.msrb.mxu1 %v14860_v62  ;;  %v8569_v19 = vld [vmem:[#allocation13] sm:$0x3] }
 0x52b   :  { %9150 = vmatpush.bf16.msrb.mxu0 %v14851_v23  ;;  %v8571_v50 = vperm.slane %v8569_v19, 0 }
 0x52c   :  { %v8378_v52 = vpop.f32.mrf.mxu3  ;;  %v8420_v44 = vpop.f32.mrf.mxu2 }
 0x52d   :  { %v8379_v42 = vadd.f32 %v8378_v52, %v8365_v39  ;;  %v8421_v10 = vadd.f32 %v8420_v44, %v8407_v46 }
 0x52e   :  { %8997 = vmatpush.bf16.msra.mxu3 %v13632_v30  ;;  %9164 = vmatpush.bf16.msrb.mxu1 %v14859_v60 }
 0x52f   :  { %v8499_v55 = vmax.f32 %v8379_v42, 0.0  ;;  %9151 = vmatpush.bf16.msrb.mxu0 %v14850_v6 }
 0x530   :  { %v8448_v59 = vpop.f32.mrf.mxu0 }
 0x531   :  { %v8503_v29 = vpack.c.bf16 %v8499_v55, %v8495_v13  ;;  %v8462_v13 = vpop.f32.mrf.mxu1 }
 0x532   :  { %8998 = vmatpush.bf16.msra.mxu3 %v13624_v26  ;;  %9165 = vmatpush.bf16.msrb.mxu1 %v14858_v43 }
 0x533   :  { %8931 = vmatmul.bf16.vlgmr.msrb.gmra.mxu2 %v8503_v29  ;;  %9152 = vmatpush.bf16.msrb.mxu0 %v14849_v14 }
 0x536   :  { %8999 = vmatpush.bf16.msra.mxu3 %v13616_v37  ;;  %9166 = vmatpush.bf16.msrb.mxu1 %v14857_v3 }
 0x53a   :  { %9000 = vmatpush.bf16.msra.mxu3 %v13608_v57 }
 0x543   :  { %8987 = vmatmul.bf16.vlgmr.msra.gmra.mxu2 %v8503_v29 }
 0x544   :  { %v8432_v63 = vpop.f32.mrf.mxu3  ;;  %v8474_v40 = vpop.f32.mrf.mxu2 }
 0x545   :  { %v8433_v1 = vadd.f32 %v8432_v63, %v8419_v56 }
 0x547   :  { %v8447_v28 = vadd.f32 %v8446_v38, %v8433_v1 }
 0x549   :  { %v8461_v42 = vadd.f32 %v8460_v5, %v8447_v28  ;;  %v8572_v5 = vperm.slane %v8569_v19, 1 }
 0x54b   :  { %v8475_v24 = vadd.f32 %v8474_v40, %v8461_v42 }
 0x54c   :  { %v8434_v27 = vpop.f32.mrf.mxu3  ;;  %v8476_v45 = vpop.f32.mrf.mxu2 }
 0x54d   :  { %v8435_v39 = vadd.f32 %v8434_v27, %v8421_v10 }
 0x54f   :  { %v8449_v52 = vadd.f32 %v8448_v59, %v8435_v39 }
 0x550   :  { %v8904_v58 = vpop.f32.mrf.mxu0 }
 0x551   :  { %v8463_v55 = vadd.f32 %v8462_v13, %v8449_v52  ;;  %v8905_v34 = vadd.f32 %v8904_v58, %v8571_v50 }
 0x553   :  { %v8477_v17 = vadd.f32 %v8476_v45, %v8463_v55 }
 0x558   :  { %v8906_v63 = vpop.f32.mrf.mxu0 }
 0x559   :  { %v8907_v53 = vadd.f32 %v8906_v63, %v8571_v50 }
 0x560   :  { %v8960_v47 = vpop.f32.mrf.mxu0 }
 0x561   :  { %v8961_v36 = vadd.f32 %v8960_v47, %v8572_v5 }
 0x564   :  { %v8488_v20 = vpop.f32.mrf.mxu3 }
 0x565   :  { %v8489_v61 = vadd.f32 %v8488_v20, %v8475_v24 }
 0x567   :  { %v8496_v16 = vmax.f32 %v8489_v61, 0.0  ;;  %v14883_v61 = vld [vmem:[#allocation16] ss:$0 sm:$0xff] }
 0x568   :  { %v8962_v10 = vpop.f32.mrf.mxu0 }
 0x569   :  { %v8963_v57 = vadd.f32 %v8962_v10, %v8572_v5 }
 0x56c   :  { %v8490_v32 = vpop.f32.mrf.mxu3 }
 0x56d   :  { %v8491_v29 = vadd.f32 %v8490_v32, %v8477_v17 }
 0x56f   :  { %v8500_v33 = vmax.f32 %v8491_v29, 0.0 }
 0x570   :  { %v8918_v31 = vpop.f32.mrf.mxu1 }
 0x571   :  { %v8504_v22 = vpack.c.bf16 %v8500_v33, %v8496_v16  ;;  %v8919_v9 = vadd.f32 %v8918_v31, %v8905_v34 }
 0x573   :  { %8945 = vmatmul.bf16.vlgmr.msrb.gmra.mxu3 %v8504_v22 }
 0x578   :  { %v8920_v49 = vpop.f32.mrf.mxu1 }
 0x579   :  { %v8921_v26 = vadd.f32 %v8920_v49, %v8907_v53 }
 0x580   :  { %v8974_v44 = vpop.f32.mrf.mxu1 }
 0x581   :  { %v8975_v39 = vadd.f32 %v8974_v44, %v8961_v36 }
 0x583   :  { %9001 = vmatmul.bf16.vlgmr.msra.gmra.mxu3 %v8504_v22 }
 0x588   :  { %v8976_v48 = vpop.f32.mrf.mxu1 }
 0x589   :  { %v8977_v28 = vadd.f32 %v8976_v48, %v8963_v57 }
 0x5b6   :  { %v8932_v21 = vpop.f32.mrf.mxu2 }
 0x5b7   :  { %v8933_v18 = vadd.f32 %v8932_v21, %v8919_v9 }
 0x5be   :  { %v8934_v51 = vpop.f32.mrf.mxu2 }
 0x5bf   :  { %v8935_v35 = vadd.f32 %v8934_v51, %v8921_v26 }
 0x5c6   :  { %v8988_v37 = vpop.f32.mrf.mxu2 }
 0x5c7   :  { %v8989_v59 = vadd.f32 %v8988_v37, %v8975_v39 }
 0x5ce   :  { %v8990_v40 = vpop.f32.mrf.mxu2 }
 0x5cf   :  { %v8991_v52 = vadd.f32 %v8990_v40, %v8977_v28 }
 0x5f6   :  { %v8946_v30 = vpop.f32.mrf.mxu3 }
 0x5f7   :  { %v8947_v38 = vadd.f32 %v8946_v30, %v8933_v18 }
 0x5f9   :  { %v9007_v46 = vmax.f32 %v8947_v38, 0.0 }
 0x5fe   :  { %v8948_v11 = vpop.f32.mrf.mxu3 }
 0x5ff   :  { %v8949_v0 = vadd.f32 %v8948_v11, %v8935_v35 }
 0x601   :  { %v9009_v56 = vmax.f32 %v8949_v0, 0.0 }
 0x603   :  { %v9011_v27 = vpack.c.bf16 %v9009_v56, %v9007_v46 }
 0x605   :  { %9153 = vmatmul.bf16.vlgmr.msrb.gmra.mxu0 %v9011_v27 }
 0x606   :  { %v9002_v1 = vpop.f32.mrf.mxu3 }
 0x607   :  { %v9003_v20 = vadd.f32 %v9002_v1, %v8989_v59 }
 0x609   :  { %v9008_v55 = vmax.f32 %v9003_v20, 0.0 }
 0x60e   :  { %v9004_v42 = vpop.f32.mrf.mxu3 }
 0x60f   :  { %v9005_v13 = vadd.f32 %v9004_v42, %v8991_v52 }
 0x611   :  { %v9010_v24 = vmax.f32 %v9005_v13, 0.0 }
 0x613   :  { %v9012_v45 = vpack.c.bf16 %v9010_v24, %v9008_v55 }
 0x615   :  { %9167 = vmatmul.bf16.vlgmr.msrb.gmra.mxu1 %v9012_v45 }
 0x682   :  { %v9154_v17 = vpop.f32.mrf.mxu0 }
 0x683   :  { %v9155_v32 = vadd.f32 %v14883_v61, %v9154_v17 }
 0x68a   :  { %v9156_v33 = vpop.f32.mrf.mxu0 }
 0x68b   :  { %v9157_v22 = vadd.f32 %v14883_v61, %v9156_v33 }
 0x692   :  { %v9168_v29 = vpop.f32.mrf.mxu1 }
 0x693   :  { %v9169_v16 = vadd.f32 %v9168_v29, %v9155_v32 }
 0x695   :  { %9173 = vst [vmem:[%s15881_s11] sm:$0xff] %v9169_v16 }
 0x69a   :  { %v9170_v25 = vpop.f32.mrf.mxu1 }
 0x69b   :  { %v9171_v4 = vadd.f32 %v9170_v25, %v9157_v22 }
 0x69d   :  { %9174 = vst [vmem:[%s15881_s11 + $0x8] sm:$0xff] %v9171_v4 }
 0x69e   :  { %9179 = vsyncpa [#allocation3], 1 }
 0x69f   :  { %9180 = vsyncpa [#allocation5], 1 }
 0x6a0   :  { %9181 = vsyncpa [#allocation8], 1 }
 0x6a1   :  { %9182 = vsyncpa [#allocation11], 1 }
 0x6a2   :  { %9183 = vsyncpa [#allocation14], 1 }
 0x6a3   :  { %9184 = vsyncpa [#allocation17], 1 }

</bundles_post_ra>
